<compile_context>
chip_gen: v7x
topology: tpu7x:2x2x1
jax: 0.10.0
libtpu: 0.0.40
codegen_flags: <defaults>
</compile_context>

<pallas_src>
import functools
import numpy as np
import jax
import jax.numpy as jnp
from jax.experimental import pallas as pl
from jax.experimental.pallas import tpu as pltpu

# ------------------------- configuration (small, deterministic) -------------
DIM = 32
NUM_BLOCKS = 2
NUM_HEADS = 4
WINDOW = 4
NOISE_DIM = 16
RES = (8, 8)          # input_resolution (H, W)
BATCH = 2
MLP_RATIO = 4
HIDDEN = MLP_RATIO * DIM
EPS = 1e-5            # nn.LayerNorm default eps
VEC_W = max(128, HIDDEN, 3 * DIM)   # lane width of the packed bias-vector operand
NUM_VEC = 9                         # packed vector rows per block


# ------------------------- static tables (numpy, module load) ---------------
def _relative_position_index(ws):
    coords = np.stack(np.meshgrid(np.arange(ws), np.arange(ws), indexing="ij"))
    coords_flat = coords.reshape(2, -1)                      # (2, N)
    rel = coords_flat[:, :, None] - coords_flat[:, None, :]  # (2, N, N)
    rel = rel.transpose(1, 2, 0).astype(np.int64)            # (N, N, 2)
    rel[:, :, 0] += ws - 1
    rel[:, :, 1] += ws - 1
    rel[:, :, 0] *= 2 * ws - 1
    return rel.sum(-1)                                       # (N, N)


REL_POS_INDEX = _relative_position_index(WINDOW)


def _static_attn_tables(shift):
    """Static tables for the full-attention formulation of (shifted) window MHSA.

    Returns rel_idx (L, L) int  -- index into the rel-pos-bias table
            mask    (L, L) f32  -- shift mask (-100) + out-of-window mask (-1e9)
    Token order is the original (un-rolled) flattened H*W order; window membership
    and in-window position are computed at the cyclically-shifted coordinates, so
    the result is exactly equivalent to roll -> window attention -> reverse roll.
    """
    H, W = RES
    ws = WINDOW
    L = H * W
    r = np.arange(L) // W
    c = np.arange(L) % W
    rr = (r - shift) % H                                   # rolled coordinates
    cc = (c - shift) % W
    win = (rr // ws) * (W // ws) + (cc // ws)              # shifted-window index
    pos = (rr % ws) * ws + (cc % ws)                       # position within window
    rel_idx = REL_POS_INDEX[pos[:, None], pos[None, :]]
    mask = np.where(win[:, None] == win[None, :], 0.0, -1e9).astype(np.float32)
    if shift > 0:
        def region(v, size):
            return np.where(v < size - ws, 0, np.where(v < size - shift, 1, 2))
        cnt = region(rr, H) * 3 + region(cc, W)
        mask = mask + np.where(cnt[:, None] == cnt[None, :],
                               0.0, -100.0).astype(np.float32)
    return rel_idx, mask


_STATIC_TABLES = {s: _static_attn_tables(s) for s in (0, WINDOW // 2)}


def _build_attn_bias(rpb_table, shift):
    """(num_heads, L, L) additive attention bias: rel-pos bias + window/shift mask."""
    rel_idx, mask = _STATIC_TABLES[shift]
    L = rel_idx.shape[0]
    bias = rpb_table[jnp.asarray(rel_idx.reshape(-1))]       # (L*L, nH)
    bias = bias.reshape(L, L, NUM_HEADS)
    bias = jnp.transpose(bias, (2, 0, 1))                    # (nH, L, L)
    return bias + jnp.asarray(mask)[None, :, :]


def _full_spec(a):
    nd = a.ndim
    return pl.BlockSpec(a.shape, lambda i, _nd=nd: (0,) * _nd)


# ------------------------- Pallas kernel: fused BasicBlock ------------------
def _basic_block_kernel(x_ref, noise_ref, bias_ref, qkvw_ref, projw_ref,
                        fc1w_ref, fc2w_ref, nzw_ref, vec_ref, o_ref,
                        *, num_blocks, num_heads):
    f32 = jnp.float32
    bf16 = jnp.bfloat16
    B, L, C = x_ref.shape
    D = C // num_heads

    x = x_ref[...].astype(f32).reshape(B * L, C)              # (B*L, C)
    noise = noise_ref[...].astype(bf16)                       # (B, noise_dim)

    for blk in range(num_blocks):                             # static unroll (2)
        vec = vec_ref[blk]                                    # (NUM_VEC, VEC_W) f32
        ln1g, ln1b = vec[0:1, :C], vec[1:2, :C]
        qkvb = vec[2:3, :3 * C]                               # q part pre-scaled
        projb = vec[3:4, :C]
        ln2g, ln2b = vec[4:5, :C], vec[5:6, :C]
        fc1b = vec[6:7, :]                                    # (1, HIDDEN)
        fc2b = vec[7:8, :C]
        nzb = vec[8:9, :C]
        bias_b = bias_ref[blk]                                # (nH, L, L) f32

        # ---- LayerNorm 1 (f32) ----
        mu = jnp.mean(x, axis=-1, keepdims=True)
        var = jnp.mean(jnp.square(x - mu), axis=-1, keepdims=True)
        xn = (x - mu) * jax.lax.rsqrt(var + EPS) * ln1g + ln1b

        # ---- fused QKV: ONE (C -> 3C) matmul, q columns pre-scaled ----
        qkv = jnp.dot(xn.astype(bf16), qkvw_ref[blk],
                      preferred_element_type=f32) + qkvb      # (B*L, 3C) f32

        # ---- windowed MHSA: biased full attention, B-batched per head ----
        heads = []
        for h in range(num_heads):                            # static unroll (4)
            qh = qkv[:, h * D:(h + 1) * D].astype(bf16).reshape(B, L, D)
            kh = qkv[:, C + h * D:C + (h + 1) * D].astype(bf16).reshape(B, L, D)
            vh = qkv[:, 2 * C + h * D:2 * C + (h + 1) * D].astype(bf16).reshape(B, L, D)
            s = jnp.einsum('bqd,bkd->bqk', qh, kh,
                           preferred_element_type=f32) + bias_b[h]
            # manual softmax: exp on EUP, divide via approx reciprocal (EUP slot)
            m = jnp.max(s, axis=-1, keepdims=True)
            e = jnp.exp(s - m)
            p = e * pl.reciprocal(jnp.sum(e, axis=-1, keepdims=True), approx=True)
            oh = jnp.einsum('bqk,bkd->bqd', p.astype(bf16), vh,
                            preferred_element_type=f32)       # (B, L, D)
            heads.append(oh.reshape(B * L, D))
        attn = jnp.concatenate(heads, axis=-1)                # (B*L, C) f32
        attn = jnp.dot(attn.astype(bf16), projw_ref[blk],
                       preferred_element_type=f32) + projb
        x = x + attn                                          # residual 1

        # ---- noise conditioning (in-kernel tiny matmul, broadcast over tokens) ----
        # TODO(synk): exact noise-conditioning form of swinu-crps SwinTransformerBlock
        # is not in the provided source; assuming x = x + Linear(noise_dim->dim)(noise)
        # broadcast over tokens before the LN2/MLP branch.
        nz = jnp.dot(noise, nzw_ref[blk], preferred_element_type=f32) + nzb  # (B, C)
        x = (x.reshape(B, L, C) + nz[:, None, :]).reshape(B * L, C)

        # ---- LayerNorm 2 + MLP + residual ----
        mu2 = jnp.mean(x, axis=-1, keepdims=True)
        var2 = jnp.mean(jnp.square(x - mu2), axis=-1, keepdims=True)
        xn2 = (x - mu2) * jax.lax.rsqrt(var2 + EPS) * ln2g + ln2b
        h1 = jnp.dot(xn2.astype(bf16), fc1w_ref[blk],
                     preferred_element_type=f32) + fc1b
        # TODO(synk): PyTorch nn.GELU defaults to exact erf; tanh approximation used
        # for Mosaic-safe lowering.
        h1 = jax.nn.gelu(h1, approximate=True)
        h2 = jnp.dot(h1.astype(bf16), fc2w_ref[blk],
                     preferred_element_type=f32) + fc2b
        x = x + h2

    o_ref[...] = x.reshape(B, L, C).astype(o_ref.dtype)


# ------------------------- one-time parameter preparation -------------------
def prepare_params(params_list):
    """Hoisted per-parameter-set preprocessing (NOT in the per-forward path):
    attention-bias tables, D**-0.5 scale folding, bf16 weight casts, packing."""
    f32, bf16 = jnp.float32, jnp.bfloat16
    C = DIM
    D = C // NUM_HEADS
    scale = D ** -0.5

    def row(v):
        v = jnp.reshape(v, (-1,)).astype(f32)
        return jnp.pad(v, (0, VEC_W - v.shape[0]))

    biases, qkvws, projws, fc1ws, fc2ws, nzws, vecs = [], [], [], [], [], [], []
    for i, p in enumerate(params_list):
        shift = 0 if i % 2 == 0 else WINDOW // 2
        biases.append(_build_attn_bias(p["rpb_table"], shift))     # (nH, L, L)

        qkv_w = p["qkv_w"].astype(f32).at[:, :C].multiply(scale)   # fold q scale
        qkv_b = p["qkv_b"].reshape(-1).astype(f32).at[:C].multiply(scale)
        qkvws.append(qkv_w.astype(bf16))
        projws.append(p["proj_w"].astype(bf16))
        fc1ws.append(p["fc1_w"].astype(bf16))
        fc2ws.append(p["fc2_w"].astype(bf16))
        nzws.append(p["noise_w"].astype(bf16))
        vecs.append(jnp.stack([row(p["ln1_g"]), row(p["ln1_b"]), row(qkv_b),
                               row(p["proj_b"]), row(p["ln2_g"]), row(p["ln2_b"]),
                               row(p["fc1_b"]), row(p["fc2_b"]), row(p["noise_b"])]))
    return dict(bias=jnp.stack(biases),       # (NB, nH, L, L) f32
                qkvw=jnp.stack(qkvws),        # (NB, C, 3C)    bf16
                projw=jnp.stack(projws),      # (NB, C, C)     bf16
                fc1w=jnp.stack(fc1ws),        # (NB, C, HID)   bf16
                fc2w=jnp.stack(fc2ws),        # (NB, HID, C)   bf16
                nzw=jnp.stack(nzws),          # (NB, ND, C)    bf16
                vecs=jnp.stack(vecs))         # (NB, 9, 128)   f32


# ------------------------- BasicBlock forward (single pallas_call) ----------
def basic_block_forward(x, noise_emb, pk):
    B, L, C = x.shape
    args = (x, noise_emb, pk["bias"], pk["qkvw"], pk["projw"],
            pk["fc1w"], pk["fc2w"], pk["nzw"], pk["vecs"])
    kernel = functools.partial(_basic_block_kernel,
                               num_blocks=NUM_BLOCKS, num_heads=NUM_HEADS)
    return pl.pallas_call(
        kernel,
        out_shape=jax.ShapeDtypeStruct((B, L, C), x.dtype),
        grid=(1,),                                   # single step: batch folded into rows
        in_specs=[_full_spec(a) for a in args],
        out_specs=pl.BlockSpec((B, L, C), lambda i: (0, 0, 0)),
        compiler_params=pltpu.CompilerParams(dimension_semantics=("arbitrary",)),
    )(*args)


# ------------------------- deterministic parameter init ---------------------
def init_block_params(key):
    ks = jax.random.split(key, 6)
    std = 0.02
    f32 = jnp.float32
    return dict(
        ln1_g=jnp.ones((1, DIM), f32), ln1_b=jnp.zeros((1, DIM), f32),
        qkv_w=std * jax.random.normal(ks[0], (DIM, 3 * DIM), f32),
        qkv_b=jnp.zeros((1, 3 * DIM), f32),
        proj_w=std * jax.random.normal(ks[1], (DIM, DIM), f32),
        proj_b=jnp.zeros((1, DIM), f32),
        rpb_table=std * jax.random.normal(ks[2], ((2 * WINDOW - 1) ** 2, NUM_HEADS), f32),
        ln2_g=jnp.ones((1, DIM), f32), ln2_b=jnp.zeros((1, DIM), f32),
        fc1_w=std * jax.random.normal(ks[3], (DIM, HIDDEN), f32),
        fc1_b=jnp.zeros((1, HIDDEN), f32),
        fc2_w=std * jax.random.normal(ks[4], (HIDDEN, DIM), f32),
        fc2_b=jnp.zeros((1, DIM), f32),
        noise_w=std * jax.random.normal(ks[5], (NOISE_DIM, DIM), f32),
        noise_b=jnp.zeros((1, DIM), f32),
    )


# ------------------------- main ----------------------------------------------
if __name__ == "__main__":
    key = jax.random.PRNGKey(0)
    kx, kn, kp = jax.random.split(key, 3)
    H, W = RES
    x = jax.random.normal(kx, (BATCH, H * W, DIM), jnp.float32)
    noise_embedding = jax.random.normal(kn, (BATCH, NOISE_DIM), jnp.float32)
    params = [init_block_params(k) for k in jax.random.split(kp, NUM_BLOCKS)]

    packed = prepare_params(params)          # one-time prep, outside the forward path
    fwd = jax.jit(basic_block_forward)
    out = jax.block_until_ready(fwd(x, noise_embedding, packed))

    assert out.shape == x.shape and out.dtype == x.dtype
    assert bool(jnp.all(jnp.isfinite(out)))
    print("KERNEL_OK")
</pallas_src>

<mosaic_0001>
module attributes {stable_mosaic.version = 11 : i64} {
  func.func @_basic_block_kernel(%arg0: i32, %arg1: memref<2x64x32xf32, #tpu.memory_space<vmem>>, %arg2: memref<2x16xf32, #tpu.memory_space<vmem>>, %arg3: memref<2x4x64x64xf32, #tpu.memory_space<vmem>>, %arg4: memref<2x32x96xbf16, #tpu.memory_space<vmem>>, %arg5: memref<2x32x32xbf16, #tpu.memory_space<vmem>>, %arg6: memref<2x32x128xbf16, #tpu.memory_space<vmem>>, %arg7: memref<2x128x32xbf16, #tpu.memory_space<vmem>>, %arg8: memref<2x16x32xbf16, #tpu.memory_space<vmem>>, %arg9: memref<2x9x128xf32, #tpu.memory_space<vmem>>, %arg10: memref<2x64x32xf32, #tpu.memory_space<vmem>>) attributes {dimension_semantics = [#tpu.dimension_semantics<arbitrary>], iteration_bounds = array<i64: 1>, scalar_prefetch = 0 : i64, scratch_operands = 0 : i64, tpu.core_type = #tpu.core_type<tc>, window_params = [{pipeline_mode = #tpu.pipeline_mode<synchronous>, transform_indices = @transform_0, window_bounds = array<i64: 2, 64, 32>}, {pipeline_mode = #tpu.pipeline_mode<synchronous>, transform_indices = @transform_1, window_bounds = array<i64: 2, 16>}, {pipeline_mode = #tpu.pipeline_mode<synchronous>, transform_indices = @transform_2, window_bounds = array<i64: 2, 4, 64, 64>}, {pipeline_mode = #tpu.pipeline_mode<synchronous>, transform_indices = @transform_3, window_bounds = array<i64: 2, 32, 96>}, {pipeline_mode = #tpu.pipeline_mode<synchronous>, transform_indices = @transform_4, window_bounds = array<i64: 2, 32, 32>}, {pipeline_mode = #tpu.pipeline_mode<synchronous>, transform_indices = @transform_5, window_bounds = array<i64: 2, 32, 128>}, {pipeline_mode = #tpu.pipeline_mode<synchronous>, transform_indices = @transform_6, window_bounds = array<i64: 2, 128, 32>}, {pipeline_mode = #tpu.pipeline_mode<synchronous>, transform_indices = @transform_7, window_bounds = array<i64: 2, 16, 32>}, {pipeline_mode = #tpu.pipeline_mode<synchronous>, transform_indices = @transform_8, window_bounds = array<i64: 2, 9, 128>}, {pipeline_mode = #tpu.pipeline_mode<synchronous>, transform_indices = @transform_9, window_bounds = array<i64: 2, 64, 32>}]} {
    %c0 = arith.constant 0 : index
    %c0_0 = arith.constant 0 : index
    %c0_1 = arith.constant 0 : index
    %0 = vector.load %arg1[%c0, %c0_0, %c0_1] : memref<2x64x32xf32, #tpu.memory_space<vmem>>, vector<2x64x32xf32>
    %1 = vector.shape_cast %0 : vector<2x64x32xf32> to vector<128x32xf32>
    %c0_2 = arith.constant 0 : index
    %c0_3 = arith.constant 0 : index
    %2 = vector.load %arg2[%c0_2, %c0_3] : memref<2x16xf32, #tpu.memory_space<vmem>>, vector<2x16xf32>
    %3 = arith.truncf %2 : vector<2x16xf32> to vector<2x16xbf16>
    %c0_4 = arith.constant 0 : index
    %c0_5 = arith.constant 0 : index
    %c0_6 = arith.constant 0 : index
    %4 = vector.load %arg9[%c0_4, %c0_5, %c0_6] : memref<2x9x128xf32, #tpu.memory_space<vmem>>, vector<1x9x128xf32>
    %5 = vector.shape_cast %4 : vector<1x9x128xf32> to vector<9x128xf32>
    %6 = vector.extract_strided_slice %5 {offsets = [0, 0], sizes = [1, 32], strides = [1, 1]} : vector<9x128xf32> to vector<1x32xf32>
    %7 = vector.extract_strided_slice %5 {offsets = [1, 0], sizes = [1, 32], strides = [1, 1]} : vector<9x128xf32> to vector<1x32xf32>
    %8 = vector.extract_strided_slice %5 {offsets = [2, 0], sizes = [1, 96], strides = [1, 1]} : vector<9x128xf32> to vector<1x96xf32>
    %9 = vector.extract_strided_slice %5 {offsets = [3, 0], sizes = [1, 32], strides = [1, 1]} : vector<9x128xf32> to vector<1x32xf32>
    %10 = vector.extract_strided_slice %5 {offsets = [4, 0], sizes = [1, 32], strides = [1, 1]} : vector<9x128xf32> to vector<1x32xf32>
    %11 = vector.extract_strided_slice %5 {offsets = [5, 0], sizes = [1, 32], strides = [1, 1]} : vector<9x128xf32> to vector<1x32xf32>
    %12 = vector.extract_strided_slice %5 {offsets = [6, 0], sizes = [1, 128], strides = [1, 1]} : vector<9x128xf32> to vector<1x128xf32>
    %13 = vector.extract_strided_slice %5 {offsets = [7, 0], sizes = [1, 32], strides = [1, 1]} : vector<9x128xf32> to vector<1x32xf32>
    %14 = vector.extract_strided_slice %5 {offsets = [8, 0], sizes = [1, 32], strides = [1, 1]} : vector<9x128xf32> to vector<1x32xf32>
    %c0_7 = arith.constant 0 : index
    %c0_8 = arith.constant 0 : index
    %c0_9 = arith.constant 0 : index
    %c0_10 = arith.constant 0 : index
    %15 = vector.load %arg3[%c0_7, %c0_8, %c0_9, %c0_10] : memref<2x4x64x64xf32, #tpu.memory_space<vmem>>, vector<1x4x64x64xf32>
    %16 = vector.shape_cast %15 : vector<1x4x64x64xf32> to vector<4x64x64xf32>
    %cst = arith.constant dense<0.000000e+00> : vector<128xf32>
    %17 = vector.multi_reduction <add>, %1, %cst [1] : vector<128x32xf32> to vector<128xf32>
    %18 = vector.shape_cast %17 : vector<128xf32> to vector<128x1xf32>
    %cst_11 = arith.constant 3.200000e+01 : f32
    %19 = vector.broadcast %cst_11 : f32 to vector<128x1xf32>
    %20 = arith.divf %18, %19 : vector<128x1xf32>
    %21 = vector.broadcast %20 : vector<128x1xf32> to vector<128x32xf32>
    %22 = arith.subf %1, %21 : vector<128x32xf32>
    %23 = arith.mulf %22, %22 : vector<128x32xf32>
    %cst_12 = arith.constant dense<0.000000e+00> : vector<128xf32>
    %24 = vector.multi_reduction <add>, %23, %cst_12 [1] : vector<128x32xf32> to vector<128xf32>
    %25 = vector.shape_cast %24 : vector<128xf32> to vector<128x1xf32>
    %cst_13 = arith.constant 3.200000e+01 : f32
    %26 = vector.broadcast %cst_13 : f32 to vector<128x1xf32>
    %27 = arith.divf %25, %26 : vector<128x1xf32>
    %28 = vector.broadcast %20 : vector<128x1xf32> to vector<128x32xf32>
    %29 = arith.subf %1, %28 : vector<128x32xf32>
    %cst_14 = arith.constant 9.99999974E-6 : f32
    %30 = vector.broadcast %cst_14 : f32 to vector<128x1xf32>
    %31 = arith.addf %27, %30 : vector<128x1xf32>
    %32 = math.rsqrt %31 : vector<128x1xf32>
    %33 = vector.broadcast %32 : vector<128x1xf32> to vector<128x32xf32>
    %34 = arith.mulf %29, %33 : vector<128x32xf32>
    %35 = vector.broadcast %6 : vector<1x32xf32> to vector<128x32xf32>
    %36 = arith.mulf %34, %35 : vector<128x32xf32>
    %37 = vector.broadcast %7 : vector<1x32xf32> to vector<128x32xf32>
    %38 = arith.addf %36, %37 : vector<128x32xf32>
    %39 = arith.truncf %38 : vector<128x32xf32> to vector<128x32xbf16>
    %c0_15 = arith.constant 0 : index
    %c0_16 = arith.constant 0 : index
    %c0_17 = arith.constant 0 : index
    %40 = vector.load %arg4[%c0_15, %c0_16, %c0_17] : memref<2x32x96xbf16, #tpu.memory_space<vmem>>, vector<1x32x96xbf16>
    %41 = vector.shape_cast %40 : vector<1x32x96xbf16> to vector<32x96xbf16>
    %cst_18 = arith.constant dense<0.000000e+00> : vector<128x96xf32>
    %42 = tpu.matmul %39, %41, %cst_18 {dimension_numbers = #tpu.dot_dimension_numbers<[1], [0], [0], [1], [0, 0, 1, 1], [], []>} : vector<128x32xbf16>, vector<32x96xbf16>, vector<128x96xf32> -> vector<128x96xf32>
    %43 = vector.broadcast %8 : vector<1x96xf32> to vector<128x96xf32>
    %44 = arith.addf %42, %43 : vector<128x96xf32>
    %45 = vector.extract_strided_slice %44 {offsets = [0, 0], sizes = [128, 8], strides = [1, 1]} : vector<128x96xf32> to vector<128x8xf32>
    %46 = arith.truncf %45 : vector<128x8xf32> to vector<128x8xbf16>
    %47 = vector.shape_cast %46 : vector<128x8xbf16> to vector<2x64x8xbf16>
    %48 = vector.extract_strided_slice %44 {offsets = [0, 32], sizes = [128, 8], strides = [1, 1]} : vector<128x96xf32> to vector<128x8xf32>
    %49 = arith.truncf %48 : vector<128x8xf32> to vector<128x8xbf16>
    %50 = vector.shape_cast %49 : vector<128x8xbf16> to vector<2x64x8xbf16>
    %51 = vector.extract_strided_slice %44 {offsets = [0, 64], sizes = [128, 8], strides = [1, 1]} : vector<128x96xf32> to vector<128x8xf32>
    %52 = arith.truncf %51 : vector<128x8xf32> to vector<128x8xbf16>
    %53 = vector.shape_cast %52 : vector<128x8xbf16> to vector<2x64x8xbf16>
    "tpu.trace_start"() <{level = 10 : i32, message = "bqd,bkd->bqk"}> : () -> ()
    %cst_19 = arith.constant dense<0.000000e+00> : vector<2x64x64xf32>
    %54 = tpu.matmul %47, %50, %cst_19 {dimension_numbers = #tpu.dot_dimension_numbers<[2], [2], [1], [1], [0, 0, 0, 1, 1, 1], [0], [0]>} : vector<2x64x8xbf16>, vector<2x64x8xbf16>, vector<2x64x64xf32> -> vector<2x64x64xf32>
    "tpu.trace_stop"() : () -> ()
    %55 = vector.extract_strided_slice %16 {offsets = [0, 0, 0], sizes = [1, 64, 64], strides = [1, 1, 1]} : vector<4x64x64xf32> to vector<1x64x64xf32>
    %56 = vector.shape_cast %55 : vector<1x64x64xf32> to vector<64x64xf32>
    %57 = vector.shape_cast %56 : vector<64x64xf32> to vector<1x64x64xf32>
    %58 = vector.broadcast %57 : vector<1x64x64xf32> to vector<2x64x64xf32>
    %59 = arith.addf %54, %58 : vector<2x64x64xf32>
    %cst_20 = arith.constant dense<0xFF800000> : vector<2x64xf32>
    %60 = vector.multi_reduction <maximumf>, %59, %cst_20 [2] : vector<2x64x64xf32> to vector<2x64xf32>
    %61 = vector.shape_cast %60 : vector<2x64xf32> to vector<2x64x1xf32>
    %62 = vector.broadcast %61 : vector<2x64x1xf32> to vector<2x64x64xf32>
    %63 = arith.subf %59, %62 : vector<2x64x64xf32>
    %64 = math.exp %63 : vector<2x64x64xf32>
    %cst_21 = arith.constant dense<0.000000e+00> : vector<2x64xf32>
    %65 = vector.multi_reduction <add>, %64, %cst_21 [2] : vector<2x64x64xf32> to vector<2x64xf32>
    %66 = vector.shape_cast %65 : vector<2x64xf32> to vector<2x64x1xf32>
    %67 = tpu.reciprocal %66 {approx = true} : vector<2x64x1xf32> -> vector<2x64x1xf32>
    %68 = vector.broadcast %67 : vector<2x64x1xf32> to vector<2x64x64xf32>
    %69 = arith.mulf %64, %68 : vector<2x64x64xf32>
    %70 = arith.truncf %69 : vector<2x64x64xf32> to vector<2x64x64xbf16>
    "tpu.trace_start"() <{level = 10 : i32, message = "bqk,bkd->bqd"}> : () -> ()
    %cst_22 = arith.constant dense<0.000000e+00> : vector<2x64x8xf32>
    %71 = tpu.matmul %70, %53, %cst_22 {dimension_numbers = #tpu.dot_dimension_numbers<[2], [1], [1], [2], [0, 0, 0, 1, 1, 2], [0], [0]>} : vector<2x64x64xbf16>, vector<2x64x8xbf16>, vector<2x64x8xf32> -> vector<2x64x8xf32>
    "tpu.trace_stop"() : () -> ()
    %72 = vector.shape_cast %71 : vector<2x64x8xf32> to vector<128x8xf32>
    %73 = vector.extract_strided_slice %44 {offsets = [0, 8], sizes = [128, 8], strides = [1, 1]} : vector<128x96xf32> to vector<128x8xf32>
    %74 = arith.truncf %73 : vector<128x8xf32> to vector<128x8xbf16>
    %75 = vector.shape_cast %74 : vector<128x8xbf16> to vector<2x64x8xbf16>
    %76 = vector.extract_strided_slice %44 {offsets = [0, 40], sizes = [128, 8], strides = [1, 1]} : vector<128x96xf32> to vector<128x8xf32>
    %77 = arith.truncf %76 : vector<128x8xf32> to vector<128x8xbf16>
    %78 = vector.shape_cast %77 : vector<128x8xbf16> to vector<2x64x8xbf16>
    %79 = vector.extract_strided_slice %44 {offsets = [0, 72], sizes = [128, 8], strides = [1, 1]} : vector<128x96xf32> to vector<128x8xf32>
    %80 = arith.truncf %79 : vector<128x8xf32> to vector<128x8xbf16>
    %81 = vector.shape_cast %80 : vector<128x8xbf16> to vector<2x64x8xbf16>
    "tpu.trace_start"() <{level = 10 : i32, message = "bqd,bkd->bqk"}> : () -> ()
    %cst_23 = arith.constant dense<0.000000e+00> : vector<2x64x64xf32>
    %82 = tpu.matmul %75, %78, %cst_23 {dimension_numbers = #tpu.dot_dimension_numbers<[2], [2], [1], [1], [0, 0, 0, 1, 1, 1], [0], [0]>} : vector<2x64x8xbf16>, vector<2x64x8xbf16>, vector<2x64x64xf32> -> vector<2x64x64xf32>
    "tpu.trace_stop"() : () -> ()
    %83 = vector.extract_strided_slice %16 {offsets = [1, 0, 0], sizes = [1, 64, 64], strides = [1, 1, 1]} : vector<4x64x64xf32> to vector<1x64x64xf32>
    %84 = vector.shape_cast %83 : vector<1x64x64xf32> to vector<64x64xf32>
    %85 = vector.shape_cast %84 : vector<64x64xf32> to vector<1x64x64xf32>
    %86 = vector.broadcast %85 : vector<1x64x64xf32> to vector<2x64x64xf32>
    %87 = arith.addf %82, %86 : vector<2x64x64xf32>
    %cst_24 = arith.constant dense<0xFF800000> : vector<2x64xf32>
    %88 = vector.multi_reduction <maximumf>, %87, %cst_24 [2] : vector<2x64x64xf32> to vector<2x64xf32>
    %89 = vector.shape_cast %88 : vector<2x64xf32> to vector<2x64x1xf32>
    %90 = vector.broadcast %89 : vector<2x64x1xf32> to vector<2x64x64xf32>
    %91 = arith.subf %87, %90 : vector<2x64x64xf32>
    %92 = math.exp %91 : vector<2x64x64xf32>
    %cst_25 = arith.constant dense<0.000000e+00> : vector<2x64xf32>
    %93 = vector.multi_reduction <add>, %92, %cst_25 [2] : vector<2x64x64xf32> to vector<2x64xf32>
    %94 = vector.shape_cast %93 : vector<2x64xf32> to vector<2x64x1xf32>
    %95 = tpu.reciprocal %94 {approx = true} : vector<2x64x1xf32> -> vector<2x64x1xf32>
    %96 = vector.broadcast %95 : vector<2x64x1xf32> to vector<2x64x64xf32>
    %97 = arith.mulf %92, %96 : vector<2x64x64xf32>
    %98 = arith.truncf %97 : vector<2x64x64xf32> to vector<2x64x64xbf16>
    "tpu.trace_start"() <{level = 10 : i32, message = "bqk,bkd->bqd"}> : () -> ()
    %cst_26 = arith.constant dense<0.000000e+00> : vector<2x64x8xf32>
    %99 = tpu.matmul %98, %81, %cst_26 {dimension_numbers = #tpu.dot_dimension_numbers<[2], [1], [1], [2], [0, 0, 0, 1, 1, 2], [0], [0]>} : vector<2x64x64xbf16>, vector<2x64x8xbf16>, vector<2x64x8xf32> -> vector<2x64x8xf32>
    "tpu.trace_stop"() : () -> ()
    %100 = vector.shape_cast %99 : vector<2x64x8xf32> to vector<128x8xf32>
    %101 = vector.extract_strided_slice %44 {offsets = [0, 16], sizes = [128, 8], strides = [1, 1]} : vector<128x96xf32> to vector<128x8xf32>
    %102 = arith.truncf %101 : vector<128x8xf32> to vector<128x8xbf16>
    %103 = vector.shape_cast %102 : vector<128x8xbf16> to vector<2x64x8xbf16>
    %104 = vector.extract_strided_slice %44 {offsets = [0, 48], sizes = [128, 8], strides = [1, 1]} : vector<128x96xf32> to vector<128x8xf32>
    %105 = arith.truncf %104 : vector<128x8xf32> to vector<128x8xbf16>
    %106 = vector.shape_cast %105 : vector<128x8xbf16> to vector<2x64x8xbf16>
    %107 = vector.extract_strided_slice %44 {offsets = [0, 80], sizes = [128, 8], strides = [1, 1]} : vector<128x96xf32> to vector<128x8xf32>
    %108 = arith.truncf %107 : vector<128x8xf32> to vector<128x8xbf16>
    %109 = vector.shape_cast %108 : vector<128x8xbf16> to vector<2x64x8xbf16>
    "tpu.trace_start"() <{level = 10 : i32, message = "bqd,bkd->bqk"}> : () -> ()
    %cst_27 = arith.constant dense<0.000000e+00> : vector<2x64x64xf32>
    %110 = tpu.matmul %103, %106, %cst_27 {dimension_numbers = #tpu.dot_dimension_numbers<[2], [2], [1], [1], [0, 0, 0, 1, 1, 1], [0], [0]>} : vector<2x64x8xbf16>, vector<2x64x8xbf16>, vector<2x64x64xf32> -> vector<2x64x64xf32>
    "tpu.trace_stop"() : () -> ()
    %111 = vector.extract_strided_slice %16 {offsets = [2, 0, 0], sizes = [1, 64, 64], strides = [1, 1, 1]} : vector<4x64x64xf32> to vector<1x64x64xf32>
    %112 = vector.shape_cast %111 : vector<1x64x64xf32> to vector<64x64xf32>
    %113 = vector.shape_cast %112 : vector<64x64xf32> to vector<1x64x64xf32>
    %114 = vector.broadcast %113 : vector<1x64x64xf32> to vector<2x64x64xf32>
    %115 = arith.addf %110, %114 : vector<2x64x64xf32>
    %cst_28 = arith.constant dense<0xFF800000> : vector<2x64xf32>
    %116 = vector.multi_reduction <maximumf>, %115, %cst_28 [2] : vector<2x64x64xf32> to vector<2x64xf32>
    %117 = vector.shape_cast %116 : vector<2x64xf32> to vector<2x64x1xf32>
    %118 = vector.broadcast %117 : vector<2x64x1xf32> to vector<2x64x64xf32>
    %119 = arith.subf %115, %118 : vector<2x64x64xf32>
    %120 = math.exp %119 : vector<2x64x64xf32>
    %cst_29 = arith.constant dense<0.000000e+00> : vector<2x64xf32>
    %121 = vector.multi_reduction <add>, %120, %cst_29 [2] : vector<2x64x64xf32> to vector<2x64xf32>
    %122 = vector.shape_cast %121 : vector<2x64xf32> to vector<2x64x1xf32>
    %123 = tpu.reciprocal %122 {approx = true} : vector<2x64x1xf32> -> vector<2x64x1xf32>
    %124 = vector.broadcast %123 : vector<2x64x1xf32> to vector<2x64x64xf32>
    %125 = arith.mulf %120, %124 : vector<2x64x64xf32>
    %126 = arith.truncf %125 : vector<2x64x64xf32> to vector<2x64x64xbf16>
    "tpu.trace_start"() <{level = 10 : i32, message = "bqk,bkd->bqd"}> : () -> ()
    %cst_30 = arith.constant dense<0.000000e+00> : vector<2x64x8xf32>
    %127 = tpu.matmul %126, %109, %cst_30 {dimension_numbers = #tpu.dot_dimension_numbers<[2], [1], [1], [2], [0, 0, 0, 1, 1, 2], [0], [0]>} : vector<2x64x64xbf16>, vector<2x64x8xbf16>, vector<2x64x8xf32> -> vector<2x64x8xf32>
    "tpu.trace_stop"() : () -> ()
    %128 = vector.shape_cast %127 : vector<2x64x8xf32> to vector<128x8xf32>
    %129 = vector.extract_strided_slice %44 {offsets = [0, 24], sizes = [128, 8], strides = [1, 1]} : vector<128x96xf32> to vector<128x8xf32>
    %130 = arith.truncf %129 : vector<128x8xf32> to vector<128x8xbf16>
    %131 = vector.shape_cast %130 : vector<128x8xbf16> to vector<2x64x8xbf16>
    %132 = vector.extract_strided_slice %44 {offsets = [0, 56], sizes = [128, 8], strides = [1, 1]} : vector<128x96xf32> to vector<128x8xf32>
    %133 = arith.truncf %132 : vector<128x8xf32> to vector<128x8xbf16>
    %134 = vector.shape_cast %133 : vector<128x8xbf16> to vector<2x64x8xbf16>
    %135 = vector.extract_strided_slice %44 {offsets = [0, 88], sizes = [128, 8], strides = [1, 1]} : vector<128x96xf32> to vector<128x8xf32>
    %136 = arith.truncf %135 : vector<128x8xf32> to vector<128x8xbf16>
    %137 = vector.shape_cast %136 : vector<128x8xbf16> to vector<2x64x8xbf16>
    "tpu.trace_start"() <{level = 10 : i32, message = "bqd,bkd->bqk"}> : () -> ()
    %cst_31 = arith.constant dense<0.000000e+00> : vector<2x64x64xf32>
    %138 = tpu.matmul %131, %134, %cst_31 {dimension_numbers = #tpu.dot_dimension_numbers<[2], [2], [1], [1], [0, 0, 0, 1, 1, 1], [0], [0]>} : vector<2x64x8xbf16>, vector<2x64x8xbf16>, vector<2x64x64xf32> -> vector<2x64x64xf32>
    "tpu.trace_stop"() : () -> ()
    %139 = vector.extract_strided_slice %16 {offsets = [3, 0, 0], sizes = [1, 64, 64], strides = [1, 1, 1]} : vector<4x64x64xf32> to vector<1x64x64xf32>
    %140 = vector.shape_cast %139 : vector<1x64x64xf32> to vector<64x64xf32>
    %141 = vector.shape_cast %140 : vector<64x64xf32> to vector<1x64x64xf32>
    %142 = vector.broadcast %141 : vector<1x64x64xf32> to vector<2x64x64xf32>
    %143 = arith.addf %138, %142 : vector<2x64x64xf32>
    %cst_32 = arith.constant dense<0xFF800000> : vector<2x64xf32>
    %144 = vector.multi_reduction <maximumf>, %143, %cst_32 [2] : vector<2x64x64xf32> to vector<2x64xf32>
    %145 = vector.shape_cast %144 : vector<2x64xf32> to vector<2x64x1xf32>
    %146 = vector.broadcast %145 : vector<2x64x1xf32> to vector<2x64x64xf32>
    %147 = arith.subf %143, %146 : vector<2x64x64xf32>
    %148 = math.exp %147 : vector<2x64x64xf32>
    %cst_33 = arith.constant dense<0.000000e+00> : vector<2x64xf32>
    %149 = vector.multi_reduction <add>, %148, %cst_33 [2] : vector<2x64x64xf32> to vector<2x64xf32>
    %150 = vector.shape_cast %149 : vector<2x64xf32> to vector<2x64x1xf32>
    %151 = tpu.reciprocal %150 {approx = true} : vector<2x64x1xf32> -> vector<2x64x1xf32>
    %152 = vector.broadcast %151 : vector<2x64x1xf32> to vector<2x64x64xf32>
    %153 = arith.mulf %148, %152 : vector<2x64x64xf32>
    %154 = arith.truncf %153 : vector<2x64x64xf32> to vector<2x64x64xbf16>
    "tpu.trace_start"() <{level = 10 : i32, message = "bqk,bkd->bqd"}> : () -> ()
    %cst_34 = arith.constant dense<0.000000e+00> : vector<2x64x8xf32>
    %155 = tpu.matmul %154, %137, %cst_34 {dimension_numbers = #tpu.dot_dimension_numbers<[2], [1], [1], [2], [0, 0, 0, 1, 1, 2], [0], [0]>} : vector<2x64x64xbf16>, vector<2x64x8xbf16>, vector<2x64x8xf32> -> vector<2x64x8xf32>
    "tpu.trace_stop"() : () -> ()
    %156 = vector.shape_cast %155 : vector<2x64x8xf32> to vector<128x8xf32>
    %157 = tpu.concatenate %72, %100, %128, %156 in 1 : vector<128x8xf32>, vector<128x8xf32>, vector<128x8xf32>, vector<128x8xf32> -> vector<128x32xf32>
    %158 = arith.truncf %157 : vector<128x32xf32> to vector<128x32xbf16>
    %c0_35 = arith.constant 0 : index
    %c0_36 = arith.constant 0 : index
    %c0_37 = arith.constant 0 : index
    %159 = vector.load %arg5[%c0_35, %c0_36, %c0_37] : memref<2x32x32xbf16, #tpu.memory_space<vmem>>, vector<1x32x32xbf16>
    %160 = vector.shape_cast %159 : vector<1x32x32xbf16> to vector<32x32xbf16>
    %cst_38 = arith.constant dense<0.000000e+00> : vector<128x32xf32>
    %161 = tpu.matmul %158, %160, %cst_38 {dimension_numbers = #tpu.dot_dimension_numbers<[1], [0], [0], [1], [0, 0, 1, 1], [], []>} : vector<128x32xbf16>, vector<32x32xbf16>, vector<128x32xf32> -> vector<128x32xf32>
    %162 = vector.broadcast %9 : vector<1x32xf32> to vector<128x32xf32>
    %163 = arith.addf %161, %162 : vector<128x32xf32>
    %164 = arith.addf %1, %163 : vector<128x32xf32>
    %c0_39 = arith.constant 0 : index
    %c0_40 = arith.constant 0 : index
    %c0_41 = arith.constant 0 : index
    %165 = vector.load %arg8[%c0_39, %c0_40, %c0_41] : memref<2x16x32xbf16, #tpu.memory_space<vmem>>, vector<1x16x32xbf16>
    %166 = vector.shape_cast %165 : vector<1x16x32xbf16> to vector<16x32xbf16>
    %cst_42 = arith.constant dense<0.000000e+00> : vector<2x32xf32>
    %167 = tpu.matmul %3, %166, %cst_42 {dimension_numbers = #tpu.dot_dimension_numbers<[1], [0], [0], [1], [0, 0, 1, 1], [], []>} : vector<2x16xbf16>, vector<16x32xbf16>, vector<2x32xf32> -> vector<2x32xf32>
    %168 = vector.broadcast %14 : vector<1x32xf32> to vector<2x32xf32>
    %169 = arith.addf %167, %168 : vector<2x32xf32>
    %170 = vector.shape_cast %164 : vector<128x32xf32> to vector<2x64x32xf32>
    %171 = vector.shape_cast %169 : vector<2x32xf32> to vector<2x1x32xf32>
    %172 = vector.broadcast %171 : vector<2x1x32xf32> to vector<2x64x32xf32>
    %173 = arith.addf %170, %172 : vector<2x64x32xf32>
    %174 = vector.shape_cast %173 : vector<2x64x32xf32> to vector<128x32xf32>
    %cst_43 = arith.constant dense<0.000000e+00> : vector<128xf32>
    %175 = vector.multi_reduction <add>, %174, %cst_43 [1] : vector<128x32xf32> to vector<128xf32>
    %176 = vector.shape_cast %175 : vector<128xf32> to vector<128x1xf32>
    %cst_44 = arith.constant 3.200000e+01 : f32
    %177 = vector.broadcast %cst_44 : f32 to vector<128x1xf32>
    %178 = arith.divf %176, %177 : vector<128x1xf32>
    %179 = vector.broadcast %178 : vector<128x1xf32> to vector<128x32xf32>
    %180 = arith.subf %174, %179 : vector<128x32xf32>
    %181 = arith.mulf %180, %180 : vector<128x32xf32>
    %cst_45 = arith.constant dense<0.000000e+00> : vector<128xf32>
    %182 = vector.multi_reduction <add>, %181, %cst_45 [1] : vector<128x32xf32> to vector<128xf32>
    %183 = vector.shape_cast %182 : vector<128xf32> to vector<128x1xf32>
    %cst_46 = arith.constant 3.200000e+01 : f32
    %184 = vector.broadcast %cst_46 : f32 to vector<128x1xf32>
    %185 = arith.divf %183, %184 : vector<128x1xf32>
    %186 = vector.broadcast %178 : vector<128x1xf32> to vector<128x32xf32>
    %187 = arith.subf %174, %186 : vector<128x32xf32>
    %cst_47 = arith.constant 9.99999974E-6 : f32
    %188 = vector.broadcast %cst_47 : f32 to vector<128x1xf32>
    %189 = arith.addf %185, %188 : vector<128x1xf32>
    %190 = math.rsqrt %189 : vector<128x1xf32>
    %191 = vector.broadcast %190 : vector<128x1xf32> to vector<128x32xf32>
    %192 = arith.mulf %187, %191 : vector<128x32xf32>
    %193 = vector.broadcast %10 : vector<1x32xf32> to vector<128x32xf32>
    %194 = arith.mulf %192, %193 : vector<128x32xf32>
    %195 = vector.broadcast %11 : vector<1x32xf32> to vector<128x32xf32>
    %196 = arith.addf %194, %195 : vector<128x32xf32>
    %197 = arith.truncf %196 : vector<128x32xf32> to vector<128x32xbf16>
    %c0_48 = arith.constant 0 : index
    %c0_49 = arith.constant 0 : index
    %c0_50 = arith.constant 0 : index
    %198 = vector.load %arg6[%c0_48, %c0_49, %c0_50] : memref<2x32x128xbf16, #tpu.memory_space<vmem>>, vector<1x32x128xbf16>
    %199 = vector.shape_cast %198 : vector<1x32x128xbf16> to vector<32x128xbf16>
    %cst_51 = arith.constant dense<0.000000e+00> : vector<128x128xf32>
    %200 = tpu.matmul %197, %199, %cst_51 {dimension_numbers = #tpu.dot_dimension_numbers<[1], [0], [0], [1], [0, 0, 1, 1], [], []>} : vector<128x32xbf16>, vector<32x128xbf16>, vector<128x128xf32> -> vector<128x128xf32>
    %201 = vector.broadcast %12 : vector<1x128xf32> to vector<128x128xf32>
    %202 = arith.addf %200, %201 : vector<128x128xf32>
    %203 = arith.mulf %202, %202 : vector<128x128xf32>
    %204 = arith.mulf %202, %203 : vector<128x128xf32>
    %cst_52 = arith.constant 4.471500e-02 : f32
    %205 = vector.broadcast %cst_52 : f32 to vector<128x128xf32>
    %206 = arith.mulf %205, %204 : vector<128x128xf32>
    %207 = arith.addf %202, %206 : vector<128x128xf32>
    %cst_53 = arith.constant 0.797884583 : f32
    %208 = vector.broadcast %cst_53 : f32 to vector<128x128xf32>
    %209 = arith.mulf %208, %207 : vector<128x128xf32>
    %210 = math.tanh %209 : vector<128x128xf32>
    %cst_54 = arith.constant 1.000000e+00 : f32
    %211 = vector.broadcast %cst_54 : f32 to vector<128x128xf32>
    %212 = arith.addf %211, %210 : vector<128x128xf32>
    %cst_55 = arith.constant 5.000000e-01 : f32
    %213 = vector.broadcast %cst_55 : f32 to vector<128x128xf32>
    %214 = arith.mulf %213, %212 : vector<128x128xf32>
    %215 = arith.mulf %202, %214 : vector<128x128xf32>
    %216 = arith.truncf %215 : vector<128x128xf32> to vector<128x128xbf16>
    %c0_56 = arith.constant 0 : index
    %c0_57 = arith.constant 0 : index
    %c0_58 = arith.constant 0 : index
    %217 = vector.load %arg7[%c0_56, %c0_57, %c0_58] : memref<2x128x32xbf16, #tpu.memory_space<vmem>>, vector<1x128x32xbf16>
    %218 = vector.shape_cast %217 : vector<1x128x32xbf16> to vector<128x32xbf16>
    %cst_59 = arith.constant dense<0.000000e+00> : vector<128x32xf32>
    %219 = tpu.matmul %216, %218, %cst_59 {dimension_numbers = #tpu.dot_dimension_numbers<[1], [0], [0], [1], [0, 0, 1, 1], [], []>} : vector<128x128xbf16>, vector<128x32xbf16>, vector<128x32xf32> -> vector<128x32xf32>
    %220 = vector.broadcast %13 : vector<1x32xf32> to vector<128x32xf32>
    %221 = arith.addf %219, %220 : vector<128x32xf32>
    %222 = arith.addf %174, %221 : vector<128x32xf32>
    %c1 = arith.constant 1 : index
    %c0_60 = arith.constant 0 : index
    %c0_61 = arith.constant 0 : index
    %223 = vector.load %arg9[%c1, %c0_60, %c0_61] : memref<2x9x128xf32, #tpu.memory_space<vmem>>, vector<1x9x128xf32>
    %224 = vector.shape_cast %223 : vector<1x9x128xf32> to vector<9x128xf32>
    %225 = vector.extract_strided_slice %224 {offsets = [0, 0], sizes = [1, 32], strides = [1, 1]} : vector<9x128xf32> to vector<1x32xf32>
    %226 = vector.extract_strided_slice %224 {offsets = [1, 0], sizes = [1, 32], strides = [1, 1]} : vector<9x128xf32> to vector<1x32xf32>
    %227 = vector.extract_strided_slice %224 {offsets = [2, 0], sizes = [1, 96], strides = [1, 1]} : vector<9x128xf32> to vector<1x96xf32>
    %228 = vector.extract_strided_slice %224 {offsets = [3, 0], sizes = [1, 32], strides = [1, 1]} : vector<9x128xf32> to vector<1x32xf32>
    %229 = vector.extract_strided_slice %224 {offsets = [4, 0], sizes = [1, 32], strides = [1, 1]} : vector<9x128xf32> to vector<1x32xf32>
    %230 = vector.extract_strided_slice %224 {offsets = [5, 0], sizes = [1, 32], strides = [1, 1]} : vector<9x128xf32> to vector<1x32xf32>
    %231 = vector.extract_strided_slice %224 {offsets = [6, 0], sizes = [1, 128], strides = [1, 1]} : vector<9x128xf32> to vector<1x128xf32>
    %232 = vector.extract_strided_slice %224 {offsets = [7, 0], sizes = [1, 32], strides = [1, 1]} : vector<9x128xf32> to vector<1x32xf32>
    %233 = vector.extract_strided_slice %224 {offsets = [8, 0], sizes = [1, 32], strides = [1, 1]} : vector<9x128xf32> to vector<1x32xf32>
    %c1_62 = arith.constant 1 : index
    %c0_63 = arith.constant 0 : index
    %c0_64 = arith.constant 0 : index
    %c0_65 = arith.constant 0 : index
    %234 = vector.load %arg3[%c1_62, %c0_63, %c0_64, %c0_65] : memref<2x4x64x64xf32, #tpu.memory_space<vmem>>, vector<1x4x64x64xf32>
    %235 = vector.shape_cast %234 : vector<1x4x64x64xf32> to vector<4x64x64xf32>
    %cst_66 = arith.constant dense<0.000000e+00> : vector<128xf32>
    %236 = vector.multi_reduction <add>, %222, %cst_66 [1] : vector<128x32xf32> to vector<128xf32>
    %237 = vector.shape_cast %236 : vector<128xf32> to vector<128x1xf32>
    %cst_67 = arith.constant 3.200000e+01 : f32
    %238 = vector.broadcast %cst_67 : f32 to vector<128x1xf32>
    %239 = arith.divf %237, %238 : vector<128x1xf32>
    %240 = vector.broadcast %239 : vector<128x1xf32> to vector<128x32xf32>
    %241 = arith.subf %222, %240 : vector<128x32xf32>
    %242 = arith.mulf %241, %241 : vector<128x32xf32>
    %cst_68 = arith.constant dense<0.000000e+00> : vector<128xf32>
    %243 = vector.multi_reduction <add>, %242, %cst_68 [1] : vector<128x32xf32> to vector<128xf32>
    %244 = vector.shape_cast %243 : vector<128xf32> to vector<128x1xf32>
    %cst_69 = arith.constant 3.200000e+01 : f32
    %245 = vector.broadcast %cst_69 : f32 to vector<128x1xf32>
    %246 = arith.divf %244, %245 : vector<128x1xf32>
    %247 = vector.broadcast %239 : vector<128x1xf32> to vector<128x32xf32>
    %248 = arith.subf %222, %247 : vector<128x32xf32>
    %cst_70 = arith.constant 9.99999974E-6 : f32
    %249 = vector.broadcast %cst_70 : f32 to vector<128x1xf32>
    %250 = arith.addf %246, %249 : vector<128x1xf32>
    %251 = math.rsqrt %250 : vector<128x1xf32>
    %252 = vector.broadcast %251 : vector<128x1xf32> to vector<128x32xf32>
    %253 = arith.mulf %248, %252 : vector<128x32xf32>
    %254 = vector.broadcast %225 : vector<1x32xf32> to vector<128x32xf32>
    %255 = arith.mulf %253, %254 : vector<128x32xf32>
    %256 = vector.broadcast %226 : vector<1x32xf32> to vector<128x32xf32>
    %257 = arith.addf %255, %256 : vector<128x32xf32>
    %258 = arith.truncf %257 : vector<128x32xf32> to vector<128x32xbf16>
    %c1_71 = arith.constant 1 : index
    %c0_72 = arith.constant 0 : index
    %c0_73 = arith.constant 0 : index
    %259 = vector.load %arg4[%c1_71, %c0_72, %c0_73] : memref<2x32x96xbf16, #tpu.memory_space<vmem>>, vector<1x32x96xbf16>
    %260 = vector.shape_cast %259 : vector<1x32x96xbf16> to vector<32x96xbf16>
    %cst_74 = arith.constant dense<0.000000e+00> : vector<128x96xf32>
    %261 = tpu.matmul %258, %260, %cst_74 {dimension_numbers = #tpu.dot_dimension_numbers<[1], [0], [0], [1], [0, 0, 1, 1], [], []>} : vector<128x32xbf16>, vector<32x96xbf16>, vector<128x96xf32> -> vector<128x96xf32>
    %262 = vector.broadcast %227 : vector<1x96xf32> to vector<128x96xf32>
    %263 = arith.addf %261, %262 : vector<128x96xf32>
    %264 = vector.extract_strided_slice %263 {offsets = [0, 0], sizes = [128, 8], strides = [1, 1]} : vector<128x96xf32> to vector<128x8xf32>
    %265 = arith.truncf %264 : vector<128x8xf32> to vector<128x8xbf16>
    %266 = vector.shape_cast %265 : vector<128x8xbf16> to vector<2x64x8xbf16>
    %267 = vector.extract_strided_slice %263 {offsets = [0, 32], sizes = [128, 8], strides = [1, 1]} : vector<128x96xf32> to vector<128x8xf32>
    %268 = arith.truncf %267 : vector<128x8xf32> to vector<128x8xbf16>
    %269 = vector.shape_cast %268 : vector<128x8xbf16> to vector<2x64x8xbf16>
    %270 = vector.extract_strided_slice %263 {offsets = [0, 64], sizes = [128, 8], strides = [1, 1]} : vector<128x96xf32> to vector<128x8xf32>
    %271 = arith.truncf %270 : vector<128x8xf32> to vector<128x8xbf16>
    %272 = vector.shape_cast %271 : vector<128x8xbf16> to vector<2x64x8xbf16>
    "tpu.trace_start"() <{level = 10 : i32, message = "bqd,bkd->bqk"}> : () -> ()
    %cst_75 = arith.constant dense<0.000000e+00> : vector<2x64x64xf32>
    %273 = tpu.matmul %266, %269, %cst_75 {dimension_numbers = #tpu.dot_dimension_numbers<[2], [2], [1], [1], [0, 0, 0, 1, 1, 1], [0], [0]>} : vector<2x64x8xbf16>, vector<2x64x8xbf16>, vector<2x64x64xf32> -> vector<2x64x64xf32>
    "tpu.trace_stop"() : () -> ()
    %274 = vector.extract_strided_slice %235 {offsets = [0, 0, 0], sizes = [1, 64, 64], strides = [1, 1, 1]} : vector<4x64x64xf32> to vector<1x64x64xf32>
    %275 = vector.shape_cast %274 : vector<1x64x64xf32> to vector<64x64xf32>
    %276 = vector.shape_cast %275 : vector<64x64xf32> to vector<1x64x64xf32>
    %277 = vector.broadcast %276 : vector<1x64x64xf32> to vector<2x64x64xf32>
    %278 = arith.addf %273, %277 : vector<2x64x64xf32>
    %cst_76 = arith.constant dense<0xFF800000> : vector<2x64xf32>
    %279 = vector.multi_reduction <maximumf>, %278, %cst_76 [2] : vector<2x64x64xf32> to vector<2x64xf32>
    %280 = vector.shape_cast %279 : vector<2x64xf32> to vector<2x64x1xf32>
    %281 = vector.broadcast %280 : vector<2x64x1xf32> to vector<2x64x64xf32>
    %282 = arith.subf %278, %281 : vector<2x64x64xf32>
    %283 = math.exp %282 : vector<2x64x64xf32>
    %cst_77 = arith.constant dense<0.000000e+00> : vector<2x64xf32>
    %284 = vector.multi_reduction <add>, %283, %cst_77 [2] : vector<2x64x64xf32> to vector<2x64xf32>
    %285 = vector.shape_cast %284 : vector<2x64xf32> to vector<2x64x1xf32>
    %286 = tpu.reciprocal %285 {approx = true} : vector<2x64x1xf32> -> vector<2x64x1xf32>
    %287 = vector.broadcast %286 : vector<2x64x1xf32> to vector<2x64x64xf32>
    %288 = arith.mulf %283, %287 : vector<2x64x64xf32>
    %289 = arith.truncf %288 : vector<2x64x64xf32> to vector<2x64x64xbf16>
    "tpu.trace_start"() <{level = 10 : i32, message = "bqk,bkd->bqd"}> : () -> ()
    %cst_78 = arith.constant dense<0.000000e+00> : vector<2x64x8xf32>
    %290 = tpu.matmul %289, %272, %cst_78 {dimension_numbers = #tpu.dot_dimension_numbers<[2], [1], [1], [2], [0, 0, 0, 1, 1, 2], [0], [0]>} : vector<2x64x64xbf16>, vector<2x64x8xbf16>, vector<2x64x8xf32> -> vector<2x64x8xf32>
    "tpu.trace_stop"() : () -> ()
    %291 = vector.shape_cast %290 : vector<2x64x8xf32> to vector<128x8xf32>
    %292 = vector.extract_strided_slice %263 {offsets = [0, 8], sizes = [128, 8], strides = [1, 1]} : vector<128x96xf32> to vector<128x8xf32>
    %293 = arith.truncf %292 : vector<128x8xf32> to vector<128x8xbf16>
    %294 = vector.shape_cast %293 : vector<128x8xbf16> to vector<2x64x8xbf16>
    %295 = vector.extract_strided_slice %263 {offsets = [0, 40], sizes = [128, 8], strides = [1, 1]} : vector<128x96xf32> to vector<128x8xf32>
    %296 = arith.truncf %295 : vector<128x8xf32> to vector<128x8xbf16>
    %297 = vector.shape_cast %296 : vector<128x8xbf16> to vector<2x64x8xbf16>
    %298 = vector.extract_strided_slice %263 {offsets = [0, 72], sizes = [128, 8], strides = [1, 1]} : vector<128x96xf32> to vector<128x8xf32>
    %299 = arith.truncf %298 : vector<128x8xf32> to vector<128x8xbf16>
    %300 = vector.shape_cast %299 : vector<128x8xbf16> to vector<2x64x8xbf16>
    "tpu.trace_start"() <{level = 10 : i32, message = "bqd,bkd->bqk"}> : () -> ()
    %cst_79 = arith.constant dense<0.000000e+00> : vector<2x64x64xf32>
    %301 = tpu.matmul %294, %297, %cst_79 {dimension_numbers = #tpu.dot_dimension_numbers<[2], [2], [1], [1], [0, 0, 0, 1, 1, 1], [0], [0]>} : vector<2x64x8xbf16>, vector<2x64x8xbf16>, vector<2x64x64xf32> -> vector<2x64x64xf32>
    "tpu.trace_stop"() : () -> ()
    %302 = vector.extract_strided_slice %235 {offsets = [1, 0, 0], sizes = [1, 64, 64], strides = [1, 1, 1]} : vector<4x64x64xf32> to vector<1x64x64xf32>
    %303 = vector.shape_cast %302 : vector<1x64x64xf32> to vector<64x64xf32>
    %304 = vector.shape_cast %303 : vector<64x64xf32> to vector<1x64x64xf32>
    %305 = vector.broadcast %304 : vector<1x64x64xf32> to vector<2x64x64xf32>
    %306 = arith.addf %301, %305 : vector<2x64x64xf32>
    %cst_80 = arith.constant dense<0xFF800000> : vector<2x64xf32>
    %307 = vector.multi_reduction <maximumf>, %306, %cst_80 [2] : vector<2x64x64xf32> to vector<2x64xf32>
    %308 = vector.shape_cast %307 : vector<2x64xf32> to vector<2x64x1xf32>
    %309 = vector.broadcast %308 : vector<2x64x1xf32> to vector<2x64x64xf32>
    %310 = arith.subf %306, %309 : vector<2x64x64xf32>
    %311 = math.exp %310 : vector<2x64x64xf32>
    %cst_81 = arith.constant dense<0.000000e+00> : vector<2x64xf32>
    %312 = vector.multi_reduction <add>, %311, %cst_81 [2] : vector<2x64x64xf32> to vector<2x64xf32>
    %313 = vector.shape_cast %312 : vector<2x64xf32> to vector<2x64x1xf32>
    %314 = tpu.reciprocal %313 {approx = true} : vector<2x64x1xf32> -> vector<2x64x1xf32>
    %315 = vector.broadcast %314 : vector<2x64x1xf32> to vector<2x64x64xf32>
    %316 = arith.mulf %311, %315 : vector<2x64x64xf32>
    %317 = arith.truncf %316 : vector<2x64x64xf32> to vector<2x64x64xbf16>
    "tpu.trace_start"() <{level = 10 : i32, message = "bqk,bkd->bqd"}> : () -> ()
    %cst_82 = arith.constant dense<0.000000e+00> : vector<2x64x8xf32>
    %318 = tpu.matmul %317, %300, %cst_82 {dimension_numbers = #tpu.dot_dimension_numbers<[2], [1], [1], [2], [0, 0, 0, 1, 1, 2], [0], [0]>} : vector<2x64x64xbf16>, vector<2x64x8xbf16>, vector<2x64x8xf32> -> vector<2x64x8xf32>
    "tpu.trace_stop"() : () -> ()
    %319 = vector.shape_cast %318 : vector<2x64x8xf32> to vector<128x8xf32>
    %320 = vector.extract_strided_slice %263 {offsets = [0, 16], sizes = [128, 8], strides = [1, 1]} : vector<128x96xf32> to vector<128x8xf32>
    %321 = arith.truncf %320 : vector<128x8xf32> to vector<128x8xbf16>
    %322 = vector.shape_cast %321 : vector<128x8xbf16> to vector<2x64x8xbf16>
    %323 = vector.extract_strided_slice %263 {offsets = [0, 48], sizes = [128, 8], strides = [1, 1]} : vector<128x96xf32> to vector<128x8xf32>
    %324 = arith.truncf %323 : vector<128x8xf32> to vector<128x8xbf16>
    %325 = vector.shape_cast %324 : vector<128x8xbf16> to vector<2x64x8xbf16>
    %326 = vector.extract_strided_slice %263 {offsets = [0, 80], sizes = [128, 8], strides = [1, 1]} : vector<128x96xf32> to vector<128x8xf32>
    %327 = arith.truncf %326 : vector<128x8xf32> to vector<128x8xbf16>
    %328 = vector.shape_cast %327 : vector<128x8xbf16> to vector<2x64x8xbf16>
    "tpu.trace_start"() <{level = 10 : i32, message = "bqd,bkd->bqk"}> : () -> ()
    %cst_83 = arith.constant dense<0.000000e+00> : vector<2x64x64xf32>
    %329 = tpu.matmul %322, %325, %cst_83 {dimension_numbers = #tpu.dot_dimension_numbers<[2], [2], [1], [1], [0, 0, 0, 1, 1, 1], [0], [0]>} : vector<2x64x8xbf16>, vector<2x64x8xbf16>, vector<2x64x64xf32> -> vector<2x64x64xf32>
    "tpu.trace_stop"() : () -> ()
    %330 = vector.extract_strided_slice %235 {offsets = [2, 0, 0], sizes = [1, 64, 64], strides = [1, 1, 1]} : vector<4x64x64xf32> to vector<1x64x64xf32>
    %331 = vector.shape_cast %330 : vector<1x64x64xf32> to vector<64x64xf32>
    %332 = vector.shape_cast %331 : vector<64x64xf32> to vector<1x64x64xf32>
    %333 = vector.broadcast %332 : vector<1x64x64xf32> to vector<2x64x64xf32>
    %334 = arith.addf %329, %333 : vector<2x64x64xf32>
    %cst_84 = arith.constant dense<0xFF800000> : vector<2x64xf32>
    %335 = vector.multi_reduction <maximumf>, %334, %cst_84 [2] : vector<2x64x64xf32> to vector<2x64xf32>
    %336 = vector.shape_cast %335 : vector<2x64xf32> to vector<2x64x1xf32>
    %337 = vector.broadcast %336 : vector<2x64x1xf32> to vector<2x64x64xf32>
    %338 = arith.subf %334, %337 : vector<2x64x64xf32>
    %339 = math.exp %338 : vector<2x64x64xf32>
    %cst_85 = arith.constant dense<0.000000e+00> : vector<2x64xf32>
    %340 = vector.multi_reduction <add>, %339, %cst_85 [2] : vector<2x64x64xf32> to vector<2x64xf32>
    %341 = vector.shape_cast %340 : vector<2x64xf32> to vector<2x64x1xf32>
    %342 = tpu.reciprocal %341 {approx = true} : vector<2x64x1xf32> -> vector<2x64x1xf32>
    %343 = vector.broadcast %342 : vector<2x64x1xf32> to vector<2x64x64xf32>
    %344 = arith.mulf %339, %343 : vector<2x64x64xf32>
    %345 = arith.truncf %344 : vector<2x64x64xf32> to vector<2x64x64xbf16>
    "tpu.trace_start"() <{level = 10 : i32, message = "bqk,bkd->bqd"}> : () -> ()
    %cst_86 = arith.constant dense<0.000000e+00> : vector<2x64x8xf32>
    %346 = tpu.matmul %345, %328, %cst_86 {dimension_numbers = #tpu.dot_dimension_numbers<[2], [1], [1], [2], [0, 0, 0, 1, 1, 2], [0], [0]>} : vector<2x64x64xbf16>, vector<2x64x8xbf16>, vector<2x64x8xf32> -> vector<2x64x8xf32>
    "tpu.trace_stop"() : () -> ()
    %347 = vector.shape_cast %346 : vector<2x64x8xf32> to vector<128x8xf32>
    %348 = vector.extract_strided_slice %263 {offsets = [0, 24], sizes = [128, 8], strides = [1, 1]} : vector<128x96xf32> to vector<128x8xf32>
    %349 = arith.truncf %348 : vector<128x8xf32> to vector<128x8xbf16>
    %350 = vector.shape_cast %349 : vector<128x8xbf16> to vector<2x64x8xbf16>
    %351 = vector.extract_strided_slice %263 {offsets = [0, 56], sizes = [128, 8], strides = [1, 1]} : vector<128x96xf32> to vector<128x8xf32>
    %352 = arith.truncf %351 : vector<128x8xf32> to vector<128x8xbf16>
    %353 = vector.shape_cast %352 : vector<128x8xbf16> to vector<2x64x8xbf16>
    %354 = vector.extract_strided_slice %263 {offsets = [0, 88], sizes = [128, 8], strides = [1, 1]} : vector<128x96xf32> to vector<128x8xf32>
    %355 = arith.truncf %354 : vector<128x8xf32> to vector<128x8xbf16>
    %356 = vector.shape_cast %355 : vector<128x8xbf16> to vector<2x64x8xbf16>
    "tpu.trace_start"() <{level = 10 : i32, message = "bqd,bkd->bqk"}> : () -> ()
    %cst_87 = arith.constant dense<0.000000e+00> : vector<2x64x64xf32>
    %357 = tpu.matmul %350, %353, %cst_87 {dimension_numbers = #tpu.dot_dimension_numbers<[2], [2], [1], [1], [0, 0, 0, 1, 1, 1], [0], [0]>} : vector<2x64x8xbf16>, vector<2x64x8xbf16>, vector<2x64x64xf32> -> vector<2x64x64xf32>
    "tpu.trace_stop"() : () -> ()
    %358 = vector.extract_strided_slice %235 {offsets = [3, 0, 0], sizes = [1, 64, 64], strides = [1, 1, 1]} : vector<4x64x64xf32> to vector<1x64x64xf32>
    %359 = vector.shape_cast %358 : vector<1x64x64xf32> to vector<64x64xf32>
    %360 = vector.shape_cast %359 : vector<64x64xf32> to vector<1x64x64xf32>
    %361 = vector.broadcast %360 : vector<1x64x64xf32> to vector<2x64x64xf32>
    %362 = arith.addf %357, %361 : vector<2x64x64xf32>
    %cst_88 = arith.constant dense<0xFF800000> : vector<2x64xf32>
    %363 = vector.multi_reduction <maximumf>, %362, %cst_88 [2] : vector<2x64x64xf32> to vector<2x64xf32>
    %364 = vector.shape_cast %363 : vector<2x64xf32> to vector<2x64x1xf32>
    %365 = vector.broadcast %364 : vector<2x64x1xf32> to vector<2x64x64xf32>
    %366 = arith.subf %362, %365 : vector<2x64x64xf32>
    %367 = math.exp %366 : vector<2x64x64xf32>
    %cst_89 = arith.constant dense<0.000000e+00> : vector<2x64xf32>
    %368 = vector.multi_reduction <add>, %367, %cst_89 [2] : vector<2x64x64xf32> to vector<2x64xf32>
    %369 = vector.shape_cast %368 : vector<2x64xf32> to vector<2x64x1xf32>
    %370 = tpu.reciprocal %369 {approx = true} : vector<2x64x1xf32> -> vector<2x64x1xf32>
    %371 = vector.broadcast %370 : vector<2x64x1xf32> to vector<2x64x64xf32>
    %372 = arith.mulf %367, %371 : vector<2x64x64xf32>
    %373 = arith.truncf %372 : vector<2x64x64xf32> to vector<2x64x64xbf16>
    "tpu.trace_start"() <{level = 10 : i32, message = "bqk,bkd->bqd"}> : () -> ()
    %cst_90 = arith.constant dense<0.000000e+00> : vector<2x64x8xf32>
    %374 = tpu.matmul %373, %356, %cst_90 {dimension_numbers = #tpu.dot_dimension_numbers<[2], [1], [1], [2], [0, 0, 0, 1, 1, 2], [0], [0]>} : vector<2x64x64xbf16>, vector<2x64x8xbf16>, vector<2x64x8xf32> -> vector<2x64x8xf32>
    "tpu.trace_stop"() : () -> ()
    %375 = vector.shape_cast %374 : vector<2x64x8xf32> to vector<128x8xf32>
    %376 = tpu.concatenate %291, %319, %347, %375 in 1 : vector<128x8xf32>, vector<128x8xf32>, vector<128x8xf32>, vector<128x8xf32> -> vector<128x32xf32>
    %377 = arith.truncf %376 : vector<128x32xf32> to vector<128x32xbf16>
    %c1_91 = arith.constant 1 : index
    %c0_92 = arith.constant 0 : index
    %c0_93 = arith.constant 0 : index
    %378 = vector.load %arg5[%c1_91, %c0_92, %c0_93] : memref<2x32x32xbf16, #tpu.memory_space<vmem>>, vector<1x32x32xbf16>
    %379 = vector.shape_cast %378 : vector<1x32x32xbf16> to vector<32x32xbf16>
    %cst_94 = arith.constant dense<0.000000e+00> : vector<128x32xf32>
    %380 = tpu.matmul %377, %379, %cst_94 {dimension_numbers = #tpu.dot_dimension_numbers<[1], [0], [0], [1], [0, 0, 1, 1], [], []>} : vector<128x32xbf16>, vector<32x32xbf16>, vector<128x32xf32> -> vector<128x32xf32>
    %381 = vector.broadcast %228 : vector<1x32xf32> to vector<128x32xf32>
    %382 = arith.addf %380, %381 : vector<128x32xf32>
    %383 = arith.addf %222, %382 : vector<128x32xf32>
    %c1_95 = arith.constant 1 : index
    %c0_96 = arith.constant 0 : index
    %c0_97 = arith.constant 0 : index
    %384 = vector.load %arg8[%c1_95, %c0_96, %c0_97] : memref<2x16x32xbf16, #tpu.memory_space<vmem>>, vector<1x16x32xbf16>
    %385 = vector.shape_cast %384 : vector<1x16x32xbf16> to vector<16x32xbf16>
    %cst_98 = arith.constant dense<0.000000e+00> : vector<2x32xf32>
    %386 = tpu.matmul %3, %385, %cst_98 {dimension_numbers = #tpu.dot_dimension_numbers<[1], [0], [0], [1], [0, 0, 1, 1], [], []>} : vector<2x16xbf16>, vector<16x32xbf16>, vector<2x32xf32> -> vector<2x32xf32>
    %387 = vector.broadcast %233 : vector<1x32xf32> to vector<2x32xf32>
    %388 = arith.addf %386, %387 : vector<2x32xf32>
    %389 = vector.shape_cast %383 : vector<128x32xf32> to vector<2x64x32xf32>
    %390 = vector.shape_cast %388 : vector<2x32xf32> to vector<2x1x32xf32>
    %391 = vector.broadcast %390 : vector<2x1x32xf32> to vector<2x64x32xf32>
    %392 = arith.addf %389, %391 : vector<2x64x32xf32>
    %393 = vector.shape_cast %392 : vector<2x64x32xf32> to vector<128x32xf32>
    %cst_99 = arith.constant dense<0.000000e+00> : vector<128xf32>
    %394 = vector.multi_reduction <add>, %393, %cst_99 [1] : vector<128x32xf32> to vector<128xf32>
    %395 = vector.shape_cast %394 : vector<128xf32> to vector<128x1xf32>
    %cst_100 = arith.constant 3.200000e+01 : f32
    %396 = vector.broadcast %cst_100 : f32 to vector<128x1xf32>
    %397 = arith.divf %395, %396 : vector<128x1xf32>
    %398 = vector.broadcast %397 : vector<128x1xf32> to vector<128x32xf32>
    %399 = arith.subf %393, %398 : vector<128x32xf32>
    %400 = arith.mulf %399, %399 : vector<128x32xf32>
    %cst_101 = arith.constant dense<0.000000e+00> : vector<128xf32>
    %401 = vector.multi_reduction <add>, %400, %cst_101 [1] : vector<128x32xf32> to vector<128xf32>
    %402 = vector.shape_cast %401 : vector<128xf32> to vector<128x1xf32>
    %cst_102 = arith.constant 3.200000e+01 : f32
    %403 = vector.broadcast %cst_102 : f32 to vector<128x1xf32>
    %404 = arith.divf %402, %403 : vector<128x1xf32>
    %405 = vector.broadcast %397 : vector<128x1xf32> to vector<128x32xf32>
    %406 = arith.subf %393, %405 : vector<128x32xf32>
    %cst_103 = arith.constant 9.99999974E-6 : f32
    %407 = vector.broadcast %cst_103 : f32 to vector<128x1xf32>
    %408 = arith.addf %404, %407 : vector<128x1xf32>
    %409 = math.rsqrt %408 : vector<128x1xf32>
    %410 = vector.broadcast %409 : vector<128x1xf32> to vector<128x32xf32>
    %411 = arith.mulf %406, %410 : vector<128x32xf32>
    %412 = vector.broadcast %229 : vector<1x32xf32> to vector<128x32xf32>
    %413 = arith.mulf %411, %412 : vector<128x32xf32>
    %414 = vector.broadcast %230 : vector<1x32xf32> to vector<128x32xf32>
    %415 = arith.addf %413, %414 : vector<128x32xf32>
    %416 = arith.truncf %415 : vector<128x32xf32> to vector<128x32xbf16>
    %c1_104 = arith.constant 1 : index
    %c0_105 = arith.constant 0 : index
    %c0_106 = arith.constant 0 : index
    %417 = vector.load %arg6[%c1_104, %c0_105, %c0_106] : memref<2x32x128xbf16, #tpu.memory_space<vmem>>, vector<1x32x128xbf16>
    %418 = vector.shape_cast %417 : vector<1x32x128xbf16> to vector<32x128xbf16>
    %cst_107 = arith.constant dense<0.000000e+00> : vector<128x128xf32>
    %419 = tpu.matmul %416, %418, %cst_107 {dimension_numbers = #tpu.dot_dimension_numbers<[1], [0], [0], [1], [0, 0, 1, 1], [], []>} : vector<128x32xbf16>, vector<32x128xbf16>, vector<128x128xf32> -> vector<128x128xf32>
    %420 = vector.broadcast %231 : vector<1x128xf32> to vector<128x128xf32>
    %421 = arith.addf %419, %420 : vector<128x128xf32>
    %422 = arith.mulf %421, %421 : vector<128x128xf32>
    %423 = arith.mulf %421, %422 : vector<128x128xf32>
    %cst_108 = arith.constant 4.471500e-02 : f32
    %424 = vector.broadcast %cst_108 : f32 to vector<128x128xf32>
    %425 = arith.mulf %424, %423 : vector<128x128xf32>
    %426 = arith.addf %421, %425 : vector<128x128xf32>
    %cst_109 = arith.constant 0.797884583 : f32
    %427 = vector.broadcast %cst_109 : f32 to vector<128x128xf32>
    %428 = arith.mulf %427, %426 : vector<128x128xf32>
    %429 = math.tanh %428 : vector<128x128xf32>
    %cst_110 = arith.constant 1.000000e+00 : f32
    %430 = vector.broadcast %cst_110 : f32 to vector<128x128xf32>
    %431 = arith.addf %430, %429 : vector<128x128xf32>
    %cst_111 = arith.constant 5.000000e-01 : f32
    %432 = vector.broadcast %cst_111 : f32 to vector<128x128xf32>
    %433 = arith.mulf %432, %431 : vector<128x128xf32>
    %434 = arith.mulf %421, %433 : vector<128x128xf32>
    %435 = arith.truncf %434 : vector<128x128xf32> to vector<128x128xbf16>
    %c1_112 = arith.constant 1 : index
    %c0_113 = arith.constant 0 : index
    %c0_114 = arith.constant 0 : index
    %436 = vector.load %arg7[%c1_112, %c0_113, %c0_114] : memref<2x128x32xbf16, #tpu.memory_space<vmem>>, vector<1x128x32xbf16>
    %437 = vector.shape_cast %436 : vector<1x128x32xbf16> to vector<128x32xbf16>
    %cst_115 = arith.constant dense<0.000000e+00> : vector<128x32xf32>
    %438 = tpu.matmul %435, %437, %cst_115 {dimension_numbers = #tpu.dot_dimension_numbers<[1], [0], [0], [1], [0, 0, 1, 1], [], []>} : vector<128x128xbf16>, vector<128x32xbf16>, vector<128x32xf32> -> vector<128x32xf32>
    %439 = vector.broadcast %232 : vector<1x32xf32> to vector<128x32xf32>
    %440 = arith.addf %438, %439 : vector<128x32xf32>
    %441 = arith.addf %393, %440 : vector<128x32xf32>
    %442 = vector.shape_cast %441 : vector<128x32xf32> to vector<2x64x32xf32>
    %c0_116 = arith.constant 0 : index
    %c0_117 = arith.constant 0 : index
    %c0_118 = arith.constant 0 : index
    %443 = vector.load %arg10[%c0_116, %c0_117, %c0_118] : memref<2x64x32xf32, #tpu.memory_space<vmem>>, vector<2x64x32xf32>
    tpu.vector_store %arg10[%c0_116, %c0_117, %c0_118], %442 {strides = array<i32>} : memref<2x64x32xf32, #tpu.memory_space<vmem>>, vector<2x64x32xf32>,
    return
  }
  func.func @transform_0(%arg0: i32) -> (i32, i32, i32) {
    %c0_i32 = arith.constant 0 : i32
    %c0_i32_0 = arith.constant 0 : i32
    %c0_i32_1 = arith.constant 0 : i32
    %c0_i32_2 = arith.constant 0 : i32
    return %c0_i32, %c0_i32_0, %c0_i32_1 : i32, i32, i32
  }
  func.func @transform_1(%arg0: i32) -> (i32, i32) {
    %c0_i32 = arith.constant 0 : i32
    %c0_i32_0 = arith.constant 0 : i32
    %c0_i32_1 = arith.constant 0 : i32
    return %c0_i32, %c0_i32_0 : i32, i32
  }
  func.func @transform_2(%arg0: i32) -> (i32, i32, i32, i32) {
    %c0_i32 = arith.constant 0 : i32
    %c0_i32_0 = arith.constant 0 : i32
    %c0_i32_1 = arith.constant 0 : i32
    %c0_i32_2 = arith.constant 0 : i32
    %c0_i32_3 = arith.constant 0 : i32
    return %c0_i32, %c0_i32_0, %c0_i32_1, %c0_i32_2 : i32, i32, i32, i32
  }
  func.func @transform_3(%arg0: i32) -> (i32, i32, i32) {
    %c0_i32 = arith.constant 0 : i32
    %c0_i32_0 = arith.constant 0 : i32
    %c0_i32_1 = arith.constant 0 : i32
    %c0_i32_2 = arith.constant 0 : i32
    return %c0_i32, %c0_i32_0, %c0_i32_1 : i32, i32, i32
  }
  func.func @transform_4(%arg0: i32) -> (i32, i32, i32) {
    %c0_i32 = arith.constant 0 : i32
    %c0_i32_0 = arith.constant 0 : i32
    %c0_i32_1 = arith.constant 0 : i32
    %c0_i32_2 = arith.constant 0 : i32
    return %c0_i32, %c0_i32_0, %c0_i32_1 : i32, i32, i32
  }
  func.func @transform_5(%arg0: i32) -> (i32, i32, i32) {
    %c0_i32 = arith.constant 0 : i32
    %c0_i32_0 = arith.constant 0 : i32
    %c0_i32_1 = arith.constant 0 : i32
    %c0_i32_2 = arith.constant 0 : i32
    return %c0_i32, %c0_i32_0, %c0_i32_1 : i32, i32, i32
  }
  func.func @transform_6(%arg0: i32) -> (i32, i32, i32) {
    %c0_i32 = arith.constant 0 : i32
    %c0_i32_0 = arith.constant 0 : i32
    %c0_i32_1 = arith.constant 0 : i32
    %c0_i32_2 = arith.constant 0 : i32
    return %c0_i32, %c0_i32_0, %c0_i32_1 : i32, i32, i32
  }
  func.func @transform_7(%arg0: i32) -> (i32, i32, i32) {
    %c0_i32 = arith.constant 0 : i32
    %c0_i32_0 = arith.constant 0 : i32
    %c0_i32_1 = arith.constant 0 : i32
    %c0_i32_2 = arith.constant 0 : i32
    return %c0_i32, %c0_i32_0, %c0_i32_1 : i32, i32, i32
  }
  func.func @transform_8(%arg0: i32) -> (i32, i32, i32) {
    %c0_i32 = arith.constant 0 : i32
    %c0_i32_0 = arith.constant 0 : i32
    %c0_i32_1 = arith.constant 0 : i32
    %c0_i32_2 = arith.constant 0 : i32
    return %c0_i32, %c0_i32_0, %c0_i32_1 : i32, i32, i32
  }
  func.func @transform_9(%arg0: i32) -> (i32, i32, i32) {
    %c0_i32 = arith.constant 0 : i32
    %c0_i32_0 = arith.constant 0 : i32
    %c0_i32_1 = arith.constant 0 : i32
    %c0_i32_2 = arith.constant 0 : i32
    return %c0_i32, %c0_i32_0, %c0_i32_1 : i32, i32, i32
  }
}

</mosaic_0001>

<bundles_post_ra>
// kernel: basic_block_forward.1
= control target key start
LH: loop header
LB: loop body
LE: loop exit
PB: predicated region body
PF: predicated region fallthrough
CT: control target
= control target key end

     0   :  { %14 = vsyncpa [#allocation3], 0  ;;  %s10415_s30 = smov [#allocation2]   ;;  %s14628_s0 = inlined_call_operand.vmem [shape: f32[2,64,32], index: 0, kind: input, shape index: {}]   ;;  %s14629_s1 = inlined_call_operand.vmem [shape: f32[2,16], index: 1, kind: input, shape index: {}]   ;;  %s14630_s2 = inlined_call_operand.hbm [shape: f32[2,4,64,64], index: 2, kind: input, shape index: {}]   ;;  %s14631_s3 = inlined_call_operand.vmem [shape: bf16[2,32,96], index: 3, kind: input, shape index: {}]   ;;  %s14632_s4 = inlined_call_operand.vmem [shape: bf16[2,32,32], index: 4, kind: input, shape index: {}]   ;;  %s14633_s5 = inlined_call_operand.vmem [shape: bf16[2,32,128], index: 5, kind: input, shape index: {}]   ;;  %s14634_s6 = inlined_call_operand.vmem [shape: bf16[2,128,32], index: 6, kind: input, shape index: {}]   ;;  %s14635_s7 = inlined_call_operand.vmem [shape: bf16[2,16,32], index: 7, kind: input, shape index: {}]   ;;  %s14636_s8 = inlined_call_operand.vmem [shape: f32[2,9,128], index: 8, kind: input, shape index: {}]   ;;  %s14637_s9 = inlined_call_operand.vmem [shape: f32[2,64,32], index: 9, kind: output, shape index: {}]  }
   0x1   :  { %s24_s10 = sshll.u32 %s10415_s30, 4  ;;  %s10391_s13 = scalar_lea.hbm %s14630_s2, 8192  ;;  %s25_s10 = int_to_ptr.vmem [resolvable:$true] %s24_s10 }
   0x2   :  { %p10392_p0 = scmp.ne.s32.totalorder %s14630_s2, %s10391_s13  ;;  %p10395_p1 = scmp.lt.u32.totalorder %s10391_s13, %s14630_s2 }
   0x4   :  { %p10397_p2 = pnand %p10395_p1, %p10392_p0 }
   0x6   :  { %10400 = shalt.err (!%p10397_p2)
}
   0x7   :  { %s10401_s18 = scalar_lea.vmem %s25_s10, 8192  ;;  %p10406_p4 = scmp.lt.s32.totalorder %s25_s10, %s25_s10 }
   0x8   :  { %p10402_p3 = scmp.ne.s32.totalorder %s25_s10, %s10401_s18  ;;  %p10407_p5 = scmp.lt.s32.totalorder %s10401_s18, %s10401_s18 }
   0xa   :  { %p10408_p6 = por %p10407_p5, %p10406_p4 }
   0xc   :  { %p10409_p7 = pnand %p10408_p6, %p10402_p3 }
   0xe   :  { %10412 = shalt.err (!%p10409_p7)
}
   0xf   :  { %s10416_s19 = smov 128   ;;  %s10417_s20 = smov 8  }
  0x10   :  { %30 = dma.hbm_to_vmem [thread:$0]  %s14630_s2, 8192, %s25_s10, [#allocation3], %s10416_s19, %s10416_s19, %s10417_s20  }
  0x11   :  { %10413 = dma.done.wait [#allocation3], 8192  }
  0x12   :  { %10414 = vsyncadd [#allocation3], 4294959104  ;;  %vm99_vm0 = vcmask 261120   ;;  %v47_v0 = vld [vmem:[%s14628_s0] sm:$0xff]  ;;  %v49_v1 = vld [vmem:[%s14628_s0 + $0x10] sm:$0xff]  ;;  %vm518_vm1 = vcmask 64512  }
  0x13   :  { %v48_v2 = vld [vmem:[%s14628_s0 + $0x8] sm:$0xff]  ;;  %v100_v3 = vsel %vm99_vm0, %v47_v0, 0.0  ;;  %v106_v4 = vsel %vm99_vm0, %v49_v1, 0.0  ;;  %v50_v5 = vld [vmem:[%s14628_s0 + $0x18] sm:$0xff]  ;;  %v10514_v6 = vld [vmem:[%s14628_s0 + $0x20] sm:$0xff]  ;;  %s10418_s18 = smov 96  }
  0x14   :  { %v10519_v7 = vld [vmem:[%s14628_s0 + $0x28] sm:$0xff]  ;;  %101 = vadd.xlane.f32.xlu0 %v100_v3  ;;  %107 = vadd.xlane.f32.xlu1 %v106_v4  ;;  %v10524_v8 = vld [vmem:[%s14628_s0 + $0x30] sm:$0xff]  ;;  %v10529_v9 = vld [vmem:[%s14628_s0 + $0x38] sm:$0xff]  ;;  %v103_v11 = vsel %vm99_vm0, %v48_v2, 0.0  ;;  %v109_v12 = vsel %vm99_vm0, %v50_v5, 0.0  ;;  %v112_v16 = vsel %vm99_vm0, %v10514_v6, 0.0 }
  0x15   :  { %v10534_v10 = vld [vmem:[%s14628_s0 + $0x40] sm:$0xff]  ;;  %v10541_v13 = vld [vmem:[%s14628_s0 + $0x48] sm:$0xff]  ;;  %v10546_v14 = vld [vmem:[%s14628_s0 + $0x50] sm:$0xff]  ;;  %v115_v17 = vsel %vm99_vm0, %v10519_v7, 0.0  ;;  %v118_v18 = vsel %vm99_vm0, %v10524_v8, 0.0  ;;  %v121_v19 = vsel %vm99_vm0, %v10529_v9, 0.0 }
  0x16   :  { %v10551_v15 = vld [vmem:[%s14628_s0 + $0x58] sm:$0xff]  ;;  %v10564_v20 = vld [vmem:[%s14628_s0 + $0x60] sm:$0xff]  ;;  %v10569_v21 = vld [vmem:[%s14628_s0 + $0x68] sm:$0xff]  ;;  %v124_v22 = vsel %vm99_vm0, %v10534_v10, 0.0  ;;  %v127_v23 = vsel %vm99_vm0, %v10541_v13, 0.0  ;;  %v130_v24 = vsel %vm99_vm0, %v10546_v14, 0.0 }
  0x17   :  { %v133_v25 = vsel %vm99_vm0, %v10551_v15, 0.0  ;;  %v136_v26 = vsel %vm99_vm0, %v10564_v20, 0.0  ;;  %v139_v27 = vsel %vm99_vm0, %v10569_v21, 0.0  ;;  %v10586_v28 = vld [vmem:[%s14628_s0 + $0x70] sm:$0xff]  ;;  %v10591_v29 = vld [vmem:[%s14628_s0 + $0x78] sm:$0xff]  ;;  %s10419_s19 = smov 64  }
  0x18   :  { %104 = vadd.xlane.f32.xlu0 %v103_v11  ;;  %110 = vadd.xlane.f32.xlu1 %v109_v12  ;;  %v142_v30 = vsel %vm99_vm0, %v10586_v28, 0.0  ;;  %v145_v31 = vsel %vm99_vm0, %v10591_v29, 0.0  ;;  %s10420_s21 = smov 88   ;;  %vm709_vm2 = vcmask 523264   ;;  %s10421_s22 = smov 120   ;;  %vm2996_vm3 = vcmask 130048  }
  0x19   :  { %s10422_s23 = smov 56   ;;  %s10423_s24 = smov 80   ;;  %vm10431_vm4 = vmmov 0   ;;  %vm3013_vm5 = vcmask 195584  }
  0x1a   :  { %s10424_s25 = smov 112   ;;  %s10425_s26 = smov 48  }
  0x1b   :  { %s10426_s27 = smov 72   ;;  %s10427_s28 = smov 104  }
  0x1c   :  { %113 = vadd.xlane.f32.xlu0 %v112_v16  ;;  %116 = vadd.xlane.f32.xlu1 %v115_v17  ;;  %s10428_s2 = smov 40   ;;  %s10429_s29 = smov 16  }
  0x20   :  { %119 = vadd.xlane.f32.xlu0 %v118_v18  ;;  %122 = vadd.xlane.f32.xlu1 %v121_v19 }
  0x24   :  { %125 = vadd.xlane.f32.xlu0 %v124_v22  ;;  %128 = vadd.xlane.f32.xlu1 %v127_v23 }
  0x28   :  { %131 = vadd.xlane.f32.xlu0 %v130_v24  ;;  %134 = vadd.xlane.f32.xlu1 %v133_v25 }
  0x2c   :  { %137 = vadd.xlane.f32.xlu0 %v136_v26  ;;  %140 = vadd.xlane.f32.xlu1 %v139_v27 }
  0x30   :  { %143 = vadd.xlane.f32.xlu0 %v142_v30  ;;  %146 = vadd.xlane.f32.xlu1 %v145_v31 }
  0xa1   :  { %v102_v32 = vpop.xlane.xlu0 %101  ;;  %v108_v33 = vpop.xlane.xlu1 %107 }
  0xa2   :  { %v149_v34 = vmul.f32 0.03125, %v102_v32  ;;  %v151_v35 = vmul.f32 0.03125, %v108_v33 }
  0xa4   :  { %v10597_v36 = vsub.f32 %v47_v0, %v149_v34  ;;  %v10599_v37 = vsub.f32 %v49_v1, %v151_v35 }
  0xa5   :  { %v105_v38 = vpop.xlane.xlu0 %104  ;;  %v111_v39 = vpop.xlane.xlu1 %110 }
  0xa6   :  { %v150_v40 = vmul.f32 0.03125, %v105_v38  ;;  %v152_v41 = vmul.f32 0.03125, %v111_v39  ;;  %v181_v42 = vmul.f32 %v10597_v36, %v10597_v36  ;;  %v183_v43 = vmul.f32 %v10599_v37, %v10599_v37 }
  0xa8   :  { %v10605_v44 = vsub.f32 %v48_v2, %v150_v40  ;;  %v10607_v45 = vsub.f32 %v50_v5, %v152_v41  ;;  %v197_v46 = vsel %vm99_vm0, %v181_v42, 0.0  ;;  %v203_v49 = vsel %vm99_vm0, %v183_v43, 0.0 }
  0xa9   :  { %198 = vadd.xlane.f32.xlu0 %v197_v46  ;;  %v114_v47 = vpop.xlane.xlu0 %113  ;;  %v117_v48 = vpop.xlane.xlu1 %116 }
  0xaa   :  { %v153_v50 = vmul.f32 0.03125, %v114_v47  ;;  %v154_v51 = vmul.f32 0.03125, %v117_v48  ;;  %v182_v52 = vmul.f32 %v10605_v44, %v10605_v44  ;;  %v184_v53 = vmul.f32 %v10607_v45, %v10607_v45 }
  0xac   :  { %v10616_v54 = vsub.f32 %v10514_v6, %v153_v50  ;;  %v10619_v55 = vsub.f32 %v10519_v7, %v154_v51  ;;  %v200_v56 = vsel %vm99_vm0, %v182_v52, 0.0  ;;  %v206_v59 = vsel %vm99_vm0, %v184_v53, 0.0  ;;  %v9638_v53 = vld [vmem:[%s14631_s3 + $0x8] sm:$0xff]  }
  0xad   :  { %204 = vadd.xlane.f32.xlu0 %v203_v49  ;;  %201 = vadd.xlane.f32.xlu1 %v200_v56  ;;  %v120_v57 = vpop.xlane.xlu0 %119  ;;  %v123_v58 = vpop.xlane.xlu1 %122 }
  0xae   :  { %v155_v60 = vmul.f32 0.03125, %v120_v57  ;;  %v156_v61 = vmul.f32 0.03125, %v123_v58  ;;  %v185_v62 = vmul.f32 %v10616_v54, %v10616_v54  ;;  %v186_v63 = vmul.f32 %v10619_v55, %v10619_v55 }
  0xb0   :  { %v10628_v0 = vsub.f32 %v10524_v8, %v155_v60  ;;  %v10631_v1 = vsub.f32 %v10529_v9, %v156_v61  ;;  %v209_v2 = vsel %vm99_vm0, %v185_v62, 0.0  ;;  %v212_v5 = vsel %vm99_vm0, %v186_v63, 0.0 }
  0xb1   :  { %207 = vadd.xlane.f32.xlu1 %v206_v59  ;;  %210 = vadd.xlane.f32.xlu0 %v209_v2  ;;  %v126_v3 = vpop.xlane.xlu0 %125  ;;  %v129_v4 = vpop.xlane.xlu1 %128  ;;  %v309_v61 = vlaneseq }
  0xb2   :  { %v157_v6 = vmul.f32 0.03125, %v126_v3  ;;  %v158_v7 = vmul.f32 0.03125, %v129_v4  ;;  %v187_v11 = vmul.f32 %v10628_v0, %v10628_v0  ;;  %v188_v8 = vmul.f32 %v10631_v1, %v10631_v1 }
  0xb4   :  { %v10640_v12 = vsub.f32 %v10534_v10, %v157_v6  ;;  %v10643_v9 = vsub.f32 %v10541_v13, %v158_v7  ;;  %v215_v16 = vsel %vm99_vm0, %v187_v11, 0.0  ;;  %v218_v19 = vsel %vm99_vm0, %v188_v8, 0.0 }
  0xb5   :  { %213 = vadd.xlane.f32.xlu1 %v212_v5  ;;  %216 = vadd.xlane.f32.xlu0 %v215_v16  ;;  %v132_v17 = vpop.xlane.xlu0 %131  ;;  %v135_v18 = vpop.xlane.xlu1 %134  ;;  %v10695_v6 = vshrl.u32 %v309_v61, 7 }
  0xb6   :  { %v159_v22 = vmul.f32 0.03125, %v132_v17  ;;  %v160_v23 = vmul.f32 0.03125, %v135_v18  ;;  %v189_v24 = vmul.f32 %v10640_v12, %v10640_v12  ;;  %v190_v10 = vmul.f32 %v10643_v9, %v10643_v9 }
  0xb7   :  { %14672 = vst [vmem:[#allocation5_spill] sm:$0xff] %v10695_v6 }
  0xb8   :  { %v10652_v25 = vsub.f32 %v10546_v14, %v159_v22  ;;  %v10655_v13 = vsub.f32 %v10551_v15, %v160_v23  ;;  %v221_v26 = vsel %vm99_vm0, %v189_v24, 0.0  ;;  %v224_v31 = vsel %vm99_vm0, %v190_v10, 0.0  ;;  %v10703_v24 = vld [vmem:[%s14636_s8] sm:$0xff] }
  0xb9   :  { %219 = vadd.xlane.f32.xlu1 %v218_v19  ;;  %222 = vadd.xlane.f32.xlu0 %v221_v26  ;;  %v138_v27 = vpop.xlane.xlu0 %137  ;;  %v141_v30 = vpop.xlane.xlu1 %140  ;;  %v10698_v19 = vsub.s32 0, %v10695_v6 }
  0xba   :  { %v161_v32 = vmul.f32 0.03125, %v138_v27  ;;  %v162_v33 = vmul.f32 0.03125, %v141_v30  ;;  %v191_v34 = vmul.f32 %v10652_v25, %v10652_v25  ;;  %v192_v14 = vmul.f32 %v10655_v13, %v10655_v13 }
  0xbb   :  { %14673 = vst [vmem:[#allocation6_spill] sm:$0xff] %v10698_v19 }
  0xbc   :  { %v10664_v35 = vsub.f32 %v10564_v20, %v161_v32  ;;  %v10667_v15 = vsub.f32 %v10569_v21, %v162_v33  ;;  %v227_v38 = vsel %vm99_vm0, %v191_v34, 0.0  ;;  %v230_v41 = vsel %vm99_vm0, %v192_v14, 0.0 }
  0xbd   :  { %225 = vadd.xlane.f32.xlu1 %v224_v31  ;;  %228 = vadd.xlane.f32.xlu0 %v227_v38  ;;  %v144_v39 = vpop.xlane.xlu0 %143  ;;  %v147_v40 = vpop.xlane.xlu1 %146  ;;  %v10708_v33 = vrot.slane %v10703_v24, %v10698_v19  ;;  %v14639_v34 = vsub.s32 1, %v10695_v6 }
  0xbe   :  { %v163_v42 = vmul.f32 0.03125, %v144_v39  ;;  %v164_v43 = vmul.f32 0.03125, %v147_v40  ;;  %v193_v46 = vmul.f32 %v10664_v35, %v10664_v35  ;;  %v194_v20 = vmul.f32 %v10667_v15, %v10667_v15 }
  0xc0   :  { %v10676_v47 = vsub.f32 %v10586_v28, %v163_v42  ;;  %v10679_v21 = vsub.f32 %v10591_v29, %v164_v43  ;;  %v233_v48 = vsel %vm99_vm0, %v193_v46, 0.0  ;;  %v236_v49 = vsel %vm99_vm0, %v194_v20, 0.0  ;;  %v9637_v29 = vld [vmem:[%s14631_s3] sm:$0xff]  }
  0xc1   :  { %231 = vadd.xlane.f32.xlu1 %v230_v41  ;;  %234 = vadd.xlane.f32.xlu0 %v233_v48  ;;  %v10716_v48 = vrot.slane %v10703_v24, %v14639_v34  ;;  %v88_v34 = vld [vmem:[#allocation2 + $0xa8] sm:$0xff] }
  0xc2   :  { %v195_v50 = vmul.f32 %v10676_v47, %v10676_v47  ;;  %v196_v51 = vmul.f32 %v10679_v21, %v10679_v21  ;;  %8606 = vmatprep.subr.bf16.mxu0 %v9637_v29 }
  0xc3   :  { %8607 = vmatpush3.bf16.msra.mxu0 %v9637_v29 }
  0xc4   :  { %v239_v52 = vsel %vm99_vm0, %v195_v50, 0.0  ;;  %v242_v28 = vsel %vm99_vm0, %v196_v51, 0.0  ;;  %8608 = vmatprep.subr.bf16.mxu0 %v9638_v53 }
  0xc5   :  { %237 = vadd.xlane.f32.xlu1 %v236_v49  ;;  %240 = vadd.xlane.f32.xlu0 %v239_v52 }
  0xc7   :  { %8609 = vmatpush3.bf16.msra.mxu0 %v9638_v53 }
  0xc9   :  { %243 = vadd.xlane.f32.xlu1 %v242_v28 }
 0x136   :  { %v199_v56 = vpop.xlane.xlu0 %198 }
 0x137   :  { %v245_v57 = vmul.f32 0.03125, %v199_v56 }
 0x139   :  { %v261_v58 = vadd.f32 1e-05, %v245_v57 }
 0x13a   :  { %v202_v59 = vpop.xlane.xlu1 %201  ;;  %v205_v60 = vpop.xlane.xlu0 %204 }
 0x13b   :  { %9667 = vrsqrt.f32 %v261_v58  ;;  %v246_v62 = vmul.f32 0.03125, %v202_v59  ;;  %v247_v63 = vmul.f32 0.03125, %v205_v60 }
 0x13d   :  { %v262_v2 = vadd.f32 1e-05, %v246_v62  ;;  %v263_v3 = vadd.f32 1e-05, %v247_v63 }
 0x13e   :  { %v208_v4 = vpop.xlane.xlu1 %207  ;;  %v211_v5 = vpop.xlane.xlu0 %210 }
 0x13f   :  { %9669 = vrsqrt.f32 %v262_v2  ;;  %v248_v7 = vmul.f32 0.03125, %v208_v4  ;;  %v249_v11 = vmul.f32 0.03125, %v211_v5 }
 0x140   :  { %9671 = vrsqrt.f32 %v263_v3 }
 0x141   :  { %v264_v8 = vadd.f32 1e-05, %v248_v7  ;;  %v265_v16 = vadd.f32 1e-05, %v249_v11 }
 0x142   :  { %v214_v17 = vpop.xlane.xlu1 %213  ;;  %v217_v18 = vpop.xlane.xlu0 %216 }
 0x143   :  { %9673 = vrsqrt.f32 %v264_v8  ;;  %v250_v22 = vmul.f32 0.03125, %v214_v17  ;;  %v251_v23 = vmul.f32 0.03125, %v217_v18 }
 0x144   :  { %9675 = vrsqrt.f32 %v265_v16 }
 0x145   :  { %v9668_v10 = vpop.eup %9667  ;;  %v266_v26 = vadd.f32 1e-05, %v250_v22  ;;  %v267_v27 = vadd.f32 1e-05, %v251_v23 }
 0x146   :  { %v220_v30 = vpop.xlane.xlu1 %219  ;;  %v223_v31 = vpop.xlane.xlu0 %222  ;;  %v293_v32 = vmul.f32 %v9668_v10, %v10597_v36 }
 0x147   :  { %9677 = vrsqrt.f32 %v266_v26  ;;  %v252_v14 = vmul.f32 0.03125, %v220_v30  ;;  %v253_v38 = vmul.f32 0.03125, %v223_v31 }
 0x148   :  { %9679 = vrsqrt.f32 %v267_v27  ;;  %v313_v36 = vmul.f32 %v10708_v33, %v293_v32 }
 0x149   :  { %v9670_v39 = vpop.eup %9669  ;;  %v268_v40 = vadd.f32 1e-05, %v252_v14  ;;  %v269_v41 = vadd.f32 1e-05, %v253_v38 }
 0x14a   :  { %v9672_v42 = vpop.eup %9671  ;;  %v226_v43 = vpop.xlane.xlu1 %225  ;;  %v294_v20 = vmul.f32 %v9670_v39, %v10605_v44  ;;  %v333_v58 = vadd.f32 %v10716_v48, %v313_v36 }
 0x14b   :  { %v229_v46 = vpop.xlane.xlu0 %228  ;;  %9681 = vrsqrt.f32 %v268_v40  ;;  %v254_v49 = vmul.f32 0.03125, %v226_v43  ;;  %v295_v51 = vmul.f32 %v9672_v42, %v10599_v37 }
 0x14c   :  { %v255_v50 = vmul.f32 0.03125, %v229_v46  ;;  %9683 = vrsqrt.f32 %v269_v41  ;;  %v314_v52 = vmul.f32 %v10708_v33, %v294_v20 }
 0x14d   :  { %v9674_v28 = vpop.eup %9673  ;;  %v270_v29 = vadd.f32 1e-05, %v254_v49  ;;  %v315_v61 = vmul.f32 %v10708_v33, %v295_v51 }
 0x14e   :  { %v271_v53 = vadd.f32 1e-05, %v255_v50  ;;  %v9676_v56 = vpop.eup %9675  ;;  %v232_v44 = vpop.xlane.xlu1 %231  ;;  %v334_v59 = vadd.f32 %v10716_v48, %v314_v52  ;;  %v296_v60 = vmul.f32 %v9674_v28, %v10607_v45 }
 0x14f   :  { %v235_v57 = vpop.xlane.xlu0 %234  ;;  %9685 = vrsqrt.f32 %v270_v29  ;;  %v256_v62 = vmul.f32 0.03125, %v232_v44  ;;  %v297_v3 = vmul.f32 %v9676_v56, %v10616_v54  ;;  %v335_v45 = vadd.f32 %v10716_v48, %v315_v61 }
 0x150   :  { %v257_v37 = vmul.f32 0.03125, %v235_v57  ;;  %9687 = vrsqrt.f32 %v271_v53  ;;  %v349_v63 = vpack.c.bf16 %v334_v59, %v333_v58  ;;  %v316_v2 = vmul.f32 %v10708_v33, %v296_v60 }
 0x151   :  { %v9678_v4 = vpop.eup %9677  ;;  %v272_v5 = vadd.f32 1e-05, %v256_v62  ;;  %v317_v22 = vmul.f32 %v10708_v33, %v297_v3 }
 0x152   :  { %v273_v7 = vadd.f32 1e-05, %v257_v37  ;;  %v9680_v11 = vpop.eup %9679  ;;  %v238_v8 = vpop.xlane.xlu1 %237  ;;  %8610 = vmatprep.mubr.msk.bf16.mxu0 %vm99_vm0, %v349_v63  ;;  %v336_v17 = vadd.f32 %v10716_v48, %v316_v2  ;;  %v298_v18 = vmul.f32 %v9678_v4, %v10619_v55 }
 0x153   :  { %v241_v16 = vpop.xlane.xlu0 %240  ;;  %9689 = vrsqrt.f32 %v272_v5  ;;  %v258_v23 = vmul.f32 0.03125, %v238_v8  ;;  %v299_v54 = vmul.f32 %v9680_v11, %v10628_v0  ;;  %v337_v55 = vadd.f32 %v10716_v48, %v317_v22 }
 0x154   :  { %v259_v10 = vmul.f32 0.03125, %v241_v16  ;;  %9691 = vrsqrt.f32 %v273_v7  ;;  %v350_v26 = vpack.c.bf16 %v336_v17, %v335_v45  ;;  %v318_v27 = vmul.f32 %v10708_v33, %v298_v18 }
 0x155   :  { %v9682_v30 = vpop.eup %9681  ;;  %v274_v31 = vadd.f32 1e-05, %v258_v23  ;;  %v319_v41 = vmul.f32 %v10708_v33, %v299_v54  ;;  %v14638_v22 = vsub.s32 2, %v10695_v6 }
 0x156   :  { %v275_v32 = vadd.f32 1e-05, %v259_v10  ;;  %v9684_v14 = vpop.eup %9683  ;;  %v244_v38 = vpop.xlane.xlu1 %243  ;;  %8611 = vmatmul.mubr.msk.bf16.vlgmr.msra.gmra.mrb[0].mxu0 %vm99_vm0, %v350_v26  ;;  %v338_v39 = vadd.f32 %v10716_v48, %v318_v27  ;;  %v300_v40 = vmul.f32 %v9682_v30, %v10631_v1 }
 0x157   :  { %9693 = vrsqrt.f32 %v274_v31  ;;  %v260_v0 = vmul.f32 0.03125, %v244_v38  ;;  %v301_v42 = vmul.f32 %v9684_v14, %v10640_v12  ;;  %v339_v50 = vadd.f32 %v10716_v48, %v319_v41 }
 0x158   :  { %9695 = vrsqrt.f32 %v275_v32  ;;  %v351_v43 = vpack.c.bf16 %v338_v39, %v337_v55  ;;  %v320_v46 = vmul.f32 %v10708_v33, %v300_v40 }
 0x159   :  { %v9686_v20 = vpop.eup %9685  ;;  %v276_v36 = vadd.f32 1e-05, %v260_v0  ;;  %v321_v52 = vmul.f32 %v10708_v33, %v301_v42 }
 0x15a   :  { %v9688_v49 = vpop.eup %9687  ;;  %8614 = vmatprep.mubr.msk.bf16.mxu0 %vm99_vm0, %v351_v43  ;;  %v340_v51 = vadd.f32 %v10716_v48, %v320_v46  ;;  %v302_v1 = vmul.f32 %v9686_v20, %v10643_v9 }
 0x15b   :  { %9697 = vrsqrt.f32 %v276_v36  ;;  %v303_v12 = vmul.f32 %v9688_v49, %v10652_v25  ;;  %v341_v44 = vadd.f32 %v10716_v48, %v321_v52 }
 0x15c   :  { %v352_v28 = vpack.c.bf16 %v340_v51, %v339_v50  ;;  %v322_v29 = vmul.f32 %v10708_v33, %v302_v1 }
 0x15d   :  { %v9690_v53 = vpop.eup %9689  ;;  %v323_v9 = vmul.f32 %v10708_v33, %v303_v12 }
 0x15e   :  { %v9692_v56 = vpop.eup %9691  ;;  %8615 = vmatmul.mubr.msk.bf16.gmra.mrb[4].mxu0 %vm99_vm0, %v352_v28  ;;  %v342_v57 = vadd.f32 %v10716_v48, %v322_v29  ;;  %v304_v58 = vmul.f32 %v9690_v53, %v10655_v13 }
 0x15f   :  { %v305_v59 = vmul.f32 %v9692_v56, %v10664_v35  ;;  %v343_v37 = vadd.f32 %v10716_v48, %v323_v9 }
 0x160   :  { %v353_v60 = vpack.c.bf16 %v342_v57, %v341_v44  ;;  %v324_v25 = vmul.f32 %v10708_v33, %v304_v58 }
 0x161   :  { %v9694_v61 = vpop.eup %9693  ;;  %v325_v3 = vmul.f32 %v10708_v33, %v305_v59 }
 0x162   :  { %v9696_v62 = vpop.eup %9695  ;;  %8618 = vmatprep.mubr.msk.bf16.mxu0 %vm99_vm0, %v353_v60  ;;  %v344_v63 = vadd.f32 %v10716_v48, %v324_v25  ;;  %v306_v2 = vmul.f32 %v9694_v61, %v10667_v15 }
 0x163   :  { %v307_v13 = vmul.f32 %v9696_v62, %v10676_v47  ;;  %v345_v7 = vadd.f32 %v10716_v48, %v325_v3 }
 0x164   :  { %v354_v4 = vpack.c.bf16 %v344_v63, %v343_v37  ;;  %v326_v35 = vmul.f32 %v10708_v33, %v306_v2 }
 0x165   :  { %v9698_v5 = vpop.eup %9697  ;;  %v327_v16 = vmul.f32 %v10708_v33, %v307_v13 }
 0x166   :  { %8619 = vmatmul.mubr.msk.bf16.gmra.mrb[8].mxu0 %vm99_vm0, %v354_v4  ;;  %v346_v11 = vadd.f32 %v10716_v48, %v326_v35  ;;  %v308_v8 = vmul.f32 %v9698_v5, %v10679_v21  ;;  %v364_v21 = vrot.slane %v10703_v24, %v14638_v22 }
 0x167   :  { %v347_v47 = vadd.f32 %v10716_v48, %v327_v16 }
 0x168   :  { %v355_v45 = vpack.c.bf16 %v346_v11, %v345_v7  ;;  %v328_v15 = vmul.f32 %v10708_v33, %v308_v8 }
 0x16a   :  { %8622 = vmatprep.mubr.msk.bf16.mxu0 %vm99_vm0, %v355_v45  ;;  %v348_v17 = vadd.f32 %v10716_v48, %v328_v15 }
 0x16c   :  { %v356_v18 = vpack.c.bf16 %v348_v17, %v347_v47 }
 0x16e   :  { %8623 = vmatmul.mubr.msk.bf16.gmra.mrb[12].mxu0 %vm99_vm0, %v356_v18 }
 0x229   :  { %v8612_v23 = vpop.f32.mrb[0].mxu0 }
 0x22a   :  { %v435_v10 = vpop.f32.mrb[1].mxu0  ;;  %v444_v26 = vadd.f32 %v8612_v23, %v364_v21 }
 0x22b   :  { %v8613_v54 = vpop.f32.mrb[2].mxu0  ;;  %v436_v30 = vadd.f32 %v435_v10, %v364_v21 }
 0x22c   :  { %v447_v33 = vadd.f32 %v8613_v54, %v364_v21  ;;  %v438_v27 = vpop.f32.mrb[3].mxu0 }
 0x22d   :  { %v439_v31 = vadd.f32 %v438_v27, %v364_v21 }
 0x22e   :  { %v10775_v32 = vpack.c.bf16 %v447_v33, %v444_v26 }
 0x22f   :  { %v10777_v48 = vpack.c.bf16 %v439_v31, %v436_v30  ;;  %v69_v30 = vld [vmem:[#allocation2 + $0x10] sm:$0xff] }
 0x230   :  { %512 = vrot.lane.b32.xlu1 %v10775_v32, %s10418_s18 }
 0x231   :  { %510 = vrot.lane.b32.xlu0 %v10777_v48, %s10418_s18  ;;  %v8616_v24 = vpop.f32.mrb[4].mxu0  ;;  %8634 = vmatprep.mubr.msk.bf16.mxu1 %vm518_vm1, %v10777_v48 }
 0x232   :  { %v451_v14 = vpop.f32.mrb[5].mxu0  ;;  %v460_v55 = vadd.f32 %v8616_v24, %v364_v21  ;;  %v67_v24 = vld [vmem:[#allocation2] sm:$0xff] }
 0x233   :  { %v8617_v38 = vpop.f32.mrb[6].mxu0  ;;  %v452_v41 = vadd.f32 %v451_v14, %v364_v21 }
 0x234   :  { %v463_v39 = vadd.f32 %v8617_v38, %v364_v21  ;;  %v454_v40 = vpop.f32.mrb[7].mxu0 }
 0x235   :  { %v455_v0 = vadd.f32 %v454_v40, %v364_v21 }
 0x236   :  { %v10785_v42 = vpack.c.bf16 %v463_v39, %v460_v55  ;;  %v68_v55 = vld [vmem:[#allocation2 + $0x8] sm:$0xff] }
 0x237   :  { %v10787_v43 = vpack.c.bf16 %v455_v0, %v452_v41 }
 0x238   :  { %516 = vrot.lane.b32.xlu0 %v10785_v42, %s10418_s18 }
 0x239   :  { %514 = vrot.lane.b32.xlu1 %v10787_v43, %s10418_s18  ;;  %v8620_v46 = vpop.f32.mrb[8].mxu0 }
 0x23a   :  { %v467_v20 = vpop.f32.mrb[9].mxu0  ;;  %v476_v49 = vadd.f32 %v8620_v46, %v364_v21  ;;  %v70_v46 = vld [vmem:[#allocation2 + $0x18] sm:$0xff] }
 0x23b   :  { %v8621_v36 = vpop.f32.mrb[10].mxu0  ;;  %v468_v1 = vadd.f32 %v467_v20, %v364_v21 }
 0x23c   :  { %v479_v50 = vadd.f32 %v8621_v36, %v364_v21  ;;  %v470_v51 = vpop.f32.mrb[11].mxu0 }
 0x23d   :  { %v471_v52 = vadd.f32 %v470_v51, %v364_v21  ;;  %v73_v51 = vld [vmem:[#allocation2 + $0x30] sm:$0xff] }
 0x23e   :  { %v10793_v12 = vpack.c.bf16 %v479_v50, %v476_v49 }
 0x23f   :  { %v10795_v28 = vpack.c.bf16 %v471_v52, %v468_v1  ;;  %v74_v52 = vld [vmem:[#allocation2 + $0x38] sm:$0xff] }
 0x241   :  { %612 = vrot.lane.b32.xlu1 %v10795_v28, %s10418_s18  ;;  %v8624_v29 = vpop.f32.mrb[12].mxu0  ;;  %8650 = vmatprep.mubr.msk.bf16.mxu0 %vm518_vm1, %v10795_v28 }
 0x242   :  { %v483_v53 = vpop.f32.mrb[13].mxu0  ;;  %v492_v44 = vadd.f32 %v8624_v29, %v364_v21 }
 0x243   :  { %v8625_v56 = vpop.f32.mrb[14].mxu0  ;;  %v484_v9 = vadd.f32 %v483_v53, %v364_v21 }
 0x244   :  { %v495_v57 = vadd.f32 %v8625_v56, %v364_v21  ;;  %v486_v58 = vpop.f32.mrb[15].mxu0  ;;  %v72_v56 = vld [vmem:[#allocation2 + $0x28] sm:$0xff] }
 0x245   :  { %v487_v59 = vadd.f32 %v486_v58, %v364_v21  ;;  %614 = vrot.lane.b32.xlu1 %v10793_v12, %s10418_s18 }
 0x246   :  { %v10803_v60 = vpack.c.bf16 %v495_v57, %v492_v44 }
 0x247   :  { %v10805_v25 = vpack.c.bf16 %v487_v59, %v484_v9  ;;  %v71_v59 = vld [vmem:[#allocation2 + $0x20] sm:$0xff] }
 0x249   :  { %618 = vrot.lane.b32.xlu1 %v10803_v60, %s10418_s18  ;;  %616 = vrot.lane.b32.xlu0 %v10805_v25, %s10418_s18 }
 0x24d   :  { %896 = vrot.lane.b32.xlu1 %v10775_v32, %s10419_s19  ;;  %894 = vrot.lane.b32.xlu0 %v10777_v48, %s10419_s19 }
 0x251   :  { %900 = vrot.lane.b32.xlu1 %v10785_v42, %s10419_s19  ;;  %898 = vrot.lane.b32.xlu0 %v10787_v43, %s10419_s19 }
 0x255   :  { %985 = vrot.lane.b32.xlu1 %v10793_v12, %s10419_s19  ;;  %983 = vrot.lane.b32.xlu0 %v10795_v28, %s10419_s19 }
 0x259   :  { %1080 = vrot.lane.b32.xlu1 %v10777_v48, %s10420_s21  ;;  %989 = vrot.lane.b32.xlu0 %v10803_v60, %s10419_s19 }
 0x25d   :  { %1082 = vrot.lane.b32.xlu1 %v10775_v32, %s10420_s21 }
 0x261   :  { %987 = vrot.lane.b32.xlu1 %v10805_v25, %s10419_s19 }
 0x2a2   :  { %v513_v37 = vpop.permute.xlu1 %512 }
 0x2a3   :  { %v511_v61 = vpop.permute.xlu0 %510  ;;  %v535_v63 = vsel %vm518_vm1, %v513_v37, 0 }
 0x2a4   :  { %9314 = vmatprep.subr.msk.bf16.mxu1 %vm518_vm1, %v511_v61  ;;  %v532_v62 = vsel %vm518_vm1, %v511_v61, 0 }
 0x2a5   :  { %8627 = vmatpush3.bf16.xpose.msra.mxu1 %v532_v62 }
 0x2a6   :  { %9315 = vmatprep.subr.msk.bf16.mxu1 %vm518_vm1, %v513_v37 }
 0x2aa   :  { %v517_v35 = vpop.permute.xlu0 %516 }
 0x2ab   :  { %v515_v2 = vpop.permute.xlu1 %514  ;;  %v541_v8 = vsel %vm518_vm1, %v517_v35, 0 }
 0x2ac   :  { %v538_v13 = vsel %vm518_vm1, %v515_v2, 0 }
 0x2ad   :  { %8629 = vmatpush3.bf16.xpose.msra.mxu1 %v535_v63 }
 0x2ae   :  { %9316 = vmatprep.subr.msk.bf16.mxu1 %vm518_vm1, %v515_v2 }
 0x2b3   :  { %v613_v3 = vpop.permute.xlu1 %612 }
 0x2b4   :  { %9318 = vmatprep.subr.msk.bf16.mxu0 %vm518_vm1, %v613_v3  ;;  %v633_v4 = vsel %vm518_vm1, %v613_v3, 0 }
 0x2b5   :  { %8631 = vmatpush3.bf16.xpose.msra.mxu1 %v538_v13  ;;  %8643 = vmatpush3.bf16.xpose.msra.mxu0 %v633_v4 }
 0x2b6   :  { %9317 = vmatprep.subr.msk.bf16.mxu1 %vm518_vm1, %v517_v35 }
 0x2b7   :  { %v615_v5 = vpop.permute.xlu1 %614 }
 0x2b8   :  { %9319 = vmatprep.subr.msk.bf16.mxu0 %vm518_vm1, %v615_v5  ;;  %v636_v16 = vsel %vm518_vm1, %v615_v5, 0 }
 0x2bb   :  { %v619_v7 = vpop.permute.xlu1 %618  ;;  %v617_v11 = vpop.permute.xlu0 %616 }
 0x2bc   :  { %v639_v17 = vsel %vm518_vm1, %v617_v11, 0  ;;  %v642_v23 = vsel %vm518_vm1, %v619_v7, 0 }
 0x2bd   :  { %8633 = vmatpush3.bf16.xpose.msra.mxu1 %v541_v8  ;;  %8645 = vmatpush3.bf16.xpose.msra.mxu0 %v636_v16 }
 0x2be   :  { %9320 = vmatprep.subr.msk.bf16.mxu0 %vm518_vm1, %v617_v11 }
 0x2bf   :  { %v897_v45 = vpop.permute.xlu1 %896  ;;  %v895_v15 = vpop.permute.xlu0 %894 }
 0x2c0   :  { %8658 = vmatprep.subr.bf16.mxu1 %v895_v15 }
 0x2c3   :  { %v901_v47 = vpop.permute.xlu1 %900  ;;  %v899_v18 = vpop.permute.xlu0 %898 }
 0x2c4   :  { %8635 = vmatmul.mubr.msk.bf16.vlgmr.msra.gmra.mrb[0].mxu1 %vm518_vm1, %v10775_v32 }
 0x2c5   :  { %8638 = vmatprep.mubr.msk.bf16.mxu1 %vm518_vm1, %v10787_v43  ;;  %8647 = vmatpush3.bf16.xpose.msra.mxu0 %v639_v17 }
 0x2c6   :  { %8659 = vmatpush3.bf16.msra.mxu1 %v895_v15  ;;  %9321 = vmatprep.subr.msk.bf16.mxu0 %vm518_vm1, %v619_v7 }
 0x2c7   :  { %8660 = vmatprep.subr.bf16.mxu1 %v897_v45  ;;  %v986_v21 = vpop.permute.xlu1 %985  ;;  %v984_v10 = vpop.permute.xlu0 %983 }
 0x2ca   :  { %8661 = vmatpush3.bf16.msra.mxu1 %v897_v45 }
 0x2cb   :  { %8662 = vmatprep.subr.bf16.mxu1 %v899_v18  ;;  %v10853_v54 = vpop.permute.xlu1 %1080  ;;  %v990_v27 = vpop.permute.xlu0 %989 }
 0x2cc   :  { %8639 = vmatmul.mubr.msk.bf16.gmra.mrb[4].mxu1 %vm518_vm1, %v10785_v42 }
 0x2cd   :  { %8649 = vmatpush3.bf16.xpose.msra.mxu0 %v642_v23 }
 0x2ce   :  { %8663 = vmatpush3.bf16.msra.mxu1 %v899_v18  ;;  %8674 = vmatprep.subr.bf16.mxu0 %v984_v10 }
 0x2cf   :  { %8664 = vmatprep.subr.bf16.mxu1 %v901_v47  ;;  %v10855_v26 = vpop.permute.xlu1 %1082 }
 0x2d2   :  { %8665 = vmatpush3.bf16.msra.mxu1 %v901_v47 }
 0x2d3   :  { %9322 = vmatprep.subr.msk.bf16.mxu1 %vm518_vm1, %v10853_v54  ;;  %v988_v33 = vpop.permute.xlu1 %987 }
 0x2d4   :  { %8651 = vmatmul.mubr.msk.bf16.vlgmr.msra.gmra.mrb[16].mxu0 %vm518_vm1, %v10793_v12 }
 0x2d5   :  { %8654 = vmatprep.mubr.msk.bf16.mxu0 %vm518_vm1, %v10805_v25  ;;  %8675 = vmatpush3.bf16.msra.mxu0 %v984_v10 }
 0x2d6   :  { %8676 = vmatprep.subr.bf16.mxu0 %v986_v21 }
 0x2d9   :  { %8677 = vmatpush3.bf16.msra.mxu0 %v986_v21 }
 0x2da   :  { %8678 = vmatprep.subr.bf16.mxu0 %v988_v33 }
 0x2dc   :  { %8655 = vmatmul.mubr.msk.bf16.gmra.mrb[20].mxu0 %vm518_vm1, %v10803_v60 }
 0x2dd   :  { %8679 = vmatpush3.bf16.msra.mxu0 %v988_v33 }
 0x2de   :  { %8680 = vmatprep.subr.bf16.mxu0 %v990_v27 }
 0x2e1   :  { %8681 = vmatpush3.bf16.msra.mxu0 %v990_v27 }
 0x397   :  { %v8636_v31 = vpop.f32.mrb[0].mxu1 }
 0x398   :  { %v10865_v14 = vadd.f32 %v8636_v31, %v69_v30  ;;  %v577_v38 = vpop.f32.mrb[1].mxu1 }
 0x399   :  { %v8637_v39 = vpop.f32.mrb[2].mxu1  ;;  %v10867_v40 = vadd.f32 %v577_v38, %v67_v24 }
 0x39a   :  { %v580_v41 = vpop.f32.mrb[3].mxu1  ;;  %v716_v0 = vsel %vm709_vm2, %v10865_v14, -inf  ;;  %v10875_v49 = vadd.f32 %v8637_v39, %v70_v46 }
 0x39b   :  { %v10871_v20 = vadd.f32 %v580_v41, %v68_v55  ;;  %717 = vmax.xlane.f32.xlu0 %v716_v0  ;;  %v710_v50 = vsel %vm709_vm2, %v10867_v40, -inf }
 0x39c   :  { %v719_v9 = vsel %vm709_vm2, %v10875_v49, -inf }
 0x39d   :  { %v713_v36 = vsel %vm709_vm2, %v10871_v20, -inf }
 0x39e   :  { %714 = vmax.xlane.f32.xlu1 %v713_v36 }
 0x39f   :  { %v8640_v1 = vpop.f32.mrb[4].mxu1  ;;  %711 = vmax.xlane.f32.xlu0 %v710_v50 }
 0x3a0   :  { %v593_v29 = vpop.f32.mrb[5].mxu1  ;;  %v10879_v44 = vadd.f32 %v8640_v1, %v73_v51 }
 0x3a1   :  { %v8641_v53 = vpop.f32.mrb[6].mxu1  ;;  %v10889_v37 = vadd.f32 %v593_v29, %v71_v59 }
 0x3a2   :  { %v10881_v57 = vadd.f32 %v8641_v53, %v74_v52  ;;  %v596_v58 = vpop.f32.mrb[7].mxu1  ;;  %v728_v63 = vsel %vm709_vm2, %v10879_v44, -inf }
 0x3a3   :  { %720 = vmax.xlane.f32.xlu0 %v719_v9  ;;  %v10885_v61 = vadd.f32 %v596_v58, %v72_v56  ;;  %v722_v7 = vsel %vm709_vm2, %v10889_v37, -inf }
 0x3a4   :  { %v731_v62 = vsel %vm709_vm2, %v10881_v57, -inf }
 0x3a5   :  { %732 = vmax.xlane.f32.xlu1 %v731_v62  ;;  %v725_v13 = vsel %vm709_vm2, %v10885_v61, -inf }
 0x3a7   :  { %729 = vmax.xlane.f32.xlu0 %v728_v63  ;;  %v8652_v2 = vpop.f32.mrb[16].mxu0 }
 0x3a8   :  { %v678_v3 = vpop.f32.mrb[17].mxu0  ;;  %v10895_v35 = vadd.f32 %v8652_v2, %v69_v30 }
 0x3a9   :  { %726 = vmax.xlane.f32.xlu1 %v725_v13  ;;  %v8653_v4 = vpop.f32.mrb[18].mxu0  ;;  %v10901_v8 = vadd.f32 %v678_v3, %v67_v24 }
 0x3aa   :  { %v681_v5 = vpop.f32.mrb[19].mxu0  ;;  %v740_v16 = vsel %vm709_vm2, %v10895_v35, -inf  ;;  %v10921_v27 = vadd.f32 %v8653_v4, %v70_v46 }
 0x3ab   :  { %v10899_v11 = vadd.f32 %v681_v5, %v68_v55  ;;  %723 = vmax.xlane.f32.xlu0 %v722_v7  ;;  %v734_v10 = vsel %vm709_vm2, %v10901_v8, -inf }
 0x3ac   :  { %v743_v30 = vsel %vm709_vm2, %v10921_v27, -inf }
 0x3ad   :  { %v737_v31 = vsel %vm709_vm2, %v10899_v11, -inf }
 0x3af   :  { %741 = vmax.xlane.f32.xlu0 %v740_v16  ;;  %v8656_v45 = vpop.f32.mrb[20].mxu0 }
 0x3b0   :  { %v10905_v15 = vadd.f32 %v8656_v45, %v73_v51  ;;  %v694_v47 = vpop.f32.mrb[21].mxu0 }
 0x3b1   :  { %v10907_v17 = vadd.f32 %v694_v47, %v71_v59  ;;  %v8657_v18 = vpop.f32.mrb[22].mxu0 }
 0x3b2   :  { %v10909_v21 = vadd.f32 %v8657_v18, %v74_v52  ;;  %v697_v23 = vpop.f32.mrb[23].mxu0  ;;  %v752_v24 = vsel %vm709_vm2, %v10905_v15, -inf }
 0x3b3   :  { %v10913_v33 = vadd.f32 %v697_v23, %v72_v56  ;;  %735 = vmax.xlane.f32.xlu0 %v734_v10  ;;  %v746_v55 = vsel %vm709_vm2, %v10907_v17, -inf }
 0x3b4   :  { %v755_v38 = vsel %vm709_vm2, %v10909_v21, -inf }
 0x3b5   :  { %v749_v39 = vsel %vm709_vm2, %v10913_v33, -inf }
 0x3ba   :  { %1185 = vrot.lane.b32.xlu1 %v10795_v28, %s10420_s21 }
 0x3be   :  { %1086 = vrot.lane.b32.xlu1 %v10785_v42, %s10420_s21 }
 0x3c9   :  { %1084 = vrot.lane.b32.xlu0 %v10787_v43, %s10420_s21 }
 0x3e2   :  { %744 = vmax.xlane.f32.xlu1 %v743_v30 }
 0x3e6   :  { %738 = vmax.xlane.f32.xlu1 %v737_v31 }
 0x3e8   :  { %753 = vmax.xlane.f32.xlu0 %v752_v24 }
 0x3ea   :  { %756 = vmax.xlane.f32.xlu1 %v755_v38 }
 0x3ec   :  { %747 = vmax.xlane.f32.xlu0 %v746_v55 }
 0x3ee   :  { %750 = vmax.xlane.f32.xlu1 %v749_v39 }
 0x3ff   :  { %1187 = vrot.lane.b32.xlu1 %v10793_v12, %s10420_s21 }
 0x428   :  { %v718_v41 = vpop.xlane.xlu0 %717 }
 0x429   :  { %v760_v0 = vsub.f32 %v10865_v14, %v718_v41 }
 0x42b   :  { %v778_v46 = vmul.f32 1.442695, %v760_v0  ;;  %v715_v36 = vpop.xlane.xlu1 %714 }
 0x42c   :  { %v712_v50 = vpop.xlane.xlu0 %711  ;;  %v759_v1 = vsub.f32 %v10871_v20, %v715_v36 }
 0x42d   :  { %9699 = vpow2.f32 %v778_v46  ;;  %v758_v51 = vsub.f32 %v10867_v40, %v712_v50 }
 0x42e   :  { %v776_v58 = vmul.f32 1.442695, %v759_v1 }
 0x42f   :  { %v774_v52 = vmul.f32 1.442695, %v758_v51 }
 0x430   :  { %v721_v29 = vpop.xlane.xlu0 %720 }
 0x431   :  { %9701 = vpow2.f32 %v774_v52  ;;  %v761_v53 = vsub.f32 %v10875_v49, %v721_v29 }
 0x432   :  { %v733_v56 = vpop.xlane.xlu1 %732 }
 0x433   :  { %v780_v9 = vmul.f32 1.442695, %v761_v53  ;;  %v765_v40 = vsub.f32 %v10881_v57, %v733_v56 }
 0x434   :  { %v730_v59 = vpop.xlane.xlu0 %729 }
 0x435   :  { %9703 = vpow2.f32 %v780_v9  ;;  %v764_v14 = vsub.f32 %v10879_v44, %v730_v59  ;;  %v788_v7 = vmul.f32 1.442695, %v765_v40 }
 0x436   :  { %v727_v62 = vpop.xlane.xlu1 %726  ;;  %9705 = vpow2.f32 %v776_v58 }
 0x437   :  { %v10942_v63 = vpop.eup %9699  ;;  %v786_v2 = vmul.f32 1.442695, %v764_v14  ;;  %v763_v20 = vsub.f32 %v10885_v61, %v727_v62 }
 0x438   :  { %v724_v3 = vpop.xlane.xlu0 %723  ;;  %v812_v49 = vsel %vm709_vm2, %v10942_v63, 0.0 }
 0x439   :  { %9707 = vpow2.f32 %v786_v2  ;;  %v784_v13 = vmul.f32 1.442695, %v763_v20  ;;  %v762_v4 = vsub.f32 %v10889_v37, %v724_v3  ;;  %813 = vadd.xlane.f32.xlu0 %v812_v49 }
 0x43a   :  { %v10949_v5 = vpop.permute.xlu1 %1185 }
 0x43b   :  { %v10951_v44 = vpop.eup %9701  ;;  %9709 = vpow2.f32 %v784_v13  ;;  %v782_v16 = vmul.f32 1.442695, %v762_v4  ;;  %9326 = vmatprep.subr.msk.bf16.mxu0 %vm518_vm1, %v10949_v5 }
 0x43c   :  { %v742_v57 = vpop.xlane.xlu0 %741  ;;  %v806_v61 = vsel %vm709_vm2, %v10951_v44, 0.0 }
 0x43d   :  { %9711 = vpow2.f32 %v782_v16  ;;  %v768_v45 = vsub.f32 %v10895_v35, %v742_v57  ;;  %807 = vadd.xlane.f32.xlu0 %v806_v61 }
 0x43e   :  { %9713 = vpow2.f32 %v788_v7  ;;  %v10991_v52 = vpop.permute.xlu1 %1086 }
 0x43f   :  { %v10958_v37 = vpop.eup %9703  ;;  %v794_v47 = vmul.f32 1.442695, %v768_v45 }
 0x440   :  { %v736_v18 = vpop.xlane.xlu0 %735  ;;  %v815_v23 = vsel %vm709_vm2, %v10958_v37, 0.0  ;;  %v10962_v10 = vpop.eup %9705 }
 0x441   :  { %9715 = vpow2.f32 %v794_v47  ;;  %v766_v30 = vsub.f32 %v10901_v8, %v736_v18  ;;  %816 = vadd.xlane.f32.xlu1 %v815_v23  ;;  %v809_v35 = vsel %vm709_vm2, %v10962_v10, 0.0 }
 0x443   :  { %v10965_v31 = vpop.eup %9707  ;;  %v790_v24 = vmul.f32 1.442695, %v766_v30 }
 0x444   :  { %v824_v38 = vsel %vm709_vm2, %v10965_v31, 0.0 }
 0x445   :  { %v10971_v55 = vpop.eup %9709  ;;  %9717 = vpow2.f32 %v790_v24  ;;  %810 = vadd.xlane.f32.xlu1 %v809_v35  ;;  %825 = vadd.xlane.f32.xlu0 %v824_v38 }
 0x446   :  { %v821_v8 = vsel %vm709_vm2, %v10971_v55, 0.0 }
 0x447   :  { %v10973_v39 = vpop.eup %9711 }
 0x448   :  { %v818_v41 = vsel %vm709_vm2, %v10973_v39, 0.0  ;;  %v10979_v0 = vpop.eup %9713 }
 0x449   :  { %822 = vadd.xlane.f32.xlu1 %v821_v8  ;;  %819 = vadd.xlane.f32.xlu0 %v818_v41  ;;  %v827_v36 = vsel %vm709_vm2, %v10979_v0, 0.0 }
 0x44b   :  { %v10981_v46 = vpop.eup %9715 }
 0x44c   :  { %v836_v50 = vsel %vm709_vm2, %v10981_v46, 0.0 }
 0x44d   :  { %828 = vadd.xlane.f32.xlu0 %v827_v36  ;;  %837 = vadd.xlane.f32.xlu1 %v836_v50 }
 0x44f   :  { %v10987_v51 = vpop.eup %9717 }
 0x450   :  { %v830_v1 = vsel %vm709_vm2, %v10987_v51, 0.0 }
 0x451   :  { %831 = vadd.xlane.f32.xlu1 %v830_v1 }
 0x46f   :  { %v745_v29 = vpop.xlane.xlu1 %744 }
 0x470   :  { %v769_v53 = vsub.f32 %v10921_v27, %v745_v29 }
 0x472   :  { %v796_v56 = vmul.f32 1.442695, %v769_v53 }
 0x473   :  { %v739_v58 = vpop.xlane.xlu1 %738 }
 0x474   :  { %9719 = vpow2.f32 %v796_v56  ;;  %v767_v9 = vsub.f32 %v10899_v11, %v739_v58  ;;  %v11005_v11 = vpop.permute.xlu0 %1084 }
 0x476   :  { %v792_v59 = vmul.f32 1.442695, %v767_v9 }
 0x477   :  { %v757_v27 = vpop.xlane.xlu1 %756 }
 0x478   :  { %9721 = vpow2.f32 %v792_v59  ;;  %v754_v3 = vpop.xlane.xlu0 %753  ;;  %v773_v61 = vsub.f32 %v10909_v21, %v757_v27 }
 0x479   :  { %v772_v13 = vsub.f32 %v10905_v15, %v754_v3 }
 0x47a   :  { %v804_v47 = vmul.f32 1.442695, %v773_v61 }
 0x47b   :  { %v751_v20 = vpop.xlane.xlu1 %750  ;;  %v802_v16 = vmul.f32 1.442695, %v772_v13 }
 0x47c   :  { %v771_v49 = vsub.f32 %v10913_v33, %v751_v20  ;;  %v748_v7 = vpop.xlane.xlu0 %747 }
 0x47d   :  { %v770_v57 = vsub.f32 %v10907_v17, %v748_v7 }
 0x47e   :  { %v10995_v14 = vpop.eup %9719  ;;  %v800_v4 = vmul.f32 1.442695, %v771_v49 }
 0x47f   :  { %v839_v62 = vsel %vm709_vm2, %v10995_v14, 0.0  ;;  %v798_v45 = vmul.f32 1.442695, %v770_v57  ;;  %v11031_v38 = vpop.permute.xlu1 %1187  ;;  %v1104_v57 = vsel %vm518_vm1, %v10855_v26, 0 }
 0x480   :  { %840 = vadd.xlane.f32.xlu1 %v839_v62  ;;  %9723 = vpow2.f32 %v800_v4 }
 0x481   :  { %9725 = vpow2.f32 %v802_v16 }
 0x482   :  { %v10999_v40 = vpop.eup %9721  ;;  %9727 = vpow2.f32 %v798_v45 }
 0x483   :  { %v833_v2 = vsel %vm709_vm2, %v10999_v40, 0.0  ;;  %9729 = vpow2.f32 %v804_v47 }
 0x484   :  { %834 = vadd.xlane.f32.xlu0 %v833_v2 }
 0x48a   :  { %v11013_v18 = vpop.eup %9723 }
 0x48b   :  { %v845_v33 = vsel %vm709_vm2, %v11013_v18, 0.0  ;;  %v11017_v23 = vpop.eup %9725 }
 0x48c   :  { %v848_v15 = vsel %vm709_vm2, %v11017_v23, 0.0  ;;  %v11021_v17 = vpop.eup %9727 }
 0x48d   :  { %v842_v21 = vsel %vm709_vm2, %v11021_v17, 0.0  ;;  %v11025_v30 = vpop.eup %9729 }
 0x48e   :  { %v851_v24 = vsel %vm709_vm2, %v11025_v30, 0.0 }
 0x491   :  { %1074 = vrot.lane.b32.xlu1 %v10775_v32, %s10421_s22 }
 0x49a   :  { %1072 = vrot.lane.b32.xlu0 %v10777_v48, %s10421_s22 }
 0x4b5   :  { %846 = vadd.xlane.f32.xlu1 %v845_v33 }
 0x4b9   :  { %849 = vadd.xlane.f32.xlu0 %v848_v15 }
 0x4bd   :  { %843 = vadd.xlane.f32.xlu0 %v842_v21 }
 0x4c1   :  { %852 = vadd.xlane.f32.xlu0 %v851_v24 }
 0x4c6   :  { %1191 = vrot.lane.b32.xlu1 %v10803_v60, %s10420_s21  ;;  %v814_v35 = vpop.xlane.xlu0 %813 }
 0x4ca   :  { %1179 = vrot.lane.b32.xlu1 %v10793_v12, %s10421_s22  ;;  %v808_v8 = vpop.xlane.xlu0 %807 }
 0x4ce   :  { %v817_v41 = vpop.xlane.xlu1 %816  ;;  %1078 = vrot.lane.b32.xlu1 %v10785_v42, %s10421_s22 }
 0x4cf   :  { %9731 = vrcp.f32 %v817_v41 }
 0x4d0   :  { %9733 = vrcp.f32 %v808_v8 }
 0x4d1   :  { %9735 = vrcp.f32 %v814_v35 }
 0x4d2   :  { %v811_v36 = vpop.xlane.xlu1 %810  ;;  %1183 = vrot.lane.b32.xlu1 %v10803_v60, %s10421_s22  ;;  %v826_v50 = vpop.xlane.xlu0 %825 }
 0x4d3   :  { %9737 = vrcp.f32 %v811_v36 }
 0x4d6   :  { %v823_v1 = vpop.xlane.xlu1 %822  ;;  %1468 = vrot.lane.b32.xlu1 %v10775_v32, %s10422_s23  ;;  %v820_v29 = vpop.xlane.xlu0 %819 }
 0x4d7   :  { %9739 = vrcp.f32 %v823_v1  ;;  %1189 = vrot.lane.b32.xlu0 %v10805_v25, %s10420_s21 }
 0x4d8   :  { %9741 = vrcp.f32 %v820_v29  ;;  %v1206_v29 = vsel %vm518_vm1, %v10949_v5, 0 }
 0x4d9   :  { %v9732_v53 = vpop.eup %9731  ;;  %9743 = vrcp.f32 %v826_v50 }
 0x4da   :  { %1472 = vrot.lane.b32.xlu1 %v10785_v42, %s10422_s23  ;;  %v829_v56 = vpop.xlane.xlu0 %828  ;;  %v9734_v58 = vpop.eup %9733  ;;  %v873_v62 = vmul.f32 %v9732_v53, %v10958_v37 }
 0x4db   :  { %1177 = vrot.lane.b32.xlu0 %v10795_v28, %s10421_s22  ;;  %v9736_v9 = vpop.eup %9735  ;;  %9745 = vrcp.f32 %v829_v56  ;;  %v870_v2 = vmul.f32 %v9734_v58, %v10951_v44 }
 0x4dc   :  { %v872_v20 = vmul.f32 %v9736_v9, %v10942_v63  ;;  %v1101_v63 = vsel %vm518_vm1, %v10853_v54, 0 }
 0x4dd   :  { %v9738_v59 = vpop.eup %9737 }
 0x4de   :  { %1557 = vrot.lane.b32.xlu1 %v10793_v12, %s10422_s23  ;;  %v871_v27 = vmul.f32 %v9738_v59, %v10962_v10  ;;  %v887_v13 = vpack.c.bf16 %v873_v62, %v872_v20 }
 0x4df   :  { %1076 = vrot.lane.b32.xlu0 %v10787_v43, %s10421_s22 }
 0x4e0   :  { %v886_v3 = vpack.c.bf16 %v871_v27, %v870_v2 }
 0x4e1   :  { %v9740_v49 = vpop.eup %9739 }
 0x4e2   :  { %v9742_v4 = vpop.eup %9741  ;;  %1652 = vrot.lane.b32.xlu1 %v10777_v48, %s10423_s24  ;;  %8666 = vmatprep.mubr.msk.bf16.mxu1 %vm709_vm2, %v886_v3  ;;  %v875_v37 = vmul.f32 %v9740_v49, %v10971_v55 }
 0x4e3   :  { %1181 = vrot.lane.b32.xlu0 %v10805_v25, %s10421_s22  ;;  %8667 = vmatmul.mubr.msk.bf16.vlgmr.msra.gmra.mrb[8].mxu1 %vm709_vm2, %v887_v13  ;;  %v874_v44 = vmul.f32 %v9742_v4, %v10973_v39  ;;  %v9744_v10 = vpop.eup %9743 }
 0x4e4   :  { %8691 = vmatpush3.bf16.xpose.msra.mxu1 %v1101_v63  ;;  %v876_v55 = vmul.f32 %v9744_v10, %v10965_v31  ;;  %v1107_v31 = vsel %vm518_vm1, %v11005_v11, 0 }
 0x4e5   :  { %9323 = vmatprep.subr.msk.bf16.mxu1 %vm518_vm1, %v10855_v26  ;;  %v888_v7 = vpack.c.bf16 %v875_v37, %v874_v44  ;;  %v9746_v16 = vpop.eup %9745  ;;  %v1110_v26 = vsel %vm518_vm1, %v10991_v52, 0 }
 0x4e6   :  { %1559 = vrot.lane.b32.xlu1 %v10805_v25, %s10422_s23  ;;  %v877_v54 = vmul.f32 %v9746_v16, %v10979_v0  ;;  %v838_v0 = vpop.xlane.xlu1 %837 }
 0x4e7   :  { %8670 = vmatprep.mubr.msk.bf16.mxu1 %vm709_vm2, %v888_v7  ;;  %1466 = vrot.lane.b32.xlu0 %v10777_v48, %s10422_s23 }
 0x4e8   :  { %v889_v39 = vpack.c.bf16 %v877_v54, %v876_v55 }
 0x4ea   :  { %1654 = vrot.lane.b32.xlu1 %v10775_v32, %s10423_s24  ;;  %v832_v61 = vpop.xlane.xlu1 %831 }
 0x4eb   :  { %1470 = vrot.lane.b32.xlu0 %v10787_v43, %s10422_s23  ;;  %8671 = vmatmul.mubr.msk.bf16.gmra.mrb[12].mxu1 %vm709_vm2, %v889_v39 }
 0x4ec   :  { %8693 = vmatpush3.bf16.xpose.msra.mxu1 %v1104_v57 }
 0x4ed   :  { %9324 = vmatprep.subr.msk.bf16.mxu1 %vm518_vm1, %v11005_v11 }
 0x4ef   :  { %1555 = vrot.lane.b32.xlu0 %v10795_v28, %s10422_s23 }
 0x4f3   :  { %1561 = vrot.lane.b32.xlu0 %v10803_v60, %s10422_s23 }
 0x4f4   :  { %8695 = vmatpush3.bf16.xpose.msra.mxu1 %v1107_v31 }
 0x4f5   :  { %9325 = vmatprep.subr.msk.bf16.mxu1 %vm518_vm1, %v10991_v52 }
 0x4fc   :  { %8697 = vmatpush3.bf16.xpose.msra.mxu1 %v1110_v26 }
 0x50d   :  { %v841_v45 = vpop.xlane.xlu1 %840 }
 0x50e   :  { %9747 = vrcp.f32 %v841_v45 }
 0x50f   :  { %9749 = vrcp.f32 %v832_v61 }
 0x510   :  { %9751 = vrcp.f32 %v838_v0 }
 0x511   :  { %v835_v47 = vpop.xlane.xlu0 %834  ;;  %v1075_v15 = vpop.permute.xlu1 %1074 }
 0x512   :  { %9753 = vrcp.f32 %v835_v47 }
 0x515   :  { %v1073_v33 = vpop.permute.xlu0 %1072 }
 0x516   :  { %8698 = vmatprep.mubr.msk.bf16.mxu1 %vm518_vm1, %v1073_v33 }
 0x517   :  { %8699 = vmatmul.mubr.msk.bf16.vlgmr.msra.gmra.mrb[16].mxu1 %vm518_vm1, %v1075_v15 }
 0x518   :  { %v9748_v11 = vpop.eup %9747 }
 0x519   :  { %v9750_v21 = vpop.eup %9749  ;;  %v881_v52 = vmul.f32 %v9748_v11, %v10995_v14 }
 0x51a   :  { %v9752_v24 = vpop.eup %9751  ;;  %v878_v8 = vmul.f32 %v9750_v21, %v10987_v51  ;;  %v1209_v51 = vsel %vm518_vm1, %v11031_v38, 0  ;;  %v77_v21 = vld [vmem:[#allocation2 + $0x50] sm:$0xff] }
 0x51b   :  { %v880_v36 = vmul.f32 %v9752_v24, %v10981_v46 }
 0x51c   :  { %v9754_v35 = vpop.eup %9753 }
 0x51d   :  { %v879_v41 = vmul.f32 %v9754_v35, %v10999_v40  ;;  %v891_v1 = vpack.c.bf16 %v881_v52, %v880_v36  ;;  %v75_v35 = vld [vmem:[#allocation2 + $0x40] sm:$0xff] }
 0x51f   :  { %v890_v50 = vpack.c.bf16 %v879_v41, %v878_v8  ;;  %v11145_v41 = vld [vmem:[#allocation2 + $0x48] sm:$0xff] }
 0x521   :  { %8682 = vmatprep.mubr.msk.bf16.mxu0 %vm709_vm2, %v890_v50 }
 0x522   :  { %8683 = vmatmul.mubr.msk.bf16.vlgmr.msra.gmra.mrb[24].mxu0 %vm709_vm2, %v891_v1 }
 0x523   :  { %8707 = vmatpush3.bf16.xpose.msra.mxu0 %v1206_v29 }
 0x524   :  { %9327 = vmatprep.subr.msk.bf16.mxu0 %vm518_vm1, %v11031_v38 }
 0x52b   :  { %8709 = vmatpush3.bf16.xpose.msra.mxu0 %v1209_v51  ;;  %v78_v51 = vld [vmem:[#allocation2 + $0x58] sm:$0xff] }
 0x542   :  { %v847_v14 = vpop.xlane.xlu1 %846 }
 0x543   :  { %9755 = vrcp.f32 %v847_v14 }
 0x546   :  { %v1192_v40 = vpop.permute.xlu1 %1191  ;;  %v850_v46 = vpop.xlane.xlu0 %849 }
 0x547   :  { %v1215_v7 = vsel %vm518_vm1, %v1192_v40, 0 }
 0x54a   :  { %v1180_v53 = vpop.permute.xlu1 %1179  ;;  %v844_v56 = vpop.xlane.xlu0 %843 }
 0x54b   :  { %9757 = vrcp.f32 %v844_v56 }
 0x54c   :  { %9759 = vrcp.f32 %v850_v46 }
 0x54d   :  { %v9756_v62 = vpop.eup %9755 }
 0x54e   :  { %v1079_v58 = vpop.permute.xlu1 %1078  ;;  %v853_v9 = vpop.xlane.xlu0 %852  ;;  %v883_v3 = vmul.f32 %v9756_v62, %v11013_v18  ;;  %v81_v62 = vld [vmem:[#allocation2 + $0x70] sm:$0xff] }
 0x54f   :  { %9761 = vrcp.f32 %v853_v9 }
 0x552   :  { %v1184_v5 = vpop.permute.xlu1 %1183  ;;  %v1190_v59 = vpop.permute.xlu0 %1189 }
 0x553   :  { %9328 = vmatprep.subr.msk.bf16.mxu0 %vm518_vm1, %v1190_v59  ;;  %v1212_v2 = vsel %vm518_vm1, %v1190_v59, 0 }
 0x554   :  { %8711 = vmatpush3.bf16.xpose.msra.mxu0 %v1212_v2 }
 0x555   :  { %v9758_v38 = vpop.eup %9757  ;;  %9329 = vmatprep.subr.msk.bf16.mxu0 %vm518_vm1, %v1192_v40 }
 0x556   :  { %v1178_v27 = vpop.permute.xlu0 %1177  ;;  %v882_v20 = vmul.f32 %v9758_v38, %v11021_v17  ;;  %v9760_v49 = vpop.eup %9759  ;;  %v79_v38 = vld [vmem:[#allocation2 + $0x60] sm:$0xff] }
 0x557   :  { %v1469_v13 = vpop.permute.xlu1 %1468  ;;  %v884_v44 = vmul.f32 %v9760_v49, %v11017_v23 }
 0x558   :  { %v892_v4 = vpack.c.bf16 %v883_v3, %v882_v20 }
 0x559   :  { %v9762_v37 = vpop.eup %9761 }
 0x55a   :  { %8686 = vmatprep.mubr.msk.bf16.mxu0 %vm709_vm2, %v892_v4  ;;  %v1077_v63 = vpop.permute.xlu0 %1076  ;;  %v885_v10 = vmul.f32 %v9762_v37, %v11025_v30  ;;  %v80_v4 = vld [vmem:[#allocation2 + $0x68] sm:$0xff] }
 0x55b   :  { %8702 = vmatprep.mubr.msk.bf16.mxu1 %vm518_vm1, %v1077_v63  ;;  %v1473_v18 = vpop.permute.xlu1 %1472 }
 0x55c   :  { %8703 = vmatmul.mubr.msk.bf16.gmra.mrb[20].mxu1 %vm518_vm1, %v1079_v58  ;;  %8713 = vmatpush3.bf16.xpose.msra.mxu0 %v1215_v7  ;;  %v893_v17 = vpack.c.bf16 %v885_v10, %v884_v44 }
 0x55e   :  { %8687 = vmatmul.mubr.msk.bf16.gmra.mrb[28].mxu0 %vm709_vm2, %v893_v17  ;;  %v1182_v16 = vpop.permute.xlu0 %1181 }
 0x55f   :  { %8714 = vmatprep.mubr.msk.bf16.mxu0 %vm518_vm1, %v1178_v27  ;;  %v1558_v54 = vpop.permute.xlu1 %1557  ;;  %v82_v27 = vld [vmem:[#allocation2 + $0x78] sm:$0xff] }
 0x562   :  { %v1467_v55 = vpop.permute.xlu0 %1466 }
 0x563   :  { %8722 = vmatprep.subr.bf16.mxu1 %v1467_v55  ;;  %v11122_v30 = vpop.permute.xlu1 %1652 }
 0x564   :  { %8723 = vmatpush3.bf16.msra.mxu1 %v1467_v55 }
 0x565   :  { %8724 = vmatprep.subr.bf16.mxu1 %v1469_v13 }
 0x566   :  { %8715 = vmatmul.mubr.msk.bf16.vlgmr.msra.gmra.mrb[32].mxu0 %vm518_vm1, %v1180_v53  ;;  %v1471_v23 = vpop.permute.xlu0 %1470 }
 0x567   :  { %8718 = vmatprep.mubr.msk.bf16.mxu0 %vm518_vm1, %v1182_v16  ;;  %v1560_v57 = vpop.permute.xlu1 %1559 }
 0x568   :  { %8725 = vmatpush3.bf16.msra.mxu1 %v1469_v13 }
 0x569   :  { %8726 = vmatprep.subr.bf16.mxu1 %v1471_v23 }
 0x56a   :  { %v1556_v39 = vpop.permute.xlu0 %1555 }
 0x56b   :  { %8738 = vmatprep.subr.bf16.mxu0 %v1556_v39 }
 0x56c   :  { %8727 = vmatpush3.bf16.msra.mxu1 %v1471_v23  ;;  %8739 = vmatpush3.bf16.msra.mxu0 %v1556_v39 }
 0x56d   :  { %8728 = vmatprep.subr.bf16.mxu1 %v1473_v18  ;;  %8740 = vmatprep.subr.bf16.mxu0 %v1558_v54 }
 0x56e   :  { %8719 = vmatmul.mubr.msk.bf16.gmra.mrb[36].mxu0 %vm518_vm1, %v1184_v5  ;;  %v1562_v31 = vpop.permute.xlu0 %1561 }
 0x570   :  { %8729 = vmatpush3.bf16.msra.mxu1 %v1473_v18  ;;  %8741 = vmatpush3.bf16.msra.mxu0 %v1558_v54 }
 0x571   :  { %8742 = vmatprep.subr.bf16.mxu0 %v1560_v57  ;;  %9330 = vmatprep.subr.msk.bf16.mxu1 %vm518_vm1, %v11122_v30 }
 0x574   :  { %8743 = vmatpush3.bf16.msra.mxu0 %v1560_v57 }
 0x575   :  { %8744 = vmatprep.subr.bf16.mxu0 %v1562_v31 }
 0x578   :  { %8745 = vmatpush3.bf16.msra.mxu0 %v1562_v31 }
 0x5b6   :  { %v11127_v26 = vpop.f32.mrb[8].mxu1 }
 0x5b7   :  { %14674 = vst [vmem:[#allocation7_spill] sm:$0xff] %v11127_v26  ;;  %v11129_v0 = vpop.f32.mrb[9].mxu1 }
 0x5b8   :  { %14675 = vst [vmem:[#allocation8_spill] sm:$0xff] %v11129_v0  ;;  %v11131_v61 = vpop.f32.mrb[10].mxu1 }
 0x5b9   :  { %14676 = vst [vmem:[#allocation9_spill] sm:$0xff] %v11131_v61  ;;  %v11133_v45 = vpop.f32.mrb[11].mxu1 }
 0x5be   :  { %v11135_v47 = vpop.f32.mrb[12].mxu1 }
 0x5bf   :  { %14677 = vst [vmem:[#allocation10_spill] sm:$0xff] %v11135_v47  ;;  %v11137_v33 = vpop.f32.mrb[13].mxu1 }
 0x5c0   :  { %14678 = vst [vmem:[#allocation11_spill] sm:$0xff] %v11137_v33  ;;  %v11139_v15 = vpop.f32.mrb[14].mxu1 }
 0x5c1   :  { %14679 = vst [vmem:[#allocation12_spill] sm:$0xff] %v11139_v15  ;;  %v11141_v11 = vpop.f32.mrb[15].mxu1 }
 0x5c2   :  { %14680 = vst [vmem:[#allocation13_spill] sm:$0xff] %v11141_v11 }
 0x5ea   :  { %v8700_v24 = vpop.f32.mrb[16].mxu1 }
 0x5eb   :  { %v11143_v52 = vadd.f32 %v8700_v24, %v77_v21  ;;  %v1146_v8 = vpop.f32.mrb[17].mxu1 }
 0x5ec   :  { %v8701_v36 = vpop.f32.mrb[18].mxu1  ;;  %v11147_v50 = vadd.f32 %v1146_v8, %v75_v35 }
 0x5ed   :  { %v1149_v1 = vpop.f32.mrb[19].mxu1  ;;  %v1288_v29 = vsel %vm709_vm2, %v11143_v52, -inf  ;;  %v11156_v46 = vadd.f32 %v8701_v36, %v78_v51 }
 0x5ee   :  { %v11152_v14 = vadd.f32 %v1149_v1, %v11145_v41  ;;  %1289 = vmax.xlane.f32.xlu0 %v1288_v29  ;;  %v1282_v53 = vsel %vm709_vm2, %v11147_v50, -inf }
 0x5ef   :  { %v1291_v58 = vsel %vm709_vm2, %v11156_v46, -inf }
 0x5f0   :  { %v1285_v40 = vsel %vm709_vm2, %v11152_v14, -inf }
 0x5f1   :  { %1286 = vmax.xlane.f32.xlu1 %v1285_v40 }
 0x5f2   :  { %1283 = vmax.xlane.f32.xlu0 %v1282_v53 }
 0x5f5   :  { %v11160_v56 = vpop.f32.mrb[24].mxu0 }
 0x5f6   :  { %14681 = vst [vmem:[#allocation14_spill] sm:$0xff] %v11160_v56  ;;  %v11164_v9 = vpop.f32.mrb[25].mxu0  ;;  %1292 = vmax.xlane.f32.xlu0 %v1291_v58 }
 0x5f7   :  { %14682 = vst [vmem:[#allocation15_spill] sm:$0xff] %v11164_v9  ;;  %v11166_v5 = vpop.f32.mrb[26].mxu0 }
 0x5f8   :  { %14683 = vst [vmem:[#allocation16_spill] sm:$0xff] %v11166_v5  ;;  %v11168_v59 = vpop.f32.mrb[27].mxu0 }
 0x5f9   :  { %14684 = vst [vmem:[#allocation17_spill] sm:$0xff] %v11168_v59 }
 0x62f   :  { %v8704_v2 = vpop.f32.mrb[20].mxu1 }
 0x630   :  { %v11170_v20 = vadd.f32 %v8704_v2, %v81_v62  ;;  %v1162_v3 = vpop.f32.mrb[21].mxu1 }
 0x631   :  { %v11172_v49 = vpop.f32.mrb[28].mxu0  ;;  %v8705_v13 = vpop.f32.mrb[22].mxu1  ;;  %v11174_v37 = vadd.f32 %v1162_v3, %v79_v38 }
 0x632   :  { %14685 = vst [vmem:[#allocation18_spill] sm:$0xff] %v11172_v49  ;;  %v11176_v63 = vadd.f32 %v8705_v13, %v82_v27  ;;  %v11178_v44 = vpop.f32.mrb[29].mxu0  ;;  %v1165_v10 = vpop.f32.mrb[23].mxu1  ;;  %v1300_v7 = vsel %vm709_vm2, %v11170_v20, -inf }
 0x633   :  { %14686 = vst [vmem:[#allocation19_spill] sm:$0xff] %v11178_v44  ;;  %v11182_v17 = vpop.f32.mrb[30].mxu0  ;;  %1301 = vmax.xlane.f32.xlu0 %v1300_v7  ;;  %v11184_v18 = vadd.f32 %v1165_v10, %v80_v4  ;;  %v1294_v54 = vsel %vm709_vm2, %v11174_v37, -inf }
 0x634   :  { %14687 = vst [vmem:[#allocation20_spill] sm:$0xff] %v11182_v17  ;;  %v11186_v16 = vpop.f32.mrb[31].mxu0  ;;  %v1303_v55 = vsel %vm709_vm2, %v11176_v63, -inf }
 0x635   :  { %14688 = vst [vmem:[#allocation21_spill] sm:$0xff] %v11186_v16  ;;  %1304 = vmax.xlane.f32.xlu1 %v1303_v55  ;;  %v1297_v23 = vsel %vm709_vm2, %v11184_v18, -inf }
 0x637   :  { %1295 = vmax.xlane.f32.xlu0 %v1294_v54 }
 0x639   :  { %v8716_v39 = vpop.f32.mrb[32].mxu0  ;;  %1298 = vmax.xlane.f32.xlu1 %v1297_v23 }
 0x63a   :  { %v11194_v57 = vadd.f32 %v8716_v39, %v77_v21  ;;  %v1251_v31 = vpop.f32.mrb[33].mxu0 }
 0x63b   :  { %v8717_v24 = vpop.f32.mrb[34].mxu0  ;;  %v11196_v8 = vadd.f32 %v1251_v31, %v75_v35 }
 0x63c   :  { %v1254_v36 = vpop.f32.mrb[35].mxu0  ;;  %v1312_v1 = vsel %vm709_vm2, %v11194_v57, -inf }
 0x63d   :  { %1313 = vmax.xlane.f32.xlu0 %v1312_v1  ;;  %v1306_v29 = vsel %vm709_vm2, %v11196_v8, -inf }
 0x641   :  { %1307 = vmax.xlane.f32.xlu0 %v1306_v29  ;;  %v8720_v40 = vpop.f32.mrb[36].mxu0 }
 0x642   :  { %v11202_v53 = vadd.f32 %v8720_v40, %v81_v62  ;;  %v1267_v58 = vpop.f32.mrb[37].mxu0  ;;  %v11216_v62 = vadd.f32 %v8717_v24, %v78_v51  ;;  %v11245_v40 = vpop.permute.xlu1 %1654 }
 0x643   :  { %v11204_v2 = vadd.f32 %v1267_v58, %v79_v38  ;;  %v8721_v21 = vpop.f32.mrb[38].mxu0  ;;  %v11219_v38 = vadd.f32 %v1254_v36, %v11145_v41 }
 0x644   :  { %v11206_v3 = vadd.f32 %v8721_v21, %v82_v27  ;;  %v1270_v35 = vpop.f32.mrb[39].mxu0  ;;  %v1315_v27 = vsel %vm709_vm2, %v11216_v62, -inf  ;;  %v1324_v10 = vsel %vm709_vm2, %v11202_v53, -inf }
 0x645   :  { %v11208_v13 = vadd.f32 %v1270_v35, %v80_v4  ;;  %v1309_v4 = vsel %vm709_vm2, %v11219_v38, -inf  ;;  %v1318_v51 = vsel %vm709_vm2, %v11204_v2, -inf }
 0x646   :  { %v1327_v7 = vsel %vm709_vm2, %v11206_v3, -inf }
 0x647   :  { %v1321_v54 = vsel %vm709_vm2, %v11208_v13, -inf }
 0x64a   :  { %1757 = vrot.lane.b32.xlu1 %v10795_v28, %s10423_s24 }
 0x64e   :  { %1658 = vrot.lane.b32.xlu1 %v10785_v42, %s10423_s24 }
 0x657   :  { %1656 = vrot.lane.b32.xlu0 %v10787_v43, %s10423_s24 }
 0x672   :  { %1316 = vmax.xlane.f32.xlu1 %v1315_v27 }
 0x676   :  { %1310 = vmax.xlane.f32.xlu1 %v1309_v4  ;;  %1325 = vmax.xlane.f32.xlu0 %v1324_v10 }
 0x67a   :  { %1328 = vmax.xlane.f32.xlu1 %v1327_v7  ;;  %1319 = vmax.xlane.f32.xlu0 %v1318_v51 }
 0x67b   :  { %v1290_v41 = vpop.xlane.xlu0 %1289 }
 0x67c   :  { %v1332_v55 = vsub.f32 %v11143_v52, %v1290_v41 }
 0x67e   :  { %v1350_v23 = vmul.f32 1.442695, %v1332_v55  ;;  %1322 = vmax.xlane.f32.xlu1 %v1321_v54  ;;  %v1287_v21 = vpop.xlane.xlu1 %1286 }
 0x67f   :  { %v1284_v39 = vpop.xlane.xlu0 %1283  ;;  %v1331_v35 = vsub.f32 %v11152_v14, %v1287_v21 }
 0x680   :  { %9763 = vpow2.f32 %v1350_v23  ;;  %v1330_v31 = vsub.f32 %v11147_v50, %v1284_v39 }
 0x681   :  { %v1348_v4 = vmul.f32 1.442695, %v1331_v35 }
 0x682   :  { %v1346_v24 = vmul.f32 1.442695, %v1330_v31 }
 0x683   :  { %v1293_v50 = vpop.xlane.xlu0 %1292 }
 0x684   :  { %9765 = vpow2.f32 %v1346_v24  ;;  %v1333_v58 = vsub.f32 %v11156_v46, %v1293_v50 }
 0x686   :  { %v1352_v27 = vmul.f32 1.442695, %v1333_v58 }
 0x688   :  { %9767 = vpow2.f32 %v1352_v27 }
 0x689   :  { %9769 = vpow2.f32 %v1348_v4 }
 0x68a   :  { %v11235_v36 = vpop.eup %9763 }
 0x68b   :  { %v1384_v1 = vsel %vm709_vm2, %v11235_v36, 0.0 }
 0x68c   :  { %1385 = vadd.xlane.f32.xlu0 %v1384_v1 }
 0x68e   :  { %v11239_v29 = vpop.eup %9765 }
 0x68f   :  { %1759 = vrot.lane.b32.xlu1 %v10793_v12, %s10423_s24  ;;  %v1378_v52 = vsel %vm709_vm2, %v11239_v29, 0.0 }
 0x690   :  { %1379 = vadd.xlane.f32.xlu0 %v1378_v52 }
 0x692   :  { %v11249_v10 = vpop.eup %9767 }
 0x693   :  { %v1387_v7 = vsel %vm709_vm2, %v11249_v10, 0.0  ;;  %v11253_v51 = vpop.eup %9769 }
 0x694   :  { %v1381_v41 = vsel %vm709_vm2, %v11253_v51, 0.0 }
 0x6b3   :  { %1388 = vadd.xlane.f32.xlu1 %v1387_v7 }
 0x6b7   :  { %1382 = vadd.xlane.f32.xlu1 %v1381_v41 }
 0x6c0   :  { %v1302_v46 = vpop.xlane.xlu0 %1301 }
 0x6c1   :  { %v1336_v55 = vsub.f32 %v11170_v20, %v1302_v46 }
 0x6c2   :  { %v1305_v14 = vpop.xlane.xlu1 %1304 }
 0x6c3   :  { %v1358_v54 = vmul.f32 1.442695, %v1336_v55  ;;  %v1337_v23 = vsub.f32 %v11176_v63, %v1305_v14 }
 0x6c4   :  { %v1296_v39 = vpop.xlane.xlu0 %1295 }
 0x6c5   :  { %9771 = vpow2.f32 %v1358_v54  ;;  %v1334_v31 = vsub.f32 %v11174_v37, %v1296_v39  ;;  %v1360_v24 = vmul.f32 1.442695, %v1337_v23 }
 0x6c6   :  { %v1299_v1 = vpop.xlane.xlu1 %1298 }
 0x6c7   :  { %v1354_v52 = vmul.f32 1.442695, %v1334_v31  ;;  %v1335_v50 = vsub.f32 %v11184_v18, %v1299_v1 }
 0x6c9   :  { %9773 = vpow2.f32 %v1354_v52  ;;  %v1356_v58 = vmul.f32 1.442695, %v1335_v50 }
 0x6ca   :  { %9775 = vpow2.f32 %v1360_v24  ;;  %v11261_v21 = vpop.permute.xlu1 %1757  ;;  %v1314_v35 = vpop.xlane.xlu0 %1313 }
 0x6cb   :  { %9777 = vpow2.f32 %v1356_v58  ;;  %v1340_v20 = vsub.f32 %v11194_v57, %v1314_v35  ;;  %9334 = vmatprep.subr.msk.bf16.mxu0 %vm518_vm1, %v11261_v21 }
 0x6cd   :  { %v1366_v63 = vmul.f32 1.442695, %v1340_v20 }
 0x6ce   :  { %v1308_v27 = vpop.xlane.xlu0 %1307  ;;  %v11291_v24 = vpop.permute.xlu1 %1658 }
 0x6cf   :  { %v11266_v37 = vpop.eup %9771  ;;  %9779 = vpow2.f32 %v1366_v63  ;;  %v1338_v4 = vsub.f32 %v11196_v8, %v1308_v27 }
 0x6d0   :  { %v1396_v18 = vsel %vm709_vm2, %v11266_v37, 0.0 }
 0x6d1   :  { %v1362_v7 = vmul.f32 1.442695, %v1338_v4  ;;  %1397 = vadd.xlane.f32.xlu0 %v1396_v18 }
 0x6d3   :  { %v11271_v41 = vpop.eup %9773  ;;  %9781 = vpow2.f32 %v1362_v7 }
 0x6d4   :  { %v11273_v46 = vpop.eup %9775  ;;  %v1390_v57 = vsel %vm709_vm2, %v11271_v41, 0.0 }
 0x6d5   :  { %v11277_v55 = vpop.eup %9777  ;;  %1391 = vadd.xlane.f32.xlu0 %v1390_v57  ;;  %v1399_v8 = vsel %vm709_vm2, %v11273_v46, 0.0 }
 0x6d6   :  { %v1393_v14 = vsel %vm709_vm2, %v11277_v55, 0.0 }
 0x6d7   :  { %1394 = vadd.xlane.f32.xlu1 %v1393_v14 }
 0x6d9   :  { %v11283_v54 = vpop.eup %9779  ;;  %1400 = vadd.xlane.f32.xlu0 %v1399_v8 }
 0x6da   :  { %v1408_v23 = vsel %vm709_vm2, %v11283_v54, 0.0 }
 0x6db   :  { %1409 = vadd.xlane.f32.xlu1 %v1408_v23 }
 0x6dd   :  { %v11287_v39 = vpop.eup %9781 }
 0x6de   :  { %v1402_v31 = vsel %vm709_vm2, %v11287_v39, 0.0 }
 0x6df   :  { %1403 = vadd.xlane.f32.xlu1 %v1402_v31 }
 0x6ff   :  { %v1317_v1 = vpop.xlane.xlu1 %1316 }
 0x700   :  { %v1341_v52 = vsub.f32 %v11216_v62, %v1317_v1 }
 0x702   :  { %v1368_v50 = vmul.f32 1.442695, %v1341_v52 }
 0x703   :  { %v1311_v58 = vpop.xlane.xlu1 %1310 }
 0x704   :  { %9783 = vpow2.f32 %v1368_v50  ;;  %v1339_v35 = vsub.f32 %v11219_v38, %v1311_v58  ;;  %v11305_v38 = vpop.permute.xlu0 %1656 }
 0x706   :  { %v1364_v20 = vmul.f32 1.442695, %v1339_v35 }
 0x707   :  { %v1329_v62 = vpop.xlane.xlu1 %1328 }
 0x708   :  { %9785 = vpow2.f32 %v1364_v20  ;;  %v1326_v57 = vpop.xlane.xlu0 %1325  ;;  %v1345_v50 = vsub.f32 %v11206_v3, %v1329_v62 }
 0x709   :  { %v1344_v8 = vsub.f32 %v11202_v53, %v1326_v57 }
 0x70b   :  { %v1323_v7 = vpop.xlane.xlu1 %1322  ;;  %v1374_v1 = vmul.f32 1.442695, %v1344_v8 }
 0x70c   :  { %v1343_v14 = vsub.f32 %v11208_v13, %v1323_v7  ;;  %v1320_v31 = vpop.xlane.xlu0 %1319 }
 0x70d   :  { %v1342_v52 = vsub.f32 %v11204_v2, %v1320_v31 }
 0x70e   :  { %v11295_v63 = vpop.eup %9783  ;;  %v1372_v23 = vmul.f32 1.442695, %v1343_v14 }
 0x70f   :  { %v1411_v27 = vsel %vm709_vm2, %v11295_v63, 0.0  ;;  %v1370_v35 = vmul.f32 1.442695, %v1342_v52  ;;  %v11313_v20 = vpop.permute.xlu1 %1759 }
 0x710   :  { %1412 = vadd.xlane.f32.xlu1 %v1411_v27  ;;  %9787 = vpow2.f32 %v1372_v23  ;;  %v1376_v27 = vmul.f32 1.442695, %v1345_v50 }
 0x711   :  { %9789 = vpow2.f32 %v1374_v1 }
 0x712   :  { %v11299_v4 = vpop.eup %9785  ;;  %9791 = vpow2.f32 %v1370_v35 }
 0x713   :  { %v1405_v18 = vsel %vm709_vm2, %v11299_v4, 0.0  ;;  %9793 = vpow2.f32 %v1376_v27 }
 0x714   :  { %1406 = vadd.xlane.f32.xlu0 %v1405_v18 }
 0x719   :  { %v1386_v58 = vpop.xlane.xlu0 %1385 }
 0x71a   :  { %v11315_v13 = vpop.eup %9787 }
 0x71b   :  { %v1417_v2 = vsel %vm709_vm2, %v11315_v13, 0.0  ;;  %v11319_v3 = vpop.eup %9789 }
 0x71c   :  { %v1420_v62 = vsel %vm709_vm2, %v11319_v3, 0.0  ;;  %v11323_v7 = vpop.eup %9791 }
 0x71d   :  { %v1380_v18 = vpop.xlane.xlu0 %1379  ;;  %v11325_v57 = vpop.eup %9793 }
 0x71e   :  { %v1423_v52 = vsel %vm709_vm2, %v11325_v57, 0.0 }
 0x721   :  { %1646 = vrot.lane.b32.xlu1 %v10775_v32, %s10424_s25 }
 0x72a   :  { %1644 = vrot.lane.b32.xlu0 %v10777_v48, %s10424_s25 }
 0x740   :  { %v1389_v22 = vpop.xlane.xlu1 %1388 }
 0x741   :  { %9795 = vrcp.f32 %v1389_v22  ;;  %v1414_v22 = vsel %vm709_vm2, %v11323_v7, 0.0 }
 0x742   :  { %9797 = vrcp.f32 %v1380_v18 }
 0x743   :  { %9799 = vrcp.f32 %v1386_v58 }
 0x744   :  { %v1383_v53 = vpop.xlane.xlu1 %1382 }
 0x745   :  { %9801 = vrcp.f32 %v1383_v53  ;;  %1418 = vadd.xlane.f32.xlu1 %v1417_v2  ;;  %v1673_v53 = vsel %vm518_vm1, %v11122_v30, 0  ;;  %v1682_v2 = vsel %vm518_vm1, %v11291_v24, 0 }
 0x749   :  { %1421 = vadd.xlane.f32.xlu0 %v1420_v62 }
 0x74b   :  { %v9796_v14 = vpop.eup %9795 }
 0x74c   :  { %v9798_v8 = vpop.eup %9797  ;;  %v1445_v1 = vmul.f32 %v9796_v14, %v11249_v10 }
 0x74d   :  { %1415 = vadd.xlane.f32.xlu0 %v1414_v22  ;;  %v9800_v23 = vpop.eup %9799  ;;  %v1442_v50 = vmul.f32 %v9798_v8, %v11239_v29 }
 0x74e   :  { %v1444_v35 = vmul.f32 %v9800_v23, %v11235_v36  ;;  %v1676_v36 = vsel %vm518_vm1, %v11245_v40, 0 }
 0x74f   :  { %v9802_v31 = vpop.eup %9801 }
 0x750   :  { %v1443_v58 = vmul.f32 %v9802_v31, %v11253_v51  ;;  %v1459_v18 = vpack.c.bf16 %v1445_v1, %v1444_v35  ;;  %v1679_v51 = vsel %vm518_vm1, %v11305_v38, 0 }
 0x751   :  { %1424 = vadd.xlane.f32.xlu0 %v1423_v52 }
 0x752   :  { %v1458_v27 = vpack.c.bf16 %v1443_v58, %v1442_v50 }
 0x754   :  { %8730 = vmatprep.mubr.msk.bf16.mxu1 %vm709_vm2, %v1458_v27 }
 0x755   :  { %8731 = vmatmul.mubr.msk.bf16.vlgmr.msra.gmra.mrb[24].mxu1 %vm709_vm2, %v1459_v18 }
 0x756   :  { %8755 = vmatpush3.bf16.xpose.msra.mxu1 %v1673_v53  ;;  %1763 = vrot.lane.b32.xlu1 %v10803_v60, %s10423_s24 }
 0x757   :  { %9331 = vmatprep.subr.msk.bf16.mxu1 %vm518_vm1, %v11245_v40 }
 0x75a   :  { %1751 = vrot.lane.b32.xlu1 %v10793_v12, %s10424_s25 }
 0x75e   :  { %8757 = vmatpush3.bf16.xpose.msra.mxu1 %v1676_v36  ;;  %1650 = vrot.lane.b32.xlu1 %v10785_v42, %s10424_s25  ;;  %v1398_v29 = vpop.xlane.xlu0 %1397 }
 0x75f   :  { %9332 = vmatprep.subr.msk.bf16.mxu1 %vm518_vm1, %v11305_v38 }
 0x762   :  { %1755 = vrot.lane.b32.xlu1 %v10803_v60, %s10424_s25  ;;  %v1392_v30 = vpop.xlane.xlu0 %1391 }
 0x763   :  { %9803 = vrcp.f32 %v1392_v30 }
 0x764   :  { %9805 = vrcp.f32 %v1398_v29  ;;  %v1395_v10 = vpop.xlane.xlu1 %1394 }
 0x765   :  { %9807 = vrcp.f32 %v1395_v10 }
 0x766   :  { %8759 = vmatpush3.bf16.xpose.msra.mxu1 %v1679_v51  ;;  %2040 = vrot.lane.b32.xlu1 %v10775_v32, %s10425_s26  ;;  %v1401_v40 = vpop.xlane.xlu0 %1400 }
 0x767   :  { %9333 = vmatprep.subr.msk.bf16.mxu1 %vm518_vm1, %v11291_v24  ;;  %9809 = vrcp.f32 %v1401_v40  ;;  %1761 = vrot.lane.b32.xlu0 %v10805_v25, %s10423_s24 }
 0x76a   :  { %2044 = vrot.lane.b32.xlu1 %v10785_v42, %s10425_s26 }
 0x76b   :  { %1749 = vrot.lane.b32.xlu0 %v10795_v28, %s10424_s25 }
 0x76d   :  { %v9804_v38 = vpop.eup %9803 }
 0x76e   :  { %v9806_v62 = vpop.eup %9805  ;;  %8761 = vmatpush3.bf16.xpose.msra.mxu1 %v1682_v2  ;;  %2129 = vrot.lane.b32.xlu1 %v10793_v12, %s10425_s26  ;;  %v1446_v22 = vmul.f32 %v9804_v38, %v11271_v41  ;;  %v1778_v38 = vsel %vm518_vm1, %v11261_v21, 0 }
 0x76f   :  { %v9808_v14 = vpop.eup %9807  ;;  %1648 = vrot.lane.b32.xlu0 %v10787_v43, %s10424_s25  ;;  %v1448_v24 = vmul.f32 %v9806_v62, %v11266_v37  ;;  %v1410_v37 = vpop.xlane.xlu1 %1409 }
 0x770   :  { %v1447_v8 = vmul.f32 %v9808_v14, %v11277_v55 }
 0x771   :  { %v9810_v23 = vpop.eup %9809 }
 0x772   :  { %2224 = vrot.lane.b32.xlu1 %v10777_v48, %s10426_s27  ;;  %v1460_v31 = vpack.c.bf16 %v1447_v8, %v1446_v22  ;;  %v1449_v1 = vmul.f32 %v9810_v23, %v11273_v46 }
 0x773   :  { %1753 = vrot.lane.b32.xlu0 %v10805_v25, %s10424_s25  ;;  %v1404_v41 = vpop.xlane.xlu1 %1403 }
 0x774   :  { %8734 = vmatprep.mubr.msk.bf16.mxu1 %vm709_vm2, %v1460_v31  ;;  %v1461_v52 = vpack.c.bf16 %v1449_v1, %v1448_v24 }
 0x776   :  { %2131 = vrot.lane.b32.xlu1 %v10805_v25, %s10425_s26  ;;  %8735 = vmatmul.mubr.msk.bf16.gmra.mrb[28].mxu1 %vm709_vm2, %v1461_v52 }
 0x777   :  { %2038 = vrot.lane.b32.xlu0 %v10777_v48, %s10425_s26 }
 0x77a   :  { %2226 = vrot.lane.b32.xlu1 %v10775_v32, %s10426_s27 }
 0x77b   :  { %2042 = vrot.lane.b32.xlu0 %v10787_v43, %s10425_s26 }
 0x77e   :  { %2329 = vrot.lane.b32.xlu1 %v10795_v28, %s10426_s27 }
 0x77f   :  { %2127 = vrot.lane.b32.xlu0 %v10795_v28, %s10425_s26 }
 0x782   :  { %2230 = vrot.lane.b32.xlu1 %v10785_v42, %s10426_s27 }
 0x783   :  { %2133 = vrot.lane.b32.xlu0 %v10803_v60, %s10425_s26 }
 0x786   :  { %2331 = vrot.lane.b32.xlu1 %v10793_v12, %s10426_s27 }
 0x787   :  { %2228 = vrot.lane.b32.xlu0 %v10787_v43, %s10426_s27 }
 0x79d   :  { %v1413_v46 = vpop.xlane.xlu1 %1412 }
 0x79e   :  { %9811 = vrcp.f32 %v1413_v46 }
 0x79f   :  { %9813 = vrcp.f32 %v1404_v41 }
 0x7a0   :  { %9815 = vrcp.f32 %v1410_v37 }
 0x7a1   :  { %v1407_v55 = vpop.xlane.xlu0 %1406  ;;  %v1647_v58 = vpop.permute.xlu1 %1646 }
 0x7a2   :  { %9817 = vrcp.f32 %v1407_v55 }
 0x7a5   :  { %v1645_v50 = vpop.permute.xlu0 %1644 }
 0x7a6   :  { %8762 = vmatprep.mubr.msk.bf16.mxu1 %vm518_vm1, %v1645_v50 }
 0x7a7   :  { %8763 = vmatmul.mubr.msk.bf16.vlgmr.msra.gmra.mrb[32].mxu1 %vm518_vm1, %v1647_v58 }
 0x7a8   :  { %v9812_v35 = vpop.eup %9811 }
 0x7a9   :  { %v9814_v27 = vpop.eup %9813  ;;  %v1453_v36 = vmul.f32 %v9812_v35, %v11295_v63 }
 0x7aa   :  { %v9816_v18 = vpop.eup %9815  ;;  %v1450_v29 = vmul.f32 %v9814_v27, %v11287_v39  ;;  %v1781_v39 = vsel %vm518_vm1, %v11313_v20, 0 }
 0x7ab   :  { %v1452_v10 = vmul.f32 %v9816_v18, %v11283_v54 }
 0x7ac   :  { %v9818_v53 = vpop.eup %9817 }
 0x7ad   :  { %v1451_v30 = vmul.f32 %v9818_v53, %v11299_v4  ;;  %v1463_v40 = vpack.c.bf16 %v1453_v36, %v1452_v10 }
 0x7af   :  { %v1462_v51 = vpack.c.bf16 %v1451_v30, %v1450_v29 }
 0x7b1   :  { %8746 = vmatprep.mubr.msk.bf16.mxu0 %vm709_vm2, %v1462_v51 }
 0x7b2   :  { %8747 = vmatmul.mubr.msk.bf16.vlgmr.msra.gmra.mrb[40].mxu0 %vm709_vm2, %v1463_v40 }
 0x7b3   :  { %8771 = vmatpush3.bf16.xpose.msra.mxu0 %v1778_v38 }
 0x7b4   :  { %9335 = vmatprep.subr.msk.bf16.mxu0 %vm518_vm1, %v11313_v20 }
 0x7bb   :  { %8773 = vmatpush3.bf16.xpose.msra.mxu0 %v1781_v39 }
 0x7d2   :  { %v1419_v63 = vpop.xlane.xlu1 %1418 }
 0x7d3   :  { %9819 = vrcp.f32 %v1419_v63 }
 0x7d6   :  { %v1764_v4 = vpop.permute.xlu1 %1763  ;;  %v1422_v54 = vpop.xlane.xlu0 %1421 }
 0x7d7   :  { %v1787_v18 = vsel %vm518_vm1, %v1764_v4, 0 }
 0x7da   :  { %v1752_v2 = vpop.permute.xlu1 %1751  ;;  %v1416_v62 = vpop.xlane.xlu0 %1415 }
 0x7db   :  { %9821 = vrcp.f32 %v1416_v62 }
 0x7dc   :  { %9823 = vrcp.f32 %v1422_v54 }
 0x7dd   :  { %v9820_v23 = vpop.eup %9819 }
 0x7de   :  { %v1651_v14 = vpop.permute.xlu1 %1650  ;;  %v1425_v22 = vpop.xlane.xlu0 %1424  ;;  %v1455_v37 = vmul.f32 %v9820_v23, %v11315_v13 }
 0x7df   :  { %9825 = vrcp.f32 %v1425_v22 }
 0x7e2   :  { %v1756_v21 = vpop.permute.xlu1 %1755  ;;  %v1762_v8 = vpop.permute.xlu0 %1761 }
 0x7e3   :  { %9336 = vmatprep.subr.msk.bf16.mxu0 %vm518_vm1, %v1762_v8  ;;  %v1784_v31 = vsel %vm518_vm1, %v1762_v8, 0 }
 0x7e4   :  { %8775 = vmatpush3.bf16.xpose.msra.mxu0 %v1784_v31  ;;  %v85_v31 = vld [vmem:[#allocation2 + $0x90] sm:$0xff] }
 0x7e5   :  { %v9822_v20 = vpop.eup %9821  ;;  %9337 = vmatprep.subr.msk.bf16.mxu0 %vm518_vm1, %v1764_v4 }
 0x7e6   :  { %v2041_v24 = vpop.permute.xlu1 %2040  ;;  %v1750_v1 = vpop.permute.xlu0 %1749  ;;  %v1454_v52 = vmul.f32 %v9822_v20, %v11323_v7 }
 0x7e7   :  { %v9824_v41 = vpop.eup %9823 }
 0x7e8   :  { %v1464_v46 = vpack.c.bf16 %v1455_v37, %v1454_v52  ;;  %v1456_v35 = vmul.f32 %v9824_v41, %v11319_v3  ;;  %v84_v37 = vld [vmem:[#allocation2 + $0x88] sm:$0xff] }
 0x7e9   :  { %v9826_v55 = vpop.eup %9825 }
 0x7ea   :  { %v2045_v50 = vpop.permute.xlu1 %2044  ;;  %8750 = vmatprep.mubr.msk.bf16.mxu0 %vm709_vm2, %v1464_v46  ;;  %v1649_v58 = vpop.permute.xlu0 %1648  ;;  %v1457_v27 = vmul.f32 %v9826_v55, %v11325_v57 }
 0x7eb   :  { %8766 = vmatprep.mubr.msk.bf16.mxu1 %vm518_vm1, %v1649_v58  ;;  %v86_v58 = vld [vmem:[#allocation2 + $0x98] sm:$0xff] }
 0x7ec   :  { %8767 = vmatmul.mubr.msk.bf16.gmra.mrb[36].mxu1 %vm518_vm1, %v1651_v14  ;;  %8777 = vmatpush3.bf16.xpose.msra.mxu0 %v1787_v18  ;;  %v1465_v7 = vpack.c.bf16 %v1457_v27, %v1456_v35 }
 0x7ee   :  { %8751 = vmatmul.mubr.msk.bf16.gmra.mrb[44].mxu0 %vm709_vm2, %v1465_v7  ;;  %v1754_v13 = vpop.permute.xlu0 %1753  ;;  %v2130_v53 = vpop.permute.xlu1 %2129 }
 0x7ef   :  { %8778 = vmatprep.mubr.msk.bf16.mxu0 %vm518_vm1, %v1750_v1 }
 0x7f2   :  { %v2039_v36 = vpop.permute.xlu0 %2038  ;;  %v11428_v3 = vpop.permute.xlu1 %2224 }
 0x7f3   :  { %8786 = vmatprep.subr.bf16.mxu1 %v2039_v36 }
 0x7f4   :  { %8787 = vmatpush3.bf16.msra.mxu1 %v2039_v36 }
 0x7f5   :  { %8788 = vmatprep.subr.bf16.mxu1 %v2041_v24 }
 0x7f6   :  { %8779 = vmatmul.mubr.msk.bf16.vlgmr.msra.gmra.mrb[48].mxu0 %vm518_vm1, %v1752_v2  ;;  %v2043_v57 = vpop.permute.xlu0 %2042  ;;  %v2132_v30 = vpop.permute.xlu1 %2131 }
 0x7f7   :  { %8782 = vmatprep.mubr.msk.bf16.mxu0 %vm518_vm1, %v1754_v13 }
 0x7f8   :  { %8789 = vmatpush3.bf16.msra.mxu1 %v2041_v24  ;;  %v83_v24 = vld [vmem:[#allocation2 + $0x80] sm:$0xff] }
 0x7f9   :  { %8790 = vmatprep.subr.bf16.mxu1 %v2043_v57 }
 0x7fa   :  { %v2128_v29 = vpop.permute.xlu0 %2127  ;;  %v11435_v10 = vpop.permute.xlu1 %2226 }
 0x7fb   :  { %8802 = vmatprep.subr.bf16.mxu0 %v2128_v29 }
 0x7fc   :  { %8791 = vmatpush3.bf16.msra.mxu1 %v2043_v57  ;;  %8803 = vmatpush3.bf16.msra.mxu0 %v2128_v29 }
 0x7fd   :  { %8792 = vmatprep.subr.bf16.mxu1 %v2045_v50  ;;  %8804 = vmatprep.subr.bf16.mxu0 %v2130_v53 }
 0x7fe   :  { %8783 = vmatmul.mubr.msk.bf16.gmra.mrb[52].mxu0 %vm518_vm1, %v1756_v21  ;;  %v2134_v51 = vpop.permute.xlu0 %2133  ;;  %v11437_v40 = vpop.permute.xlu1 %2329 }
 0x800   :  { %8793 = vmatpush3.bf16.msra.mxu1 %v2045_v50  ;;  %8805 = vmatpush3.bf16.msra.mxu0 %v2130_v53 }
 0x801   :  { %8806 = vmatprep.subr.bf16.mxu0 %v2132_v30  ;;  %9338 = vmatprep.subr.msk.bf16.mxu1 %vm518_vm1, %v11428_v3 }
 0x804   :  { %8807 = vmatpush3.bf16.msra.mxu0 %v2132_v30 }
 0x805   :  { %8808 = vmatprep.subr.bf16.mxu0 %v2134_v51 }
 0x808   :  { %8809 = vmatpush3.bf16.msra.mxu0 %v2134_v51 }
 0x809   :  { %9342 = vmatprep.subr.msk.bf16.mxu0 %vm518_vm1, %v11437_v40 }
 0x828   :  { %v11441_v38 = vpop.f32.mrb[24].mxu1 }
 0x829   :  { %v11443_v39 = vpop.f32.mrb[25].mxu1 }
 0x82a   :  { %v11445_v63 = vpop.f32.mrb[26].mxu1 }
 0x82b   :  { %v11449_v54 = vpop.f32.mrb[27].mxu1 }
 0x849   :  { %v11453_v62 = vpop.f32.mrb[28].mxu1 }
 0x84a   :  { %v11455_v14 = vpop.f32.mrb[29].mxu1 }
 0x84b   :  { %v11457_v22 = vpop.f32.mrb[30].mxu1 }
 0x84c   :  { %v11461_v8 = vpop.f32.mrb[31].mxu1 }
 0x87a   :  { %v8764_v20 = vpop.f32.mrb[32].mxu1 }
 0x87b   :  { %v11465_v1 = vadd.f32 %v8764_v20, %v85_v31  ;;  %v1718_v52 = vpop.f32.mrb[33].mxu1  ;;  %v89_v20 = vld [vmem:[#allocation2 + $0xb0] sm:$0xff] }
 0x87c   :  { %v8765_v41 = vpop.f32.mrb[34].mxu1  ;;  %v11467_v46 = vadd.f32 %v1718_v52, %v83_v24 }
 0x87d   :  { %v1721_v55 = vpop.f32.mrb[35].mxu1  ;;  %v1860_v50 = vsel %vm709_vm2, %v11465_v1, -inf  ;;  %v11475_v18 = vadd.f32 %v8765_v41, %v86_v58  ;;  %v87_v41 = vld [vmem:[#allocation2 + $0xa0] sm:$0xff] }
 0x87e   :  { %v11471_v35 = vadd.f32 %v1721_v55, %v84_v37  ;;  %1861 = vmax.xlane.f32.xlu0 %v1860_v50  ;;  %v1854_v7 = vsel %vm709_vm2, %v11467_v46, -inf  ;;  %v90_v55 = vld [vmem:[#allocation2 + $0xb8] sm:$0xff] }
 0x87f   :  { %v1863_v53 = vsel %vm709_vm2, %v11475_v18, -inf }
 0x880   :  { %v1857_v27 = vsel %vm709_vm2, %v11471_v35, -inf }
 0x881   :  { %1858 = vmax.xlane.f32.xlu1 %v1857_v27 }
 0x882   :  { %1855 = vmax.xlane.f32.xlu0 %v1854_v7 }
 0x885   :  { %v11479_v13 = vpop.f32.mrb[40].mxu0 }
 0x886   :  { %v11483_v36 = vpop.f32.mrb[41].mxu0  ;;  %1864 = vmax.xlane.f32.xlu0 %v1863_v53 }
 0x887   :  { %v11485_v57 = vpop.f32.mrb[42].mxu0 }
 0x888   :  { %v11489_v30 = vpop.f32.mrb[43].mxu0 }
 0x8bf   :  { %v8768_v52 = vpop.f32.mrb[36].mxu1 }
 0x8c0   :  { %v11493_v50 = vadd.f32 %v8768_v52, %v89_v20  ;;  %v1734_v27 = vpop.f32.mrb[37].mxu1 }
 0x8c1   :  { %v11495_v7 = vpop.f32.mrb[44].mxu0  ;;  %v8769_v53 = vpop.f32.mrb[38].mxu1  ;;  %v11497_v21 = vadd.f32 %v1734_v27, %v87_v41 }
 0x8c2   :  { %v11499_v23 = vadd.f32 %v8769_v53, %v90_v55  ;;  %v11501_v29 = vpop.f32.mrb[45].mxu0  ;;  %v1737_v4 = vpop.f32.mrb[39].mxu1  ;;  %v1872_v51 = vsel %vm709_vm2, %v11493_v50, -inf }
 0x8c3   :  { %v11505_v2 = vpop.f32.mrb[46].mxu0  ;;  %1873 = vmax.xlane.f32.xlu0 %v1872_v51  ;;  %v11507_v52 = vadd.f32 %v1737_v4, %v88_v34  ;;  %v1866_v44 = vsel %vm709_vm2, %v11497_v21, -inf }
 0x8c4   :  { %v11511_v6 = vpop.f32.mrb[47].mxu0  ;;  %v1875_v27 = vsel %vm709_vm2, %v11499_v23, -inf }
 0x8c5   :  { %1876 = vmax.xlane.f32.xlu1 %v1875_v27  ;;  %v1869_v4 = vsel %vm709_vm2, %v11507_v52, -inf }
 0x8c7   :  { %1867 = vmax.xlane.f32.xlu0 %v1866_v44 }
 0x8c9   :  { %v8780_v51 = vpop.f32.mrb[48].mxu0  ;;  %1870 = vmax.xlane.f32.xlu1 %v1869_v4 }
 0x8ca   :  { %v11521_v16 = vadd.f32 %v8780_v51, %v85_v31  ;;  %v1823_v19 = vpop.f32.mrb[49].mxu0 }
 0x8cb   :  { %v8781_v49 = vpop.f32.mrb[50].mxu0  ;;  %v11523_v17 = vadd.f32 %v1823_v19, %v83_v24 }
 0x8cc   :  { %v11525_v9 = vadd.f32 %v8781_v49, %v86_v58  ;;  %v1826_v59 = vpop.f32.mrb[51].mxu0  ;;  %v1884_v27 = vsel %vm709_vm2, %v11521_v16, -inf }
 0x8cd   :  { %1885 = vmax.xlane.f32.xlu0 %v1884_v27  ;;  %v11529_v53 = vadd.f32 %v1826_v59, %v84_v37  ;;  %v1878_v31 = vsel %vm709_vm2, %v11523_v17, -inf }
 0x8ce   :  { %v1887_v44 = vsel %vm709_vm2, %v11525_v9, -inf }
 0x8cf   :  { %1888 = vmax.xlane.f32.xlu1 %v1887_v44  ;;  %v1881_v24 = vsel %vm709_vm2, %v11529_v53, -inf }
 0x8d1   :  { %1879 = vmax.xlane.f32.xlu0 %v1878_v31  ;;  %v8784_v4 = vpop.f32.mrb[52].mxu0 }
 0x8d2   :  { %v11535_v19 = vadd.f32 %v8784_v4, %v89_v20  ;;  %v1839_v49 = vpop.f32.mrb[53].mxu0 }
 0x8d3   :  { %1882 = vmax.xlane.f32.xlu1 %v1881_v24  ;;  %v8785_v58 = vpop.f32.mrb[54].mxu0  ;;  %v11539_v51 = vadd.f32 %v1839_v49, %v87_v41 }
 0x8d4   :  { %v11541_v59 = vadd.f32 %v8785_v58, %v90_v55  ;;  %v1842_v37 = vpop.f32.mrb[55].mxu0  ;;  %v1896_v27 = vsel %vm709_vm2, %v11535_v19, -inf  ;;  %v11559_v55 = vpop.permute.xlu0 %2228 }
 0x8d5   :  { %1897 = vmax.xlane.f32.xlu0 %v1896_v27  ;;  %v11545_v44 = vadd.f32 %v1842_v37, %v88_v34  ;;  %v1890_v31 = vsel %vm709_vm2, %v11539_v51, -inf  ;;  %v11557_v34 = vpop.permute.xlu1 %2230 }
 0x8d6   :  { %v1899_v20 = vsel %vm709_vm2, %v11541_v59, -inf }
 0x8d7   :  { %1900 = vmax.xlane.f32.xlu1 %v1899_v20  ;;  %v1893_v41 = vsel %vm709_vm2, %v11545_v44, -inf }
 0x8d9   :  { %1891 = vmax.xlane.f32.xlu0 %v1890_v31  ;;  %v11561_v4 = vpop.permute.xlu1 %2331 }
 0x8db   :  { %1894 = vmax.xlane.f32.xlu1 %v1893_v41 }
 0x8ec   :  { %2218 = vrot.lane.b32.xlu1 %v10775_v32, %s10427_s28 }
 0x8ef   :  { %2216 = vrot.lane.b32.xlu0 %v10777_v48, %s10427_s28 }
 0x90b   :  { %v1862_v49 = vpop.xlane.xlu0 %1861 }
 0x90c   :  { %v1904_v24 = vsub.f32 %v11465_v1, %v1862_v49 }
 0x90e   :  { %v1922_v58 = vmul.f32 1.442695, %v1904_v24  ;;  %v1859_v37 = vpop.xlane.xlu1 %1858 }
 0x90f   :  { %v1856_v27 = vpop.xlane.xlu0 %1855  ;;  %v1903_v31 = vsub.f32 %v11471_v35, %v1859_v37 }
 0x910   :  { %9827 = vpow2.f32 %v1922_v58  ;;  %v1902_v20 = vsub.f32 %v11467_v46, %v1856_v27 }
 0x911   :  { %v1920_v47 = vmul.f32 1.442695, %v1903_v31 }
 0x912   :  { %v1918_v41 = vmul.f32 1.442695, %v1902_v20 }
 0x913   :  { %v1865_v56 = vpop.xlane.xlu0 %1864 }
 0x914   :  { %9829 = vpow2.f32 %v1918_v41  ;;  %v1905_v5 = vsub.f32 %v11475_v18, %v1865_v56 }
 0x916   :  { %v1924_v15 = vmul.f32 1.442695, %v1905_v5 }
 0x918   :  { %9831 = vpow2.f32 %v1924_v15 }
 0x919   :  { %9833 = vpow2.f32 %v1920_v47 }
 0x91a   :  { %v11567_v33 = vpop.eup %9827 }
 0x91b   :  { %v1956_v1 = vsel %vm709_vm2, %v11567_v33, 0.0 }
 0x91c   :  { %1957 = vadd.xlane.f32.xlu0 %v1956_v1 }
 0x91e   :  { %v11571_v49 = vpop.eup %9829 }
 0x91f   :  { %v1950_v46 = vsel %vm709_vm2, %v11571_v49, 0.0 }
 0x920   :  { %1951 = vadd.xlane.f32.xlu0 %v1950_v46 }
 0x922   :  { %v11575_v35 = vpop.eup %9831 }
 0x923   :  { %v1959_v56 = vsel %vm709_vm2, %v11575_v35, 0.0  ;;  %v11579_v5 = vpop.eup %9833 }
 0x924   :  { %1960 = vadd.xlane.f32.xlu1 %v1959_v56  ;;  %v1953_v47 = vsel %vm709_vm2, %v11579_v5, 0.0 }
 0x928   :  { %1954 = vadd.xlane.f32.xlu1 %v1953_v47 }
 0x950   :  { %v1874_v15 = vpop.xlane.xlu0 %1873 }
 0x951   :  { %v1908_v18 = vsub.f32 %v11493_v50, %v1874_v15 }
 0x952   :  { %v1877_v24 = vpop.xlane.xlu1 %1876 }
 0x953   :  { %v1930_v58 = vmul.f32 1.442695, %v1908_v18  ;;  %v1909_v37 = vsub.f32 %v11499_v23, %v1877_v24 }
 0x954   :  { %v1868_v27 = vpop.xlane.xlu0 %1867 }
 0x955   :  { %9835 = vpow2.f32 %v1930_v58  ;;  %v1906_v20 = vsub.f32 %v11497_v21, %v1868_v27  ;;  %v1932_v31 = vmul.f32 1.442695, %v1909_v37 }
 0x956   :  { %v1871_v41 = vpop.xlane.xlu1 %1870 }
 0x957   :  { %v1926_v1 = vmul.f32 1.442695, %v1906_v20  ;;  %v1907_v46 = vsub.f32 %v11507_v52, %v1871_v41 }
 0x959   :  { %9837 = vpow2.f32 %v1926_v1  ;;  %v1928_v56 = vmul.f32 1.442695, %v1907_v46 }
 0x95a   :  { %9839 = vpow2.f32 %v1932_v31  ;;  %v1886_v47 = vpop.xlane.xlu0 %1885 }
 0x95b   :  { %9841 = vpow2.f32 %v1928_v56  ;;  %v1912_v50 = vsub.f32 %v11521_v16, %v1886_v47 }
 0x95c   :  { %v1889_v15 = vpop.xlane.xlu1 %1888 }
 0x95d   :  { %v1938_v18 = vmul.f32 1.442695, %v1912_v50  ;;  %v1913_v23 = vsub.f32 %v11525_v9, %v1889_v15 }
 0x95e   :  { %v1880_v24 = vpop.xlane.xlu0 %1879 }
 0x95f   :  { %v11589_v58 = vpop.eup %9835  ;;  %9843 = vpow2.f32 %v1938_v18  ;;  %v1910_v21 = vsub.f32 %v11523_v17, %v1880_v24  ;;  %v1940_v37 = vmul.f32 1.442695, %v1913_v23 }
 0x960   :  { %v1883_v27 = vpop.xlane.xlu1 %1882  ;;  %v1968_v52 = vsel %vm709_vm2, %v11589_v58, 0.0 }
 0x961   :  { %v1934_v20 = vmul.f32 1.442695, %v1910_v21  ;;  %v1911_v31 = vsub.f32 %v11529_v53, %v1883_v27  ;;  %1969 = vadd.xlane.f32.xlu0 %v1968_v52 }
 0x962   :  { %v1898_v27 = vpop.xlane.xlu0 %1897 }
 0x963   :  { %v11595_v16 = vpop.eup %9837  ;;  %9845 = vpow2.f32 %v1934_v20  ;;  %v1936_v41 = vmul.f32 1.442695, %v1911_v31  ;;  %v1916_v20 = vsub.f32 %v11535_v19, %v1898_v27 }
 0x964   :  { %v11597_v9 = vpop.eup %9839  ;;  %9847 = vpow2.f32 %v1940_v37  ;;  %v1962_v1 = vsel %vm709_vm2, %v11595_v16, 0.0  ;;  %v1901_v37 = vpop.xlane.xlu1 %1900 }
 0x965   :  { %v11601_v17 = vpop.eup %9841  ;;  %9849 = vpow2.f32 %v1936_v41  ;;  %1963 = vadd.xlane.f32.xlu0 %v1962_v1  ;;  %v1971_v53 = vsel %vm709_vm2, %v11597_v9, 0.0  ;;  %v1946_v1 = vmul.f32 1.442695, %v1916_v20 }
 0x966   :  { %v1965_v46 = vsel %vm709_vm2, %v11601_v17, 0.0  ;;  %v1892_v31 = vpop.xlane.xlu0 %1891 }
 0x967   :  { %1966 = vadd.xlane.f32.xlu1 %v1965_v46  ;;  %v1914_v46 = vsub.f32 %v11539_v51, %v1892_v31  ;;  %9851 = vpow2.f32 %v1946_v1 }
 0x968   :  { %v1895_v52 = vpop.xlane.xlu1 %1894 }
 0x969   :  { %v11607_v56 = vpop.eup %9843  ;;  %1972 = vadd.xlane.f32.xlu0 %v1971_v53  ;;  %v1915_v41 = vsub.f32 %v11545_v44, %v1895_v52 }
 0x96a   :  { %v1980_v47 = vsel %vm709_vm2, %v11607_v56, 0.0  ;;  %v11639_v51 = vpop.permute.xlu0 %2216 }
 0x96b   :  { %1981 = vadd.xlane.f32.xlu1 %v1980_v47  ;;  %v1944_v53 = vmul.f32 1.442695, %v1915_v41  ;;  %v1917_v47 = vsub.f32 %v11541_v59, %v1901_v37 }
 0x96c   :  { %v11647_v20 = vpop.permute.xlu1 %2218 }
 0x96d   :  { %v11611_v50 = vpop.eup %9845  ;;  %9853 = vpow2.f32 %v1944_v53 }
 0x96e   :  { %v11613_v15 = vpop.eup %9847  ;;  %v1974_v18 = vsel %vm709_vm2, %v11611_v50, 0.0 }
 0x96f   :  { %v11617_v23 = vpop.eup %9849  ;;  %1975 = vadd.xlane.f32.xlu1 %v1974_v18  ;;  %v1983_v21 = vsel %vm709_vm2, %v11613_v15, 0.0  ;;  %v1942_v18 = vmul.f32 1.442695, %v1914_v46 }
 0x970   :  { %v1977_v24 = vsel %vm709_vm2, %v11617_v23, 0.0 }
 0x971   :  { %1978 = vadd.xlane.f32.xlu0 %v1977_v24  ;;  %v1948_v24 = vmul.f32 1.442695, %v1917_v47  ;;  %9855 = vpow2.f32 %v1942_v18 }
 0x973   :  { %1984 = vadd.xlane.f32.xlu1 %v1983_v21  ;;  %9857 = vpow2.f32 %v1948_v24  ;;  %v11631_v21 = vpop.eup %9851 }
 0x974   :  { %v1992_v19 = vsel %vm709_vm2, %v11631_v21, 0.0 }
 0x977   :  { %v11633_v11 = vpop.eup %9853 }
 0x978   :  { %v1989_v59 = vsel %vm709_vm2, %v11633_v11, 0.0 }
 0x97b   :  { %v11637_v44 = vpop.eup %9855 }
 0x97c   :  { %v1986_v37 = vsel %vm709_vm2, %v11637_v44, 0.0 }
 0x97d   :  { %v11645_v27 = vpop.eup %9857 }
 0x97e   :  { %v1995_v31 = vsel %vm709_vm2, %v11645_v27, 0.0 }
 0x984   :  { %2220 = vrot.lane.b32.xlu1 %v10787_v43, %s10427_s28 }
 0x987   :  { %2333 = vrot.lane.b32.xlu0 %v10805_v25, %s10426_s27 }
 0x9a6   :  { %1993 = vadd.xlane.f32.xlu0 %v1992_v19 }
 0x9a8   :  { %1990 = vadd.xlane.f32.xlu1 %v1989_v59 }
 0x9a9   :  { %v1958_v52 = vpop.xlane.xlu0 %1957 }
 0x9aa   :  { %1987 = vadd.xlane.f32.xlu0 %v1986_v37 }
 0x9ad   :  { %v1952_v41 = vpop.xlane.xlu0 %1951 }
 0x9ae   :  { %1996 = vadd.xlane.f32.xlu0 %v1995_v31 }
 0x9b1   :  { %v1961_v1 = vpop.xlane.xlu1 %1960 }
 0x9b2   :  { %9859 = vrcp.f32 %v1961_v1 }
 0x9b3   :  { %9861 = vrcp.f32 %v1952_v41 }
 0x9b4   :  { %9863 = vrcp.f32 %v1958_v52 }
 0x9b5   :  { %v1955_v46 = vpop.xlane.xlu1 %1954 }
 0x9b6   :  { %9865 = vrcp.f32 %v1955_v46 }
 0x9b9   :  { %2335 = vrot.lane.b32.xlu1 %v10803_v60, %s10426_s27 }
 0x9bc   :  { %v9860_v53 = vpop.eup %9859 }
 0x9bd   :  { %2323 = vrot.lane.b32.xlu1 %v10793_v12, %s10427_s28  ;;  %v9862_v47 = vpop.eup %9861  ;;  %v2017_v19 = vmul.f32 %v9860_v53, %v11575_v35 }
 0x9be   :  { %v9864_v18 = vpop.eup %9863  ;;  %v2014_v59 = vmul.f32 %v9862_v47, %v11571_v49  ;;  %v2245_v49 = vsel %vm518_vm1, %v11428_v3, 0  ;;  %v2254_v3 = vsel %vm518_vm1, %v11557_v34, 0 }
 0x9bf   :  { %v2016_v52 = vmul.f32 %v9864_v18, %v11567_v33  ;;  %v2251_v33 = vsel %vm518_vm1, %v11559_v55, 0 }
 0x9c0   :  { %v9866_v24 = vpop.eup %9865 }
 0x9c1   :  { %2327 = vrot.lane.b32.xlu1 %v10803_v60, %s10427_s28  ;;  %v2015_v37 = vmul.f32 %v9866_v24, %v11579_v5  ;;  %v2031_v41 = vpack.c.bf16 %v2017_v19, %v2016_v52 }
 0x9c3   :  { %v2030_v31 = vpack.c.bf16 %v2015_v37, %v2014_v59 }
 0x9c4   :  { %2222 = vrot.lane.b32.xlu0 %v10785_v42, %s10427_s28 }
 0x9c5   :  { %2612 = vrot.lane.b32.xlu1 %v10775_v32, %s10428_s2  ;;  %8794 = vmatprep.mubr.msk.bf16.mxu1 %vm709_vm2, %v2030_v31  ;;  %v2248_v32 = vsel %vm518_vm1, %v11435_v10, 0 }
 0x9c6   :  { %8795 = vmatmul.mubr.msk.bf16.vlgmr.msra.gmra.mrb[40].mxu1 %vm709_vm2, %v2031_v41 }
 0x9c7   :  { %8819 = vmatpush3.bf16.xpose.msra.mxu1 %v2245_v49 }
 0x9c8   :  { %9339 = vmatprep.subr.msk.bf16.mxu1 %vm518_vm1, %v11435_v10  ;;  %2321 = vrot.lane.b32.xlu0 %v10795_v28, %s10427_s28 }
 0x9cc   :  { %2325 = vrot.lane.b32.xlu0 %v10805_v25, %s10427_s28 }
 0x9cf   :  { %8821 = vmatpush3.bf16.xpose.msra.mxu1 %v2248_v32 }
 0x9d0   :  { %9340 = vmatprep.subr.msk.bf16.mxu1 %vm518_vm1, %v11559_v55  ;;  %2610 = vrot.lane.b32.xlu0 %v10777_v48, %s10428_s2 }
 0x9d4   :  { %2614 = vrot.lane.b32.xlu0 %v10787_v43, %s10428_s2 }
 0x9d7   :  { %8823 = vmatpush3.bf16.xpose.msra.mxu1 %v2251_v33 }
 0x9d8   :  { %9341 = vmatprep.subr.msk.bf16.mxu1 %vm518_vm1, %v11557_v34  ;;  %2616 = vrot.lane.b32.xlu0 %v10785_v42, %s10428_s2 }
 0x9df   :  { %8825 = vmatpush3.bf16.xpose.msra.mxu1 %v2254_v3 }
 0x9ee   :  { %v1970_v10 = vpop.xlane.xlu0 %1969 }
 0x9f2   :  { %v1964_v35 = vpop.xlane.xlu0 %1963 }
 0x9f3   :  { %9867 = vrcp.f32 %v1964_v35 }
 0x9f4   :  { %9869 = vrcp.f32 %v1970_v10  ;;  %v1967_v48 = vpop.xlane.xlu1 %1966 }
 0x9f5   :  { %9871 = vrcp.f32 %v1967_v48 }
 0x9f6   :  { %v1973_v43 = vpop.xlane.xlu0 %1972 }
 0x9f7   :  { %9873 = vrcp.f32 %v1973_v43 }
 0x9f8   :  { %v1982_v55 = vpop.xlane.xlu1 %1981 }
 0x9fc   :  { %v1976_v5 = vpop.xlane.xlu1 %1975 }
 0x9fd   :  { %v9868_v1 = vpop.eup %9867  ;;  %9875 = vrcp.f32 %v1976_v5 }
 0x9fe   :  { %v9870_v46 = vpop.eup %9869  ;;  %9877 = vrcp.f32 %v1982_v55  ;;  %v1979_v53 = vpop.xlane.xlu0 %1978  ;;  %v2018_v34 = vmul.f32 %v9868_v1, %v11595_v16 }
 0x9ff   :  { %v9872_v42 = vpop.eup %9871  ;;  %9879 = vrcp.f32 %v1979_v53  ;;  %v2020_v59 = vmul.f32 %v9870_v46, %v11589_v58 }
 0xa00   :  { %v1985_v47 = vpop.xlane.xlu1 %1984  ;;  %v2019_v18 = vmul.f32 %v9872_v42, %v11601_v17 }
 0xa01   :  { %v9874_v24 = vpop.eup %9873  ;;  %9881 = vrcp.f32 %v1985_v47 }
 0xa02   :  { %v2032_v19 = vpack.c.bf16 %v2019_v18, %v2018_v34  ;;  %v2021_v37 = vmul.f32 %v9874_v24, %v11597_v9 }
 0xa04   :  { %8798 = vmatprep.mubr.msk.bf16.mxu1 %vm709_vm2, %v2032_v19  ;;  %v2033_v52 = vpack.c.bf16 %v2021_v37, %v2020_v59  ;;  %v2221_v10 = vpop.permute.xlu1 %2220 }
 0xa06   :  { %8799 = vmatmul.mubr.msk.bf16.gmra.mrb[44].mxu1 %vm709_vm2, %v2033_v52 }
 0xa07   :  { %v9876_v31 = vpop.eup %9875  ;;  %8826 = vmatprep.mubr.msk.bf16.mxu1 %vm518_vm1, %v11639_v51 }
 0xa08   :  { %v9878_v41 = vpop.eup %9877  ;;  %v2022_v17 = vmul.f32 %v9876_v31, %v11611_v50  ;;  %v2350_v50 = vsel %vm518_vm1, %v11437_v40, 0 }
 0xa09   :  { %v9880_v16 = vpop.eup %9879  ;;  %v2024_v58 = vmul.f32 %v9878_v41, %v11607_v56  ;;  %v2353_v56 = vsel %vm518_vm1, %v11561_v4, 0 }
 0xa0a   :  { %v2023_v49 = vmul.f32 %v9880_v16, %v11617_v23 }
 0xa0b   :  { %v9882_v32 = vpop.eup %9881 }
 0xa0c   :  { %v2025_v9 = vmul.f32 %v9882_v32, %v11613_v15  ;;  %v2034_v33 = vpack.c.bf16 %v2023_v49, %v2022_v17  ;;  %v2334_v15 = vpop.permute.xlu0 %2333 }
 0xa0d   :  { %v2356_v23 = vsel %vm518_vm1, %v2334_v15, 0 }
 0xa0e   :  { %v2035_v3 = vpack.c.bf16 %v2025_v9, %v2024_v58  ;;  %8810 = vmatprep.mubr.msk.bf16.mxu0 %vm709_vm2, %v2034_v33  ;;  %8827 = vmatmul.mubr.msk.bf16.vlgmr.msra.gmra.mrb[48].mxu1 %vm518_vm1, %v11647_v20 }
 0xa0f   :  { %8830 = vmatprep.mubr.msk.bf16.mxu1 %vm518_vm1, %v2221_v10 }
 0xa10   :  { %8811 = vmatmul.mubr.msk.bf16.vlgmr.msra.gmra.mrb[56].mxu0 %vm709_vm2, %v2035_v3 }
 0xa11   :  { %8835 = vmatpush3.bf16.xpose.msra.mxu0 %v2350_v50 }
 0xa12   :  { %9343 = vmatprep.subr.msk.bf16.mxu0 %vm518_vm1, %v11561_v4 }
 0xa19   :  { %8837 = vmatpush3.bf16.xpose.msra.mxu0 %v2353_v56  ;;  %v93_v56 = vld [vmem:[#allocation2 + $0xd0] sm:$0xff] }
 0xa1a   :  { %9344 = vmatprep.subr.msk.bf16.mxu0 %vm518_vm1, %v2334_v15 }
 0xa21   :  { %8839 = vmatpush3.bf16.xpose.msra.mxu0 %v2356_v23  ;;  %v91_v23 = vld [vmem:[#allocation2 + $0xc0] sm:$0xff] }
 0xa33   :  { %v1994_v51 = vpop.xlane.xlu0 %1993 }
 0xa35   :  { %v1991_v20 = vpop.xlane.xlu1 %1990 }
 0xa36   :  { %9883 = vrcp.f32 %v1991_v20 }
 0xa37   :  { %v1988_v35 = vpop.xlane.xlu0 %1987 }
 0xa38   :  { %9885 = vrcp.f32 %v1988_v35  ;;  %v92_v35 = vld [vmem:[#allocation2 + $0xc8] sm:$0xff] }
 0xa39   :  { %v2336_v40 = vpop.permute.xlu1 %2335  ;;  %9887 = vrcp.f32 %v1994_v51 }
 0xa3a   :  { %9345 = vmatprep.subr.msk.bf16.mxu0 %vm518_vm1, %v2336_v40  ;;  %v2359_v48 = vsel %vm518_vm1, %v2336_v40, 0 }
 0xa3b   :  { %8841 = vmatpush3.bf16.xpose.msra.mxu0 %v2359_v48  ;;  %v1997_v4 = vpop.xlane.xlu0 %1996 }
 0xa3c   :  { %9889 = vrcp.f32 %v1997_v4 }
 0xa3d   :  { %v2324_v5 = vpop.permute.xlu1 %2323 }
 0xa3f   :  { %v2223_v43 = vpop.permute.xlu0 %2222 }
 0xa40   :  { %v9884_v55 = vpop.eup %9883  ;;  %8831 = vmatmul.mubr.msk.bf16.gmra.mrb[52].mxu1 %vm518_vm1, %v2223_v43 }
 0xa41   :  { %v2027_v42 = vmul.f32 %v9884_v55, %v11633_v11  ;;  %v2328_v24 = vpop.permute.xlu1 %2327 }
 0xa42   :  { %v9886_v1 = vpop.eup %9885 }
 0xa43   :  { %v2322_v46 = vpop.permute.xlu0 %2321  ;;  %v2026_v53 = vmul.f32 %v9886_v1, %v11637_v44  ;;  %v9888_v47 = vpop.eup %9887  ;;  %v94_v1 = vld [vmem:[#allocation2 + $0xd8] sm:$0xff] }
 0xa44   :  { %v2028_v59 = vmul.f32 %v9888_v47, %v11631_v21 }
 0xa45   :  { %v2036_v34 = vpack.c.bf16 %v2027_v42, %v2026_v53  ;;  %v2613_v44 = vpop.permute.xlu1 %2612 }
 0xa46   :  { %v9890_v18 = vpop.eup %9889 }
 0xa47   :  { %8814 = vmatprep.mubr.msk.bf16.mxu0 %vm709_vm2, %v2036_v34  ;;  %v2326_v19 = vpop.permute.xlu0 %2325  ;;  %v2029_v37 = vmul.f32 %v9890_v18, %v11645_v27 }
 0xa49   :  { %v2037_v52 = vpack.c.bf16 %v2029_v37, %v2028_v59  ;;  %v97_v37 = vld [vmem:[#allocation2 + $0xf0] sm:$0xff] }
 0xa4b   :  { %8815 = vmatmul.mubr.msk.bf16.gmra.mrb[60].mxu0 %vm709_vm2, %v2037_v52  ;;  %v2611_v31 = vpop.permute.xlu0 %2610 }
 0xa4c   :  { %8842 = vmatprep.mubr.msk.bf16.mxu0 %vm518_vm1, %v2322_v46  ;;  %8850 = vmatprep.subr.bf16.mxu1 %v2611_v31 }
 0xa4d   :  { %8851 = vmatpush3.bf16.msra.mxu1 %v2611_v31  ;;  %v95_v31 = vld [vmem:[#allocation2 + $0xe0] sm:$0xff] }
 0xa4e   :  { %8852 = vmatprep.subr.bf16.mxu1 %v2613_v44 }
 0xa4f   :  { %v2615_v11 = vpop.permute.xlu0 %2614 }
 0xa51   :  { %8853 = vmatpush3.bf16.msra.mxu1 %v2613_v44  ;;  %v98_v44 = vld [vmem:[#allocation2 + $0xf8] sm:$0xff] }
 0xa52   :  { %8854 = vmatprep.subr.bf16.mxu1 %v2615_v11 }
 0xa53   :  { %8843 = vmatmul.mubr.msk.bf16.vlgmr.msra.gmra.mrb[64].mxu0 %vm518_vm1, %v2324_v5  ;;  %v2617_v21 = vpop.permute.xlu0 %2616 }
 0xa54   :  { %8846 = vmatprep.mubr.msk.bf16.mxu0 %vm518_vm1, %v2326_v19 }
 0xa55   :  { %8855 = vmatpush3.bf16.msra.mxu1 %v2615_v11 }
 0xa56   :  { %8856 = vmatprep.subr.bf16.mxu1 %v2617_v21 }
 0xa59   :  { %8857 = vmatpush3.bf16.msra.mxu1 %v2617_v21 }
 0xa5b   :  { %8847 = vmatmul.mubr.msk.bf16.gmra.mrb[68].mxu0 %vm518_vm1, %v2328_v24 }
 0xa99   :  { %v11729_v27 = vpop.f32.mrb[40].mxu1 }
 0xa9a   :  { %v11731_v41 = vpop.f32.mrb[41].mxu1 }
 0xa9b   :  { %v11733_v16 = vpop.f32.mrb[42].mxu1 }
 0xa9c   :  { %v11737_v49 = vpop.f32.mrb[43].mxu1 }
 0xad9   :  { %v11741_v58 = vpop.f32.mrb[44].mxu1 }
 0xada   :  { %v11743_v9 = vpop.f32.mrb[45].mxu1 }
 0xadb   :  { %v11745_v33 = vpop.f32.mrb[46].mxu1 }
 0xadc   :  { %v11749_v10 = vpop.f32.mrb[47].mxu1 }
 0xae1   :  { %v8828_v15 = vpop.f32.mrb[48].mxu1 }
 0xae2   :  { %v11753_v51 = vadd.f32 %v8828_v15, %v93_v56  ;;  %v2290_v20 = vpop.f32.mrb[49].mxu1 }
 0xae3   :  { %v11755_v40 = vpop.f32.mrb[56].mxu0  ;;  %v8829_v48 = vpop.f32.mrb[50].mxu1  ;;  %v11757_v4 = vadd.f32 %v2290_v20, %v91_v23  ;;  %v96_v20 = vld [vmem:[#allocation2 + $0xe8] sm:$0xff] }
 0xae4   :  { %v11759_v43 = vpop.f32.mrb[57].mxu0  ;;  %v2293_v55 = vpop.f32.mrb[51].mxu1  ;;  %v2432_v5 = vsel %vm709_vm2, %v11753_v51, -inf  ;;  %v11775_v24 = vadd.f32 %v8829_v48, %v94_v1 }
 0xae5   :  { %v11763_v46 = vadd.f32 %v2293_v55, %v92_v35  ;;  %2433 = vmax.xlane.f32.xlu0 %v2432_v5  ;;  %v11765_v53 = vpop.f32.mrb[58].mxu0  ;;  %v2426_v19 = vsel %vm709_vm2, %v11757_v4, -inf }
 0xae6   :  { %v11769_v47 = vpop.f32.mrb[59].mxu0  ;;  %v2435_v59 = vsel %vm709_vm2, %v11775_v24, -inf }
 0xae7   :  { %v2429_v18 = vsel %vm709_vm2, %v11763_v46, -inf }
 0xae8   :  { %2430 = vmax.xlane.f32.xlu1 %v2429_v18 }
 0xae9   :  { %2427 = vmax.xlane.f32.xlu0 %v2426_v19 }
 0xaed   :  { %2436 = vmax.xlane.f32.xlu0 %v2435_v59 }
 0xb13   :  { %v8832_v52 = vpop.f32.mrb[52].mxu1 }
 0xb14   :  { %v11781_v11 = vadd.f32 %v8832_v52, %v97_v37  ;;  %v2306_v21 = vpop.f32.mrb[53].mxu1 }
 0xb15   :  { %v8833_v15 = vpop.f32.mrb[54].mxu1  ;;  %v11783_v48 = vadd.f32 %v2306_v21, %v95_v31 }
 0xb16   :  { %v11785_v55 = vadd.f32 %v8833_v15, %v98_v44  ;;  %v2309_v5 = vpop.f32.mrb[55].mxu1  ;;  %v2444_v18 = vsel %vm709_vm2, %v11781_v11, -inf }
 0xb17   :  { %2445 = vmax.xlane.f32.xlu0 %v2444_v18  ;;  %v11789_v19 = vadd.f32 %v2309_v5, %v96_v20  ;;  %v2438_v52 = vsel %vm709_vm2, %v11783_v48, -inf }
 0xb18   :  { %v2447_v59 = vsel %vm709_vm2, %v11785_v55, -inf }
 0xb19   :  { %2448 = vmax.xlane.f32.xlu1 %v2447_v59  ;;  %v2441_v21 = vsel %vm709_vm2, %v11789_v19, -inf }
 0xb1b   :  { %2439 = vmax.xlane.f32.xlu0 %v2438_v52 }
 0xb1d   :  { %2442 = vmax.xlane.f32.xlu1 %v2441_v21 }
 0xb1e   :  { %v11797_v15 = vpop.f32.mrb[60].mxu0 }
 0xb1f   :  { %v11799_v34 = vpop.f32.mrb[61].mxu0 }
 0xb20   :  { %v11801_v42 = vpop.f32.mrb[62].mxu0 }
 0xb21   :  { %v11805_v18 = vpop.f32.mrb[63].mxu0 }
 0xb26   :  { %v8844_v3 = vpop.f32.mrb[64].mxu0 }
 0xb27   :  { %v11809_v52 = vadd.f32 %v8844_v3, %v93_v56  ;;  %v2395_v50 = vpop.f32.mrb[65].mxu0 }
 0xb28   :  { %v8845_v17 = vpop.f32.mrb[66].mxu0  ;;  %v11811_v21 = vadd.f32 %v2395_v50, %v91_v23 }
 0xb29   :  { %v11813_v32 = vadd.f32 %v8845_v17, %v94_v1  ;;  %v2398_v26 = vpop.f32.mrb[67].mxu0  ;;  %v2456_v61 = vsel %vm709_vm2, %v11809_v52, -inf }
 0xb2a   :  { %2457 = vmax.xlane.f32.xlu0 %v2456_v61  ;;  %v11817_v5 = vadd.f32 %v2398_v26, %v92_v35  ;;  %v2450_v3 = vsel %vm709_vm2, %v11811_v21, -inf }
 0xb2b   :  { %v2459_v0 = vsel %vm709_vm2, %v11813_v32, -inf }
 0xb2c   :  { %2460 = vmax.xlane.f32.xlu1 %v2459_v0  ;;  %v2453_v23 = vsel %vm709_vm2, %v11817_v5, -inf }
 0xb2e   :  { %2451 = vmax.xlane.f32.xlu0 %v2450_v3  ;;  %v8848_v56 = vpop.f32.mrb[68].mxu0 }
 0xb2f   :  { %v11823_v50 = vadd.f32 %v8848_v56, %v97_v37  ;;  %v2411_v17 = vpop.f32.mrb[69].mxu0 }
 0xb30   :  { %2454 = vmax.xlane.f32.xlu1 %v2453_v23  ;;  %v8849_v1 = vpop.f32.mrb[70].mxu0  ;;  %v11827_v61 = vadd.f32 %v2411_v17, %v95_v31 }
 0xb31   :  { %v11829_v26 = vadd.f32 %v8849_v1, %v98_v44  ;;  %v2414_v35 = vpop.f32.mrb[71].mxu0  ;;  %v2468_v0 = vsel %vm709_vm2, %v11823_v50, -inf }
 0xb32   :  { %2469 = vmax.xlane.f32.xlu0 %v2468_v0  ;;  %v11833_v59 = vadd.f32 %v2414_v35, %v96_v20  ;;  %v2462_v3 = vsel %vm709_vm2, %v11827_v61, -inf }
 0xb33   :  { %v2471_v37 = vsel %vm709_vm2, %v11829_v26, -inf }
 0xb34   :  { %2472 = vmax.xlane.f32.xlu1 %v2471_v37  ;;  %v2465_v31 = vsel %vm709_vm2, %v11833_v59, -inf }
 0xb36   :  { %2463 = vmax.xlane.f32.xlu0 %v2462_v3 }
 0xb38   :  { %2466 = vmax.xlane.f32.xlu1 %v2465_v31 }
 0xb49   :  { %2701 = vrot.lane.b32.xlu1 %v10793_v12, %s10428_s2 }
 0xb4c   :  { %2699 = vrot.lane.b32.xlu0 %v10795_v28, %s10428_s2 }
 0xb72   :  { %v2434_v44 = vpop.xlane.xlu0 %2433 }
 0xb73   :  { %v2476_v20 = vsub.f32 %v11753_v51, %v2434_v44 }
 0xb75   :  { %v2494_v56 = vmul.f32 1.442695, %v2476_v20  ;;  %v2431_v17 = vpop.xlane.xlu1 %2430 }
 0xb76   :  { %v2428_v23 = vpop.xlane.xlu0 %2427  ;;  %v2475_v35 = vsub.f32 %v11763_v46, %v2431_v17 }
 0xb77   :  { %9891 = vpow2.f32 %v2494_v56  ;;  %v2474_v1 = vsub.f32 %v11757_v4, %v2428_v23 }
 0xb78   :  { %v2492_v12 = vmul.f32 1.442695, %v2475_v35 }
 0xb79   :  { %v2490_v0 = vmul.f32 1.442695, %v2474_v1 }
 0xb7a   :  { %v2437_v37 = vpop.xlane.xlu0 %2436 }
 0xb7b   :  { %9893 = vpow2.f32 %v2490_v0  ;;  %v2477_v3 = vsub.f32 %v11775_v24, %v2437_v37 }
 0xb7d   :  { %v2496_v31 = vmul.f32 1.442695, %v2477_v3 }
 0xb7f   :  { %9895 = vpow2.f32 %v2496_v31 }
 0xb80   :  { %9897 = vpow2.f32 %v2492_v12 }
 0xb81   :  { %v11849_v28 = vpop.eup %9891 }
 0xb82   :  { %v2528_v51 = vsel %vm709_vm2, %v11849_v28, 0.0 }
 0xb83   :  { %2529 = vadd.xlane.f32.xlu0 %v2528_v51 }
 0xb85   :  { %v11853_v44 = vpop.eup %9893 }
 0xb86   :  { %v2522_v4 = vsel %vm709_vm2, %v11853_v44, 0.0 }
 0xb87   :  { %2523 = vadd.xlane.f32.xlu0 %v2522_v4 }
 0xb89   :  { %v11857_v46 = vpop.eup %9895 }
 0xb8a   :  { %v2531_v24 = vsel %vm709_vm2, %v11857_v46, 0.0  ;;  %v11861_v20 = vpop.eup %9897 }
 0xb8b   :  { %2532 = vadd.xlane.f32.xlu1 %v2531_v24  ;;  %v2525_v56 = vsel %vm709_vm2, %v11861_v20, 0.0 }
 0xb8f   :  { %2526 = vadd.xlane.f32.xlu1 %v2525_v56 }
 0xba4   :  { %v2446_v17 = vpop.xlane.xlu0 %2445 }
 0xba5   :  { %v2480_v23 = vsub.f32 %v11781_v11, %v2446_v17 }
 0xba6   :  { %v2449_v1 = vpop.xlane.xlu1 %2448 }
 0xba7   :  { %v2502_v35 = vmul.f32 1.442695, %v2480_v23  ;;  %v2481_v0 = vsub.f32 %v11785_v55, %v2449_v1 }
 0xba8   :  { %v2440_v37 = vpop.xlane.xlu0 %2439 }
 0xba9   :  { %9899 = vpow2.f32 %v2502_v35  ;;  %v2504_v3 = vmul.f32 1.442695, %v2481_v0  ;;  %v2478_v12 = vsub.f32 %v11783_v48, %v2440_v37 }
 0xbaa   :  { %v2443_v31 = vpop.xlane.xlu1 %2442 }
 0xbab   :  { %9901 = vpow2.f32 %v2504_v3  ;;  %v2498_v51 = vmul.f32 1.442695, %v2478_v12  ;;  %v2479_v4 = vsub.f32 %v11789_v19, %v2443_v31 }
 0xbad   :  { %9903 = vpow2.f32 %v2498_v51  ;;  %v2500_v24 = vmul.f32 1.442695, %v2479_v4 }
 0xbaf   :  { %9905 = vpow2.f32 %v2500_v24 }
 0xbb3   :  { %v11869_v56 = vpop.eup %9899 }
 0xbb4   :  { %v2540_v11 = vsel %vm709_vm2, %v11869_v56, 0.0 }
 0xbb5   :  { %v11873_v17 = vpop.eup %9901  ;;  %2541 = vadd.xlane.f32.xlu0 %v2540_v11 }
 0xbb6   :  { %v2543_v55 = vsel %vm709_vm2, %v11873_v17, 0.0 }
 0xbb7   :  { %v11877_v48 = vpop.eup %9903  ;;  %2544 = vadd.xlane.f32.xlu1 %v2543_v55  ;;  %v2458_v23 = vpop.xlane.xlu0 %2457 }
 0xbb8   :  { %v2484_v19 = vsub.f32 %v11809_v52, %v2458_v23  ;;  %v2534_v1 = vsel %vm709_vm2, %v11877_v48, 0.0 }
 0xbb9   :  { %v11882_v35 = vpop.eup %9905  ;;  %v2461_v0 = vpop.xlane.xlu1 %2460  ;;  %2535 = vadd.xlane.f32.xlu0 %v2534_v1 }
 0xbba   :  { %v2510_v37 = vmul.f32 1.442695, %v2484_v19  ;;  %v2485_v3 = vsub.f32 %v11813_v32, %v2461_v0  ;;  %v2537_v12 = vsel %vm709_vm2, %v11882_v35, 0.0 }
 0xbbb   :  { %2538 = vadd.xlane.f32.xlu1 %v2537_v12  ;;  %v2452_v31 = vpop.xlane.xlu0 %2451 }
 0xbbc   :  { %9907 = vpow2.f32 %v2510_v37  ;;  %v2482_v51 = vsub.f32 %v11811_v21, %v2452_v31  ;;  %v2512_v52 = vmul.f32 1.442695, %v2485_v3 }
 0xbbd   :  { %v2455_v4 = vpop.xlane.xlu1 %2454 }
 0xbbe   :  { %v2506_v24 = vmul.f32 1.442695, %v2482_v51  ;;  %v2483_v11 = vsub.f32 %v11817_v5, %v2455_v4 }
 0xbbf   :  { %v2470_v55 = vpop.xlane.xlu0 %2469 }
 0xbc0   :  { %9909 = vpow2.f32 %v2506_v24  ;;  %v2488_v23 = vsub.f32 %v11823_v50, %v2470_v55  ;;  %v2508_v19 = vmul.f32 1.442695, %v2483_v11 }
 0xbc1   :  { %v2473_v1 = vpop.xlane.xlu1 %2472  ;;  %9911 = vpow2.f32 %v2512_v52 }
 0xbc2   :  { %v2518_v32 = vmul.f32 1.442695, %v2488_v23  ;;  %v2489_v0 = vsub.f32 %v11829_v26, %v2473_v1 }
 0xbc3   :  { %v2464_v12 = vpop.xlane.xlu0 %2463 }
 0xbc4   :  { %9913 = vpow2.f32 %v2518_v32  ;;  %v2520_v37 = vmul.f32 1.442695, %v2489_v0  ;;  %v2486_v21 = vsub.f32 %v11827_v61, %v2464_v12 }
 0xbc5   :  { %9915 = vpow2.f32 %v2508_v19  ;;  %v2467_v3 = vpop.xlane.xlu1 %2466 }
 0xbc6   :  { %v11892_v31 = vpop.eup %9907  ;;  %9917 = vpow2.f32 %v2520_v37  ;;  %v2514_v5 = vmul.f32 1.442695, %v2486_v21  ;;  %v2487_v51 = vsub.f32 %v11833_v59, %v2467_v3 }
 0xbc7   :  { %v2700_v50 = vpop.permute.xlu0 %2699  ;;  %v2552_v4 = vsel %vm709_vm2, %v11892_v31, 0.0 }
 0xbc8   :  { %v2516_v52 = vmul.f32 1.442695, %v2487_v51  ;;  %2553 = vadd.xlane.f32.xlu1 %v2552_v4  ;;  %8866 = vmatprep.subr.bf16.mxu0 %v2700_v50  ;;  %9919 = vpow2.f32 %v2514_v5  ;;  %v14689_v5 = vpack.i.bf16 %v11449_v54, %v11443_v39  ;;  %v14690_v51 = vpack.i.bf16 %v11445_v63, %v11441_v38 }
 0xbc9   :  { %v2702_v26 = vpop.permute.xlu1 %2701  ;;  %8867 = vmatpush3.bf16.msra.mxu0 %v2700_v50  ;;  %v14691_v50 = vpack.i.bf16 %v11737_v49, %v11731_v41  ;;  %v14694_v38 = vpack.i.bf16 %v11457_v22, %v11453_v62  ;;  %v14695_v39 = vpack.i.bf16 %v11749_v10, %v11743_v9  ;;  %v14696_v63 = vpack.i.bf16 %v11745_v33, %v11741_v58 }
 0xbca   :  { %v11897_v24 = vpop.eup %9909  ;;  %9921 = vpow2.f32 %v2516_v52  ;;  %8868 = vmatprep.subr.bf16.mxu0 %v2702_v26 }
 0xbcb   :  { %v2546_v61 = vsel %vm709_vm2, %v11897_v24, 0.0  ;;  %v11901_v11 = vpop.eup %9911 }
 0xbcc   :  { %2547 = vadd.xlane.f32.xlu1 %v2546_v61  ;;  %v2555_v23 = vsel %vm709_vm2, %v11901_v11, 0.0 }
 0xbcd   :  { %8869 = vmatpush3.bf16.msra.mxu0 %v2702_v26 }
 0xbce   :  { %v11903_v59 = vpop.eup %9913 }
 0xbcf   :  { %v11905_v55 = vpop.eup %9915  ;;  %v2564_v19 = vsel %vm709_vm2, %v11903_v59, 0.0 }
 0xbd0   :  { %v11911_v1 = vpop.eup %9917  ;;  %2556 = vadd.xlane.f32.xlu1 %v2555_v23  ;;  %2565 = vadd.xlane.f32.xlu0 %v2564_v19  ;;  %v2549_v0 = vsel %vm709_vm2, %v11905_v55, 0.0 }
 0xbd1   :  { %v2567_v12 = vsel %vm709_vm2, %v11911_v1, 0.0 }
 0xbd2   :  { %v11913_v32 = vpop.eup %9919 }
 0xbd3   :  { %v2558_v3 = vsel %vm709_vm2, %v11913_v32, 0.0 }
 0xbd4   :  { %v11919_v37 = vpop.eup %9921  ;;  %2550 = vadd.xlane.f32.xlu1 %v2549_v0  ;;  %2568 = vadd.xlane.f32.xlu0 %v2567_v12 }
 0xbd5   :  { %v2561_v21 = vsel %vm709_vm2, %v11919_v37, 0.0 }
 0xbd8   :  { %2562 = vadd.xlane.f32.xlu0 %v2561_v21  ;;  %2559 = vadd.xlane.f32.xlu1 %v2558_v3 }
 0xbe9   :  { %2705 = vrot.lane.b32.xlu1 %v10803_v60, %s10428_s2  ;;  %v14692_v60 = vpack.i.bf16 %v11733_v16, %v11729_v27 }
 0xbed   :  { %9398 = vrot.lane.b32.xlu1 %v14689_v5, %s10417_s20 }
 0xbee   :  { %2703 = vrot.lane.b32.xlu0 %v10805_v25, %s10428_s2  ;;  %v14693_v25 = vpack.i.bf16 %v11461_v8, %v11455_v14 }
 0xbf1   :  { %9403 = vrot.lane.b32.xlu1 %v14690_v51, %s10417_s20 }
 0xbf2   :  { %9408 = vrot.lane.b32.xlu0 %v14691_v50, %s10429_s29 }
 0xbf5   :  { %9413 = vrot.lane.b32.xlu1 %v14692_v60, %s10429_s29 }
 0xbf6   :  { %9418 = vrot.lane.b32.xlu0 %v14693_v25, %s10417_s20 }
 0xbf9   :  { %9423 = vrot.lane.b32.xlu1 %v14694_v38, %s10417_s20 }
 0xbfa   :  { %9428 = vrot.lane.b32.xlu0 %v14695_v39, %s10429_s29 }
 0xbfd   :  { %9433 = vrot.lane.b32.xlu1 %v14696_v63, %s10429_s29 }
 0xc10   :  { %v2530_v54 = vpop.xlane.xlu0 %2529 }
 0xc14   :  { %v2524_v27 = vpop.xlane.xlu0 %2523 }
 0xc18   :  { %v2533_v41 = vpop.xlane.xlu1 %2532 }
 0xc19   :  { %9923 = vrcp.f32 %v2533_v41 }
 0xc1a   :  { %9925 = vrcp.f32 %v2524_v27 }
 0xc1b   :  { %9927 = vrcp.f32 %v2530_v54 }
 0xc1c   :  { %v2527_v14 = vpop.xlane.xlu1 %2526 }
 0xc1d   :  { %9929 = vrcp.f32 %v2527_v14 }
 0xc23   :  { %v9924_v62 = vpop.eup %9923 }
 0xc24   :  { %v9926_v22 = vpop.eup %9925  ;;  %v2589_v49 = vmul.f32 %v9924_v62, %v11857_v46 }
 0xc25   :  { %v9928_v8 = vpop.eup %9927  ;;  %v2586_v9 = vmul.f32 %v9926_v22, %v11853_v44 }
 0xc26   :  { %v2588_v58 = vmul.f32 %v9928_v8, %v11849_v28 }
 0xc27   :  { %v9930_v16 = vpop.eup %9929 }
 0xc28   :  { %v2587_v10 = vmul.f32 %v9930_v16, %v11861_v20  ;;  %v2603_v4 = vpack.c.bf16 %v2589_v49, %v2588_v58 }
 0xc2a   :  { %v2602_v33 = vpack.c.bf16 %v2587_v10, %v2586_v9 }
 0xc2c   :  { %8858 = vmatprep.mubr.msk.bf16.mxu1 %vm709_vm2, %v2602_v33 }
 0xc2d   :  { %8859 = vmatmul.mubr.msk.bf16.vlgmr.msra.gmra.mrb[56].mxu1 %vm709_vm2, %v2603_v4 }
 0xc42   :  { %v2542_v52 = vpop.xlane.xlu0 %2541 }
 0xc44   :  { %v2545_v26 = vpop.xlane.xlu1 %2544 }
 0xc45   :  { %9931 = vrcp.f32 %v2545_v26  ;;  %v9639_v26 = vld [vmem:[%s14632_s4] sm:$0xff]  }
 0xc46   :  { %v2536_v61 = vpop.xlane.xlu0 %2535  ;;  %8882 = vmatprep.subr.bf16.mxu1 %v9639_v26 }
 0xc47   :  { %9933 = vrcp.f32 %v2536_v61  ;;  %8883 = vmatpush3.bf16.msra.mxu1 %v9639_v26 }
 0xc48   :  { %9935 = vrcp.f32 %v2542_v52  ;;  %v2539_v23 = vpop.xlane.xlu1 %2538 }
 0xc49   :  { %9937 = vrcp.f32 %v2539_v23 }
 0xc4f   :  { %v9932_v46 = vpop.eup %9931 }
 0xc50   :  { %v2593_v28 = vmul.f32 %v9932_v46, %v11873_v17 }
 0xc51   :  { %v9934_v44 = vpop.eup %9933 }
 0xc52   :  { %v9936_v19 = vpop.eup %9935  ;;  %v2590_v0 = vmul.f32 %v9934_v44, %v11877_v48 }
 0xc53   :  { %v9938_v20 = vpop.eup %9937  ;;  %v2592_v3 = vmul.f32 %v9936_v19, %v11869_v56 }
 0xc54   :  { %v2591_v12 = vmul.f32 %v9938_v20, %v11882_v35 }
 0xc55   :  { %v2554_v21 = vpop.xlane.xlu1 %2553  ;;  %v2605_v51 = vpack.c.bf16 %v2593_v28, %v2592_v3 }
 0xc56   :  { %v2604_v5 = vpack.c.bf16 %v2591_v12, %v2590_v0  ;;  %v14697_v0 = vpack.i.bf16 %v11485_v57, %v11479_v13  ;;  %v14698_v12 = vpack.i.bf16 %v11489_v30, %v11483_v36  ;;  %v14699_v13 = vpack.i.bf16 %v11765_v53, %v11755_v40 }
 0xc57   :  { %v14700_v36 = vpack.i.bf16 %v11769_v47, %v11759_v43  ;;  %v14701_v40 = vpack.i.bf16 %v11505_v2, %v11495_v7  ;;  %v14702_v43 = vpack.i.bf16 %v11511_v6, %v11501_v29  ;;  %v14704_v2 = vpack.i.bf16 %v11805_v18, %v11799_v34 }
 0xc58   :  { %8862 = vmatprep.mubr.msk.bf16.mxu1 %vm709_vm2, %v2604_v5 }
 0xc59   :  { %v2548_v50 = vpop.xlane.xlu1 %2547  ;;  %8863 = vmatmul.mubr.msk.bf16.gmra.mrb[60].mxu1 %vm709_vm2, %v2605_v51 }
 0xc5d   :  { %v2557_v60 = vpop.xlane.xlu1 %2556  ;;  %v2566_v25 = vpop.xlane.xlu0 %2565 }
 0xc5e   :  { %9939 = vrcp.f32 %v2557_v60 }
 0xc5f   :  { %9941 = vrcp.f32 %v2548_v50 }
 0xc60   :  { %9943 = vrcp.f32 %v2554_v21 }
 0xc61   :  { %v2551_v17 = vpop.xlane.xlu1 %2550  ;;  %v2569_v38 = vpop.xlane.xlu0 %2568 }
 0xc62   :  { %9945 = vrcp.f32 %v2551_v17 }
 0xc63   :  { %9947 = vrcp.f32 %v2569_v38 }
 0xc65   :  { %v2560_v48 = vpop.xlane.xlu1 %2559  ;;  %v2563_v35 = vpop.xlane.xlu0 %2562 }
 0xc66   :  { %9949 = vrcp.f32 %v2560_v48 }
 0xc67   :  { %9951 = vrcp.f32 %v2563_v35 }
 0xc68   :  { %v9940_v56 = vpop.eup %9939  ;;  %9953 = vrcp.f32 %v2566_v25 }
 0xc69   :  { %v2704_v39 = vpop.permute.xlu0 %2703  ;;  %v9942_v63 = vpop.eup %9941  ;;  %v2597_v14 = vmul.f32 %v9940_v56, %v11901_v11 }
 0xc6a   :  { %8870 = vmatprep.subr.bf16.mxu0 %v2704_v39  ;;  %v9944_v54 = vpop.eup %9943  ;;  %v2706_v27 = vpop.permute.xlu1 %2705  ;;  %v2594_v62 = vmul.f32 %v9942_v63, %v11897_v24 }
 0xc6b   :  { %8871 = vmatpush3.bf16.msra.mxu0 %v2704_v39  ;;  %v2596_v8 = vmul.f32 %v9944_v54, %v11892_v31  ;;  %v14703_v54 = vpack.i.bf16 %v11801_v42, %v11797_v15 }
 0xc6c   :  { %v9946_v41 = vpop.eup %9945  ;;  %8872 = vmatprep.subr.bf16.mxu0 %v2706_v27 }
 0xc6d   :  { %v2595_v22 = vmul.f32 %v9946_v41, %v11905_v55  ;;  %v9948_v16 = vpop.eup %9947  ;;  %v2607_v10 = vpack.c.bf16 %v2597_v14, %v2596_v8 }
 0xc6e   :  { %v2601_v24 = vmul.f32 %v9948_v16, %v11911_v1  ;;  %v9641_v1 = vld [vmem:[%s14632_s4 + $0x8] sm:$0xff]   ;;  %v9399_v6 = vpop.permute.xlu1 %9398 }
 0xc6f   :  { %8873 = vmatpush3.bf16.msra.mxu0 %v2706_v27  ;;  %v2606_v49 = vpack.c.bf16 %v2595_v22, %v2594_v62  ;;  %8884 = vmatprep.subr.bf16.mxu1 %v9641_v1  ;;  %v9409_v27 = vpop.permute.xlu0 %9408  ;;  %v9401_v62 = vunpack.i.h.bf16 %v9399_v6  ;;  %v9400_v22 = vunpack.i.l.bf16 %v9399_v6 }
 0xc70   :  { %v9950_v9 = vpop.eup %9949  ;;  %8885 = vmatpush3.bf16.msra.mxu1 %v9641_v1  ;;  %v9411_v34 = vunpack.i.h.bf16 %v9409_v27  ;;  %v9410_v18 = vunpack.i.l.bf16 %v9409_v27 }
 0xc71   :  { %v9952_v58 = vpop.eup %9951  ;;  %8874 = vmatprep.mubr.msk.bf16.mxu0 %vm709_vm2, %v2606_v49  ;;  %v2598_v33 = vmul.f32 %v9950_v9, %v11913_v32  ;;  %v9640_v32 = vld [vmem:[%s14635_s7] sm:$0xff]  }
 0xc72   :  { %8875 = vmatmul.mubr.msk.bf16.vlgmr.msra.gmra.mrb[72].mxu0 %vm709_vm2, %v2607_v10  ;;  %v9954_v11 = vpop.eup %9953  ;;  %v2599_v4 = vmul.f32 %v9952_v58, %v11919_v37  ;;  %v14649_v37 = vmov 0.0   ;;  %v9404_v29 = vpop.permute.xlu1 %9403  ;;  %v2981_v10 = vsel %vm518_vm1, %v11133_v45, %v9401_v62  ;;  %v14705_v58 = vld [vmem:[#allocation8_spill] sm:$0xff] }
 0xc73   :  { %v2600_v31 = vmul.f32 %v9954_v11, %v11903_v59  ;;  %8902 = vmatprep.subr.bf16.mxu0 %v14649_v37  ;;  %v63_v59 = vld [vmem:[%s14629_s1] sm:$0x3]  ;;  %s10432_s1 = smov 24   ;;  %v9419_v14 = vpop.permute.xlu0 %9418  ;;  %v9406_v42 = vunpack.i.h.bf16 %v9404_v29  ;;  %v9405_v15 = vunpack.i.l.bf16 %v9404_v29 }
 0xc74   :  { %v2608_v55 = vpack.c.bf16 %v2599_v4, %v2598_v33  ;;  %8903 = vmatpush3.bf16.msra.mxu0 %v9640_v32  ;;  %v11998_v61 = vpack.c.bf16 %v63_v59, %v63_v59  ;;  %v2980_v33 = vsel %vm518_vm1, %v14705_v58, %v9400_v22  ;;  %v14706_v4 = vld [vmem:[#allocation9_spill] sm:$0xff] }
 0xc75   :  { %v2609_v52 = vpack.c.bf16 %v2601_v24, %v2600_v31  ;;  %v2983_v24 = vsel %vm518_vm1, %v14706_v4, %v9406_v42 }
 0xc76   :  { %8878 = vmatprep.mubr.msk.bf16.mxu0 %vm709_vm2, %v2608_v55  ;;  %v9414_v7 = vpop.permute.xlu1 %9413  ;;  %v14707_v55 = vld [vmem:[#allocation7_spill] sm:$0xff] }
 0xc77   :  { %v9429_v16 = vpop.permute.xlu0 %9428  ;;  %v9416_v49 = vunpack.i.h.bf16 %v9414_v7  ;;  %v9415_v9 = vunpack.i.l.bf16 %v9414_v7  ;;  %v2982_v31 = vsel %vm518_vm1, %v14707_v55, %v9405_v15 }
 0xc79   :  { %v2999_v59 = vsel %vm2996_vm3, %v2982_v31, %v9415_v9  ;;  %v3000_v1 = vsel %vm2996_vm3, %v2983_v24, %v9416_v49  ;;  %v14712_v24 = vld [vmem:[#allocation16_spill] sm:$0xff]  ;;  %v14713_v31 = vld [vmem:[#allocation14_spill] sm:$0xff] }
 0xc7a   :  { %8879 = vmatmul.mubr.msk.bf16.gmra.mrb[76].mxu0 %vm709_vm2, %v2609_v52  ;;  %v9424_v41 = vpop.permute.xlu1 %9423 }
 0xc7b   :  { %8904 = vmatprep.mubr.msk.bf16.mxu0 %vm10431_vm4, %v14649_v37 }
 0xc7e   :  { %v9434_v8 = vpop.permute.xlu1 %9433 }
 0xc82   :  { %8905 = vmatmul.mubr.msk.bf16.vlgmr.msra.gmra.mrb[80].mxu0 %vm2996_vm3, %v11998_v61 }
 0xd00   :  { %v8860_v23 = vpop.f32.mrb[56].mxu1 }
 0xd01   :  { %v2668_v46 = vpop.f32.mrb[57].mxu1 }
 0xd02   :  { %v8861_v44 = vpop.f32.mrb[58].mxu1 }
 0xd03   :  { %v9437_v19 = vpack.i.bf16 %v8861_v44, %v8860_v23  ;;  %v2671_v20 = vpop.f32.mrb[59].mxu1  ;;  %v2997_v44 = vsel %vm2996_vm3, %v2980_v33, %v9410_v18 }
 0xd04   :  { %v9442_v28 = vpack.i.bf16 %v2671_v20, %v2668_v46  ;;  %v2998_v46 = vsel %vm2996_vm3, %v2981_v10, %v9411_v34 }
 0xd05   :  { %9438 = vrot.lane.b32.xlu1 %v9437_v19, %s10432_s1 }
 0xd06   :  { %9443 = vrot.lane.b32.xlu0 %v9442_v28, %s10432_s1 }
 0xd09   :  { %9453 = vrot.lane.b32.xlu1 %v14697_v0, %s10417_s20 }
 0xd0a   :  { %9448 = vrot.lane.b32.xlu0 %v14698_v12, %s10417_s20 }
 0xd2c   :  { %v8864_v21 = vpop.f32.mrb[60].mxu1 }
 0xd2d   :  { %v2684_v3 = vpop.f32.mrb[61].mxu1 }
 0xd2e   :  { %v8865_v5 = vpop.f32.mrb[62].mxu1 }
 0xd2f   :  { %v9457_v51 = vpack.i.bf16 %v8865_v5, %v8864_v21  ;;  %v2687_v50 = vpop.f32.mrb[63].mxu1  ;;  %v9420_v5 = vunpack.i.l.bf16 %v9419_v14 }
 0xd30   :  { %v9462_v60 = vpack.i.bf16 %v2687_v50, %v2684_v3  ;;  %v9421_v3 = vunpack.i.h.bf16 %v9419_v14  ;;  %v9426_v50 = vunpack.i.h.bf16 %v9424_v41 }
 0xd31   :  { %9458 = vrot.lane.b32.xlu1 %v9457_v51, %s10432_s1 }
 0xd32   :  { %9463 = vrot.lane.b32.xlu0 %v9462_v60, %s10432_s1  ;;  %v9425_v60 = vunpack.i.l.bf16 %v9424_v41 }
 0xd35   :  { %9473 = vrot.lane.b32.xlu1 %v14699_v13, %s10429_s29 }
 0xd36   :  { %9468 = vrot.lane.b32.xlu0 %v14700_v36, %s10429_s29  ;;  %v9436_v36 = vunpack.i.h.bf16 %v9434_v8 }
 0xd45   :  { %v8876_v57 = vpop.f32.mrb[72].mxu0 }
 0xd46   :  { %v2757_v30 = vpop.f32.mrb[73].mxu0 }
 0xd47   :  { %v8877_v25 = vpop.f32.mrb[74].mxu0 }
 0xd48   :  { %v9482_v17 = vpack.i.bf16 %v8877_v25, %v8876_v57  ;;  %v2760_v38 = vpop.f32.mrb[75].mxu0  ;;  %v9435_v57 = vunpack.i.l.bf16 %v9434_v8  ;;  %v9430_v25 = vunpack.i.l.bf16 %v9429_v16 }
 0xd49   :  { %v9477_v48 = vpack.i.bf16 %v2760_v38, %v2757_v30  ;;  %v9431_v30 = vunpack.i.h.bf16 %v9429_v16 }
 0xd4a   :  { %9483 = vrot.lane.b32.xlu1 %v9482_v17, %s10432_s1  ;;  %v14708_v17 = vld [vmem:[#allocation13_spill] sm:$0xff] }
 0xd4b   :  { %9478 = vrot.lane.b32.xlu0 %v9477_v48, %s10432_s1  ;;  %v2985_v38 = vsel %vm518_vm1, %v14708_v17, %v9421_v3  ;;  %v14709_v48 = vld [vmem:[#allocation11_spill] sm:$0xff] }
 0xd4c   :  { %v3002_v41 = vsel %vm2996_vm3, %v2985_v38, %v9431_v30 }
 0xd4d   :  { %v8880_v35 = vpop.f32.mrb[76].mxu0 }
 0xd4e   :  { %9493 = vrot.lane.b32.xlu1 %v14701_v40, %s10417_s20  ;;  %v2773_v53 = vpop.f32.mrb[77].mxu0 }
 0xd4f   :  { %9488 = vrot.lane.b32.xlu0 %v14702_v43, %s10417_s20  ;;  %v8881_v47 = vpop.f32.mrb[78].mxu0 }
 0xd50   :  { %v9512_v56 = vpack.i.bf16 %v8881_v47, %v8880_v35  ;;  %v2776_v39 = vpop.f32.mrb[79].mxu0  ;;  %v2984_v35 = vsel %vm518_vm1, %v14709_v48, %v9420_v5  ;;  %v14711_v47 = vld [vmem:[#allocation10_spill] sm:$0xff] }
 0xd51   :  { %v9507_v63 = vpack.i.bf16 %v2776_v39, %v2773_v53  ;;  %v14710_v53 = vld [vmem:[#allocation12_spill] sm:$0xff]  ;;  %v3001_v27 = vsel %vm2996_vm3, %v2984_v35, %v9430_v25 }
 0xd52   :  { %9503 = vrot.lane.b32.xlu1 %v14703_v54, %s10429_s29  ;;  %v2987_v43 = vsel %vm518_vm1, %v14710_v53, %v9426_v50 }
 0xd53   :  { %9498 = vrot.lane.b32.xlu0 %v14704_v2, %s10429_s29  ;;  %v3004_v6 = vsel %vm2996_vm3, %v2987_v43, %v9436_v36 }
 0xd56   :  { %9513 = vrot.lane.b32.xlu1 %v9512_v56, %s10432_s1  ;;  %v2986_v56 = vsel %vm518_vm1, %v14711_v47, %v9425_v60 }
 0xd57   :  { %9508 = vrot.lane.b32.xlu0 %v9507_v63, %s10432_s1  ;;  %v3003_v2 = vsel %vm2996_vm3, %v2986_v56, %v9435_v57  ;;  %v14716_v56 = vld [vmem:[#allocation20_spill] sm:$0xff] }
 0xd77   :  { %v9439_v11 = vpop.permute.xlu1 %9438 }
 0xd78   :  { %v9441_v52 = vunpack.i.h.bf16 %v9439_v11  ;;  %v9440_v26 = vunpack.i.l.bf16 %v9439_v11  ;;  %v9444_v32 = vpop.permute.xlu0 %9443 }
 0xd79   :  { %v9446_v23 = vunpack.i.h.bf16 %v9444_v32  ;;  %v9445_v45 = vunpack.i.l.bf16 %v9444_v32  ;;  %v14714_v32 = vld [vmem:[#allocation17_spill] sm:$0xff] }
 0xd7a   :  { %v3017_v19 = vsel %vm3013_vm5, %v3000_v1, %v9441_v52  ;;  %v3016_v20 = vsel %vm3013_vm5, %v2999_v59, %v9440_v26  ;;  %v14715_v1 = vld [vmem:[#allocation15_spill] sm:$0xff] }
 0xd7b   :  { %v3031_v28 = vpack.c.bf16 %v3017_v19, %v3016_v20  ;;  %v3014_v0 = vsel %vm3013_vm5, %v2997_v44, %v9445_v45  ;;  %v3015_v12 = vsel %vm3013_vm5, %v2998_v46, %v9446_v23  ;;  %v9454_v51 = vpop.permute.xlu1 %9453 }
 0xd7c   :  { %v3030_v21 = vpack.c.bf16 %v3015_v12, %v3014_v0  ;;  %v9449_v13 = vpop.permute.xlu0 %9448  ;;  %v9456_v49 = vunpack.i.h.bf16 %v9454_v51  ;;  %v9455_v9 = vunpack.i.l.bf16 %v9454_v51 }
 0xd7d   :  { %v9451_v18 = vunpack.i.h.bf16 %v9449_v13  ;;  %v9450_v10 = vunpack.i.l.bf16 %v9449_v13 }
 0xd7e   :  { %8886 = vmatprep.mubr.msk.bf16.mxu1 %vm99_vm0, %v3030_v21  ;;  %v2991_v55 = vsel %vm518_vm1, %v14712_v24, %v9456_v49  ;;  %v2990_v52 = vsel %vm518_vm1, %v14713_v31, %v9455_v9  ;;  %v10433_v31 = vmov 1966171168  }
 0xd7f   :  { %8887 = vmatmul.mubr.msk.bf16.vlgmr.msra.gmra.mrb[64].mxu1 %vm99_vm0, %v3031_v28  ;;  %v2989_v59 = vsel %vm518_vm1, %v14714_v32, %v9451_v18  ;;  %v2988_v23 = vsel %vm518_vm1, %v14715_v1, %v9450_v10  ;;  %v8096_v32 = vld [vmem:[%s14636_s8 + $0x8] ss:$0 sm:$0xff]  ;;  %v14720_v1 = vld [vmem:[#allocation5_spill] sm:$0xff] }
 0xda3   :  { %v9459_v40 = vpop.permute.xlu1 %9458 }
 0xda4   :  { %v9461_v39 = vunpack.i.h.bf16 %v9459_v40  ;;  %v9460_v63 = vunpack.i.l.bf16 %v9459_v40  ;;  %v9464_v54 = vpop.permute.xlu0 %9463 }
 0xda5   :  { %v9466_v29 = vunpack.i.h.bf16 %v9464_v54  ;;  %v9465_v7 = vunpack.i.l.bf16 %v9464_v54 }
 0xda6   :  { %v3021_v14 = vsel %vm3013_vm5, %v3004_v6, %v9461_v39  ;;  %v3020_v62 = vsel %vm3013_vm5, %v3003_v2, %v9460_v63  ;;  %v14717_v63 = vld [vmem:[#allocation18_spill] sm:$0xff]  ;;  %v14718_v6 = vld [vmem:[#allocation21_spill] sm:$0xff] }
 0xda7   :  { %v3018_v22 = vsel %vm3013_vm5, %v3001_v27, %v9465_v7  ;;  %v3019_v8 = vsel %vm3013_vm5, %v3002_v41, %v9466_v29  ;;  %v3033_v42 = vpack.c.bf16 %v3021_v14, %v3020_v62  ;;  %v9474_v16 = vpop.permute.xlu1 %9473  ;;  %v14719_v7 = vld [vmem:[#allocation19_spill] sm:$0xff] }
 0xda8   :  { %v3032_v15 = vpack.c.bf16 %v3019_v8, %v3018_v22  ;;  %v9469_v34 = vpop.permute.xlu0 %9468  ;;  %v9476_v58 = vunpack.i.h.bf16 %v9474_v16  ;;  %v9475_v33 = vunpack.i.l.bf16 %v9474_v16 }
 0xda9   :  { %v9471_v11 = vunpack.i.h.bf16 %v9469_v34  ;;  %v9470_v4 = vunpack.i.l.bf16 %v9469_v34 }
 0xdaa   :  { %8890 = vmatprep.mubr.msk.bf16.mxu1 %vm99_vm0, %v3032_v15  ;;  %v3008_v19 = vsel %vm2996_vm3, %v2991_v55, %v9476_v58  ;;  %v3007_v20 = vsel %vm2996_vm3, %v2990_v52, %v9475_v33  ;;  %v3252_v52 = vunpack.c.l.s4 %v10433_v31 }
 0xdab   :  { %8891 = vmatmul.mubr.msk.bf16.gmra.mrb[68].mxu1 %vm99_vm0, %v3033_v42  ;;  %v3005_v12 = vsel %vm2996_vm3, %v2988_v23, %v9470_v4  ;;  %v3006_v21 = vsel %vm2996_vm3, %v2989_v59, %v9471_v11  ;;  %v3244_v11 = vpop.f32.mrb[80].mxu0 }
 0xdac   :  { %v8906_v4 = vpop.f32.mrb[81].mxu0  ;;  %v3245_v59 = vadd.f32 %v8096_v32, %v3244_v11 }
 0xdad   :  { %v3247_v24 = vpop.f32.mrb[82].mxu0 }
 0xdae   :  { %v8907_v55 = vpop.f32.mrb[83].mxu0 }
 0xdbc   :  { %v9484_v26 = vpop.permute.xlu1 %9483 }
 0xdbd   :  { %v9486_v45 = vunpack.i.h.bf16 %v9484_v26  ;;  %v9485_v46 = vunpack.i.l.bf16 %v9484_v26  ;;  %v9479_v44 = vpop.permute.xlu0 %9478  ;;  %v3253_v26 = vunpack.c.0.s8 %v3252_v52 }
 0xdbe   :  { %v9481_v28 = vunpack.i.h.bf16 %v9479_v44  ;;  %v9480_v0 = vunpack.i.l.bf16 %v9479_v44 }
 0xdbf   :  { %v3025_v3 = vsel %vm3013_vm5, %v3008_v19, %v9486_v45  ;;  %v3024_v5 = vsel %vm3013_vm5, %v3007_v20, %v9485_v46  ;;  %v12120_v23 = vsub.s32 %v3253_v26, %v14720_v1  ;;  %v14648_v46 = vsub.s32 3, %v14720_v1  ;;  %v12131_v19 = vld [vmem:[%s14636_s8] sm:$0xff] }
 0xdc0   :  { %v3022_v51 = vsel %vm3013_vm5, %v3005_v12, %v9480_v0  ;;  %v3023_v50 = vsel %vm3013_vm5, %v3006_v21, %v9481_v28  ;;  %v9494_v60 = vpop.permute.xlu1 %9493  ;;  %v3035_v13 = vpack.c.bf16 %v3025_v3, %v3024_v5  ;;  %v14722_v0 = vld [vmem:[#allocation6_spill] sm:$0xff] }
 0xdc1   :  { %v9489_v36 = vpop.permute.xlu0 %9488  ;;  %v3034_v57 = vpack.c.bf16 %v3023_v50, %v3022_v51  ;;  %v9496_v30 = vunpack.i.h.bf16 %v9494_v60  ;;  %v9495_v25 = vunpack.i.l.bf16 %v9494_v60  ;;  %14721 = vst [vmem:[#allocation8_spill] sm:$0xff] %v12120_v23  ;;  %v12123_v45 = vrot.slane %v3245_v59, %v12120_v23  ;;  %v10372_v50 = vld [vmem:[%s14628_s0 + $0x10] sm:$0xff] }
 0xdc2   :  { %v9491_v38 = vunpack.i.h.bf16 %v9489_v36  ;;  %v9490_v48 = vunpack.i.l.bf16 %v9489_v36  ;;  %v12136_v20 = vrot.slane %v12131_v19, %v14648_v46 }
 0xdc3   :  { %8894 = vmatprep.mubr.msk.bf16.mxu1 %vm99_vm0, %v3034_v57  ;;  %v2995_v39 = vsel %vm518_vm1, %v14716_v56, %v9496_v30  ;;  %v2994_v54 = vsel %vm518_vm1, %v14717_v63, %v9495_v25  ;;  %v3265_v44 = vrot.slane %v12123_v45, %v12120_v23  ;;  %v10373_v57 = vld [vmem:[%s14628_s0] sm:$0xff]  ;;  %v3258_v31 = vcombine.high %v12123_v45, %v12123_v45 }
 0xdc4   :  { %v9504_v17 = vpop.permute.xlu1 %9503  ;;  %8895 = vmatmul.mubr.msk.bf16.gmra.mrb[72].mxu1 %vm99_vm0, %v3035_v13  ;;  %v2993_v29 = vsel %vm518_vm1, %v14718_v6, %v9491_v38  ;;  %v2992_v27 = vsel %vm518_vm1, %v14719_v7, %v9490_v48  ;;  %v10374_v38 = vld [vmem:[%s14628_s0 + $0x18] sm:$0xff]  ;;  %v10381_v45 = vld [vmem:[%s14628_s0 + $0x40] sm:$0xff] }
 0xdc5   :  { %v9499_v35 = vpop.permute.xlu0 %9498  ;;  %v9506_v40 = vunpack.i.h.bf16 %v9504_v17  ;;  %v9505_v53 = vunpack.i.l.bf16 %v9504_v17  ;;  %v3276_v12 = vrot.slane %v3265_v44, %v14722_v0  ;;  %v3272_v52 = vrot.slane %v3258_v31, %v12120_v23 }
 0xdc6   :  { %v9501_v43 = vunpack.i.h.bf16 %v9499_v35  ;;  %v9500_v47 = vunpack.i.l.bf16 %v9499_v35 }
 0xdc7   :  { %v3011_v22 = vsel %vm2996_vm3, %v2994_v54, %v9505_v53  ;;  %v3012_v8 = vsel %vm2996_vm3, %v2995_v39, %v9506_v40  ;;  %v10375_v40 = vld [vmem:[%s14628_s0 + $0x8] sm:$0xff] }
 0xdc8   :  { %v9514_v2 = vpop.permute.xlu1 %9513  ;;  %v3009_v16 = vsel %vm2996_vm3, %v2992_v27, %v9500_v47  ;;  %v3010_v49 = vsel %vm2996_vm3, %v2993_v29, %v9501_v43 }
 0xdc9   :  { %v9516_v41 = vunpack.i.h.bf16 %v9514_v2  ;;  %v9515_v14 = vunpack.i.l.bf16 %v9514_v2  ;;  %v9509_v62 = vpop.permute.xlu0 %9508 }
 0xdca   :  { %v9511_v42 = vunpack.i.h.bf16 %v9509_v62  ;;  %v9510_v15 = vunpack.i.l.bf16 %v9509_v62 }
 0xdcb   :  { %v3029_v9 = vsel %vm3013_vm5, %v3012_v8, %v9516_v41  ;;  %v3028_v34 = vsel %vm3013_vm5, %v3011_v22, %v9515_v14  ;;  %v10376_v41 = vld [vmem:[%s14628_s0 + $0x30] sm:$0xff]  ;;  %v10377_v8 = vld [vmem:[%s14628_s0 + $0x20] sm:$0xff] }
 0xdcc   :  { %v3026_v18 = vsel %vm3013_vm5, %v3009_v16, %v9510_v15  ;;  %v3027_v10 = vsel %vm3013_vm5, %v3010_v49, %v9511_v42  ;;  %v3037_v58 = vpack.c.bf16 %v3029_v9, %v3028_v34  ;;  %v10378_v49 = vld [vmem:[%s14628_s0 + $0x38] sm:$0xff] }
 0xdcd   :  { %v3036_v33 = vpack.c.bf16 %v3027_v10, %v3026_v18  ;;  %v10379_v18 = vld [vmem:[%s14628_s0 + $0x28] sm:$0xff] }
 0xdcf   :  { %8898 = vmatprep.mubr.msk.bf16.mxu1 %vm99_vm0, %v3036_v33 }
 0xdd0   :  { %8899 = vmatmul.mubr.msk.bf16.gmra.mrb[76].mxu1 %vm99_vm0, %v3037_v58 }
 0xe52   :  { %v8888_v28 = vpop.f32.mrb[64].mxu1 }
 0xe53   :  { %v3125_v21 = vadd.f32 %v8888_v28, %v12136_v20  ;;  %v3116_v3 = vpop.f32.mrb[65].mxu1 }
 0xe54   :  { %v3117_v5 = vadd.f32 %v3116_v3, %v12136_v20  ;;  %v8889_v51 = vpop.f32.mrb[66].mxu1 }
 0xe55   :  { %v3181_v60 = vadd.f32 %v10372_v50, %v3125_v21  ;;  %v3128_v13 = vadd.f32 %v8889_v51, %v12136_v20  ;;  %v3119_v36 = vpop.f32.mrb[67].mxu1  ;;  %v10380_v21 = vld [vmem:[%s14628_s0 + $0x50] sm:$0xff] }
 0xe56   :  { %v3179_v30 = vadd.f32 %v10373_v57, %v3117_v5  ;;  %v3120_v25 = vadd.f32 %v3119_v36, %v12136_v20  ;;  %v10382_v36 = vld [vmem:[%s14628_s0 + $0x58] sm:$0xff] }
 0xe57   :  { %v12149_v17 = vadd.f32 %v3276_v12, %v3181_v60  ;;  %v3182_v48 = vadd.f32 %v10374_v38, %v3128_v13 }
 0xe58   :  { %v12154_v35 = vadd.f32 %v3276_v12, %v3179_v30  ;;  %v3180_v53 = vadd.f32 %v10375_v40, %v3120_v25  ;;  %v10383_v25 = vld [vmem:[%s14628_s0 + $0x48] sm:$0xff] }
 0xe59   :  { %v12159_v43 = vadd.f32 %v3276_v12, %v3182_v48  ;;  %v3305_v63 = vsel %vm99_vm0, %v12149_v17, 0.0 }
 0xe5a   :  { %v12161_v47 = vadd.f32 %v3276_v12, %v3180_v53  ;;  %v3299_v56 = vsel %vm99_vm0, %v12154_v35, 0.0 }
 0xe5b   :  { %3300 = vadd.xlane.f32.xlu0 %v3299_v56  ;;  %v3308_v54 = vsel %vm99_vm0, %v12159_v43, 0.0 }
 0xe5c   :  { %v3302_v39 = vsel %vm99_vm0, %v12161_v47, 0.0 }
 0xe5d   :  { %3303 = vadd.xlane.f32.xlu1 %v3302_v39 }
 0xe5f   :  { %3306 = vadd.xlane.f32.xlu0 %v3305_v63 }
 0xe63   :  { %3309 = vadd.xlane.f32.xlu0 %v3308_v54 }
 0xe7e   :  { %v8892_v2 = vpop.f32.mrb[68].mxu1 }
 0xe7f   :  { %v3141_v6 = vadd.f32 %v8892_v2, %v12136_v20  ;;  %v3132_v29 = vpop.f32.mrb[69].mxu1 }
 0xe80   :  { %v3133_v7 = vadd.f32 %v3132_v29, %v12136_v20  ;;  %v8893_v27 = vpop.f32.mrb[70].mxu1 }
 0xe81   :  { %v3185_v14 = vadd.f32 %v10376_v41, %v3141_v6  ;;  %v3144_v62 = vadd.f32 %v8893_v27, %v12136_v20  ;;  %v3135_v22 = vpop.f32.mrb[71].mxu1  ;;  %v10384_v27 = vld [vmem:[%s14628_s0 + $0x70] sm:$0xff] }
 0xe82   :  { %v3183_v42 = vadd.f32 %v10377_v8, %v3133_v7  ;;  %v3136_v15 = vadd.f32 %v3135_v22, %v12136_v20  ;;  %v10385_v22 = vld [vmem:[%s14628_s0 + $0x60] sm:$0xff] }
 0xe83   :  { %v12181_v16 = vadd.f32 %v3276_v12, %v3185_v14  ;;  %v3186_v9 = vadd.f32 %v10378_v49, %v3144_v62  ;;  %v10386_v49 = vld [vmem:[%s14628_s0 + $0x78] sm:$0xff] }
 0xe84   :  { %v12186_v34 = vadd.f32 %v3276_v12, %v3183_v42  ;;  %v3184_v10 = vadd.f32 %v10379_v18, %v3136_v15 }
 0xe85   :  { %v12191_v58 = vadd.f32 %v3276_v12, %v3186_v9  ;;  %v3317_v24 = vsel %vm99_vm0, %v12181_v16, 0.0 }
 0xe86   :  { %v12193_v33 = vadd.f32 %v3276_v12, %v3184_v10  ;;  %v3311_v11 = vsel %vm99_vm0, %v12186_v34, 0.0  ;;  %v3280_v12 = vrot.slane %v3272_v52, %v14722_v0  ;;  %v10387_v10 = vld [vmem:[%s14628_s0 + $0x68] sm:$0xff] }
 0xe87   :  { %3312 = vadd.xlane.f32.xlu0 %v3311_v11  ;;  %v3320_v55 = vsel %vm99_vm0, %v12191_v58, 0.0 }
 0xe88   :  { %v3314_v4 = vsel %vm99_vm0, %v12193_v33, 0.0 }
 0xe89   :  { %3315 = vadd.xlane.f32.xlu1 %v3314_v4 }
 0xe8b   :  { %3318 = vadd.xlane.f32.xlu0 %v3317_v24 }
 0xe8d   :  { %3321 = vadd.xlane.f32.xlu1 %v3320_v55 }
 0xe97   :  { %v8896_v26 = vpop.f32.mrb[72].mxu1 }
 0xe98   :  { %v3157_v32 = vadd.f32 %v8896_v26, %v12136_v20  ;;  %v3148_v59 = vpop.f32.mrb[73].mxu1 }
 0xe99   :  { %v3149_v44 = vadd.f32 %v3148_v59, %v12136_v20  ;;  %v8897_v28 = vpop.f32.mrb[74].mxu1 }
 0xe9a   :  { %v3189_v3 = vadd.f32 %v10380_v21, %v3157_v32  ;;  %v3160_v5 = vadd.f32 %v8897_v28, %v12136_v20  ;;  %v3151_v51 = vpop.f32.mrb[75].mxu1 }
 0xe9b   :  { %v3187_v50 = vadd.f32 %v10381_v45, %v3149_v44  ;;  %v3152_v60 = vadd.f32 %v3151_v51, %v12136_v20 }
 0xe9c   :  { %v12217_v13 = vadd.f32 %v3280_v12, %v3189_v3  ;;  %v3190_v57 = vadd.f32 %v10382_v36, %v3160_v5 }
 0xe9d   :  { %v12222_v30 = vadd.f32 %v3280_v12, %v3187_v50  ;;  %v3188_v38 = vadd.f32 %v10383_v25, %v3152_v60 }
 0xe9e   :  { %v12227_v48 = vadd.f32 %v3280_v12, %v3190_v57  ;;  %v3329_v63 = vsel %vm99_vm0, %v12217_v13, 0.0 }
 0xe9f   :  { %v12229_v40 = vadd.f32 %v3280_v12, %v3188_v38  ;;  %v3323_v53 = vsel %vm99_vm0, %v12222_v30, 0.0 }
 0xea0   :  { %3324 = vadd.xlane.f32.xlu0 %v3323_v53  ;;  %v3332_v7 = vsel %vm99_vm0, %v12227_v48, 0.0 }
 0xea1   :  { %v3326_v56 = vsel %vm99_vm0, %v12229_v40, 0.0 }
 0xea2   :  { %3327 = vadd.xlane.f32.xlu1 %v3326_v56 }
 0xea3   :  { %v8900_v39 = vpop.f32.mrb[76].mxu1 }
 0xea4   :  { %v3173_v54 = vadd.f32 %v8900_v39, %v12136_v20  ;;  %v3164_v2 = vpop.f32.mrb[77].mxu1  ;;  %3330 = vadd.xlane.f32.xlu0 %v3329_v63 }
 0xea5   :  { %v3165_v6 = vadd.f32 %v3164_v2, %v12136_v20  ;;  %v8901_v29 = vpop.f32.mrb[78].mxu1  ;;  %v9642_v2 = vld [vmem:[%s14633_s5] sm:$0xff]  }
 0xea6   :  { %v3193_v41 = vadd.f32 %v10384_v27, %v3173_v54  ;;  %v3176_v14 = vadd.f32 %v8901_v29, %v12136_v20  ;;  %v3167_v62 = vpop.f32.mrb[79].mxu1  ;;  %3333 = vadd.xlane.f32.xlu1 %v3332_v7  ;;  %8908 = vmatprep.subr.bf16.mxu0 %v9642_v2  ;;  %v9643_v27 = vld [vmem:[%s14633_s5 + $0x8] sm:$0xff]  }
 0xea7   :  { %v3191_v8 = vadd.f32 %v10385_v22, %v3165_v6  ;;  %v3168_v42 = vadd.f32 %v3167_v62, %v12136_v20  ;;  %8909 = vmatpush3.bf16.msra.mxu0 %v9642_v2 }
 0xea8   :  { %v12249_v15 = vadd.f32 %v3280_v12, %v3193_v41  ;;  %v3194_v9 = vadd.f32 %v10386_v49, %v3176_v14  ;;  %8910 = vmatprep.subr.bf16.mxu0 %v9643_v27 }
 0xea9   :  { %v12254_v18 = vadd.f32 %v3280_v12, %v3191_v8  ;;  %v3192_v11 = vadd.f32 %v10387_v10, %v3168_v42 }
 0xeaa   :  { %v12259_v4 = vadd.f32 %v3280_v12, %v3194_v9  ;;  %v3341_v31 = vsel %vm99_vm0, %v12249_v15, 0.0 }
 0xeab   :  { %v12261_v24 = vadd.f32 %v3280_v12, %v3192_v11  ;;  %v3335_v20 = vsel %vm99_vm0, %v12254_v18, 0.0  ;;  %8911 = vmatpush3.bf16.msra.mxu0 %v9643_v27 }
 0xeac   :  { %3336 = vadd.xlane.f32.xlu0 %v3335_v20  ;;  %v3344_v52 = vsel %vm99_vm0, %v12259_v4, 0.0 }
 0xead   :  { %v3338_v55 = vsel %vm99_vm0, %v12261_v24, 0.0 }
 0xeae   :  { %3339 = vadd.xlane.f32.xlu1 %v3338_v55 }
 0xeb0   :  { %3342 = vadd.xlane.f32.xlu0 %v3341_v31 }
 0xeb2   :  { %3345 = vadd.xlane.f32.xlu1 %v3344_v52 }
 0xee8   :  { %v3301_v26 = vpop.xlane.xlu0 %3300 }
 0xee9   :  { %v3347_v32 = vmul.f32 0.03125, %v3301_v26 }
 0xeea   :  { %v3304_v59 = vpop.xlane.xlu1 %3303 }
 0xeeb   :  { %v12272_v44 = vsub.f32 %v12154_v35, %v3347_v32  ;;  %v3348_v28 = vmul.f32 0.03125, %v3304_v59 }
 0xeec   :  { %v3307_v12 = vpop.xlane.xlu0 %3306 }
 0xeed   :  { %v12275_v21 = vsub.f32 %v12161_v47, %v3348_v28  ;;  %v3349_v3 = vmul.f32 0.03125, %v3307_v12  ;;  %v3379_v5 = vmul.f32 %v12272_v44, %v12272_v44 }
 0xeef   :  { %v12280_v51 = vsub.f32 %v12149_v17, %v3349_v3  ;;  %v3395_v45 = vsel %vm99_vm0, %v3379_v5, 0.0  ;;  %v3380_v50 = vmul.f32 %v12275_v21, %v12275_v21 }
 0xef0   :  { %3396 = vadd.xlane.f32.xlu0 %v3395_v45  ;;  %v3310_v60 = vpop.xlane.xlu0 %3309 }
 0xef1   :  { %v3350_v36 = vmul.f32 0.03125, %v3310_v60  ;;  %v3398_v57 = vsel %vm99_vm0, %v3380_v50, 0.0  ;;  %v3381_v25 = vmul.f32 %v12280_v51, %v12280_v51 }
 0xef2   :  { %3399 = vadd.xlane.f32.xlu1 %v3398_v57 }
 0xef3   :  { %v12289_v38 = vsub.f32 %v12159_v43, %v3350_v36  ;;  %v3401_v53 = vsel %vm99_vm0, %v3381_v25, 0.0 }
 0xef4   :  { %3402 = vadd.xlane.f32.xlu0 %v3401_v53 }
 0xef5   :  { %v3382_v56 = vmul.f32 %v12289_v38, %v12289_v38 }
 0xef7   :  { %v3404_v39 = vsel %vm99_vm0, %v3382_v56, 0.0 }
 0xef8   :  { %3405 = vadd.xlane.f32.xlu1 %v3404_v39 }
 0xf14   :  { %v3313_v63 = vpop.xlane.xlu0 %3312 }
 0xf15   :  { %v3351_v54 = vmul.f32 0.03125, %v3313_v63 }
 0xf16   :  { %v3316_v6 = vpop.xlane.xlu1 %3315 }
 0xf17   :  { %v12299_v29 = vsub.f32 %v12186_v34, %v3351_v54  ;;  %v3352_v7 = vmul.f32 0.03125, %v3316_v6 }
 0xf18   :  { %v3319_v41 = vpop.xlane.xlu0 %3318 }
 0xf19   :  { %v12305_v14 = vsub.f32 %v12193_v33, %v3352_v7  ;;  %v3353_v62 = vmul.f32 0.03125, %v3319_v41  ;;  %v3383_v22 = vmul.f32 %v12299_v29, %v12299_v29 }
 0xf1a   :  { %v3322_v8 = vpop.xlane.xlu1 %3321 }
 0xf1b   :  { %v12310_v42 = vsub.f32 %v12181_v16, %v3353_v62  ;;  %v3354_v49 = vmul.f32 0.03125, %v3322_v8  ;;  %v3407_v9 = vsel %vm99_vm0, %v3383_v22, 0.0  ;;  %v3384_v10 = vmul.f32 %v12305_v14, %v12305_v14 }
 0xf1c   :  { %3408 = vadd.xlane.f32.xlu0 %v3407_v9 }
 0xf1d   :  { %v12316_v11 = vsub.f32 %v12191_v58, %v3354_v49  ;;  %v3410_v20 = vsel %vm99_vm0, %v3384_v10, 0.0  ;;  %v3385_v55 = vmul.f32 %v12310_v42, %v12310_v42 }
 0xf1e   :  { %3411 = vadd.xlane.f32.xlu1 %v3410_v20 }
 0xf1f   :  { %v3413_v31 = vsel %vm99_vm0, %v3385_v55, 0.0  ;;  %v3386_v52 = vmul.f32 %v12316_v11, %v12316_v11 }
 0xf20   :  { %3414 = vadd.xlane.f32.xlu0 %v3413_v31 }
 0xf21   :  { %v3416_v26 = vsel %vm99_vm0, %v3386_v52, 0.0 }
 0xf22   :  { %3417 = vadd.xlane.f32.xlu1 %v3416_v26 }
 0xf2d   :  { %v3325_v32 = vpop.xlane.xlu0 %3324 }
 0xf2e   :  { %v3355_v59 = vmul.f32 0.03125, %v3325_v32 }
 0xf2f   :  { %v3328_v28 = vpop.xlane.xlu1 %3327 }
 0xf30   :  { %v12326_v12 = vsub.f32 %v12222_v30, %v3355_v59  ;;  %v3356_v3 = vmul.f32 0.03125, %v3328_v28 }
 0xf31   :  { %v3331_v5 = vpop.xlane.xlu0 %3330 }
 0xf32   :  { %v12329_v45 = vsub.f32 %v12229_v40, %v3356_v3  ;;  %v3357_v50 = vmul.f32 0.03125, %v3331_v5  ;;  %v3387_v60 = vmul.f32 %v12326_v12, %v12326_v12 }
 0xf33   :  { %v3334_v36 = vpop.xlane.xlu1 %3333 }
 0xf34   :  { %v12334_v57 = vsub.f32 %v12217_v13, %v3357_v50  ;;  %v3358_v25 = vmul.f32 0.03125, %v3334_v36  ;;  %v3419_v53 = vsel %vm99_vm0, %v3387_v60, 0.0  ;;  %v3388_v56 = vmul.f32 %v12329_v45, %v12329_v45 }
 0xf35   :  { %3420 = vadd.xlane.f32.xlu0 %v3419_v53 }
 0xf36   :  { %v12340_v39 = vsub.f32 %v12227_v48, %v3358_v25  ;;  %v3422_v63 = vsel %vm99_vm0, %v3388_v56, 0.0  ;;  %v3389_v54 = vmul.f32 %v12334_v57, %v12334_v57 }
 0xf37   :  { %3423 = vadd.xlane.f32.xlu1 %v3422_v63 }
 0xf38   :  { %v3425_v2 = vsel %vm99_vm0, %v3389_v54, 0.0  ;;  %v3390_v6 = vmul.f32 %v12340_v39, %v12340_v39 }
 0xf39   :  { %3426 = vadd.xlane.f32.xlu0 %v3425_v2  ;;  %v3337_v7 = vpop.xlane.xlu0 %3336 }
 0xf3a   :  { %v3359_v27 = vmul.f32 0.03125, %v3337_v7  ;;  %v3428_v41 = vsel %vm99_vm0, %v3390_v6, 0.0 }
 0xf3b   :  { %v3340_v62 = vpop.xlane.xlu1 %3339  ;;  %3429 = vadd.xlane.f32.xlu1 %v3428_v41 }
 0xf3c   :  { %v12350_v22 = vsub.f32 %v12254_v18, %v3359_v27  ;;  %v3360_v8 = vmul.f32 0.03125, %v3340_v62  ;;  %v14647_v62 = vsub.s32 4, %v14720_v1 }
 0xf3d   :  { %v3343_v49 = vpop.xlane.xlu0 %3342 }
 0xf3e   :  { %v12353_v9 = vsub.f32 %v12261_v24, %v3360_v8  ;;  %v3361_v10 = vmul.f32 0.03125, %v3343_v49  ;;  %v3391_v20 = vmul.f32 %v12350_v22, %v12350_v22  ;;  %v12377_v49 = vrot.slane %v12131_v19, %v14647_v62 }
 0xf3f   :  { %v3346_v55 = vpop.xlane.xlu1 %3345 }
 0xf40   :  { %v12358_v31 = vsub.f32 %v12249_v15, %v3361_v10  ;;  %v3362_v52 = vmul.f32 0.03125, %v3346_v55  ;;  %v3431_v26 = vsel %vm99_vm0, %v3391_v20, 0.0  ;;  %v3392_v32 = vmul.f32 %v12353_v9, %v12353_v9 }
 0xf41   :  { %3432 = vadd.xlane.f32.xlu0 %v3431_v26  ;;  %v14646_v10 = vsub.s32 5, %v14720_v1 }
 0xf42   :  { %v12364_v59 = vsub.f32 %v12259_v4, %v3362_v52  ;;  %v3434_v28 = vsel %vm99_vm0, %v3392_v32, 0.0  ;;  %v3393_v3 = vmul.f32 %v12358_v31, %v12358_v31 }
 0xf43   :  { %3435 = vadd.xlane.f32.xlu1 %v3434_v28  ;;  %v12386_v28 = vrot.slane %v12131_v19, %v14646_v10 }
 0xf44   :  { %v3437_v5 = vsel %vm99_vm0, %v3393_v3, 0.0  ;;  %v3394_v50 = vmul.f32 %v12364_v59, %v12364_v59 }
 0xf45   :  { %3438 = vadd.xlane.f32.xlu0 %v3437_v5 }
 0xf46   :  { %v3440_v60 = vsel %vm99_vm0, %v3394_v50, 0.0 }
 0xf47   :  { %3441 = vadd.xlane.f32.xlu1 %v3440_v60 }
 0xf7d   :  { %v3397_v36 = vpop.xlane.xlu0 %3396 }
 0xf7e   :  { %v3443_v25 = vmul.f32 0.03125, %v3397_v36 }
 0xf7f   :  { %v3400_v53 = vpop.xlane.xlu1 %3399 }
 0xf80   :  { %v3459_v56 = vadd.f32 1e-05, %v3443_v25  ;;  %v3444_v63 = vmul.f32 0.03125, %v3400_v53 }
 0xf81   :  { %v3403_v54 = vpop.xlane.xlu0 %3402 }
 0xf82   :  { %9955 = vrsqrt.f32 %v3459_v56  ;;  %v3460_v2 = vadd.f32 1e-05, %v3444_v63  ;;  %v3445_v6 = vmul.f32 0.03125, %v3403_v54 }
 0xf84   :  { %9957 = vrsqrt.f32 %v3460_v2  ;;  %v3461_v7 = vadd.f32 1e-05, %v3445_v6 }
 0xf85   :  { %v3406_v27 = vpop.xlane.xlu1 %3405 }
 0xf86   :  { %9959 = vrsqrt.f32 %v3461_v7  ;;  %v3446_v41 = vmul.f32 0.03125, %v3406_v27 }
 0xf88   :  { %v3462_v8 = vadd.f32 1e-05, %v3446_v41 }
 0xf8a   :  { %9961 = vrsqrt.f32 %v3462_v8 }
 0xf8c   :  { %v9956_v20 = vpop.eup %9955 }
 0xf8d   :  { %v3491_v55 = vmul.f32 %v9956_v20, %v12272_v44 }
 0xf8e   :  { %v9958_v52 = vpop.eup %9957 }
 0xf8f   :  { %v3492_v26 = vmul.f32 %v9958_v52, %v12275_v21  ;;  %v3511_v32 = vmul.f32 %v12377_v49, %v3491_v55 }
 0xf90   :  { %v9960_v3 = vpop.eup %9959 }
 0xf91   :  { %v3493_v5 = vmul.f32 %v9960_v3, %v12280_v51  ;;  %v3512_v50 = vmul.f32 %v12377_v49, %v3492_v26  ;;  %v3531_v60 = vadd.f32 %v12386_v28, %v3511_v32 }
 0xf93   :  { %v3532_v36 = vadd.f32 %v12386_v28, %v3512_v50  ;;  %v3513_v25 = vmul.f32 %v12377_v49, %v3493_v5 }
 0xf94   :  { %v9962_v44 = vpop.eup %9961 }
 0xf95   :  { %v3494_v21 = vmul.f32 %v9962_v44, %v12289_v38  ;;  %v3547_v53 = vpack.c.bf16 %v3532_v36, %v3531_v60  ;;  %v3533_v63 = vadd.f32 %v12386_v28, %v3513_v25 }
 0xf97   :  { %v3514_v56 = vmul.f32 %v12377_v49, %v3494_v21  ;;  %8912 = vmatprep.mubr.msk.bf16.mxu0 %vm99_vm0, %v3547_v53 }
 0xf99   :  { %v3534_v51 = vadd.f32 %v12386_v28, %v3514_v56 }
 0xf9b   :  { %v3548_v54 = vpack.c.bf16 %v3534_v51, %v3533_v63 }
 0xf9d   :  { %8913 = vmatmul.mubr.msk.bf16.vlgmr.msra.gmra.mrb[84].mxu0 %vm99_vm0, %v3548_v54 }
 0xfa9   :  { %v3409_v2 = vpop.xlane.xlu0 %3408 }
 0xfaa   :  { %v3447_v6 = vmul.f32 0.03125, %v3409_v2 }
 0xfab   :  { %v3412_v7 = vpop.xlane.xlu1 %3411 }
 0xfac   :  { %v3463_v27 = vadd.f32 1e-05, %v3447_v6  ;;  %v3448_v41 = vmul.f32 0.03125, %v3412_v7 }
 0xfad   :  { %v3415_v8 = vpop.xlane.xlu0 %3414 }
 0xfae   :  { %9963 = vrsqrt.f32 %v3463_v27  ;;  %v3464_v38 = vadd.f32 1e-05, %v3448_v41  ;;  %v3449_v20 = vmul.f32 0.03125, %v3415_v8 }
 0xfaf   :  { %v3418_v55 = vpop.xlane.xlu1 %3417 }
 0xfb0   :  { %9965 = vrsqrt.f32 %v3464_v38  ;;  %v3465_v52 = vadd.f32 1e-05, %v3449_v20  ;;  %v3450_v26 = vmul.f32 0.03125, %v3418_v55 }
 0xfb2   :  { %9967 = vrsqrt.f32 %v3465_v52  ;;  %v3466_v32 = vadd.f32 1e-05, %v3450_v26 }
 0xfb4   :  { %9969 = vrsqrt.f32 %v3466_v32 }
 0xfb8   :  { %v9964_v3 = vpop.eup %9963 }
 0xfb9   :  { %v3495_v5 = vmul.f32 %v9964_v3, %v12299_v29 }
 0xfba   :  { %v9966_v50 = vpop.eup %9965 }
 0xfbb   :  { %v3496_v60 = vmul.f32 %v9966_v50, %v12305_v14  ;;  %v3515_v36 = vmul.f32 %v12377_v49, %v3495_v5 }
 0xfbc   :  { %v9968_v44 = vpop.eup %9967 }
 0xfbd   :  { %v3516_v25 = vmul.f32 %v12377_v49, %v3496_v60  ;;  %v3497_v21 = vmul.f32 %v9968_v44, %v12310_v42  ;;  %v3535_v56 = vadd.f32 %v12386_v28, %v3515_v36 }
 0xfbe   :  { %v9970_v53 = vpop.eup %9969 }
 0xfbf   :  { %v3536_v63 = vadd.f32 %v12386_v28, %v3516_v25  ;;  %v3498_v51 = vmul.f32 %v9970_v53, %v12316_v11  ;;  %v3517_v54 = vmul.f32 %v12377_v49, %v3497_v21 }
 0xfc1   :  { %v3549_v29 = vpack.c.bf16 %v3536_v63, %v3535_v56  ;;  %v3518_v2 = vmul.f32 %v12377_v49, %v3498_v51  ;;  %v3537_v7 = vadd.f32 %v12386_v28, %v3517_v54 }
 0xfc2   :  { %v3421_v14 = vpop.xlane.xlu0 %3420 }
 0xfc3   :  { %v3451_v6 = vmul.f32 0.03125, %v3421_v14  ;;  %8916 = vmatprep.mubr.msk.bf16.mxu0 %vm99_vm0, %v3549_v29  ;;  %v3538_v42 = vadd.f32 %v12386_v28, %v3518_v2 }
 0xfc4   :  { %v3424_v27 = vpop.xlane.xlu1 %3423 }
 0xfc5   :  { %v3467_v41 = vadd.f32 1e-05, %v3451_v6  ;;  %v3452_v8 = vmul.f32 0.03125, %v3424_v27  ;;  %v3550_v38 = vpack.c.bf16 %v3538_v42, %v3537_v7 }
 0xfc6   :  { %v3427_v20 = vpop.xlane.xlu0 %3426 }
 0xfc7   :  { %9971 = vrsqrt.f32 %v3467_v41  ;;  %v3468_v11 = vadd.f32 1e-05, %v3452_v8  ;;  %v3453_v55 = vmul.f32 0.03125, %v3427_v20  ;;  %8917 = vmatmul.mubr.msk.bf16.gmra.mrb[88].mxu0 %vm99_vm0, %v3550_v38 }
 0xfc8   :  { %v3430_v52 = vpop.xlane.xlu1 %3429 }
 0xfc9   :  { %9973 = vrsqrt.f32 %v3468_v11  ;;  %v3469_v26 = vadd.f32 1e-05, %v3453_v55  ;;  %v3454_v32 = vmul.f32 0.03125, %v3430_v52 }
 0xfcb   :  { %9975 = vrsqrt.f32 %v3469_v26  ;;  %v3470_v3 = vadd.f32 1e-05, %v3454_v32 }
 0xfcd   :  { %9977 = vrsqrt.f32 %v3470_v3 }
 0xfce   :  { %v3433_v5 = vpop.xlane.xlu0 %3432 }
 0xfcf   :  { %v3455_v50 = vmul.f32 0.03125, %v3433_v5 }
 0xfd0   :  { %v3436_v60 = vpop.xlane.xlu1 %3435 }
 0xfd1   :  { %v9972_v36 = vpop.eup %9971  ;;  %v3471_v44 = vadd.f32 1e-05, %v3455_v50  ;;  %v3456_v25 = vmul.f32 0.03125, %v3436_v60 }
 0xfd2   :  { %v3439_v21 = vpop.xlane.xlu0 %3438  ;;  %v3499_v53 = vmul.f32 %v9972_v36, %v12326_v12 }
 0xfd3   :  { %v9974_v56 = vpop.eup %9973  ;;  %9979 = vrsqrt.f32 %v3471_v44  ;;  %v3472_v63 = vadd.f32 1e-05, %v3456_v25  ;;  %v3457_v51 = vmul.f32 0.03125, %v3439_v21 }
 0xfd4   :  { %v3442_v54 = vpop.xlane.xlu1 %3441  ;;  %v3500_v29 = vmul.f32 %v9974_v56, %v12329_v45  ;;  %v3519_v2 = vmul.f32 %v12377_v49, %v3499_v53 }
 0xfd5   :  { %v9976_v14 = vpop.eup %9975  ;;  %9981 = vrsqrt.f32 %v3472_v63  ;;  %v3473_v6 = vadd.f32 1e-05, %v3457_v51  ;;  %v3458_v7 = vmul.f32 0.03125, %v3442_v54 }
 0xfd6   :  { %v3520_v42 = vmul.f32 %v12377_v49, %v3500_v29  ;;  %v3501_v27 = vmul.f32 %v9976_v14, %v12334_v57  ;;  %v3539_v8 = vadd.f32 %v12386_v28, %v3519_v2  ;;  %v9648_v2 = vld [vmem:[%s14634_s6 + $0x20] sm:$0xff]   ;;  %v9649_v14 = vld [vmem:[%s14634_s6 + $0x28] sm:$0xff]  }
 0xfd7   :  { %v9978_v41 = vpop.eup %9977  ;;  %9983 = vrsqrt.f32 %v3473_v6  ;;  %v3474_v12 = vadd.f32 1e-05, %v3458_v7  ;;  %v9650_v6 = vld [vmem:[%s14634_s6 + $0x30] sm:$0xff]   ;;  %v9651_v7 = vld [vmem:[%s14634_s6 + $0x38] sm:$0xff]  }
 0xfd8   :  { %v3540_v38 = vadd.f32 %v12386_v28, %v3520_v42  ;;  %v3502_v20 = vmul.f32 %v9978_v41, %v12340_v39  ;;  %v3521_v45 = vmul.f32 %v12377_v49, %v3501_v27  ;;  %v14645_v42 = vsub.s32 6, %v14720_v1 }
 0xfd9   :  { %9985 = vrsqrt.f32 %v3474_v12 }
 0xfda   :  { %v3551_v11 = vpack.c.bf16 %v3540_v38, %v3539_v8  ;;  %v3522_v55 = vmul.f32 %v12377_v49, %v3502_v20  ;;  %v3541_v52 = vadd.f32 %v12386_v28, %v3521_v45  ;;  %v12469_v27 = vrot.slane %v12131_v19, %v14645_v42 }
 0xfdc   :  { %8920 = vmatprep.mubr.msk.bf16.mxu0 %vm99_vm0, %v3551_v11  ;;  %v3542_v57 = vadd.f32 %v12386_v28, %v3522_v55 }
 0xfdd   :  { %v9980_v26 = vpop.eup %9979 }
 0xfde   :  { %v3552_v32 = vpack.c.bf16 %v3542_v57, %v3541_v52  ;;  %v3503_v3 = vmul.f32 %v9980_v26, %v12350_v22 }
 0xfdf   :  { %v9982_v5 = vpop.eup %9981 }
 0xfe0   :  { %8921 = vmatmul.mubr.msk.bf16.gmra.mrb[92].mxu0 %vm99_vm0, %v3552_v32  ;;  %v3504_v39 = vmul.f32 %v9982_v5, %v12353_v9  ;;  %v3523_v50 = vmul.f32 %v12377_v49, %v3503_v3 }
 0xfe1   :  { %v9984_v60 = vpop.eup %9983 }
 0xfe2   :  { %v3524_v36 = vmul.f32 %v12377_v49, %v3504_v39  ;;  %v3505_v44 = vmul.f32 %v9984_v60, %v12358_v31  ;;  %v3543_v21 = vadd.f32 %v12386_v28, %v3523_v50  ;;  %v9644_v31 = vld [vmem:[%s14634_s6] sm:$0xff]  }
 0xfe3   :  { %v9986_v25 = vpop.eup %9985  ;;  %8928 = vmatprep.subr.bf16.mxu1 %v9644_v31 }
 0xfe4   :  { %v3544_v53 = vadd.f32 %v12386_v28, %v3524_v36  ;;  %v3506_v56 = vmul.f32 %v9986_v25, %v12364_v59  ;;  %v3525_v22 = vmul.f32 %v12377_v49, %v3505_v44  ;;  %8929 = vmatpush3.bf16.msra.mxu1 %v9644_v31  ;;  %v9645_v59 = vld [vmem:[%s14634_s6 + $0x8] sm:$0xff]  }
 0xfe5   :  { %8930 = vmatprep.subr.bf16.mxu1 %v9645_v59 }
 0xfe6   :  { %v3553_v63 = vpack.c.bf16 %v3544_v53, %v3543_v21  ;;  %v3526_v51 = vmul.f32 %v12377_v49, %v3506_v56  ;;  %v3545_v9 = vadd.f32 %v12386_v28, %v3525_v22  ;;  %v9646_v49 = vld [vmem:[%s14634_s6 + $0x10] sm:$0xff]  }
 0xfe8   :  { %8924 = vmatprep.mubr.msk.bf16.mxu0 %vm99_vm0, %v3553_v63  ;;  %v3546_v54 = vadd.f32 %v12386_v28, %v3526_v51  ;;  %8931 = vmatpush3.bf16.msra.mxu1 %v9645_v59  ;;  %v9647_v28 = vld [vmem:[%s14634_s6 + $0x18] sm:$0xff]  }
 0xfe9   :  { %8932 = vmatprep.subr.bf16.mxu1 %v9646_v49 }
 0xfea   :  { %v3554_v29 = vpack.c.bf16 %v3546_v54, %v3545_v9 }
 0xfec   :  { %8925 = vmatmul.mubr.msk.bf16.gmra.mrb[96].mxu0 %vm99_vm0, %v3554_v29  ;;  %8933 = vmatpush3.bf16.msra.mxu1 %v9646_v49 }
 0xfed   :  { %8934 = vmatprep.subr.bf16.mxu1 %v9647_v28 }
 0xff0   :  { %8935 = vmatpush3.bf16.msra.mxu1 %v9647_v28 }
 0xff1   :  { %8936 = vmatprep.subr.bf16.mxu1 %v9648_v2 }
 0xff4   :  { %8937 = vmatpush3.bf16.msra.mxu1 %v9648_v2 }
 0xff5   :  { %8938 = vmatprep.subr.bf16.mxu1 %v9649_v14 }
 0xff8   :  { %8939 = vmatpush3.bf16.msra.mxu1 %v9649_v14 }
 0xff9   :  { %8940 = vmatprep.subr.bf16.mxu1 %v9650_v6 }
 0xffc   :  { %8941 = vmatpush3.bf16.msra.mxu1 %v9650_v6 }
 0xffd   :  { %8942 = vmatprep.subr.bf16.mxu1 %v9651_v7 }
0x1000   :  { %8943 = vmatpush3.bf16.msra.mxu1 %v9651_v7 }
0x1070   :  { %v8914_v41 = vpop.f32.mrb[84].mxu0 }
0x1071   :  { %v3642_v12 = vadd.f32 %v8914_v41, %v12469_v27  ;;  %v3633_v8 = vpop.f32.mrb[85].mxu0 }
0x1072   :  { %v3634_v38 = vadd.f32 %v3633_v8, %v12469_v27  ;;  %v8915_v20 = vpop.f32.mrb[86].mxu0 }
0x1073   :  { %v3698_v45 = vmul.f32 %v3642_v12, %v3642_v12  ;;  %v3645_v11 = vadd.f32 %v8915_v20, %v12469_v27  ;;  %v3636_v55 = vpop.f32.mrb[87].mxu0 }
0x1074   :  { %v3696_v52 = vmul.f32 %v3634_v38, %v3634_v38  ;;  %v3637_v57 = vadd.f32 %v3636_v55, %v12469_v27 }
0x1075   :  { %v3714_v26 = vmul.f32 %v3698_v45, %v3642_v12  ;;  %v3699_v32 = vmul.f32 %v3645_v11, %v3645_v11 }
0x1076   :  { %v3712_v3 = vmul.f32 %v3696_v52, %v3634_v38  ;;  %v3697_v5 = vmul.f32 %v3637_v57, %v3637_v57 }
0x1077   :  { %v3730_v19 = vmul.f32 0.044715, %v3714_v26  ;;  %v3715_v39 = vmul.f32 %v3699_v32, %v3645_v11 }
0x1078   :  { %v3728_v50 = vmul.f32 0.044715, %v3712_v3  ;;  %v3713_v60 = vmul.f32 %v3697_v5, %v3637_v57 }
0x1079   :  { %v3746_v36 = vadd.f32 %v3730_v19, %v3642_v12  ;;  %v3731_v44 = vmul.f32 0.044715, %v3715_v39 }
0x107a   :  { %v3744_v25 = vadd.f32 %v3728_v50, %v3634_v38  ;;  %v3729_v21 = vmul.f32 0.044715, %v3713_v60 }
0x107b   :  { %v3762_v53 = vmul.f32 0.7978846, %v3746_v36  ;;  %v3747_v56 = vadd.f32 %v3731_v44, %v3645_v11 }
0x107c   :  { %v3760_v22 = vmul.f32 0.7978846, %v3744_v25  ;;  %v3745_v63 = vadd.f32 %v3729_v21, %v3637_v57 }
0x107d   :  { %9987 = vtanh.f32 %v3762_v53  ;;  %v3763_v51 = vmul.f32 0.7978846, %v3747_v56 }
0x107e   :  { %9989 = vtanh.f32 %v3760_v22  ;;  %v3761_v9 = vmul.f32 0.7978846, %v3745_v63 }
0x107f   :  { %9991 = vtanh.f32 %v3763_v51 }
0x1080   :  { %9993 = vtanh.f32 %v3761_v9 }
0x1087   :  { %v9988_v54 = vpop.eup %9987 }
0x1088   :  { %v9990_v29 = vpop.eup %9989  ;;  %v3794_v31 = vadd.f32 1.0, %v9988_v54 }
0x1089   :  { %v9992_v59 = vpop.eup %9991  ;;  %v3792_v49 = vadd.f32 1.0, %v9990_v29 }
0x108a   :  { %v9994_v28 = vpop.eup %9993  ;;  %v3810_v2 = vmul.f32 0.5, %v3794_v31  ;;  %v3795_v14 = vadd.f32 1.0, %v9992_v59 }
0x108b   :  { %v3793_v6 = vadd.f32 1.0, %v9994_v28  ;;  %v3808_v7 = vmul.f32 0.5, %v3792_v49 }
0x108c   :  { %v3811_v41 = vmul.f32 0.5, %v3795_v14  ;;  %v3826_v20 = vmul.f32 %v3810_v2, %v3642_v12 }
0x108d   :  { %v3809_v8 = vmul.f32 0.5, %v3793_v6  ;;  %v3824_v55 = vmul.f32 %v3808_v7, %v3634_v38 }
0x108e   :  { %v3827_v45 = vmul.f32 %v3811_v41, %v3645_v11 }
0x108f   :  { %v3825_v52 = vmul.f32 %v3809_v8, %v3637_v57 }
0x1090   :  { %v3841_v26 = vpack.c.bf16 %v3827_v45, %v3826_v20 }
0x1091   :  { %v3840_v32 = vpack.c.bf16 %v3825_v52, %v3824_v55 }
0x1093   :  { %8944 = vmatprep.mubr.bf16.mxu1 %v3840_v32 }
0x1094   :  { %8945 = vmatmul.mubr.bf16.vlgmr.msra.gmra.mrb[80].mxu1 %v3841_v26 }
0x109a   :  { %v8918_v3 = vpop.f32.mrb[88].mxu0 }
0x109b   :  { %v3658_v5 = vadd.f32 %v8918_v3, %v12469_v27  ;;  %v3649_v19 = vpop.f32.mrb[89].mxu0 }
0x109c   :  { %v3650_v39 = vadd.f32 %v3649_v19, %v12469_v27  ;;  %v8919_v50 = vpop.f32.mrb[90].mxu0 }
0x109d   :  { %v3702_v60 = vmul.f32 %v3658_v5, %v3658_v5  ;;  %v3661_v36 = vadd.f32 %v8919_v50, %v12469_v27  ;;  %v3652_v44 = vpop.f32.mrb[91].mxu0 }
0x109e   :  { %v3700_v25 = vmul.f32 %v3650_v39, %v3650_v39  ;;  %v3653_v12 = vadd.f32 %v3652_v44, %v12469_v27 }
0x109f   :  { %v3718_v38 = vmul.f32 %v3702_v60, %v3658_v5  ;;  %v3703_v11 = vmul.f32 %v3661_v36, %v3661_v36 }
0x10a0   :  { %v3716_v57 = vmul.f32 %v3700_v25, %v3650_v39  ;;  %v3701_v21 = vmul.f32 %v3653_v12, %v3653_v12 }
0x10a1   :  { %v3734_v53 = vmul.f32 0.044715, %v3718_v38  ;;  %v3719_v56 = vmul.f32 %v3703_v11, %v3661_v36 }
0x10a2   :  { %v3732_v22 = vmul.f32 0.044715, %v3716_v57  ;;  %v3717_v63 = vmul.f32 %v3701_v21, %v3653_v12 }
0x10a3   :  { %v3750_v51 = vadd.f32 %v3734_v53, %v3658_v5  ;;  %v3735_v9 = vmul.f32 0.044715, %v3719_v56 }
0x10a4   :  { %v3748_v54 = vadd.f32 %v3732_v22, %v3650_v39  ;;  %v3733_v29 = vmul.f32 0.044715, %v3717_v63 }
0x10a5   :  { %v3766_v31 = vmul.f32 0.7978846, %v3750_v51  ;;  %v3751_v59 = vadd.f32 %v3735_v9, %v3661_v36 }
0x10a6   :  { %v3764_v49 = vmul.f32 0.7978846, %v3748_v54  ;;  %v3749_v28 = vadd.f32 %v3733_v29, %v3653_v12 }
0x10a7   :  { %9995 = vtanh.f32 %v3766_v31  ;;  %v3767_v2 = vmul.f32 0.7978846, %v3751_v59 }
0x10a8   :  { %9997 = vtanh.f32 %v3764_v49  ;;  %v3765_v14 = vmul.f32 0.7978846, %v3749_v28 }
0x10a9   :  { %9999 = vtanh.f32 %v3767_v2 }
0x10aa   :  { %10001 = vtanh.f32 %v3765_v14 }
0x10b1   :  { %v9996_v6 = vpop.eup %9995 }
0x10b2   :  { %v9998_v7 = vpop.eup %9997  ;;  %v3798_v41 = vadd.f32 1.0, %v9996_v6 }
0x10b3   :  { %v10000_v8 = vpop.eup %9999  ;;  %v8922_v20 = vpop.f32.mrb[92].mxu0  ;;  %v3796_v45 = vadd.f32 1.0, %v9998_v7 }
0x10b4   :  { %v10002_v55 = vpop.eup %10001  ;;  %v12480_v52 = vadd.f32 %v8922_v20, %v12469_v27  ;;  %v3665_v26 = vpop.f32.mrb[93].mxu0  ;;  %v3799_v32 = vadd.f32 1.0, %v10000_v8  ;;  %v3814_v3 = vmul.f32 0.5, %v3798_v41 }
0x10b5   :  { %v12483_v19 = vadd.f32 %v3665_v26, %v12469_v27  ;;  %v8923_v50 = vpop.f32.mrb[94].mxu0  ;;  %v3797_v60 = vadd.f32 1.0, %v10002_v55  ;;  %v3812_v44 = vmul.f32 0.5, %v3796_v45 }
0x10b6   :  { %v3706_v25 = vmul.f32 %v12480_v52, %v12480_v52  ;;  %v12488_v38 = vadd.f32 %v8923_v50, %v12469_v27  ;;  %v3668_v11 = vpop.f32.mrb[95].mxu0  ;;  %v3815_v57 = vmul.f32 0.5, %v3799_v32  ;;  %v3830_v51 = vmul.f32 %v3814_v3, %v3658_v5 }
0x10b7   :  { %v3704_v21 = vmul.f32 %v12483_v19, %v12483_v19  ;;  %v12493_v53 = vadd.f32 %v3668_v11, %v12469_v27  ;;  %v3813_v56 = vmul.f32 0.5, %v3797_v60  ;;  %v3828_v31 = vmul.f32 %v3812_v44, %v3650_v39 }
0x10b8   :  { %v3722_v22 = vmul.f32 %v3706_v25, %v12480_v52  ;;  %v3707_v63 = vmul.f32 %v12488_v38, %v12488_v38  ;;  %v3831_v9 = vmul.f32 %v3815_v57, %v3661_v36 }
0x10b9   :  { %v3720_v54 = vmul.f32 %v3704_v21, %v12483_v19  ;;  %v3705_v29 = vmul.f32 %v12493_v53, %v12493_v53  ;;  %v3829_v59 = vmul.f32 %v3813_v56, %v3653_v12 }
0x10ba   :  { %v3738_v49 = vmul.f32 0.044715, %v3722_v22  ;;  %v3723_v28 = vmul.f32 %v3707_v63, %v12488_v38  ;;  %v3843_v2 = vpack.c.bf16 %v3831_v9, %v3830_v51 }
0x10bb   :  { %v3736_v14 = vmul.f32 0.044715, %v3720_v54  ;;  %v3721_v6 = vmul.f32 %v3705_v29, %v12493_v53  ;;  %v3842_v7 = vpack.c.bf16 %v3829_v59, %v3828_v31 }
0x10bc   :  { %v3754_v41 = vadd.f32 %v3738_v49, %v12480_v52  ;;  %v3739_v8 = vmul.f32 0.044715, %v3723_v28 }
0x10bd   :  { %v3752_v5 = vadd.f32 %v3736_v14, %v12483_v19  ;;  %v3737_v36 = vmul.f32 0.044715, %v3721_v6  ;;  %8948 = vmatprep.mubr.bf16.mxu1 %v3842_v7 }
0x10be   :  { %v3770_v20 = vmul.f32 0.7978846, %v3754_v41  ;;  %v3755_v45 = vadd.f32 %v3739_v8, %v12488_v38  ;;  %8949 = vmatmul.mubr.bf16.gmra.mrb[84].mxu1 %v3843_v2 }
0x10bf   :  { %v3768_v39 = vmul.f32 0.7978846, %v3752_v5  ;;  %v3753_v12 = vadd.f32 %v3737_v36, %v12493_v53  ;;  %v8926_v55 = vpop.f32.mrb[96].mxu0 }
0x10c0   :  { %10003 = vtanh.f32 %v3770_v20  ;;  %v3771_v26 = vmul.f32 0.7978846, %v3755_v45  ;;  %v12508_v32 = vadd.f32 %v8926_v55, %v12469_v27  ;;  %v3681_v3 = vpop.f32.mrb[97].mxu0 }
0x10c1   :  { %10005 = vtanh.f32 %v3768_v39  ;;  %v3769_v50 = vmul.f32 0.7978846, %v3753_v12  ;;  %v12511_v60 = vadd.f32 %v3681_v3, %v12469_v27  ;;  %v8927_v44 = vpop.f32.mrb[98].mxu0 }
0x10c2   :  { %10007 = vtanh.f32 %v3771_v26  ;;  %v3710_v25 = vmul.f32 %v12508_v32, %v12508_v32  ;;  %v3693_v11 = vadd.f32 %v8927_v44, %v12469_v27  ;;  %v3684_v57 = vpop.f32.mrb[99].mxu0 }
0x10c3   :  { %10009 = vtanh.f32 %v3769_v50  ;;  %v3708_v21 = vmul.f32 %v12511_v60, %v12511_v60  ;;  %v3685_v56 = vadd.f32 %v3684_v57, %v12469_v27 }
0x10c4   :  { %v3726_v22 = vmul.f32 %v3710_v25, %v12508_v32  ;;  %v3711_v63 = vmul.f32 %v3693_v11, %v3693_v11 }
0x10c5   :  { %v3724_v51 = vmul.f32 %v3708_v21, %v12511_v60  ;;  %v3709_v9 = vmul.f32 %v3685_v56, %v3685_v56 }
0x10c6   :  { %v3742_v54 = vmul.f32 0.044715, %v3726_v22  ;;  %v3727_v29 = vmul.f32 %v3711_v63, %v3693_v11 }
0x10c7   :  { %v3740_v31 = vmul.f32 0.044715, %v3724_v51  ;;  %v3725_v59 = vmul.f32 %v3709_v9, %v3685_v56 }
0x10c8   :  { %v3758_v49 = vadd.f32 %v3742_v54, %v12508_v32  ;;  %v3743_v28 = vmul.f32 0.044715, %v3727_v29 }
0x10c9   :  { %v3756_v2 = vadd.f32 %v3740_v31, %v12511_v60  ;;  %v3741_v14 = vmul.f32 0.044715, %v3725_v59 }
0x10ca   :  { %v10004_v6 = vpop.eup %10003  ;;  %v3774_v7 = vmul.f32 0.7978846, %v3758_v49  ;;  %v3759_v41 = vadd.f32 %v3743_v28, %v3693_v11 }
0x10cb   :  { %v10006_v27 = vpop.eup %10005  ;;  %v3772_v8 = vmul.f32 0.7978846, %v3756_v2  ;;  %v3757_v5 = vadd.f32 %v3741_v14, %v3685_v56  ;;  %v3802_v36 = vadd.f32 1.0, %v10004_v6 }
0x10cc   :  { %v10008_v20 = vpop.eup %10007  ;;  %10011 = vtanh.f32 %v3774_v7  ;;  %v3775_v45 = vmul.f32 0.7978846, %v3759_v41  ;;  %v3800_v39 = vadd.f32 1.0, %v10006_v27 }
0x10cd   :  { %v10010_v12 = vpop.eup %10009  ;;  %10013 = vtanh.f32 %v3772_v8  ;;  %v3773_v55 = vmul.f32 0.7978846, %v3757_v5  ;;  %v3803_v26 = vadd.f32 1.0, %v10008_v20  ;;  %v3818_v3 = vmul.f32 0.5, %v3802_v36 }
0x10ce   :  { %10015 = vtanh.f32 %v3775_v45  ;;  %v3801_v50 = vadd.f32 1.0, %v10010_v12  ;;  %v3816_v44 = vmul.f32 0.5, %v3800_v39  ;;  %v14644_v20 = vsub.s32 7, %v14720_v1  ;;  %v10388_v45 = vld [vmem:[%s14636_s8] sm:$0xff] }
0x10cf   :  { %10017 = vtanh.f32 %v3773_v55  ;;  %v3819_v25 = vmul.f32 0.5, %v3803_v26  ;;  %v3834_v21 = vmul.f32 %v3818_v3, %v12480_v52 }
0x10d0   :  { %v3817_v57 = vmul.f32 0.5, %v3801_v50  ;;  %v3832_v63 = vmul.f32 %v3816_v44, %v12483_v19  ;;  %v12535_v39 = vrot.slane %v10388_v45, %v14644_v20 }
0x10d1   :  { %v3835_v22 = vmul.f32 %v3819_v25, %v12488_v38 }
0x10d2   :  { %v3833_v51 = vmul.f32 %v3817_v57, %v12493_v53 }
0x10d3   :  { %v3845_v9 = vpack.c.bf16 %v3835_v22, %v3834_v21 }
0x10d4   :  { %v3844_v54 = vpack.c.bf16 %v3833_v51, %v3832_v63 }
0x10d6   :  { %v10012_v29 = vpop.eup %10011  ;;  %8952 = vmatprep.mubr.bf16.mxu1 %v3844_v54 }
0x10d7   :  { %v10014_v31 = vpop.eup %10013  ;;  %8953 = vmatmul.mubr.bf16.gmra.mrb[88].mxu1 %v3845_v9  ;;  %v3806_v59 = vadd.f32 1.0, %v10012_v29 }
0x10d8   :  { %v10016_v49 = vpop.eup %10015  ;;  %v3804_v28 = vadd.f32 1.0, %v10014_v31 }
0x10d9   :  { %v10018_v2 = vpop.eup %10017  ;;  %v3807_v14 = vadd.f32 1.0, %v10016_v49  ;;  %v3822_v6 = vmul.f32 0.5, %v3806_v59 }
0x10da   :  { %v3805_v7 = vadd.f32 1.0, %v10018_v2  ;;  %v3820_v52 = vmul.f32 0.5, %v3804_v28 }
0x10db   :  { %v3823_v41 = vmul.f32 0.5, %v3807_v14  ;;  %v3838_v19 = vmul.f32 %v3822_v6, %v12508_v32 }
0x10dc   :  { %v3821_v38 = vmul.f32 0.5, %v3805_v7  ;;  %v3836_v53 = vmul.f32 %v3820_v52, %v12511_v60 }
0x10dd   :  { %v3839_v27 = vmul.f32 %v3823_v41, %v3693_v11 }
0x10de   :  { %v3837_v8 = vmul.f32 %v3821_v38, %v3685_v56 }
0x10df   :  { %v3847_v5 = vpack.c.bf16 %v3839_v27, %v3838_v19 }
0x10e0   :  { %v3846_v36 = vpack.c.bf16 %v3837_v8, %v3836_v53 }
0x10e2   :  { %8956 = vmatprep.mubr.bf16.mxu1 %v3846_v36 }
0x10e3   :  { %8957 = vmatmul.mubr.bf16.gmra.mrb[92].mxu1 %v3847_v5 }
0x1167   :  { %v8946_v12 = vpop.f32.mrb[80].mxu1 }
0x1168   :  { %v3950_v32 = vpop.f32.mrb[81].mxu1  ;;  %v3959_v11 = vadd.f32 %v8946_v12, %v12535_v39 }
0x1169   :  { %v3951_v60 = vadd.f32 %v3950_v32, %v12535_v39  ;;  %v8947_v56 = vpop.f32.mrb[82].mxu1 }
0x116a   :  { %v3953_v55 = vpop.f32.mrb[83].mxu1  ;;  %v3962_v3 = vadd.f32 %v8947_v56, %v12535_v39  ;;  %v12545_v44 = vadd.f32 %v3959_v11, %v12149_v17 }
0x116b   :  { %v12540_v26 = vadd.f32 %v3951_v60, %v12154_v35  ;;  %v3954_v50 = vadd.f32 %v3953_v55, %v12535_v39 }
0x116c   :  { %14724 = vst [vmem:[#allocation7_spill] sm:$0xff] %v12545_v44  ;;  %v12553_v21 = vadd.f32 %v3962_v3, %v12159_v43  ;;  %v4071_v22 = vsel %vm99_vm0, %v12545_v44, 0.0 }
0x116d   :  { %14723 = vst [vmem:[#allocation9_spill] sm:$0xff] %v12540_v26  ;;  %v12548_v25 = vadd.f32 %v3954_v50, %v12161_v47  ;;  %v4065_v57 = vsel %vm99_vm0, %v12540_v26, 0.0 }
0x116e   :  { %4066 = vadd.xlane.f32.xlu0 %v4065_v57  ;;  %14726 = vst [vmem:[#allocation11_spill] sm:$0xff] %v12553_v21  ;;  %v4074_v17 = vsel %vm99_vm0, %v12553_v21, 0.0 }
0x116f   :  { %14725 = vst [vmem:[#allocation13_spill] sm:$0xff] %v12548_v25  ;;  %v4068_v35 = vsel %vm99_vm0, %v12548_v25, 0.0 }
0x1170   :  { %4069 = vadd.xlane.f32.xlu1 %v4068_v35 }
0x1172   :  { %4072 = vadd.xlane.f32.xlu0 %v4071_v22 }
0x1174   :  { %4075 = vadd.xlane.f32.xlu1 %v4074_v17 }
0x1191   :  { %v8950_v47 = vpop.f32.mrb[84].mxu1 }
0x1192   :  { %v3966_v63 = vpop.f32.mrb[85].mxu1  ;;  %v3975_v51 = vadd.f32 %v8950_v47, %v12535_v39 }
0x1193   :  { %v3967_v9 = vadd.f32 %v3966_v63, %v12535_v39  ;;  %v8951_v43 = vpop.f32.mrb[86].mxu1 }
0x1194   :  { %v3969_v54 = vpop.f32.mrb[87].mxu1  ;;  %v3978_v31 = vadd.f32 %v8951_v43, %v12535_v39  ;;  %v12569_v49 = vadd.f32 %v3975_v51, %v12181_v16 }
0x1195   :  { %v12564_v29 = vadd.f32 %v3967_v9, %v12186_v34  ;;  %v3970_v59 = vadd.f32 %v3969_v54, %v12535_v39 }
0x1196   :  { %14728 = vst [vmem:[#allocation10_spill] sm:$0xff] %v12569_v49  ;;  %v12577_v14 = vadd.f32 %v3978_v31, %v12191_v58  ;;  %v4083_v6 = vsel %vm99_vm0, %v12569_v49, 0.0 }
0x1197   :  { %14727 = vst [vmem:[#allocation12_spill] sm:$0xff] %v12564_v29  ;;  %v12572_v28 = vadd.f32 %v3970_v59, %v12193_v33  ;;  %v4077_v2 = vsel %vm99_vm0, %v12564_v29, 0.0 }
0x1198   :  { %4078 = vadd.xlane.f32.xlu0 %v4077_v2  ;;  %14730 = vst [vmem:[#allocation14_spill] sm:$0xff] %v12577_v14  ;;  %v4086_v16 = vsel %vm99_vm0, %v12577_v14, 0.0 }
0x1199   :  { %14729 = vst [vmem:[#allocation16_spill] sm:$0xff] %v12572_v28  ;;  %v4080_v34 = vsel %vm99_vm0, %v12572_v28, 0.0 }
0x119a   :  { %4081 = vadd.xlane.f32.xlu1 %v4080_v34 }
0x119c   :  { %4084 = vadd.xlane.f32.xlu0 %v4083_v6 }
0x119e   :  { %4087 = vadd.xlane.f32.xlu1 %v4086_v16 }
0x11aa   :  { %v8954_v33 = vpop.f32.mrb[88].mxu1 }
0x11ab   :  { %v3982_v7 = vpop.f32.mrb[89].mxu1  ;;  %v3991_v52 = vadd.f32 %v8954_v33, %v12535_v39 }
0x11ac   :  { %v3983_v41 = vadd.f32 %v3982_v7, %v12535_v39  ;;  %v8955_v58 = vpop.f32.mrb[90].mxu1 }
0x11ad   :  { %v3985_v38 = vpop.f32.mrb[91].mxu1  ;;  %v3994_v27 = vadd.f32 %v8955_v58, %v12535_v39  ;;  %v12593_v8 = vadd.f32 %v3991_v52, %v12217_v13 }
0x11ae   :  { %v12588_v19 = vadd.f32 %v3983_v41, %v12222_v30  ;;  %v3986_v53 = vadd.f32 %v3985_v38, %v12535_v39 }
0x11af   :  { %14732 = vst [vmem:[#allocation15_spill] sm:$0xff] %v12593_v8  ;;  %v12601_v45 = vadd.f32 %v3994_v27, %v12227_v48  ;;  %v4095_v12 = vsel %vm99_vm0, %v12593_v8, 0.0 }
0x11b0   :  { %14731 = vst [vmem:[#allocation17_spill] sm:$0xff] %v12588_v19  ;;  %v12596_v5 = vadd.f32 %v3986_v53, %v12229_v40  ;;  %v4089_v36 = vsel %vm99_vm0, %v12588_v19, 0.0 }
0x11b1   :  { %4090 = vadd.xlane.f32.xlu0 %v4089_v36  ;;  %14734 = vst [vmem:[#allocation18_spill] sm:$0xff] %v12601_v45  ;;  %v4098_v40 = vsel %vm99_vm0, %v12601_v45, 0.0  ;;  %v9652_v36 = vld [vmem:[%s14631_s3 + $0x10] sm:$0xff]  }
0x11b2   :  { %14733 = vst [vmem:[#allocation20_spill] sm:$0xff] %v12596_v5  ;;  %v4092_v30 = vsel %vm99_vm0, %v12596_v5, 0.0  ;;  %8960 = vmatprep.subr.bf16.mxu0 %v9652_v36 }
0x11b3   :  { %4093 = vadd.xlane.f32.xlu1 %v4092_v30  ;;  %8961 = vmatpush3.bf16.msra.mxu0 %v9652_v36 }
0x11b5   :  { %4096 = vadd.xlane.f32.xlu0 %v4095_v12 }
0x11b6   :  { %v8958_v13 = vpop.f32.mrb[92].mxu1 }
0x11b7   :  { %4099 = vadd.xlane.f32.xlu1 %v4098_v40  ;;  %v3998_v32 = vpop.f32.mrb[93].mxu1  ;;  %v4007_v11 = vadd.f32 %v8958_v13, %v12535_v39 }
0x11b8   :  { %v3999_v60 = vadd.f32 %v3998_v32, %v12535_v39  ;;  %v8959_v48 = vpop.f32.mrb[94].mxu1 }
0x11b9   :  { %v4001_v56 = vpop.f32.mrb[95].mxu1  ;;  %v4010_v3 = vadd.f32 %v8959_v48, %v12535_v39  ;;  %v12617_v57 = vadd.f32 %v4007_v11, %v12249_v15  ;;  %v9653_v48 = vld [vmem:[%s14631_s3 + $0x18] sm:$0xff]  }
0x11ba   :  { %v12612_v55 = vadd.f32 %v3999_v60, %v12254_v18  ;;  %v4002_v50 = vadd.f32 %v4001_v56, %v12535_v39  ;;  %8962 = vmatprep.subr.bf16.mxu0 %v9653_v48 }
0x11bb   :  { %14736 = vst [vmem:[#allocation19_spill] sm:$0xff] %v12617_v57  ;;  %v12625_v17 = vadd.f32 %v4010_v3, %v12259_v4  ;;  %v4107_v39 = vsel %vm99_vm0, %v12617_v57, 0.0  ;;  %8963 = vmatpush3.bf16.msra.mxu0 %v9653_v48 }
0x11bc   :  { %14735 = vst [vmem:[#allocation21_spill] sm:$0xff] %v12612_v55  ;;  %v12620_v35 = vadd.f32 %v4002_v50, %v12261_v24  ;;  %v4101_v22 = vsel %vm99_vm0, %v12612_v55, 0.0 }
0x11bd   :  { %4102 = vadd.xlane.f32.xlu0 %v4101_v22  ;;  %14738 = vst [vmem:[#allocation23_spill] sm:$0xff] %v12625_v17  ;;  %v4110_v15 = vsel %vm99_vm0, %v12625_v17, 0.0 }
0x11be   :  { %14737 = vst [vmem:[#allocation22_spill] sm:$0xff] %v12620_v35  ;;  %v4104_v18 = vsel %vm99_vm0, %v12620_v35, 0.0 }
0x11bf   :  { %4105 = vadd.xlane.f32.xlu1 %v4104_v18 }
0x11c1   :  { %4108 = vadd.xlane.f32.xlu0 %v4107_v39 }
0x11c3   :  { %4111 = vadd.xlane.f32.xlu1 %v4110_v15 }
0x11fb   :  { %v4067_v24 = vpop.xlane.xlu0 %4066 }
0x11fc   :  { %v4113_v47 = vmul.f32 0.03125, %v4067_v24 }
0x11fd   :  { %v4070_v63 = vpop.xlane.xlu1 %4069 }
0x11fe   :  { %v12634_v51 = vsub.f32 %v12540_v26, %v4113_v47  ;;  %v4114_v4 = vmul.f32 0.03125, %v4070_v63 }
0x11ff   :  { %v4073_v9 = vpop.xlane.xlu0 %4072 }
0x1200   :  { %v12637_v43 = vsub.f32 %v12548_v25, %v4114_v4  ;;  %v4115_v54 = vmul.f32 0.03125, %v4073_v9  ;;  %v4145_v31 = vmul.f32 %v12634_v51, %v12634_v51 }
0x1201   :  { %v4076_v59 = vpop.xlane.xlu1 %4075 }
0x1202   :  { %v12642_v2 = vsub.f32 %v12545_v44, %v4115_v54  ;;  %v4116_v34 = vmul.f32 0.03125, %v4076_v59  ;;  %v4161_v6 = vsel %vm99_vm0, %v4145_v31, 0.0  ;;  %v4146_v16 = vmul.f32 %v12637_v43, %v12637_v43 }
0x1203   :  { %4162 = vadd.xlane.f32.xlu0 %v4161_v6 }
0x1204   :  { %v12648_v33 = vsub.f32 %v12553_v21, %v4116_v34  ;;  %v4164_v7 = vsel %vm99_vm0, %v4146_v16, 0.0  ;;  %v4147_v52 = vmul.f32 %v12642_v2, %v12642_v2 }
0x1205   :  { %4165 = vadd.xlane.f32.xlu1 %v4164_v7 }
0x1206   :  { %v4167_v41 = vsel %vm99_vm0, %v4147_v52, 0.0  ;;  %v4148_v58 = vmul.f32 %v12648_v33, %v12648_v33 }
0x1207   :  { %4168 = vadd.xlane.f32.xlu0 %v4167_v41 }
0x1208   :  { %v4170_v38 = vsel %vm99_vm0, %v4148_v58, 0.0 }
0x1209   :  { %4171 = vadd.xlane.f32.xlu1 %v4170_v38 }
0x1225   :  { %v4079_v27 = vpop.xlane.xlu0 %4078 }
0x1226   :  { %v4117_v53 = vmul.f32 0.03125, %v4079_v27 }
0x1227   :  { %v4082_v30 = vpop.xlane.xlu1 %4081 }
0x1228   :  { %v12661_v12 = vsub.f32 %v12564_v29, %v4117_v53  ;;  %v4118_v13 = vmul.f32 0.03125, %v4082_v30 }
0x1229   :  { %v4085_v40 = vpop.xlane.xlu0 %4084 }
0x122a   :  { %v12664_v32 = vsub.f32 %v12572_v28, %v4118_v13  ;;  %v4119_v11 = vmul.f32 0.03125, %v4085_v40  ;;  %v4149_v60 = vmul.f32 %v12661_v12, %v12661_v12 }
0x122b   :  { %v4088_v56 = vpop.xlane.xlu1 %4087 }
0x122c   :  { %v12672_v3 = vsub.f32 %v12569_v49, %v4119_v11  ;;  %v4120_v50 = vmul.f32 0.03125, %v4088_v56  ;;  %v4173_v22 = vsel %vm99_vm0, %v4149_v60, 0.0  ;;  %v4150_v18 = vmul.f32 %v12664_v32, %v12664_v32 }
0x122d   :  { %4174 = vadd.xlane.f32.xlu0 %v4173_v22 }
0x122e   :  { %v12678_v39 = vsub.f32 %v12577_v14, %v4120_v50  ;;  %v4176_v15 = vsel %vm99_vm0, %v4150_v18, 0.0  ;;  %v4151_v24 = vmul.f32 %v12672_v3, %v12672_v3 }
0x122f   :  { %4177 = vadd.xlane.f32.xlu1 %v4176_v15 }
0x1230   :  { %v4179_v47 = vsel %vm99_vm0, %v4151_v24, 0.0  ;;  %v4152_v63 = vmul.f32 %v12678_v39, %v12678_v39 }
0x1231   :  { %4180 = vadd.xlane.f32.xlu0 %v4179_v47 }
0x1232   :  { %v4182_v4 = vsel %vm99_vm0, %v4152_v63, 0.0 }
0x1233   :  { %4183 = vadd.xlane.f32.xlu1 %v4182_v4 }
0x123e   :  { %v4091_v9 = vpop.xlane.xlu0 %4090 }
0x123f   :  { %v4121_v54 = vmul.f32 0.03125, %v4091_v9 }
0x1240   :  { %v4094_v31 = vpop.xlane.xlu1 %4093 }
0x1241   :  { %v12688_v59 = vsub.f32 %v12588_v19, %v4121_v54  ;;  %v4122_v34 = vmul.f32 0.03125, %v4094_v31 }
0x1242   :  { %v4097_v6 = vpop.xlane.xlu0 %4096 }
0x1243   :  { %v12691_v16 = vsub.f32 %v12596_v5, %v4122_v34  ;;  %v4123_v7 = vmul.f32 0.03125, %v4097_v6  ;;  %v4153_v52 = vmul.f32 %v12688_v59, %v12688_v59 }
0x1244   :  { %v4100_v41 = vpop.xlane.xlu1 %4099 }
0x1245   :  { %v12696_v58 = vsub.f32 %v12593_v8, %v4123_v7  ;;  %v4124_v38 = vmul.f32 0.03125, %v4100_v41  ;;  %v4185_v27 = vsel %vm99_vm0, %v4153_v52, 0.0  ;;  %v4154_v53 = vmul.f32 %v12691_v16, %v12691_v16 }
0x1246   :  { %4186 = vadd.xlane.f32.xlu0 %v4185_v27 }
0x1247   :  { %v12702_v36 = vsub.f32 %v12601_v45, %v4124_v38  ;;  %v4188_v30 = vsel %vm99_vm0, %v4154_v53, 0.0  ;;  %v4155_v13 = vmul.f32 %v12696_v58, %v12696_v58 }
0x1248   :  { %4189 = vadd.xlane.f32.xlu1 %v4188_v30 }
0x1249   :  { %v4191_v40 = vsel %vm99_vm0, %v4155_v13, 0.0  ;;  %v4156_v11 = vmul.f32 %v12702_v36, %v12702_v36 }
0x124a   :  { %4192 = vadd.xlane.f32.xlu0 %v4191_v40  ;;  %v4103_v60 = vpop.xlane.xlu0 %4102 }
0x124b   :  { %v4125_v48 = vmul.f32 0.03125, %v4103_v60  ;;  %v4194_v56 = vsel %vm99_vm0, %v4156_v11, 0.0 }
0x124c   :  { %4195 = vadd.xlane.f32.xlu1 %v4194_v56  ;;  %v4106_v50 = vpop.xlane.xlu1 %4105 }
0x124d   :  { %v12712_v22 = vsub.f32 %v12612_v55, %v4125_v48  ;;  %v4126_v18 = vmul.f32 0.03125, %v4106_v50 }
0x124e   :  { %v4109_v15 = vpop.xlane.xlu0 %4108 }
0x124f   :  { %v12715_v24 = vsub.f32 %v12620_v35, %v4126_v18  ;;  %v4127_v47 = vmul.f32 0.03125, %v4109_v15  ;;  %v4157_v63 = vmul.f32 %v12712_v22, %v12712_v22 }
0x1250   :  { %v4112_v4 = vpop.xlane.xlu1 %4111 }
0x1251   :  { %v12720_v9 = vsub.f32 %v12617_v57, %v4127_v47  ;;  %v4128_v54 = vmul.f32 0.03125, %v4112_v4  ;;  %v4197_v31 = vsel %vm99_vm0, %v4157_v63, 0.0  ;;  %v4158_v34 = vmul.f32 %v12715_v24, %v12715_v24  ;;  %v12738_v63 = vld [vmem:[%s14636_s8 + $0x10] sm:$0xff] }
0x1252   :  { %4198 = vadd.xlane.f32.xlu0 %v4197_v31  ;;  %v12742_v4 = vrot.slane %v12738_v63, %v14722_v0 }
0x1253   :  { %v12726_v6 = vsub.f32 %v12625_v17, %v4128_v54  ;;  %v4200_v7 = vsel %vm99_vm0, %v4158_v34, 0.0  ;;  %v4159_v52 = vmul.f32 %v12720_v9, %v12720_v9 }
0x1254   :  { %4201 = vadd.xlane.f32.xlu1 %v4200_v7  ;;  %v14739_v7 = vsub.s32 1, %v14720_v1 }
0x1255   :  { %v4203_v41 = vsel %vm99_vm0, %v4159_v52, 0.0  ;;  %v4160_v38 = vmul.f32 %v12726_v6, %v12726_v6 }
0x1256   :  { %4204 = vadd.xlane.f32.xlu0 %v4203_v41  ;;  %v12748_v52 = vrot.slane %v12738_v63, %v14739_v7 }
0x1257   :  { %v4206_v27 = vsel %vm99_vm0, %v4160_v38, 0.0 }
0x1258   :  { %4207 = vadd.xlane.f32.xlu1 %v4206_v27 }
0x1290   :  { %v4163_v53 = vpop.xlane.xlu0 %4162 }
0x1291   :  { %v4209_v30 = vmul.f32 0.03125, %v4163_v53 }
0x1292   :  { %v4166_v13 = vpop.xlane.xlu1 %4165 }
0x1293   :  { %v4225_v40 = vadd.f32 1e-05, %v4209_v30  ;;  %v4210_v11 = vmul.f32 0.03125, %v4166_v13 }
0x1294   :  { %v4169_v60 = vpop.xlane.xlu0 %4168 }
0x1295   :  { %10019 = vrsqrt.f32 %v4225_v40  ;;  %v4226_v48 = vadd.f32 1e-05, %v4210_v11  ;;  %v4211_v56 = vmul.f32 0.03125, %v4169_v60 }
0x1296   :  { %v4172_v50 = vpop.xlane.xlu1 %4171 }
0x1297   :  { %10021 = vrsqrt.f32 %v4226_v48  ;;  %v4227_v18 = vadd.f32 1e-05, %v4211_v56  ;;  %v4212_v15 = vmul.f32 0.03125, %v4172_v50 }
0x1299   :  { %10023 = vrsqrt.f32 %v4227_v18  ;;  %v4228_v47 = vadd.f32 1e-05, %v4212_v15 }
0x129b   :  { %10025 = vrsqrt.f32 %v4228_v47 }
0x129f   :  { %v10020_v54 = vpop.eup %10019 }
0x12a0   :  { %v4257_v31 = vmul.f32 %v10020_v54, %v12634_v51 }
0x12a1   :  { %v10022_v34 = vpop.eup %10021 }
0x12a2   :  { %v4258_v41 = vmul.f32 %v10022_v34, %v12637_v43  ;;  %v4277_v38 = vmul.f32 %v12742_v4, %v4257_v31 }
0x12a3   :  { %v10024_v27 = vpop.eup %10023 }
0x12a4   :  { %v4259_v53 = vmul.f32 %v10024_v27, %v12642_v2  ;;  %v4278_v30 = vmul.f32 %v12742_v4, %v4258_v41  ;;  %v4297_v11 = vadd.f32 %v12748_v52, %v4277_v38 }
0x12a5   :  { %v10026_v13 = vpop.eup %10025 }
0x12a6   :  { %v4279_v40 = vmul.f32 %v12742_v4, %v4259_v53  ;;  %v4260_v51 = vmul.f32 %v10026_v13, %v12648_v33  ;;  %v4298_v60 = vadd.f32 %v12748_v52, %v4278_v30 }
0x12a8   :  { %v4280_v48 = vmul.f32 %v12742_v4, %v4260_v51  ;;  %v4313_v56 = vpack.c.bf16 %v4298_v60, %v4297_v11  ;;  %v4299_v43 = vadd.f32 %v12748_v52, %v4279_v40 }
0x12aa   :  { %v4300_v50 = vadd.f32 %v12748_v52, %v4280_v48  ;;  %8964 = vmatprep.mubr.msk.bf16.mxu0 %vm99_vm0, %v4313_v56 }
0x12ac   :  { %v4314_v2 = vpack.c.bf16 %v4300_v50, %v4299_v43 }
0x12ae   :  { %8965 = vmatmul.mubr.msk.bf16.vlgmr.msra.gmra.mrb[100].mxu0 %vm99_vm0, %v4314_v2 }
0x12ba   :  { %v4175_v18 = vpop.xlane.xlu0 %4174 }
0x12bb   :  { %v4213_v15 = vmul.f32 0.03125, %v4175_v18 }
0x12bc   :  { %v4178_v47 = vpop.xlane.xlu1 %4177 }
0x12bd   :  { %v4229_v33 = vadd.f32 1e-05, %v4213_v15  ;;  %v4214_v54 = vmul.f32 0.03125, %v4178_v47 }
0x12be   :  { %v4181_v31 = vpop.xlane.xlu0 %4180 }
0x12bf   :  { %10027 = vrsqrt.f32 %v4229_v33  ;;  %v4230_v34 = vadd.f32 1e-05, %v4214_v54  ;;  %v4215_v7 = vmul.f32 0.03125, %v4181_v31 }
0x12c0   :  { %v4184_v41 = vpop.xlane.xlu1 %4183 }
0x12c1   :  { %10029 = vrsqrt.f32 %v4230_v34  ;;  %v4231_v38 = vadd.f32 1e-05, %v4215_v7  ;;  %v4216_v27 = vmul.f32 0.03125, %v4184_v41 }
0x12c3   :  { %10031 = vrsqrt.f32 %v4231_v38  ;;  %v4232_v53 = vadd.f32 1e-05, %v4216_v27 }
0x12c5   :  { %10033 = vrsqrt.f32 %v4232_v53 }
0x12c9   :  { %v10028_v30 = vpop.eup %10027 }
0x12ca   :  { %v4261_v13 = vmul.f32 %v10028_v30, %v12661_v12 }
0x12cb   :  { %v10030_v40 = vpop.eup %10029 }
0x12cc   :  { %v4262_v51 = vmul.f32 %v10030_v40, %v12664_v32  ;;  %v4281_v11 = vmul.f32 %v12742_v4, %v4261_v13 }
0x12cd   :  { %v10032_v60 = vpop.eup %10031 }
0x12ce   :  { %v4282_v48 = vmul.f32 %v12742_v4, %v4262_v51  ;;  %v4263_v56 = vmul.f32 %v10032_v60, %v12672_v3  ;;  %v4301_v50 = vadd.f32 %v12748_v52, %v4281_v11 }
0x12cf   :  { %v10034_v43 = vpop.eup %10033 }
0x12d0   :  { %v4302_v2 = vadd.f32 %v12748_v52, %v4282_v48  ;;  %v4264_v18 = vmul.f32 %v10034_v43, %v12678_v39  ;;  %v4283_v15 = vmul.f32 %v12742_v4, %v4263_v56 }
0x12d2   :  { %v4315_v12 = vpack.c.bf16 %v4302_v2, %v4301_v50  ;;  %v4284_v47 = vmul.f32 %v12742_v4, %v4264_v18  ;;  %v4303_v54 = vadd.f32 %v12748_v52, %v4283_v15 }
0x12d3   :  { %v4187_v32 = vpop.xlane.xlu0 %4186 }
0x12d4   :  { %v4217_v33 = vmul.f32 0.03125, %v4187_v32  ;;  %8968 = vmatprep.mubr.msk.bf16.mxu0 %vm99_vm0, %v4315_v12  ;;  %v4304_v3 = vadd.f32 %v12748_v52, %v4284_v47 }
0x12d5   :  { %v4190_v31 = vpop.xlane.xlu1 %4189 }
0x12d6   :  { %v4233_v34 = vadd.f32 1e-05, %v4217_v33  ;;  %v4218_v7 = vmul.f32 0.03125, %v4190_v31  ;;  %v4316_v41 = vpack.c.bf16 %v4304_v3, %v4303_v54 }
0x12d7   :  { %v4193_v38 = vpop.xlane.xlu0 %4192 }
0x12d8   :  { %10035 = vrsqrt.f32 %v4233_v34  ;;  %v4234_v39 = vadd.f32 1e-05, %v4218_v7  ;;  %v4219_v27 = vmul.f32 0.03125, %v4193_v38  ;;  %8969 = vmatmul.mubr.msk.bf16.gmra.mrb[104].mxu0 %vm99_vm0, %v4316_v41 }
0x12d9   :  { %v4196_v53 = vpop.xlane.xlu1 %4195 }
0x12da   :  { %10037 = vrsqrt.f32 %v4234_v39  ;;  %v4235_v30 = vadd.f32 1e-05, %v4219_v27  ;;  %v4220_v13 = vmul.f32 0.03125, %v4196_v53 }
0x12dc   :  { %10039 = vrsqrt.f32 %v4235_v30  ;;  %v4236_v40 = vadd.f32 1e-05, %v4220_v13 }
0x12de   :  { %10041 = vrsqrt.f32 %v4236_v40 }
0x12df   :  { %v4199_v51 = vpop.xlane.xlu0 %4198 }
0x12e0   :  { %v4221_v11 = vmul.f32 0.03125, %v4199_v51 }
0x12e1   :  { %v4202_v60 = vpop.xlane.xlu1 %4201 }
0x12e2   :  { %v10036_v48 = vpop.eup %10035  ;;  %v4237_v56 = vadd.f32 1e-05, %v4221_v11  ;;  %v4222_v43 = vmul.f32 0.03125, %v4202_v60 }
0x12e3   :  { %v4205_v50 = vpop.xlane.xlu0 %4204  ;;  %v4265_v2 = vmul.f32 %v10036_v48, %v12688_v59 }
0x12e4   :  { %v10038_v18 = vpop.eup %10037  ;;  %10043 = vrsqrt.f32 %v4237_v56  ;;  %v4238_v15 = vadd.f32 1e-05, %v4222_v43  ;;  %v4223_v12 = vmul.f32 0.03125, %v4205_v50 }
0x12e5   :  { %v4208_v47 = vpop.xlane.xlu1 %4207  ;;  %v4266_v32 = vmul.f32 %v10038_v18, %v12691_v16  ;;  %v4285_v33 = vmul.f32 %v12742_v4, %v4265_v2 }
0x12e6   :  { %v10040_v54 = vpop.eup %10039  ;;  %10045 = vrsqrt.f32 %v4238_v15  ;;  %v4239_v3 = vadd.f32 1e-05, %v4223_v12  ;;  %v4224_v31 = vmul.f32 0.03125, %v4208_v47 }
0x12e7   :  { %v4286_v34 = vmul.f32 %v12742_v4, %v4266_v32  ;;  %v4267_v7 = vmul.f32 %v10040_v54, %v12696_v58  ;;  %v4305_v38 = vadd.f32 %v12748_v52, %v4285_v33 }
0x12e8   :  { %v10042_v41 = vpop.eup %10041  ;;  %10047 = vrsqrt.f32 %v4239_v3  ;;  %v4240_v59 = vadd.f32 1e-05, %v4224_v31 }
0x12e9   :  { %v4306_v39 = vadd.f32 %v12748_v52, %v4286_v34  ;;  %v4268_v27 = vmul.f32 %v10042_v41, %v12702_v36  ;;  %v4287_v16 = vmul.f32 %v12742_v4, %v4267_v7 }
0x12ea   :  { %10049 = vrsqrt.f32 %v4240_v59 }
0x12eb   :  { %v4317_v53 = vpack.c.bf16 %v4306_v39, %v4305_v38  ;;  %v4288_v30 = vmul.f32 %v12742_v4, %v4268_v27  ;;  %v4307_v13 = vadd.f32 %v12748_v52, %v4287_v16 }
0x12ed   :  { %8972 = vmatprep.mubr.msk.bf16.mxu0 %vm99_vm0, %v4317_v53  ;;  %v4308_v58 = vadd.f32 %v12748_v52, %v4288_v30 }
0x12ee   :  { %v10044_v40 = vpop.eup %10043 }
0x12ef   :  { %v4318_v51 = vpack.c.bf16 %v4308_v58, %v4307_v13  ;;  %v4269_v11 = vmul.f32 %v10044_v40, %v12712_v22 }
0x12f0   :  { %v10046_v60 = vpop.eup %10045 }
0x12f1   :  { %8973 = vmatmul.mubr.msk.bf16.gmra.mrb[108].mxu0 %vm99_vm0, %v4318_v51  ;;  %v4270_v36 = vmul.f32 %v10046_v60, %v12715_v24  ;;  %v4289_v48 = vmul.f32 %v12742_v4, %v4269_v11 }
0x12f2   :  { %v10048_v56 = vpop.eup %10047 }
0x12f3   :  { %v4290_v43 = vmul.f32 %v12742_v4, %v4270_v36  ;;  %v4271_v50 = vmul.f32 %v10048_v56, %v12720_v9  ;;  %v4309_v18 = vadd.f32 %v12748_v52, %v4289_v48  ;;  %v14740_v9 = vsub.s32 2, %v14720_v1 }
0x12f4   :  { %v10050_v2 = vpop.eup %10049 }
0x12f5   :  { %v4310_v15 = vadd.f32 %v12748_v52, %v4290_v43  ;;  %v4272_v12 = vmul.f32 %v10050_v2, %v12726_v6  ;;  %v4291_v22 = vmul.f32 %v12742_v4, %v4271_v50  ;;  %v4329_v3 = vrot.slane %v12738_v63, %v14740_v9 }
0x12f7   :  { %v4319_v47 = vpack.c.bf16 %v4310_v15, %v4309_v18  ;;  %v4292_v32 = vmul.f32 %v12742_v4, %v4272_v12  ;;  %v4311_v24 = vadd.f32 %v12748_v52, %v4291_v22 }
0x12f9   :  { %8976 = vmatprep.mubr.msk.bf16.mxu0 %vm99_vm0, %v4319_v47  ;;  %v4312_v33 = vadd.f32 %v12748_v52, %v4292_v32 }
0x12fb   :  { %v4320_v54 = vpack.c.bf16 %v4312_v33, %v4311_v24 }
0x12fd   :  { %8977 = vmatmul.mubr.msk.bf16.gmra.mrb[112].mxu0 %vm99_vm0, %v4320_v54 }
0x1381   :  { %v8966_v31 = vpop.f32.mrb[100].mxu0 }
0x1382   :  { %v4400_v6 = vpop.f32.mrb[101].mxu0  ;;  %v4409_v7 = vadd.f32 %v8966_v31, %v4329_v3 }
0x1383   :  { %v8967_v34 = vpop.f32.mrb[102].mxu0  ;;  %v4401_v4 = vadd.f32 %v4400_v6, %v4329_v3 }
0x1384   :  { %v4412_v41 = vadd.f32 %v8967_v34, %v4329_v3  ;;  %v4403_v59 = vpop.f32.mrb[103].mxu0 }
0x1385   :  { %v4404_v38 = vadd.f32 %v4403_v59, %v4329_v3 }
0x1386   :  { %v12808_v39 = vpack.c.bf16 %v4412_v41, %v4409_v7 }
0x1387   :  { %v12810_v27 = vpack.c.bf16 %v4404_v38, %v4401_v4 }
0x1388   :  { %4477 = vrot.lane.b32.xlu1 %v12808_v39, %s10418_s18 }
0x1389   :  { %4475 = vrot.lane.b32.xlu0 %v12810_v27, %s10418_s18  ;;  %8988 = vmatprep.mubr.msk.bf16.mxu1 %vm518_vm1, %v12810_v27 }
0x13ab   :  { %v8970_v63 = vpop.f32.mrb[104].mxu0 }
0x13ac   :  { %v4416_v52 = vpop.f32.mrb[105].mxu0  ;;  %v4425_v53 = vadd.f32 %v8970_v63, %v4329_v3 }
0x13ad   :  { %v8971_v16 = vpop.f32.mrb[106].mxu0  ;;  %v4417_v58 = vadd.f32 %v4416_v52, %v4329_v3 }
0x13ae   :  { %v4428_v30 = vadd.f32 %v8971_v16, %v4329_v3  ;;  %v4419_v13 = vpop.f32.mrb[107].mxu0 }
0x13af   :  { %v4420_v40 = vadd.f32 %v4419_v13, %v4329_v3 }
0x13b0   :  { %v12818_v51 = vpack.c.bf16 %v4428_v30, %v4425_v53 }
0x13b1   :  { %v12820_v11 = vpack.c.bf16 %v4420_v40, %v4417_v58 }
0x13b2   :  { %4481 = vrot.lane.b32.xlu0 %v12818_v51, %s10418_s18 }
0x13b3   :  { %4479 = vrot.lane.b32.xlu1 %v12820_v11, %s10418_s18 }
0x13c4   :  { %v8974_v60 = vpop.f32.mrb[108].mxu0 }
0x13c5   :  { %v4432_v36 = vpop.f32.mrb[109].mxu0  ;;  %v4441_v56 = vadd.f32 %v8974_v60, %v4329_v3 }
0x13c6   :  { %v8975_v48 = vpop.f32.mrb[110].mxu0  ;;  %v4433_v2 = vadd.f32 %v4432_v36, %v4329_v3 }
0x13c7   :  { %v4444_v43 = vadd.f32 %v8975_v48, %v4329_v3  ;;  %v4435_v50 = vpop.f32.mrb[111].mxu0 }
0x13c8   :  { %v4436_v18 = vadd.f32 %v4435_v50, %v4329_v3 }
0x13c9   :  { %v12826_v15 = vpack.c.bf16 %v4444_v43, %v4441_v56 }
0x13ca   :  { %v12828_v12 = vpack.c.bf16 %v4436_v18, %v4433_v2 }
0x13cc   :  { %4576 = vrot.lane.b32.xlu1 %v12828_v12, %s10418_s18  ;;  %9004 = vmatprep.mubr.msk.bf16.mxu0 %vm518_vm1, %v12828_v12 }
0x13d0   :  { %4578 = vrot.lane.b32.xlu1 %v12826_v15, %s10418_s18  ;;  %v8978_v22 = vpop.f32.mrb[112].mxu0 }
0x13d1   :  { %v4448_v47 = vpop.f32.mrb[113].mxu0  ;;  %v4457_v24 = vadd.f32 %v8978_v22, %v4329_v3 }
0x13d2   :  { %v8979_v32 = vpop.f32.mrb[114].mxu0  ;;  %v4449_v9 = vadd.f32 %v4448_v47, %v4329_v3 }
0x13d3   :  { %v4460_v33 = vadd.f32 %v8979_v32, %v4329_v3  ;;  %v4451_v54 = vpop.f32.mrb[115].mxu0 }
0x13d4   :  { %v4452_v31 = vadd.f32 %v4451_v54, %v4329_v3 }
0x13d5   :  { %v12836_v6 = vpack.c.bf16 %v4460_v33, %v4457_v24  ;;  %v4035_v33 = vld [vmem:[#allocation2 + $0x110] sm:$0xff] }
0x13d6   :  { %v12838_v34 = vpack.c.bf16 %v4452_v31, %v4449_v9  ;;  %v4033_v9 = vld [vmem:[#allocation2 + $0x100] sm:$0xff] }
0x13d7   :  { %4582 = vrot.lane.b32.xlu1 %v12836_v6, %s10418_s18 }
0x13d8   :  { %4580 = vrot.lane.b32.xlu0 %v12838_v34, %s10418_s18 }
0x13db   :  { %4859 = vrot.lane.b32.xlu1 %v12808_v39, %s10419_s19 }
0x13dc   :  { %4857 = vrot.lane.b32.xlu0 %v12810_v27, %s10419_s19 }
0x13df   :  { %4863 = vrot.lane.b32.xlu1 %v12818_v51, %s10419_s19 }
0x13e0   :  { %4861 = vrot.lane.b32.xlu0 %v12820_v11, %s10419_s19 }
0x13e3   :  { %4948 = vrot.lane.b32.xlu1 %v12826_v15, %s10419_s19 }
0x13e4   :  { %4946 = vrot.lane.b32.xlu0 %v12828_v12, %s10419_s19 }
0x13e7   :  { %5043 = vrot.lane.b32.xlu1 %v12810_v27, %s10420_s21 }
0x13e8   :  { %4952 = vrot.lane.b32.xlu0 %v12836_v6, %s10419_s19 }
0x13eb   :  { %5045 = vrot.lane.b32.xlu1 %v12808_v39, %s10420_s21 }
0x13ef   :  { %4950 = vrot.lane.b32.xlu1 %v12838_v34, %s10419_s19 }
0x13fa   :  { %v4478_v41 = vpop.permute.xlu1 %4477 }
0x13fb   :  { %v4476_v3 = vpop.permute.xlu0 %4475  ;;  %v4499_v59 = vsel %vm518_vm1, %v4478_v41, 0 }
0x13fc   :  { %9346 = vmatprep.subr.msk.bf16.mxu1 %vm518_vm1, %v4476_v3  ;;  %v4496_v7 = vsel %vm518_vm1, %v4476_v3, 0 }
0x13fd   :  { %8981 = vmatpush3.bf16.xpose.msra.mxu1 %v4496_v7  ;;  %v4034_v7 = vld [vmem:[#allocation2 + $0x108] sm:$0xff] }
0x13fe   :  { %9347 = vmatprep.subr.msk.bf16.mxu1 %vm518_vm1, %v4478_v41 }
0x1405   :  { %8983 = vmatpush3.bf16.xpose.msra.mxu1 %v4499_v59 }
0x1424   :  { %v4482_v63 = vpop.permute.xlu0 %4481 }
0x1425   :  { %v4480_v4 = vpop.permute.xlu1 %4479  ;;  %v4505_v52 = vsel %vm518_vm1, %v4482_v63, 0 }
0x1426   :  { %9348 = vmatprep.subr.msk.bf16.mxu1 %vm518_vm1, %v4480_v4  ;;  %v4502_v38 = vsel %vm518_vm1, %v4480_v4, 0 }
0x1427   :  { %8985 = vmatpush3.bf16.xpose.msra.mxu1 %v4502_v38 }
0x1428   :  { %9349 = vmatprep.subr.msk.bf16.mxu1 %vm518_vm1, %v4482_v63  ;;  %v4036_v63 = vld [vmem:[#allocation2 + $0x118] sm:$0xff] }
0x142f   :  { %8987 = vmatpush3.bf16.xpose.msra.mxu1 %v4505_v52 }
0x1436   :  { %8989 = vmatmul.mubr.msk.bf16.vlgmr.msra.gmra.mrb[96].mxu1 %vm518_vm1, %v12808_v39 }
0x1437   :  { %8992 = vmatprep.mubr.msk.bf16.mxu1 %vm518_vm1, %v12820_v11 }
0x143e   :  { %v4577_v16 = vpop.permute.xlu1 %4576  ;;  %8993 = vmatmul.mubr.msk.bf16.gmra.mrb[100].mxu1 %vm518_vm1, %v12818_v51 }
0x143f   :  { %9350 = vmatprep.subr.msk.bf16.mxu0 %vm518_vm1, %v4577_v16  ;;  %v4597_v53 = vsel %vm518_vm1, %v4577_v16, 0 }
0x1440   :  { %8997 = vmatpush3.bf16.xpose.msra.mxu0 %v4597_v53 }
0x1442   :  { %v4579_v30 = vpop.permute.xlu1 %4578 }
0x1443   :  { %9351 = vmatprep.subr.msk.bf16.mxu0 %vm518_vm1, %v4579_v30  ;;  %v4600_v13 = vsel %vm518_vm1, %v4579_v30, 0 }
0x1448   :  { %8999 = vmatpush3.bf16.xpose.msra.mxu0 %v4600_v13  ;;  %v4039_v13 = vld [vmem:[#allocation2 + $0x130] sm:$0xff] }
0x1449   :  { %v4583_v58 = vpop.permute.xlu1 %4582 }
0x144a   :  { %v4581_v40 = vpop.permute.xlu0 %4580  ;;  %v4606_v2 = vsel %vm518_vm1, %v4583_v58, 0 }
0x144b   :  { %9352 = vmatprep.subr.msk.bf16.mxu0 %vm518_vm1, %v4581_v40  ;;  %v4603_v48 = vsel %vm518_vm1, %v4581_v40, 0  ;;  %v4040_v40 = vld [vmem:[#allocation2 + $0x138] sm:$0xff] }
0x144d   :  { %v4860_v60 = vpop.permute.xlu1 %4859 }
0x144e   :  { %v4858_v36 = vpop.permute.xlu0 %4857 }
0x144f   :  { %9012 = vmatprep.subr.bf16.mxu1 %v4858_v36 }
0x1450   :  { %9001 = vmatpush3.bf16.xpose.msra.mxu0 %v4603_v48  ;;  %9013 = vmatpush3.bf16.msra.mxu1 %v4858_v36  ;;  %v4038_v48 = vld [vmem:[#allocation2 + $0x128] sm:$0xff] }
0x1451   :  { %v4864_v56 = vpop.permute.xlu1 %4863  ;;  %9353 = vmatprep.subr.msk.bf16.mxu0 %vm518_vm1, %v4583_v58  ;;  %9014 = vmatprep.subr.bf16.mxu1 %v4860_v60 }
0x1452   :  { %v4862_v43 = vpop.permute.xlu0 %4861 }
0x1454   :  { %9015 = vmatpush3.bf16.msra.mxu1 %v4860_v60 }
0x1455   :  { %v4949_v50 = vpop.permute.xlu1 %4948  ;;  %9016 = vmatprep.subr.bf16.mxu1 %v4862_v43 }
0x1456   :  { %v4947_v18 = vpop.permute.xlu0 %4946 }
0x1458   :  { %9003 = vmatpush3.bf16.xpose.msra.mxu0 %v4606_v2  ;;  %9017 = vmatpush3.bf16.msra.mxu1 %v4862_v43 }
0x1459   :  { %v12886_v22 = vpop.permute.xlu1 %5043  ;;  %9018 = vmatprep.subr.bf16.mxu1 %v4864_v56  ;;  %9028 = vmatprep.subr.bf16.mxu0 %v4947_v18 }
0x145a   :  { %v4953_v24 = vpop.permute.xlu0 %4952 }
0x145c   :  { %9019 = vmatpush3.bf16.msra.mxu1 %v4864_v56 }
0x145d   :  { %9354 = vmatprep.subr.msk.bf16.mxu1 %vm518_vm1, %v12886_v22  ;;  %v12890_v47 = vpop.permute.xlu1 %5045 }
0x145f   :  { %9005 = vmatmul.mubr.msk.bf16.vlgmr.msra.gmra.mrb[116].mxu0 %vm518_vm1, %v12826_v15 }
0x1460   :  { %9008 = vmatprep.mubr.msk.bf16.mxu0 %vm518_vm1, %v12838_v34  ;;  %9029 = vmatpush3.bf16.msra.mxu0 %v4947_v18  ;;  %v4037_v18 = vld [vmem:[#allocation2 + $0x120] sm:$0xff] }
0x1461   :  { %9030 = vmatprep.subr.bf16.mxu0 %v4949_v50  ;;  %v4951_v32 = vpop.permute.xlu1 %4950 }
0x1464   :  { %9031 = vmatpush3.bf16.msra.mxu0 %v4949_v50 }
0x1465   :  { %9032 = vmatprep.subr.bf16.mxu0 %v4951_v32 }
0x1467   :  { %9009 = vmatmul.mubr.msk.bf16.gmra.mrb[120].mxu0 %vm518_vm1, %v12836_v6 }
0x1468   :  { %9033 = vmatpush3.bf16.msra.mxu0 %v4951_v32 }
0x1469   :  { %9034 = vmatprep.subr.bf16.mxu0 %v4953_v24 }
0x146c   :  { %9035 = vmatpush3.bf16.msra.mxu0 %v4953_v24 }
0x1509   :  { %v8990_v54 = vpop.f32.mrb[96].mxu1 }
0x150a   :  { %v12898_v31 = vadd.f32 %v8990_v54, %v4035_v33  ;;  %v4541_v3 = vpop.f32.mrb[97].mxu1 }
0x150b   :  { %v8991_v41 = vpop.f32.mrb[98].mxu1  ;;  %v12900_v59 = vadd.f32 %v4541_v3, %v4033_v9 }
0x150c   :  { %v4544_v4 = vpop.f32.mrb[99].mxu1  ;;  %v4679_v38 = vsel %vm709_vm2, %v12898_v31, -inf  ;;  %v12908_v53 = vadd.f32 %v8991_v41, %v4036_v63 }
0x150d   :  { %v12904_v52 = vadd.f32 %v4544_v4, %v4034_v7  ;;  %4680 = vmax.xlane.f32.xlu0 %v4679_v38  ;;  %v4673_v30 = vsel %vm709_vm2, %v12900_v59, -inf }
0x150e   :  { %v4682_v2 = vsel %vm709_vm2, %v12908_v53, -inf }
0x150f   :  { %v4676_v16 = vsel %vm709_vm2, %v12904_v52, -inf }
0x1510   :  { %4677 = vmax.xlane.f32.xlu1 %v4676_v16 }
0x1511   :  { %v8994_v58 = vpop.f32.mrb[100].mxu1  ;;  %4674 = vmax.xlane.f32.xlu0 %v4673_v30 }
0x1512   :  { %v4557_v60 = vpop.f32.mrb[101].mxu1  ;;  %v12912_v56 = vadd.f32 %v8994_v58, %v4039_v13 }
0x1513   :  { %v8995_v36 = vpop.f32.mrb[102].mxu1  ;;  %v12922_v54 = vadd.f32 %v4557_v60, %v4037_v18 }
0x1514   :  { %v12914_v43 = vadd.f32 %v8995_v36, %v4040_v40  ;;  %v4560_v50 = vpop.f32.mrb[103].mxu1  ;;  %v4691_v3 = vsel %vm709_vm2, %v12912_v56, -inf }
0x1515   :  { %4683 = vmax.xlane.f32.xlu0 %v4682_v2  ;;  %v12918_v32 = vadd.f32 %v4560_v50, %v4038_v48  ;;  %v4685_v4 = vsel %vm709_vm2, %v12922_v54, -inf }
0x1516   :  { %v4694_v24 = vsel %vm709_vm2, %v12914_v43, -inf }
0x1517   :  { %4695 = vmax.xlane.f32.xlu1 %v4694_v24  ;;  %v4688_v41 = vsel %vm709_vm2, %v12918_v32, -inf }
0x1519   :  { %4692 = vmax.xlane.f32.xlu0 %v4691_v3 }
0x151b   :  { %4689 = vmax.xlane.f32.xlu1 %v4688_v41 }
0x151d   :  { %4686 = vmax.xlane.f32.xlu0 %v4685_v4 }
0x152c   :  { %5148 = vrot.lane.b32.xlu1 %v12828_v12, %s10420_s21 }
0x1530   :  { %5049 = vrot.lane.b32.xlu1 %v12818_v51, %s10420_s21 }
0x1532   :  { %v9006_v38 = vpop.f32.mrb[116].mxu0 }
0x1533   :  { %v12934_v16 = vadd.f32 %v9006_v38, %v4035_v33  ;;  %v4642_v30 = vpop.f32.mrb[117].mxu0 }
0x1534   :  { %v9007_v58 = vpop.f32.mrb[118].mxu0  ;;  %v12936_v60 = vadd.f32 %v4642_v30, %v4033_v9 }
0x1535   :  { %v4645_v36 = vpop.f32.mrb[119].mxu0  ;;  %v4703_v50 = vsel %vm709_vm2, %v12934_v16, -inf  ;;  %v12952_v42 = vadd.f32 %v9007_v58, %v4036_v63 }
0x1536   :  { %v12940_v2 = vadd.f32 %v4645_v36, %v4034_v7  ;;  %4704 = vmax.xlane.f32.xlu0 %v4703_v50  ;;  %v4697_v24 = vsel %vm709_vm2, %v12936_v60, -inf }
0x1537   :  { %v4706_v7 = vsel %vm709_vm2, %v12952_v42, -inf }
0x153a   :  { %v9010_v3 = vpop.f32.mrb[120].mxu0  ;;  %4698 = vmax.xlane.f32.xlu0 %v4697_v24 }
0x153b   :  { %v12944_v41 = vadd.f32 %v9010_v3, %v4039_v13  ;;  %v4658_v33 = vpop.f32.mrb[121].mxu0  ;;  %v4700_v13 = vsel %vm709_vm2, %v12940_v2, -inf }
0x153c   :  { %v12946_v4 = vadd.f32 %v4658_v33, %v4037_v18  ;;  %v9011_v38 = vpop.f32.mrb[122].mxu0 }
0x153d   :  { %v12948_v9 = vadd.f32 %v9011_v38, %v4040_v40  ;;  %v4661_v30 = vpop.f32.mrb[123].mxu0  ;;  %v4715_v63 = vsel %vm709_vm2, %v12944_v41, -inf }
0x153e   :  { %v12950_v20 = vadd.f32 %v4661_v30, %v4038_v48  ;;  %v4709_v18 = vsel %vm709_vm2, %v12946_v4, -inf }
0x153f   :  { %v4718_v40 = vsel %vm709_vm2, %v12948_v9, -inf }
0x1540   :  { %v4712_v48 = vsel %vm709_vm2, %v12950_v20, -inf }
0x1550   :  { %5047 = vrot.lane.b32.xlu0 %v12820_v11, %s10420_s21 }
0x1554   :  { %4707 = vmax.xlane.f32.xlu1 %v4706_v7 }
0x1558   :  { %4701 = vmax.xlane.f32.xlu1 %v4700_v13 }
0x155c   :  { %4719 = vmax.xlane.f32.xlu1 %v4718_v40 }
0x1560   :  { %4713 = vmax.xlane.f32.xlu1 %v4712_v48 }
0x156f   :  { %4716 = vmax.xlane.f32.xlu0 %v4715_v63 }
0x1571   :  { %5150 = vrot.lane.b32.xlu1 %v12826_v15, %s10420_s21 }
0x1573   :  { %4710 = vmax.xlane.f32.xlu0 %v4709_v18 }
0x159a   :  { %v4681_v58 = vpop.xlane.xlu0 %4680 }
0x159b   :  { %v4723_v36 = vsub.f32 %v12898_v31, %v4681_v58 }
0x159d   :  { %v4741_v50 = vmul.f32 1.442695, %v4723_v36  ;;  %v4678_v24 = vpop.xlane.xlu1 %4677 }
0x159e   :  { %v4675_v3 = vpop.xlane.xlu0 %4674  ;;  %v4722_v38 = vsub.f32 %v12904_v52, %v4678_v24 }
0x159f   :  { %10051 = vpow2.f32 %v4741_v50  ;;  %v4721_v33 = vsub.f32 %v12900_v59, %v4675_v3 }
0x15a0   :  { %v4739_v48 = vmul.f32 1.442695, %v4722_v38 }
0x15a1   :  { %v4737_v30 = vmul.f32 1.442695, %v4721_v33 }
0x15a2   :  { %v4684_v7 = vpop.xlane.xlu0 %4683 }
0x15a3   :  { %10053 = vpow2.f32 %v4737_v30  ;;  %v4724_v13 = vsub.f32 %v12908_v53, %v4684_v7 }
0x15a4   :  { %v4696_v40 = vpop.xlane.xlu1 %4695 }
0x15a5   :  { %v4743_v63 = vmul.f32 1.442695, %v4724_v13  ;;  %v4728_v59 = vsub.f32 %v12914_v43, %v4696_v40 }
0x15a6   :  { %v4693_v18 = vpop.xlane.xlu0 %4692 }
0x15a7   :  { %10055 = vpow2.f32 %v4743_v63  ;;  %v4727_v31 = vsub.f32 %v12912_v56, %v4693_v18  ;;  %v4751_v30 = vmul.f32 1.442695, %v4728_v59 }
0x15a8   :  { %v4690_v58 = vpop.xlane.xlu1 %4689  ;;  %10057 = vpow2.f32 %v4739_v48 }
0x15a9   :  { %v12975_v36 = vpop.eup %10051  ;;  %v4749_v50 = vmul.f32 1.442695, %v4727_v31  ;;  %v4726_v52 = vsub.f32 %v12918_v32, %v4690_v58 }
0x15aa   :  { %v4687_v24 = vpop.xlane.xlu0 %4686  ;;  %v4775_v53 = vsel %vm709_vm2, %v12975_v36, 0.0 }
0x15ab   :  { %10059 = vpow2.f32 %v4749_v50  ;;  %v4747_v3 = vmul.f32 1.442695, %v4726_v52  ;;  %v4725_v33 = vsub.f32 %v12922_v54, %v4687_v24  ;;  %4776 = vadd.xlane.f32.xlu0 %v4775_v53 }
0x15ac   :  { %v12982_v38 = vpop.permute.xlu1 %5148 }
0x15ad   :  { %v12984_v56 = vpop.eup %10053  ;;  %10061 = vpow2.f32 %v4747_v3  ;;  %v4745_v7 = vmul.f32 1.442695, %v4725_v33  ;;  %9358 = vmatprep.subr.msk.bf16.mxu0 %vm518_vm1, %v12982_v38 }
0x15ae   :  { %v4769_v43 = vsel %vm709_vm2, %v12984_v56, 0.0 }
0x15af   :  { %10063 = vpow2.f32 %v4745_v7  ;;  %4770 = vadd.xlane.f32.xlu0 %v4769_v43 }
0x15b0   :  { %10065 = vpow2.f32 %v4751_v30 }
0x15b1   :  { %v12990_v32 = vpop.eup %10055 }
0x15b2   :  { %v4778_v54 = vsel %vm709_vm2, %v12990_v32, 0.0  ;;  %v12994_v13 = vpop.eup %10057 }
0x15b3   :  { %4779 = vadd.xlane.f32.xlu1 %v4778_v54  ;;  %v4772_v48 = vsel %vm709_vm2, %v12994_v13, 0.0 }
0x15b5   :  { %v12996_v40 = vpop.eup %10059 }
0x15b6   :  { %v4787_v63 = vsel %vm709_vm2, %v12996_v40, 0.0 }
0x15b7   :  { %v13002_v18 = vpop.eup %10061  ;;  %4773 = vadd.xlane.f32.xlu1 %v4772_v48  ;;  %4788 = vadd.xlane.f32.xlu0 %v4787_v63 }
0x15b8   :  { %v4784_v58 = vsel %vm709_vm2, %v13002_v18, 0.0 }
0x15b9   :  { %v13004_v31 = vpop.eup %10063 }
0x15ba   :  { %v4781_v59 = vsel %vm709_vm2, %v13004_v31, 0.0  ;;  %v13010_v50 = vpop.eup %10065 }
0x15bb   :  { %4785 = vadd.xlane.f32.xlu1 %v4784_v58  ;;  %4782 = vadd.xlane.f32.xlu0 %v4781_v59  ;;  %v4790_v52 = vsel %vm709_vm2, %v13010_v50, 0.0 }
0x15bf   :  { %4791 = vadd.xlane.f32.xlu0 %v4790_v52 }
0x15c3   :  { %v4705_v24 = vpop.xlane.xlu0 %4704 }
0x15c4   :  { %v4731_v53 = vsub.f32 %v12934_v16, %v4705_v24  ;;  %v13024_v16 = vpop.permute.xlu1 %5049 }
0x15c6   :  { %v4757_v3 = vmul.f32 1.442695, %v4731_v53 }
0x15c7   :  { %v4699_v33 = vpop.xlane.xlu0 %4698 }
0x15c8   :  { %10067 = vpow2.f32 %v4757_v3  ;;  %v4729_v30 = vsub.f32 %v12936_v60, %v4699_v33 }
0x15ca   :  { %v4753_v7 = vmul.f32 1.442695, %v4729_v30 }
0x15cc   :  { %10069 = vpow2.f32 %v4753_v7 }
0x15d2   :  { %v13016_v43 = vpop.eup %10067 }
0x15d3   :  { %v4799_v54 = vsel %vm709_vm2, %v13016_v43, 0.0 }
0x15d4   :  { %4800 = vadd.xlane.f32.xlu1 %v4799_v54  ;;  %v13038_v54 = vpop.permute.xlu0 %5047 }
0x15d6   :  { %v13020_v48 = vpop.eup %10069 }
0x15d7   :  { %v4793_v63 = vsel %vm709_vm2, %v13020_v48, 0.0 }
0x15d8   :  { %4794 = vadd.xlane.f32.xlu1 %v4793_v63 }
0x15e1   :  { %v4708_v58 = vpop.xlane.xlu1 %4707 }
0x15e2   :  { %v4732_v59 = vsub.f32 %v12952_v42, %v4708_v58 }
0x15e4   :  { %v4759_v60 = vmul.f32 1.442695, %v4732_v59 }
0x15e5   :  { %v4702_v52 = vpop.xlane.xlu1 %4701 }
0x15e6   :  { %10071 = vpow2.f32 %v4759_v60  ;;  %v4730_v24 = vsub.f32 %v12940_v2, %v4702_v52 }
0x15e8   :  { %v4755_v53 = vmul.f32 1.442695, %v4730_v24 }
0x15e9   :  { %v4720_v42 = vpop.xlane.xlu1 %4719 }
0x15ea   :  { %10073 = vpow2.f32 %v4755_v53 }
0x15ed   :  { %v4714_v2 = vpop.xlane.xlu1 %4713 }
0x15ee   :  { %v4734_v58 = vsub.f32 %v12950_v20, %v4714_v2 }
0x15f0   :  { %v13028_v3 = vpop.eup %10071  ;;  %v4763_v59 = vmul.f32 1.442695, %v4734_v58 }
0x15f1   :  { %v4802_v33 = vsel %vm709_vm2, %v13028_v3, 0.0  ;;  %v13064_v58 = vpop.permute.xlu1 %5150 }
0x15f2   :  { %4803 = vadd.xlane.f32.xlu1 %v4802_v33  ;;  %10075 = vpow2.f32 %v4763_v59  ;;  %v4736_v33 = vsub.f32 %v12948_v9, %v4720_v42 }
0x15f4   :  { %v13032_v30 = vpop.eup %10073  ;;  %v4767_v10 = vmul.f32 1.442695, %v4736_v33 }
0x15f5   :  { %v4796_v7 = vsel %vm709_vm2, %v13032_v30, 0.0 }
0x15f6   :  { %4797 = vadd.xlane.f32.xlu0 %v4796_v7 }
0x15fc   :  { %v4717_v63 = vpop.xlane.xlu0 %4716  ;;  %v13046_v62 = vpop.eup %10075 }
0x15fd   :  { %v4735_v60 = vsub.f32 %v12944_v41, %v4717_v63  ;;  %v4808_v20 = vsel %vm709_vm2, %v13046_v62, 0.0 }
0x15ff   :  { %v4765_v24 = vmul.f32 1.442695, %v4735_v60 }
0x1600   :  { %v4711_v52 = vpop.xlane.xlu0 %4710 }
0x1601   :  { %v4733_v53 = vsub.f32 %v12946_v4, %v4711_v52  ;;  %10077 = vpow2.f32 %v4765_v24 }
0x1603   :  { %5037 = vrot.lane.b32.xlu1 %v12808_v39, %s10421_s22  ;;  %v4761_v7 = vmul.f32 1.442695, %v4733_v53 }
0x1605   :  { %10079 = vpow2.f32 %v4761_v7 }
0x1606   :  { %10081 = vpow2.f32 %v4767_v10 }
0x160b   :  { %v13050_v2 = vpop.eup %10077 }
0x160c   :  { %5035 = vrot.lane.b32.xlu0 %v12810_v27, %s10421_s22  ;;  %v4811_v41 = vsel %vm709_vm2, %v13050_v2, 0.0 }
0x160f   :  { %v13054_v63 = vpop.eup %10079 }
0x1610   :  { %v4805_v4 = vsel %vm709_vm2, %v13054_v63, 0.0  ;;  %v13058_v9 = vpop.eup %10081 }
0x1611   :  { %v4814_v10 = vsel %vm709_vm2, %v13058_v9, 0.0 }
0x1627   :  { %4809 = vadd.xlane.f32.xlu1 %v4808_v20 }
0x162b   :  { %4812 = vadd.xlane.f32.xlu0 %v4811_v41 }
0x162f   :  { %4806 = vadd.xlane.f32.xlu0 %v4805_v4 }
0x1633   :  { %4815 = vadd.xlane.f32.xlu0 %v4814_v10 }
0x1638   :  { %5154 = vrot.lane.b32.xlu1 %v12836_v6, %s10420_s21  ;;  %v4777_v42 = vpop.xlane.xlu0 %4776 }
0x163c   :  { %5142 = vrot.lane.b32.xlu1 %v12826_v15, %s10421_s22  ;;  %v4771_v59 = vpop.xlane.xlu0 %4770 }
0x1640   :  { %v4780_v60 = vpop.xlane.xlu1 %4779  ;;  %5041 = vrot.lane.b32.xlu1 %v12818_v51, %s10421_s22 }
0x1641   :  { %10083 = vrcp.f32 %v4780_v60 }
0x1642   :  { %10085 = vrcp.f32 %v4771_v59 }
0x1643   :  { %10087 = vrcp.f32 %v4777_v42 }
0x1644   :  { %v4774_v52 = vpop.xlane.xlu1 %4773  ;;  %5146 = vrot.lane.b32.xlu1 %v12836_v6, %s10421_s22  ;;  %v4789_v24 = vpop.xlane.xlu0 %4788 }
0x1645   :  { %10089 = vrcp.f32 %v4774_v52 }
0x1648   :  { %v4786_v53 = vpop.xlane.xlu1 %4785  ;;  %5431 = vrot.lane.b32.xlu1 %v12808_v39, %s10422_s23  ;;  %v4783_v33 = vpop.xlane.xlu0 %4782 }
0x1649   :  { %10091 = vrcp.f32 %v4786_v53  ;;  %5152 = vrot.lane.b32.xlu0 %v12838_v34, %s10420_s21 }
0x164a   :  { %10093 = vrcp.f32 %v4783_v33 }
0x164b   :  { %10095 = vrcp.f32 %v4789_v24  ;;  %v10084_v7 = vpop.eup %10083 }
0x164c   :  { %5435 = vrot.lane.b32.xlu1 %v12818_v51, %s10422_s23  ;;  %v4792_v20 = vpop.xlane.xlu0 %4791  ;;  %v10086_v41 = vpop.eup %10085  ;;  %v4836_v42 = vmul.f32 %v10084_v7, %v12990_v32 }
0x164d   :  { %10097 = vrcp.f32 %v4792_v20  ;;  %5140 = vrot.lane.b32.xlu0 %v12828_v12, %s10421_s22  ;;  %v10088_v4 = vpop.eup %10087  ;;  %v4833_v59 = vmul.f32 %v10086_v41, %v12984_v56 }
0x164e   :  { %v4835_v52 = vmul.f32 %v10088_v4, %v12975_v36  ;;  %v5064_v36 = vsel %vm518_vm1, %v12886_v22, 0 }
0x164f   :  { %v10090_v10 = vpop.eup %10089 }
0x1650   :  { %5520 = vrot.lane.b32.xlu1 %v12826_v15, %s10422_s23  ;;  %v4834_v60 = vmul.f32 %v10090_v10, %v12994_v13  ;;  %v4850_v33 = vpack.c.bf16 %v4836_v42, %v4835_v52 }
0x1651   :  { %5039 = vrot.lane.b32.xlu0 %v12820_v11, %s10421_s22 }
0x1652   :  { %v4849_v24 = vpack.c.bf16 %v4834_v60, %v4833_v59 }
0x1653   :  { %v10092_v53 = vpop.eup %10091 }
0x1654   :  { %v10094_v20 = vpop.eup %10093  ;;  %5615 = vrot.lane.b32.xlu1 %v12810_v27, %s10423_s24  ;;  %9020 = vmatprep.mubr.msk.bf16.mxu1 %vm709_vm2, %v4849_v24  ;;  %v4838_v32 = vmul.f32 %v10092_v53, %v13002_v18 }
0x1655   :  { %v10096_v7 = vpop.eup %10095  ;;  %5144 = vrot.lane.b32.xlu0 %v12838_v34, %s10421_s22  ;;  %9021 = vmatmul.mubr.msk.bf16.vlgmr.msra.gmra.mrb[104].mxu1 %vm709_vm2, %v4850_v33  ;;  %v4837_v56 = vmul.f32 %v10094_v20, %v13004_v31  ;;  %v5067_v31 = vsel %vm518_vm1, %v12890_v47, 0 }
0x1656   :  { %9045 = vmatpush3.bf16.xpose.msra.mxu1 %v5064_v36  ;;  %v4839_v18 = vmul.f32 %v10096_v7, %v12996_v40  ;;  %v5070_v40 = vsel %vm518_vm1, %v13038_v54, 0 }
0x1657   :  { %v10098_v13 = vpop.eup %10097  ;;  %9355 = vmatprep.subr.msk.bf16.mxu1 %vm518_vm1, %v12890_v47  ;;  %v4851_v41 = vpack.c.bf16 %v4838_v32, %v4837_v56  ;;  %v5073_v47 = vsel %vm518_vm1, %v13024_v16, 0 }
0x1658   :  { %5522 = vrot.lane.b32.xlu1 %v12838_v34, %s10422_s23  ;;  %v4840_v4 = vmul.f32 %v10098_v13, %v13010_v50  ;;  %v5169_v13 = vsel %vm518_vm1, %v12982_v38, 0 }
0x1659   :  { %9024 = vmatprep.mubr.msk.bf16.mxu1 %vm709_vm2, %v4851_v41  ;;  %5429 = vrot.lane.b32.xlu0 %v12810_v27, %s10422_s23 }
0x165a   :  { %v4852_v22 = vpack.c.bf16 %v4840_v4, %v4839_v18 }
0x165c   :  { %5617 = vrot.lane.b32.xlu1 %v12808_v39, %s10423_s24 }
0x165d   :  { %5433 = vrot.lane.b32.xlu0 %v12820_v11, %s10422_s23  ;;  %9025 = vmatmul.mubr.msk.bf16.gmra.mrb[108].mxu1 %vm709_vm2, %v4852_v22 }
0x165e   :  { %9047 = vmatpush3.bf16.xpose.msra.mxu1 %v5067_v31 }
0x165f   :  { %9356 = vmatprep.subr.msk.bf16.mxu1 %vm518_vm1, %v13038_v54 }
0x1661   :  { %5518 = vrot.lane.b32.xlu0 %v12828_v12, %s10422_s23  ;;  %v4801_v50 = vpop.xlane.xlu1 %4800 }
0x1665   :  { %5524 = vrot.lane.b32.xlu0 %v12836_v6, %s10422_s23  ;;  %v4795_v10 = vpop.xlane.xlu1 %4794 }
0x1666   :  { %9049 = vmatpush3.bf16.xpose.msra.mxu1 %v5070_v40 }
0x1667   :  { %9357 = vmatprep.subr.msk.bf16.mxu1 %vm518_vm1, %v13024_v16 }
0x166e   :  { %9051 = vmatpush3.bf16.xpose.msra.mxu1 %v5073_v47 }
0x167f   :  { %v4804_v42 = vpop.xlane.xlu1 %4803 }
0x1680   :  { %10099 = vrcp.f32 %v4804_v42 }
0x1681   :  { %10101 = vrcp.f32 %v4795_v10 }
0x1682   :  { %10103 = vrcp.f32 %v4801_v50 }
0x1683   :  { %v4798_v59 = vpop.xlane.xlu0 %4797  ;;  %v5038_v52 = vpop.permute.xlu1 %5037 }
0x1684   :  { %10105 = vrcp.f32 %v4798_v59 }
0x1687   :  { %v5036_v60 = vpop.permute.xlu0 %5035 }
0x1688   :  { %9052 = vmatprep.mubr.msk.bf16.mxu1 %vm518_vm1, %v5036_v60 }
0x1689   :  { %9053 = vmatmul.mubr.msk.bf16.vlgmr.msra.gmra.mrb[112].mxu1 %vm518_vm1, %v5038_v52 }
0x168a   :  { %v10100_v54 = vpop.eup %10099 }
0x168b   :  { %v10102_v24 = vpop.eup %10101  ;;  %v4844_v16 = vmul.f32 %v10100_v54, %v13028_v3 }
0x168c   :  { %v10104_v53 = vpop.eup %10103  ;;  %v4841_v20 = vmul.f32 %v10102_v24, %v13020_v48  ;;  %v5172_v48 = vsel %vm518_vm1, %v13064_v58, 0 }
0x168d   :  { %v4843_v7 = vmul.f32 %v10104_v53, %v13016_v43 }
0x168e   :  { %v10106_v33 = vpop.eup %10105 }
0x168f   :  { %v4842_v32 = vmul.f32 %v10106_v33, %v13032_v30  ;;  %v4854_v56 = vpack.c.bf16 %v4844_v16, %v4843_v7 }
0x1691   :  { %v4853_v36 = vpack.c.bf16 %v4842_v32, %v4841_v20 }
0x1693   :  { %9036 = vmatprep.mubr.msk.bf16.mxu0 %vm709_vm2, %v4853_v36 }
0x1694   :  { %9037 = vmatmul.mubr.msk.bf16.vlgmr.msra.gmra.mrb[124].mxu0 %vm709_vm2, %v4854_v56 }
0x1695   :  { %9061 = vmatpush3.bf16.xpose.msra.mxu0 %v5169_v13 }
0x1696   :  { %9359 = vmatprep.subr.msk.bf16.mxu0 %vm518_vm1, %v13064_v58 }
0x169d   :  { %9063 = vmatpush3.bf16.xpose.msra.mxu0 %v5172_v48 }
0x16b4   :  { %v4810_v3 = vpop.xlane.xlu1 %4809 }
0x16b5   :  { %10107 = vrcp.f32 %v4810_v3 }
0x16b8   :  { %v5155_v30 = vpop.permute.xlu1 %5154  ;;  %v4813_v43 = vpop.xlane.xlu0 %4812 }
0x16b9   :  { %v5178_v16 = vsel %vm518_vm1, %v5155_v30, 0 }
0x16bc   :  { %v5143_v41 = vpop.permute.xlu1 %5142  ;;  %v4807_v18 = vpop.xlane.xlu0 %4806 }
0x16bd   :  { %10109 = vrcp.f32 %v4807_v18 }
0x16be   :  { %10111 = vrcp.f32 %v4813_v43 }
0x16bf   :  { %v10108_v40 = vpop.eup %10107 }
0x16c0   :  { %v5042_v4 = vpop.permute.xlu1 %5041  ;;  %v4816_v22 = vpop.xlane.xlu0 %4815  ;;  %v4846_v42 = vmul.f32 %v10108_v40, %v13046_v62  ;;  %v4041_v40 = vld [vmem:[#allocation2 + $0x140] sm:$0xff] }
0x16c1   :  { %10113 = vrcp.f32 %v4816_v22 }
0x16c4   :  { %v5147_v38 = vpop.permute.xlu1 %5146  ;;  %v5153_v31 = vpop.permute.xlu0 %5152 }
0x16c5   :  { %9360 = vmatprep.subr.msk.bf16.mxu0 %vm518_vm1, %v5153_v31  ;;  %v5175_v47 = vsel %vm518_vm1, %v5153_v31, 0 }
0x16c6   :  { %9065 = vmatpush3.bf16.xpose.msra.mxu0 %v5175_v47 }
0x16c7   :  { %v10110_v58 = vpop.eup %10109  ;;  %9361 = vmatprep.subr.msk.bf16.mxu0 %vm518_vm1, %v5155_v30 }
0x16c8   :  { %v5141_v50 = vpop.permute.xlu0 %5140  ;;  %v4845_v10 = vmul.f32 %v10110_v58, %v13054_v63  ;;  %v10112_v59 = vpop.eup %10111 }
0x16c9   :  { %v5432_v60 = vpop.permute.xlu1 %5431  ;;  %v4847_v53 = vmul.f32 %v10112_v59, %v13050_v2 }
0x16ca   :  { %v4855_v52 = vpack.c.bf16 %v4846_v42, %v4845_v10 }
0x16cb   :  { %v10114_v54 = vpop.eup %10113 }
0x16cc   :  { %9040 = vmatprep.mubr.msk.bf16.mxu0 %vm709_vm2, %v4855_v52  ;;  %v5040_v24 = vpop.permute.xlu0 %5039  ;;  %v4848_v33 = vmul.f32 %v10114_v54, %v13058_v9  ;;  %v4044_v52 = vld [vmem:[#allocation2 + $0x158] sm:$0xff] }
0x16cd   :  { %9056 = vmatprep.mubr.msk.bf16.mxu1 %vm518_vm1, %v5040_v24  ;;  %v5436_v62 = vpop.permute.xlu1 %5435 }
0x16ce   :  { %9057 = vmatmul.mubr.msk.bf16.gmra.mrb[116].mxu1 %vm518_vm1, %v5042_v4  ;;  %9067 = vmatpush3.bf16.xpose.msra.mxu0 %v5178_v16  ;;  %v4856_v63 = vpack.c.bf16 %v4848_v33, %v4847_v53 }
0x16d0   :  { %9041 = vmatmul.mubr.msk.bf16.gmra.mrb[128].mxu0 %vm709_vm2, %v4856_v63  ;;  %v5145_v20 = vpop.permute.xlu0 %5144 }
0x16d1   :  { %9068 = vmatprep.mubr.msk.bf16.mxu0 %vm518_vm1, %v5141_v50  ;;  %v5521_v7 = vpop.permute.xlu1 %5520  ;;  %v13178_v50 = vld [vmem:[#allocation2 + $0x148] sm:$0xff] }
0x16d4   :  { %v5430_v32 = vpop.permute.xlu0 %5429 }
0x16d5   :  { %9076 = vmatprep.subr.bf16.mxu1 %v5430_v32  ;;  %v13155_v9 = vpop.permute.xlu1 %5615 }
0x16d6   :  { %9077 = vmatpush3.bf16.msra.mxu1 %v5430_v32 }
0x16d7   :  { %9078 = vmatprep.subr.bf16.mxu1 %v5432_v60 }
0x16d8   :  { %9069 = vmatmul.mubr.msk.bf16.vlgmr.msra.gmra.mrb[132].mxu0 %vm518_vm1, %v5143_v41  ;;  %v5434_v2 = vpop.permute.xlu0 %5433 }
0x16d9   :  { %9072 = vmatprep.mubr.msk.bf16.mxu0 %vm518_vm1, %v5145_v20  ;;  %v5523_v56 = vpop.permute.xlu1 %5522 }
0x16da   :  { %9079 = vmatpush3.bf16.msra.mxu1 %v5432_v60 }
0x16db   :  { %9080 = vmatprep.subr.bf16.mxu1 %v5434_v2 }
0x16dc   :  { %v5519_v36 = vpop.permute.xlu0 %5518 }
0x16dd   :  { %9092 = vmatprep.subr.bf16.mxu0 %v5519_v36 }
0x16de   :  { %9081 = vmatpush3.bf16.msra.mxu1 %v5434_v2  ;;  %9093 = vmatpush3.bf16.msra.mxu0 %v5519_v36  ;;  %v4045_v36 = vld [vmem:[#allocation2 + $0x160] sm:$0xff] }
0x16df   :  { %9082 = vmatprep.subr.bf16.mxu1 %v5436_v62  ;;  %9094 = vmatprep.subr.bf16.mxu0 %v5521_v7 }
0x16e0   :  { %9073 = vmatmul.mubr.msk.bf16.gmra.mrb[136].mxu0 %vm518_vm1, %v5147_v38  ;;  %v5525_v13 = vpop.permute.xlu0 %5524  ;;  %v4043_v38 = vld [vmem:[#allocation2 + $0x150] sm:$0xff] }
0x16e2   :  { %9083 = vmatpush3.bf16.msra.mxu1 %v5436_v62  ;;  %9095 = vmatpush3.bf16.msra.mxu0 %v5521_v7  ;;  %v4047_v7 = vld [vmem:[#allocation2 + $0x170] sm:$0xff] }
0x16e3   :  { %9096 = vmatprep.subr.bf16.mxu0 %v5523_v56  ;;  %9362 = vmatprep.subr.msk.bf16.mxu1 %vm518_vm1, %v13155_v9 }
0x16e6   :  { %9097 = vmatpush3.bf16.msra.mxu0 %v5523_v56  ;;  %v4048_v56 = vld [vmem:[#allocation2 + $0x178] sm:$0xff] }
0x16e7   :  { %9098 = vmatprep.subr.bf16.mxu0 %v5525_v13 }
0x16ea   :  { %9099 = vmatpush3.bf16.msra.mxu0 %v5525_v13 }
0x1728   :  { %v13160_v48 = vpop.f32.mrb[104].mxu1 }
0x1729   :  { %14741 = vst [vmem:[#allocation24_spill] sm:$0xff] %v13160_v48  ;;  %v13162_v3 = vpop.f32.mrb[105].mxu1 }
0x172a   :  { %14742 = vst [vmem:[#allocation25_spill] sm:$0xff] %v13162_v3  ;;  %v13164_v30 = vpop.f32.mrb[106].mxu1 }
0x172b   :  { %14743 = vst [vmem:[#allocation26_spill] sm:$0xff] %v13164_v30  ;;  %v13166_v43 = vpop.f32.mrb[107].mxu1 }
0x172c   :  { %14744 = vst [vmem:[#allocation27_spill] sm:$0xff] %v13166_v43 }
0x1730   :  { %v13168_v41 = vpop.f32.mrb[108].mxu1 }
0x1731   :  { %14745 = vst [vmem:[#allocation28_spill] sm:$0xff] %v13168_v41  ;;  %v13170_v18 = vpop.f32.mrb[109].mxu1 }
0x1732   :  { %14746 = vst [vmem:[#allocation29_spill] sm:$0xff] %v13170_v18  ;;  %v13172_v4 = vpop.f32.mrb[110].mxu1 }
0x1733   :  { %14747 = vst [vmem:[#allocation30_spill] sm:$0xff] %v13172_v4  ;;  %v13174_v22 = vpop.f32.mrb[111].mxu1 }
0x1734   :  { %14748 = vst [vmem:[#allocation31_spill] sm:$0xff] %v13174_v22 }
0x175c   :  { %v9054_v31 = vpop.f32.mrb[112].mxu1 }
0x175d   :  { %v13176_v47 = vadd.f32 %v9054_v31, %v4043_v38  ;;  %v5109_v58 = vpop.f32.mrb[113].mxu1 }
0x175e   :  { %v9055_v10 = vpop.f32.mrb[114].mxu1  ;;  %v13180_v42 = vadd.f32 %v5109_v58, %v4041_v40 }
0x175f   :  { %v5112_v59 = vpop.f32.mrb[115].mxu1  ;;  %v5251_v60 = vsel %vm709_vm2, %v13176_v47, -inf  ;;  %v13189_v53 = vadd.f32 %v9055_v10, %v4044_v52 }
0x1760   :  { %v13185_v54 = vadd.f32 %v5112_v59, %v13178_v50  ;;  %5252 = vmax.xlane.f32.xlu0 %v5251_v60  ;;  %v5245_v33 = vsel %vm709_vm2, %v13180_v42, -inf  ;;  %v4046_v59 = vld [vmem:[#allocation2 + $0x168] sm:$0xff] }
0x1761   :  { %v5254_v63 = vsel %vm709_vm2, %v13189_v53, -inf }
0x1762   :  { %v5248_v24 = vsel %vm709_vm2, %v13185_v54, -inf }
0x1763   :  { %5249 = vmax.xlane.f32.xlu1 %v5248_v24 }
0x1764   :  { %5246 = vmax.xlane.f32.xlu0 %v5245_v33 }
0x1767   :  { %v13193_v16 = vpop.f32.mrb[124].mxu0 }
0x1768   :  { %14749 = vst [vmem:[#allocation32_spill] sm:$0xff] %v13193_v16  ;;  %v13197_v62 = vpop.f32.mrb[125].mxu0  ;;  %5255 = vmax.xlane.f32.xlu0 %v5254_v63 }
0x1769   :  { %14750 = vst [vmem:[#allocation33_spill] sm:$0xff] %v13197_v62  ;;  %v13199_v20 = vpop.f32.mrb[126].mxu0 }
0x176a   :  { %14751 = vst [vmem:[#allocation34_spill] sm:$0xff] %v13199_v20  ;;  %v13201_v32 = vpop.f32.mrb[127].mxu0 }
0x176b   :  { %14752 = vst [vmem:[#allocation35_spill] sm:$0xff] %v13201_v32 }
0x17a1   :  { %v9058_v2 = vpop.f32.mrb[116].mxu1 }
0x17a2   :  { %v13203_v13 = vadd.f32 %v9058_v2, %v4047_v7  ;;  %v5125_v31 = vpop.f32.mrb[117].mxu1 }
0x17a3   :  { %v13205_v58 = vpop.f32.mrb[128].mxu0  ;;  %v9059_v10 = vpop.f32.mrb[118].mxu1  ;;  %v13207_v60 = vadd.f32 %v5125_v31, %v4045_v36 }
0x17a4   :  { %14753 = vst [vmem:[#allocation36_spill] sm:$0xff] %v13205_v58  ;;  %v13209_v24 = vadd.f32 %v9059_v10, %v4048_v56  ;;  %v13211_v33 = vpop.f32.mrb[129].mxu0  ;;  %v5128_v63 = vpop.f32.mrb[119].mxu1  ;;  %v5263_v46 = vsel %vm709_vm2, %v13203_v13, -inf }
0x17a5   :  { %14754 = vst [vmem:[#allocation37_spill] sm:$0xff] %v13211_v33  ;;  %v13215_v37 = vpop.f32.mrb[130].mxu0  ;;  %5264 = vmax.xlane.f32.xlu0 %v5263_v46  ;;  %v13217_v2 = vadd.f32 %v5128_v63, %v4046_v59  ;;  %v5257_v31 = vsel %vm709_vm2, %v13207_v60, -inf }
0x17a6   :  { %14755 = vst [vmem:[#allocation38_spill] sm:$0xff] %v13215_v37  ;;  %v13219_v35 = vpop.f32.mrb[131].mxu0  ;;  %v5266_v17 = vsel %vm709_vm2, %v13209_v24, -inf }
0x17a7   :  { %14756 = vst [vmem:[#allocation39_spill] sm:$0xff] %v13219_v35  ;;  %5267 = vmax.xlane.f32.xlu1 %v5266_v17  ;;  %v5260_v10 = vsel %vm709_vm2, %v13217_v2, -inf }
0x17a9   :  { %5258 = vmax.xlane.f32.xlu0 %v5257_v31 }
0x17ab   :  { %v9070_v55 = vpop.f32.mrb[132].mxu0  ;;  %5261 = vmax.xlane.f32.xlu1 %v5260_v10 }
0x17ac   :  { %v13227_v57 = vadd.f32 %v9070_v55, %v4043_v38  ;;  %v5214_v46 = vpop.f32.mrb[133].mxu0 }
0x17ad   :  { %v9071_v63 = vpop.f32.mrb[134].mxu0  ;;  %v13229_v5 = vadd.f32 %v5214_v46, %v4041_v40 }
0x17ae   :  { %v5217_v45 = vpop.f32.mrb[135].mxu0  ;;  %v5275_v19 = vsel %vm709_vm2, %v13227_v57, -inf }
0x17af   :  { %5276 = vmax.xlane.f32.xlu0 %v5275_v19  ;;  %v5269_v17 = vsel %vm709_vm2, %v13229_v5, -inf  ;;  %v13249_v19 = vadd.f32 %v9071_v63, %v4044_v52 }
0x17b3   :  { %5270 = vmax.xlane.f32.xlu0 %v5269_v17  ;;  %v9074_v31 = vpop.f32.mrb[136].mxu0 }
0x17b4   :  { %v13235_v8 = vadd.f32 %v9074_v31, %v4047_v7  ;;  %v5230_v28 = vpop.f32.mrb[137].mxu0  ;;  %v5278_v7 = vsel %vm709_vm2, %v13249_v19, -inf }
0x17b5   :  { %v13237_v10 = vadd.f32 %v5230_v28, %v4045_v36  ;;  %v9075_v55 = vpop.f32.mrb[138].mxu0  ;;  %v13252_v28 = vadd.f32 %v5217_v45, %v13178_v50 }
0x17b6   :  { %v13239_v38 = vadd.f32 %v9075_v55, %v4048_v56  ;;  %v5233_v40 = vpop.f32.mrb[139].mxu0  ;;  %v5287_v56 = vsel %vm709_vm2, %v13235_v8, -inf }
0x17b7   :  { %v13241_v46 = vadd.f32 %v5233_v40, %v4046_v59  ;;  %v5272_v36 = vsel %vm709_vm2, %v13252_v28, -inf  ;;  %v5281_v52 = vsel %vm709_vm2, %v13237_v10, -inf }
0x17b8   :  { %v5290_v59 = vsel %vm709_vm2, %v13239_v38, -inf }
0x17b9   :  { %v5284_v63 = vsel %vm709_vm2, %v13241_v46, -inf }
0x17bc   :  { %5720 = vrot.lane.b32.xlu1 %v12828_v12, %s10423_s24 }
0x17c0   :  { %5621 = vrot.lane.b32.xlu1 %v12818_v51, %s10423_s24 }
0x17c9   :  { %5619 = vrot.lane.b32.xlu0 %v12820_v11, %s10423_s24 }
0x17e4   :  { %5279 = vmax.xlane.f32.xlu1 %v5278_v7 }
0x17e8   :  { %5273 = vmax.xlane.f32.xlu1 %v5272_v36  ;;  %5288 = vmax.xlane.f32.xlu0 %v5287_v56 }
0x17ec   :  { %5291 = vmax.xlane.f32.xlu1 %v5290_v59  ;;  %5282 = vmax.xlane.f32.xlu0 %v5281_v52  ;;  %v13278_v59 = vpop.permute.xlu1 %5617 }
0x17ed   :  { %v5253_v45 = vpop.xlane.xlu0 %5252 }
0x17ee   :  { %v5295_v50 = vsub.f32 %v13176_v47, %v5253_v45 }
0x17f0   :  { %v5313_v17 = vmul.f32 1.442695, %v5295_v50  ;;  %5285 = vmax.xlane.f32.xlu1 %v5284_v63  ;;  %v5250_v45 = vpop.xlane.xlu1 %5249 }
0x17f1   :  { %v5247_v31 = vpop.xlane.xlu0 %5246  ;;  %v5294_v50 = vsub.f32 %v13185_v54, %v5250_v45 }
0x17f2   :  { %10115 = vpow2.f32 %v5313_v17  ;;  %v5293_v55 = vsub.f32 %v13180_v42, %v5247_v31 }
0x17f3   :  { %v5311_v17 = vmul.f32 1.442695, %v5294_v50 }
0x17f4   :  { %v5309_v40 = vmul.f32 1.442695, %v5293_v55 }
0x17f5   :  { %v5256_v42 = vpop.xlane.xlu0 %5255 }
0x17f6   :  { %10117 = vpow2.f32 %v5309_v40  ;;  %v5296_v52 = vsub.f32 %v13189_v53, %v5256_v42 }
0x17f8   :  { %v5315_v63 = vmul.f32 1.442695, %v5296_v52 }
0x17fa   :  { %10119 = vpow2.f32 %v5315_v63 }
0x17fb   :  { %10121 = vpow2.f32 %v5311_v17 }
0x17fc   :  { %v13268_v7 = vpop.eup %10115 }
0x17fd   :  { %v5347_v36 = vsel %vm709_vm2, %v13268_v7, 0.0 }
0x17fe   :  { %5348 = vadd.xlane.f32.xlu0 %v5347_v36 }
0x1800   :  { %v13272_v56 = vpop.eup %10117 }
0x1801   :  { %5722 = vrot.lane.b32.xlu1 %v12826_v15, %s10423_s24  ;;  %v5341_v47 = vsel %vm709_vm2, %v13272_v56, 0.0 }
0x1802   :  { %5342 = vadd.xlane.f32.xlu0 %v5341_v47 }
0x1804   :  { %v13282_v31 = vpop.eup %10119 }
0x1805   :  { %v5350_v55 = vsel %vm709_vm2, %v13282_v31, 0.0  ;;  %v13286_v40 = vpop.eup %10121 }
0x1806   :  { %v5344_v36 = vsel %vm709_vm2, %v13286_v40, 0.0 }
0x1825   :  { %5351 = vadd.xlane.f32.xlu1 %v5350_v55 }
0x1829   :  { %5345 = vadd.xlane.f32.xlu1 %v5344_v36 }
0x1832   :  { %v5265_v53 = vpop.xlane.xlu0 %5264 }
0x1833   :  { %v5299_v47 = vsub.f32 %v13203_v13, %v5265_v53 }
0x1834   :  { %v5268_v54 = vpop.xlane.xlu1 %5267 }
0x1835   :  { %v5321_v42 = vmul.f32 1.442695, %v5299_v47  ;;  %v5300_v52 = vsub.f32 %v13209_v24, %v5268_v54 }
0x1836   :  { %v5259_v45 = vpop.xlane.xlu0 %5258 }
0x1837   :  { %10123 = vpow2.f32 %v5321_v42  ;;  %v5297_v50 = vsub.f32 %v13207_v60, %v5259_v45  ;;  %v5323_v63 = vmul.f32 1.442695, %v5300_v52 }
0x1838   :  { %v5262_v17 = vpop.xlane.xlu1 %5261 }
0x1839   :  { %v5317_v14 = vmul.f32 1.442695, %v5297_v50  ;;  %v5298_v55 = vsub.f32 %v13217_v2, %v5262_v17 }
0x183b   :  { %10125 = vpow2.f32 %v5317_v14  ;;  %v5319_v29 = vmul.f32 1.442695, %v5298_v55 }
0x183c   :  { %10127 = vpow2.f32 %v5323_v63  ;;  %v13294_v36 = vpop.permute.xlu1 %5720  ;;  %v5277_v49 = vpop.xlane.xlu0 %5276 }
0x183d   :  { %10129 = vpow2.f32 %v5319_v29  ;;  %v5303_v13 = vsub.f32 %v13227_v57, %v5277_v49  ;;  %9366 = vmatprep.subr.msk.bf16.mxu0 %vm518_vm1, %v13294_v36 }
0x183f   :  { %v5329_v24 = vmul.f32 1.442695, %v5303_v13 }
0x1840   :  { %v5271_v53 = vpop.xlane.xlu0 %5270  ;;  %v13324_v17 = vpop.permute.xlu1 %5621 }
0x1841   :  { %v13299_v60 = vpop.eup %10123  ;;  %10131 = vpow2.f32 %v5329_v24  ;;  %v5301_v47 = vsub.f32 %v13229_v5, %v5271_v53 }
0x1842   :  { %v5359_v14 = vsel %vm709_vm2, %v13299_v60, 0.0 }
0x1843   :  { %v5325_v2 = vmul.f32 1.442695, %v5301_v47  ;;  %5360 = vadd.xlane.f32.xlu0 %v5359_v14 }
0x1845   :  { %v13304_v54 = vpop.eup %10125  ;;  %10133 = vpow2.f32 %v5325_v2 }
0x1846   :  { %v13306_v29 = vpop.eup %10127  ;;  %v5353_v49 = vsel %vm709_vm2, %v13304_v54, 0.0 }
0x1847   :  { %v13310_v57 = vpop.eup %10129  ;;  %5354 = vadd.xlane.f32.xlu0 %v5353_v49  ;;  %v5362_v5 = vsel %vm709_vm2, %v13306_v29, 0.0 }
0x1848   :  { %v5356_v42 = vsel %vm709_vm2, %v13310_v57, 0.0 }
0x1849   :  { %5357 = vadd.xlane.f32.xlu1 %v5356_v42 }
0x184b   :  { %v13316_v52 = vpop.eup %10131  ;;  %5363 = vadd.xlane.f32.xlu0 %v5362_v5 }
0x184c   :  { %v5371_v45 = vsel %vm709_vm2, %v13316_v52, 0.0 }
0x184d   :  { %5372 = vadd.xlane.f32.xlu1 %v5371_v45  ;;  %v13338_v45 = vpop.permute.xlu0 %5619 }
0x184f   :  { %v13320_v50 = vpop.eup %10133 }
0x1850   :  { %v5365_v63 = vsel %vm709_vm2, %v13320_v50, 0.0 }
0x1851   :  { %5366 = vadd.xlane.f32.xlu1 %v5365_v63 }
0x1871   :  { %v5280_v55 = vpop.xlane.xlu1 %5279 }
0x1872   :  { %v5304_v13 = vsub.f32 %v13249_v19, %v5280_v55 }
0x1874   :  { %v5331_v24 = vmul.f32 1.442695, %v5304_v13 }
0x1875   :  { %v5274_v53 = vpop.xlane.xlu1 %5273  ;;  %v5289_v63 = vpop.xlane.xlu0 %5288 }
0x1876   :  { %10135 = vpow2.f32 %v5331_v24  ;;  %v5302_v47 = vsub.f32 %v13252_v28, %v5274_v53  ;;  %v5307_v13 = vsub.f32 %v13235_v8, %v5289_v63 }
0x1878   :  { %v5327_v14 = vmul.f32 1.442695, %v5302_v47  ;;  %v5337_v47 = vmul.f32 1.442695, %v5307_v13 }
0x1879   :  { %v5292_v19 = vpop.xlane.xlu1 %5291  ;;  %v5283_v53 = vpop.xlane.xlu0 %5282 }
0x187a   :  { %10137 = vpow2.f32 %v5327_v14  ;;  %v5305_v14 = vsub.f32 %v13237_v10, %v5283_v53 }
0x187c   :  { %v5333_v25 = vmul.f32 1.442695, %v5305_v14 }
0x187d   :  { %v5286_v28 = vpop.xlane.xlu1 %5285 }
0x187e   :  { %v5306_v55 = vsub.f32 %v13241_v46, %v5286_v28 }
0x1880   :  { %v13328_v2 = vpop.eup %10135  ;;  %v5335_v24 = vmul.f32 1.442695, %v5306_v55 }
0x1881   :  { %v5374_v49 = vsel %vm709_vm2, %v13328_v2, 0.0  ;;  %v13346_v21 = vpop.permute.xlu1 %5722 }
0x1882   :  { %5375 = vadd.xlane.f32.xlu1 %v5374_v49  ;;  %10139 = vpow2.f32 %v5335_v24  ;;  %v5308_v49 = vsub.f32 %v13239_v38, %v5292_v19 }
0x1883   :  { %10141 = vpow2.f32 %v5337_v47 }
0x1884   :  { %v13332_v42 = vpop.eup %10137  ;;  %v5339_v26 = vmul.f32 1.442695, %v5308_v49  ;;  %10143 = vpow2.f32 %v5333_v25 }
0x1885   :  { %v5368_v5 = vsel %vm709_vm2, %v13332_v42, 0.0 }
0x1886   :  { %5369 = vadd.xlane.f32.xlu0 %v5368_v5  ;;  %10145 = vpow2.f32 %v5339_v26 }
0x188b   :  { %v5349_v5 = vpop.xlane.xlu0 %5348 }
0x188c   :  { %v13348_v46 = vpop.eup %10139 }
0x188d   :  { %v5380_v10 = vsel %vm709_vm2, %v13348_v46, 0.0  ;;  %v13352_v38 = vpop.eup %10141 }
0x188e   :  { %v5383_v19 = vsel %vm709_vm2, %v13352_v38, 0.0  ;;  %v13356_v25 = vpop.eup %10143 }
0x188f   :  { %v5343_v44 = vpop.xlane.xlu0 %5342 }
0x1890   :  { %v13358_v28 = vpop.eup %10145 }
0x1891   :  { %v5386_v24 = vsel %vm709_vm2, %v13358_v28, 0.0 }
0x1893   :  { %5609 = vrot.lane.b32.xlu1 %v12808_v39, %s10424_s25 }
0x189c   :  { %5607 = vrot.lane.b32.xlu0 %v12810_v27, %s10424_s25 }
0x18b2   :  { %v5352_v0 = vpop.xlane.xlu1 %5351 }
0x18b3   :  { %10147 = vrcp.f32 %v5352_v0  ;;  %v5377_v0 = vsel %vm709_vm2, %v13356_v25, 0.0 }
0x18b4   :  { %10149 = vrcp.f32 %v5343_v44 }
0x18b5   :  { %10151 = vrcp.f32 %v5349_v5 }
0x18b6   :  { %v5346_v8 = vpop.xlane.xlu1 %5345 }
0x18b7   :  { %10153 = vrcp.f32 %v5346_v8  ;;  %5381 = vadd.xlane.f32.xlu1 %v5380_v10  ;;  %v5636_v8 = vsel %vm518_vm1, %v13155_v9, 0 }
0x18bb   :  { %5384 = vadd.xlane.f32.xlu0 %v5383_v19 }
0x18bd   :  { %v10148_v26 = vpop.eup %10147 }
0x18be   :  { %v10150_v44 = vpop.eup %10149  ;;  %v5408_v13 = vmul.f32 %v10148_v26, %v13282_v31 }
0x18bf   :  { %5378 = vadd.xlane.f32.xlu0 %v5377_v0  ;;  %v10152_v63 = vpop.eup %10151  ;;  %v5405_v53 = vmul.f32 %v10150_v44, %v13272_v56 }
0x18c0   :  { %v5407_v14 = vmul.f32 %v10152_v63, %v13268_v7  ;;  %v5639_v7 = vsel %vm518_vm1, %v13278_v59, 0 }
0x18c1   :  { %v10154_v55 = vpop.eup %10153 }
0x18c2   :  { %v5406_v47 = vmul.f32 %v10154_v55, %v13286_v40  ;;  %v5422_v5 = vpack.c.bf16 %v5408_v13, %v5407_v14  ;;  %v5642_v40 = vsel %vm518_vm1, %v13338_v45, 0 }
0x18c3   :  { %5387 = vadd.xlane.f32.xlu0 %v5386_v24 }
0x18c4   :  { %v5421_v49 = vpack.c.bf16 %v5406_v47, %v5405_v53 }
0x18c6   :  { %9084 = vmatprep.mubr.msk.bf16.mxu1 %vm709_vm2, %v5421_v49 }
0x18c7   :  { %9085 = vmatmul.mubr.msk.bf16.vlgmr.msra.gmra.mrb[120].mxu1 %vm709_vm2, %v5422_v5 }
0x18c8   :  { %9109 = vmatpush3.bf16.xpose.msra.mxu1 %v5636_v8  ;;  %5726 = vrot.lane.b32.xlu1 %v12836_v6, %s10423_s24 }
0x18c9   :  { %9363 = vmatprep.subr.msk.bf16.mxu1 %vm518_vm1, %v13278_v59 }
0x18cc   :  { %5714 = vrot.lane.b32.xlu1 %v12826_v15, %s10424_s25 }
0x18d0   :  { %9111 = vmatpush3.bf16.xpose.msra.mxu1 %v5639_v7  ;;  %5613 = vrot.lane.b32.xlu1 %v12818_v51, %s10424_s25  ;;  %v5361_v56 = vpop.xlane.xlu0 %5360 }
0x18d1   :  { %9364 = vmatprep.subr.msk.bf16.mxu1 %vm518_vm1, %v13338_v45  ;;  %v5645_v45 = vsel %vm518_vm1, %v13324_v17, 0 }
0x18d4   :  { %5718 = vrot.lane.b32.xlu1 %v12836_v6, %s10424_s25  ;;  %v5355_v9 = vpop.xlane.xlu0 %5354 }
0x18d5   :  { %10155 = vrcp.f32 %v5355_v9 }
0x18d6   :  { %10157 = vrcp.f32 %v5361_v56  ;;  %v5358_v31 = vpop.xlane.xlu1 %5357 }
0x18d7   :  { %10159 = vrcp.f32 %v5358_v31 }
0x18d8   :  { %9113 = vmatpush3.bf16.xpose.msra.mxu1 %v5642_v40  ;;  %6003 = vrot.lane.b32.xlu1 %v12808_v39, %s10425_s26  ;;  %v5364_v59 = vpop.xlane.xlu0 %5363 }
0x18d9   :  { %9365 = vmatprep.subr.msk.bf16.mxu1 %vm518_vm1, %v13324_v17  ;;  %10161 = vrcp.f32 %v5364_v59  ;;  %5724 = vrot.lane.b32.xlu0 %v12838_v34, %s10423_s24 }
0x18dc   :  { %6007 = vrot.lane.b32.xlu1 %v12818_v51, %s10425_s26 }
0x18dd   :  { %5712 = vrot.lane.b32.xlu0 %v12828_v12, %s10424_s25 }
0x18df   :  { %v10156_v10 = vpop.eup %10155 }
0x18e0   :  { %v10158_v19 = vpop.eup %10157  ;;  %9115 = vmatpush3.bf16.xpose.msra.mxu1 %v5645_v45  ;;  %6092 = vrot.lane.b32.xlu1 %v12826_v15, %s10425_s26  ;;  %v5409_v0 = vmul.f32 %v10156_v10, %v13304_v54  ;;  %v5741_v10 = vsel %vm518_vm1, %v13294_v36, 0 }
0x18e1   :  { %v10160_v26 = vpop.eup %10159  ;;  %5611 = vrot.lane.b32.xlu0 %v12820_v11, %s10424_s25  ;;  %v5411_v17 = vmul.f32 %v10158_v19, %v13299_v60  ;;  %v5373_v60 = vpop.xlane.xlu1 %5372 }
0x18e2   :  { %v5410_v44 = vmul.f32 %v10160_v26, %v13310_v57 }
0x18e3   :  { %v10162_v63 = vpop.eup %10161 }
0x18e4   :  { %6187 = vrot.lane.b32.xlu1 %v12810_v27, %s10426_s27  ;;  %v5423_v55 = vpack.c.bf16 %v5410_v44, %v5409_v0  ;;  %v5412_v13 = vmul.f32 %v10162_v63, %v13306_v29 }
0x18e5   :  { %5716 = vrot.lane.b32.xlu0 %v12838_v34, %s10424_s25  ;;  %v5367_v54 = vpop.xlane.xlu1 %5366 }
0x18e6   :  { %9088 = vmatprep.mubr.msk.bf16.mxu1 %vm709_vm2, %v5423_v55  ;;  %v5424_v24 = vpack.c.bf16 %v5412_v13, %v5411_v17 }
0x18e8   :  { %6094 = vrot.lane.b32.xlu1 %v12838_v34, %s10425_s26  ;;  %9089 = vmatmul.mubr.msk.bf16.gmra.mrb[124].mxu1 %vm709_vm2, %v5424_v24 }
0x18e9   :  { %6001 = vrot.lane.b32.xlu0 %v12810_v27, %s10425_s26 }
0x18ec   :  { %6189 = vrot.lane.b32.xlu1 %v12808_v39, %s10426_s27 }
0x18ed   :  { %6005 = vrot.lane.b32.xlu0 %v12820_v11, %s10425_s26 }
0x18f0   :  { %6292 = vrot.lane.b32.xlu1 %v12828_v12, %s10426_s27 }
0x18f1   :  { %6090 = vrot.lane.b32.xlu0 %v12828_v12, %s10425_s26 }
0x18f4   :  { %6193 = vrot.lane.b32.xlu1 %v12818_v51, %s10426_s27 }
0x18f5   :  { %6096 = vrot.lane.b32.xlu0 %v12836_v6, %s10425_s26 }
0x18f8   :  { %6294 = vrot.lane.b32.xlu1 %v12826_v15, %s10426_s27 }
0x18f9   :  { %6191 = vrot.lane.b32.xlu0 %v12820_v11, %s10426_s27 }
0x190f   :  { %v5376_v29 = vpop.xlane.xlu1 %5375 }
0x1910   :  { %10163 = vrcp.f32 %v5376_v29 }
0x1911   :  { %10165 = vrcp.f32 %v5367_v54 }
0x1912   :  { %10167 = vrcp.f32 %v5373_v60 }
0x1913   :  { %v5370_v57 = vpop.xlane.xlu0 %5369  ;;  %v5610_v47 = vpop.permute.xlu1 %5609 }
0x1914   :  { %10169 = vrcp.f32 %v5370_v57 }
0x1917   :  { %v5608_v53 = vpop.permute.xlu0 %5607 }
0x1918   :  { %9116 = vmatprep.mubr.msk.bf16.mxu1 %vm518_vm1, %v5608_v53 }
0x1919   :  { %9117 = vmatmul.mubr.msk.bf16.vlgmr.msra.gmra.mrb[128].mxu1 %vm518_vm1, %v5610_v47 }
0x191a   :  { %v10164_v14 = vpop.eup %10163 }
0x191b   :  { %v10166_v49 = vpop.eup %10165  ;;  %v5416_v7 = vmul.f32 %v10164_v14, %v13328_v2 }
0x191c   :  { %v10168_v5 = vpop.eup %10167  ;;  %v5413_v56 = vmul.f32 %v10166_v49, %v13320_v50  ;;  %v5744_v50 = vsel %vm518_vm1, %v13346_v21, 0 }
0x191d   :  { %v5415_v31 = vmul.f32 %v10168_v5, %v13316_v52 }
0x191e   :  { %v10170_v8 = vpop.eup %10169 }
0x191f   :  { %v5414_v9 = vmul.f32 %v10170_v8, %v13332_v42  ;;  %v5426_v59 = vpack.c.bf16 %v5416_v7, %v5415_v31 }
0x1921   :  { %v5425_v40 = vpack.c.bf16 %v5414_v9, %v5413_v56 }
0x1923   :  { %9100 = vmatprep.mubr.msk.bf16.mxu0 %vm709_vm2, %v5425_v40 }
0x1924   :  { %9101 = vmatmul.mubr.msk.bf16.vlgmr.msra.gmra.mrb[140].mxu0 %vm709_vm2, %v5426_v59 }
0x1925   :  { %9125 = vmatpush3.bf16.xpose.msra.mxu0 %v5741_v10 }
0x1926   :  { %9367 = vmatprep.subr.msk.bf16.mxu0 %vm518_vm1, %v13346_v21 }
0x192d   :  { %9127 = vmatpush3.bf16.xpose.msra.mxu0 %v5744_v50 }
0x1944   :  { %v5382_v2 = vpop.xlane.xlu1 %5381 }
0x1945   :  { %10171 = vrcp.f32 %v5382_v2 }
0x1948   :  { %v5727_v42 = vpop.permute.xlu1 %5726  ;;  %v5385_v52 = vpop.xlane.xlu0 %5384 }
0x1949   :  { %v5750_v5 = vsel %vm518_vm1, %v5727_v42, 0 }
0x194c   :  { %v5715_v45 = vpop.permute.xlu1 %5714  ;;  %v5379_v19 = vpop.xlane.xlu0 %5378 }
0x194d   :  { %10173 = vrcp.f32 %v5379_v19 }
0x194e   :  { %10175 = vrcp.f32 %v5385_v52 }
0x194f   :  { %v10172_v63 = vpop.eup %10171 }
0x1950   :  { %v5614_v26 = vpop.permute.xlu1 %5613  ;;  %v5388_v0 = vpop.xlane.xlu0 %5387  ;;  %v5418_v60 = vmul.f32 %v10172_v63, %v13348_v46  ;;  %v4054_v63 = vld [vmem:[#allocation2 + $0x1a8] sm:$0xff] }
0x1951   :  { %10177 = vrcp.f32 %v5388_v0 }
0x1954   :  { %v5719_v36 = vpop.permute.xlu1 %5718  ;;  %v5725_v44 = vpop.permute.xlu0 %5724 }
0x1955   :  { %9368 = vmatprep.subr.msk.bf16.mxu0 %vm518_vm1, %v5725_v44  ;;  %v5747_v55 = vsel %vm518_vm1, %v5725_v44, 0 }
0x1956   :  { %9129 = vmatpush3.bf16.xpose.msra.mxu0 %v5747_v55  ;;  %v4051_v55 = vld [vmem:[#allocation2 + $0x190] sm:$0xff] }
0x1957   :  { %v10174_v21 = vpop.eup %10173  ;;  %9369 = vmatprep.subr.msk.bf16.mxu0 %vm518_vm1, %v5727_v42 }
0x1958   :  { %v6004_v17 = vpop.permute.xlu1 %6003  ;;  %v5713_v13 = vpop.permute.xlu0 %5712  ;;  %v5417_v24 = vmul.f32 %v10174_v21, %v13356_v25 }
0x1959   :  { %v10176_v54 = vpop.eup %10175 }
0x195a   :  { %v5427_v29 = vpack.c.bf16 %v5418_v60, %v5417_v24  ;;  %v5419_v14 = vmul.f32 %v10176_v54, %v13352_v38  ;;  %v4050_v60 = vld [vmem:[#allocation2 + $0x188] sm:$0xff] }
0x195b   :  { %v10178_v57 = vpop.eup %10177 }
0x195c   :  { %v6008_v53 = vpop.permute.xlu1 %6007  ;;  %9104 = vmatprep.mubr.msk.bf16.mxu0 %vm709_vm2, %v5427_v29  ;;  %v5612_v47 = vpop.permute.xlu0 %5611  ;;  %v5420_v49 = vmul.f32 %v10178_v57, %v13358_v28 }
0x195d   :  { %9120 = vmatprep.mubr.msk.bf16.mxu1 %vm518_vm1, %v5612_v47  ;;  %v4052_v47 = vld [vmem:[#allocation2 + $0x198] sm:$0xff] }
0x195e   :  { %9121 = vmatmul.mubr.msk.bf16.gmra.mrb[132].mxu1 %vm518_vm1, %v5614_v26  ;;  %9131 = vmatpush3.bf16.xpose.msra.mxu0 %v5750_v5  ;;  %v5428_v25 = vpack.c.bf16 %v5420_v49, %v5419_v14 }
0x1960   :  { %9105 = vmatmul.mubr.msk.bf16.gmra.mrb[144].mxu0 %vm709_vm2, %v5428_v25  ;;  %v5717_v46 = vpop.permute.xlu0 %5716  ;;  %v6093_v8 = vpop.permute.xlu1 %6092 }
0x1961   :  { %9132 = vmatprep.mubr.msk.bf16.mxu0 %vm518_vm1, %v5713_v13 }
0x1964   :  { %v6002_v7 = vpop.permute.xlu0 %6001  ;;  %v13461_v38 = vpop.permute.xlu1 %6187 }
0x1965   :  { %9140 = vmatprep.subr.bf16.mxu1 %v6002_v7 }
0x1966   :  { %9141 = vmatpush3.bf16.msra.mxu1 %v6002_v7 }
0x1967   :  { %9142 = vmatprep.subr.bf16.mxu1 %v6004_v17 }
0x1968   :  { %9133 = vmatmul.mubr.msk.bf16.vlgmr.msra.gmra.mrb[148].mxu0 %vm518_vm1, %v5715_v45  ;;  %v6006_v28 = vpop.permute.xlu0 %6005  ;;  %v6095_v9 = vpop.permute.xlu1 %6094 }
0x1969   :  { %9136 = vmatprep.mubr.msk.bf16.mxu0 %vm518_vm1, %v5717_v46 }
0x196a   :  { %9143 = vmatpush3.bf16.msra.mxu1 %v6004_v17  ;;  %v4049_v17 = vld [vmem:[#allocation2 + $0x180] sm:$0xff] }
0x196b   :  { %9144 = vmatprep.subr.bf16.mxu1 %v6006_v28 }
0x196c   :  { %v6091_v56 = vpop.permute.xlu0 %6090  ;;  %v13468_v31 = vpop.permute.xlu1 %6189 }
0x196d   :  { %9156 = vmatprep.subr.bf16.mxu0 %v6091_v56 }
0x196e   :  { %9145 = vmatpush3.bf16.msra.mxu1 %v6006_v28  ;;  %9157 = vmatpush3.bf16.msra.mxu0 %v6091_v56 }
0x196f   :  { %9146 = vmatprep.subr.bf16.mxu1 %v6008_v53  ;;  %9158 = vmatprep.subr.bf16.mxu0 %v6093_v8 }
0x1970   :  { %9137 = vmatmul.mubr.msk.bf16.gmra.mrb[152].mxu0 %vm518_vm1, %v5719_v36  ;;  %v6097_v40 = vpop.permute.xlu0 %6096  ;;  %v13470_v59 = vpop.permute.xlu1 %6292 }
0x1972   :  { %9147 = vmatpush3.bf16.msra.mxu1 %v6008_v53  ;;  %9159 = vmatpush3.bf16.msra.mxu0 %v6093_v8 }
0x1973   :  { %9160 = vmatprep.subr.bf16.mxu0 %v6095_v9  ;;  %9370 = vmatprep.subr.msk.bf16.mxu1 %vm518_vm1, %v13461_v38 }
0x1976   :  { %9161 = vmatpush3.bf16.msra.mxu0 %v6095_v9 }
0x1977   :  { %9162 = vmatprep.subr.bf16.mxu0 %v6097_v40 }
0x197a   :  { %9163 = vmatpush3.bf16.msra.mxu0 %v6097_v40 }
0x197b   :  { %9374 = vmatprep.subr.msk.bf16.mxu0 %vm518_vm1, %v13470_v59 }
0x199a   :  { %v13474_v10 = vpop.f32.mrb[120].mxu1 }
0x199b   :  { %v13476_v50 = vpop.f32.mrb[121].mxu1 }
0x199c   :  { %v13478_v2 = vpop.f32.mrb[122].mxu1 }
0x199d   :  { %v13482_v52 = vpop.f32.mrb[123].mxu1 }
0x19bb   :  { %v13486_v19 = vpop.f32.mrb[124].mxu1 }
0x19bc   :  { %v13488_v26 = vpop.f32.mrb[125].mxu1 }
0x19bd   :  { %v13490_v0 = vpop.f32.mrb[126].mxu1 }
0x19be   :  { %v13494_v44 = vpop.f32.mrb[127].mxu1 }
0x19ec   :  { %v9118_v21 = vpop.f32.mrb[128].mxu1 }
0x19ed   :  { %v13498_v13 = vadd.f32 %v9118_v21, %v4051_v55  ;;  %v5681_v24 = vpop.f32.mrb[129].mxu1  ;;  %v4055_v21 = vld [vmem:[#allocation2 + $0x1b0] sm:$0xff] }
0x19ee   :  { %v9119_v54 = vpop.f32.mrb[130].mxu1  ;;  %v13500_v29 = vadd.f32 %v5681_v24, %v4049_v17 }
0x19ef   :  { %v5684_v57 = vpop.f32.mrb[131].mxu1  ;;  %v5823_v53 = vsel %vm709_vm2, %v13498_v13, -inf  ;;  %v13508_v5 = vadd.f32 %v9119_v54, %v4052_v47  ;;  %v4053_v54 = vld [vmem:[#allocation2 + $0x1a0] sm:$0xff] }
0x19f0   :  { %v13504_v14 = vadd.f32 %v5684_v57, %v4050_v60  ;;  %5824 = vmax.xlane.f32.xlu0 %v5823_v53  ;;  %v5817_v25 = vsel %vm709_vm2, %v13500_v29, -inf  ;;  %v4056_v57 = vld [vmem:[#allocation2 + $0x1b8] sm:$0xff] }
0x19f1   :  { %v5826_v8 = vsel %vm709_vm2, %v13508_v5, -inf }
0x19f2   :  { %v5820_v49 = vsel %vm709_vm2, %v13504_v14, -inf }
0x19f3   :  { %5821 = vmax.xlane.f32.xlu1 %v5820_v49 }
0x19f4   :  { %5818 = vmax.xlane.f32.xlu0 %v5817_v25 }
0x19f7   :  { %v13512_v46 = vpop.f32.mrb[140].mxu0 }
0x19f8   :  { %v13516_v7 = vpop.f32.mrb[141].mxu0  ;;  %5827 = vmax.xlane.f32.xlu0 %v5826_v8 }
0x19f9   :  { %v13518_v28 = vpop.f32.mrb[142].mxu0 }
0x19fa   :  { %v13522_v9 = vpop.f32.mrb[143].mxu0 }
0x1a31   :  { %v9122_v24 = vpop.f32.mrb[132].mxu1 }
0x1a32   :  { %v13526_v53 = vadd.f32 %v9122_v24, %v4055_v21  ;;  %v5697_v49 = vpop.f32.mrb[133].mxu1 }
0x1a33   :  { %v13528_v25 = vpop.f32.mrb[144].mxu0  ;;  %v9123_v8 = vpop.f32.mrb[134].mxu1  ;;  %v13530_v36 = vadd.f32 %v5697_v49, %v4053_v54 }
0x1a34   :  { %v13532_v45 = vadd.f32 %v9123_v8, %v4056_v57  ;;  %v13534_v56 = vpop.f32.mrb[145].mxu0  ;;  %v5700_v42 = vpop.f32.mrb[135].mxu1  ;;  %v5835_v40 = vsel %vm709_vm2, %v13526_v53, -inf }
0x1a35   :  { %v13538_v1 = vpop.f32.mrb[146].mxu0  ;;  %5836 = vmax.xlane.f32.xlu0 %v5835_v40  ;;  %v13540_v24 = vadd.f32 %v5700_v42, %v4054_v63  ;;  %v5829_v35 = vsel %vm709_vm2, %v13530_v36, -inf }
0x1a36   :  { %v13544_v33 = vpop.f32.mrb[147].mxu0  ;;  %v5838_v49 = vsel %vm709_vm2, %v13532_v45, -inf }
0x1a37   :  { %5839 = vmax.xlane.f32.xlu1 %v5838_v49  ;;  %v5832_v42 = vsel %vm709_vm2, %v13540_v24, -inf }
0x1a39   :  { %5830 = vmax.xlane.f32.xlu0 %v5829_v35 }
0x1a3b   :  { %v9134_v40 = vpop.f32.mrb[148].mxu0  ;;  %5833 = vmax.xlane.f32.xlu1 %v5832_v42 }
0x1a3c   :  { %v13554_v58 = vadd.f32 %v9134_v40, %v4051_v55  ;;  %v5786_v23 = vpop.f32.mrb[149].mxu0 }
0x1a3d   :  { %v9135_v37 = vpop.f32.mrb[150].mxu0  ;;  %v13556_v41 = vadd.f32 %v5786_v23, %v4049_v17 }
0x1a3e   :  { %v13558_v4 = vadd.f32 %v9135_v37, %v4052_v47  ;;  %v5789_v18 = vpop.f32.mrb[151].mxu0  ;;  %v5847_v49 = vsel %vm709_vm2, %v13554_v58, -inf }
0x1a3f   :  { %5848 = vmax.xlane.f32.xlu0 %v5847_v49  ;;  %v13562_v8 = vadd.f32 %v5789_v18, %v4050_v60  ;;  %v5841_v55 = vsel %vm709_vm2, %v13556_v41, -inf }
0x1a40   :  { %v5850_v35 = vsel %vm709_vm2, %v13558_v4, -inf }
0x1a41   :  { %5851 = vmax.xlane.f32.xlu1 %v5850_v35  ;;  %v5844_v17 = vsel %vm709_vm2, %v13562_v8, -inf }
0x1a43   :  { %5842 = vmax.xlane.f32.xlu0 %v5841_v55  ;;  %v9138_v42 = vpop.f32.mrb[152].mxu0 }
0x1a44   :  { %v13568_v23 = vadd.f32 %v9138_v42, %v4055_v21  ;;  %v5802_v37 = vpop.f32.mrb[153].mxu0 }
0x1a45   :  { %5845 = vmax.xlane.f32.xlu1 %v5844_v17  ;;  %v9139_v47 = vpop.f32.mrb[154].mxu0  ;;  %v13572_v40 = vadd.f32 %v5802_v37, %v4053_v54 }
0x1a46   :  { %v13574_v18 = vadd.f32 %v9139_v47, %v4056_v57  ;;  %v5805_v60 = vpop.f32.mrb[155].mxu0  ;;  %v5859_v49 = vsel %vm709_vm2, %v13568_v23, -inf  ;;  %v13592_v57 = vpop.permute.xlu0 %6191 }
0x1a47   :  { %5860 = vmax.xlane.f32.xlu0 %v5859_v49  ;;  %v13578_v35 = vadd.f32 %v5805_v60, %v4054_v63  ;;  %v5853_v55 = vsel %vm709_vm2, %v13572_v40, -inf  ;;  %v13590_v63 = vpop.permute.xlu1 %6193 }
0x1a48   :  { %v5862_v21 = vsel %vm709_vm2, %v13574_v18, -inf }
0x1a49   :  { %5863 = vmax.xlane.f32.xlu1 %v5862_v21  ;;  %v5856_v54 = vsel %vm709_vm2, %v13578_v35, -inf }
0x1a4b   :  { %5854 = vmax.xlane.f32.xlu0 %v5853_v55  ;;  %v13594_v42 = vpop.permute.xlu1 %6294 }
0x1a4d   :  { %5857 = vmax.xlane.f32.xlu1 %v5856_v54 }
0x1a5e   :  { %6181 = vrot.lane.b32.xlu1 %v12808_v39, %s10427_s28 }
0x1a61   :  { %6179 = vrot.lane.b32.xlu0 %v12810_v27, %s10427_s28 }
0x1a7d   :  { %v5825_v37 = vpop.xlane.xlu0 %5824 }
0x1a7e   :  { %v5867_v17 = vsub.f32 %v13498_v13, %v5825_v37 }
0x1a80   :  { %v5885_v47 = vmul.f32 1.442695, %v5867_v17  ;;  %v5822_v60 = vpop.xlane.xlu1 %5821 }
0x1a81   :  { %v5819_v49 = vpop.xlane.xlu0 %5818  ;;  %v5866_v55 = vsub.f32 %v13504_v14, %v5822_v60 }
0x1a82   :  { %10179 = vpow2.f32 %v5885_v47  ;;  %v5865_v21 = vsub.f32 %v13500_v29, %v5819_v49 }
0x1a83   :  { %v5883_v32 = vmul.f32 1.442695, %v5866_v55 }
0x1a84   :  { %v5881_v54 = vmul.f32 1.442695, %v5865_v21 }
0x1a85   :  { %v5828_v22 = vpop.xlane.xlu0 %5827 }
0x1a86   :  { %10181 = vpow2.f32 %v5881_v54  ;;  %v5868_v62 = vsub.f32 %v13508_v5, %v5828_v22 }
0x1a88   :  { %v5887_v16 = vmul.f32 1.442695, %v5868_v62 }
0x1a8a   :  { %10183 = vpow2.f32 %v5887_v16 }
0x1a8b   :  { %10185 = vpow2.f32 %v5883_v32 }
0x1a8c   :  { %v13600_v20 = vpop.eup %10179 }
0x1a8d   :  { %v5919_v13 = vsel %vm709_vm2, %v13600_v20, 0.0 }
0x1a8e   :  { %5920 = vadd.xlane.f32.xlu0 %v5919_v13 }
0x1a90   :  { %v13604_v37 = vpop.eup %10181 }
0x1a91   :  { %v5913_v29 = vsel %vm709_vm2, %v13604_v37, 0.0 }
0x1a92   :  { %5914 = vadd.xlane.f32.xlu0 %v5913_v29 }
0x1a94   :  { %v13608_v14 = vpop.eup %10183 }
0x1a95   :  { %v5922_v22 = vsel %vm709_vm2, %v13608_v14, 0.0  ;;  %v13612_v62 = vpop.eup %10185 }
0x1a96   :  { %5923 = vadd.xlane.f32.xlu1 %v5922_v22  ;;  %v5916_v16 = vsel %vm709_vm2, %v13612_v62, 0.0 }
0x1a9a   :  { %5917 = vadd.xlane.f32.xlu1 %v5916_v16 }
0x1ac2   :  { %v5837_v32 = vpop.xlane.xlu0 %5836 }
0x1ac3   :  { %v5871_v5 = vsub.f32 %v13526_v53, %v5837_v32 }
0x1ac4   :  { %v5840_v17 = vpop.xlane.xlu1 %5839 }
0x1ac5   :  { %v5893_v47 = vmul.f32 1.442695, %v5871_v5  ;;  %v5872_v60 = vsub.f32 %v13532_v45, %v5840_v17 }
0x1ac6   :  { %v5831_v49 = vpop.xlane.xlu0 %5830 }
0x1ac7   :  { %10187 = vpow2.f32 %v5893_v47  ;;  %v5869_v21 = vsub.f32 %v13530_v36, %v5831_v49  ;;  %v5895_v55 = vmul.f32 1.442695, %v5872_v60 }
0x1ac8   :  { %v5834_v54 = vpop.xlane.xlu1 %5833 }
0x1ac9   :  { %v5889_v13 = vmul.f32 1.442695, %v5869_v21  ;;  %v5870_v29 = vsub.f32 %v13540_v24, %v5834_v54 }
0x1acb   :  { %10189 = vpow2.f32 %v5889_v13  ;;  %v5891_v22 = vmul.f32 1.442695, %v5870_v29 }
0x1acc   :  { %10191 = vpow2.f32 %v5895_v55  ;;  %v5849_v16 = vpop.xlane.xlu0 %5848 }
0x1acd   :  { %10193 = vpow2.f32 %v5891_v22  ;;  %v5875_v53 = vsub.f32 %v13554_v58, %v5849_v16 }
0x1ace   :  { %v5852_v32 = vpop.xlane.xlu1 %5851 }
0x1acf   :  { %v5901_v5 = vmul.f32 1.442695, %v5875_v53  ;;  %v5876_v45 = vsub.f32 %v13558_v4, %v5852_v32 }
0x1ad0   :  { %v5843_v17 = vpop.xlane.xlu0 %5842 }
0x1ad1   :  { %v13622_v47 = vpop.eup %10187  ;;  %10195 = vpow2.f32 %v5901_v5  ;;  %v5873_v36 = vsub.f32 %v13556_v41, %v5843_v17  ;;  %v5903_v60 = vmul.f32 1.442695, %v5876_v45 }
0x1ad2   :  { %v5846_v49 = vpop.xlane.xlu1 %5845  ;;  %v5931_v24 = vsel %vm709_vm2, %v13622_v47, 0.0 }
0x1ad3   :  { %v5897_v21 = vmul.f32 1.442695, %v5873_v36  ;;  %v5874_v55 = vsub.f32 %v13562_v8, %v5846_v49  ;;  %5932 = vadd.xlane.f32.xlu0 %v5931_v24 }
0x1ad4   :  { %v5861_v49 = vpop.xlane.xlu0 %5860 }
0x1ad5   :  { %v13628_v58 = vpop.eup %10189  ;;  %10197 = vpow2.f32 %v5897_v21  ;;  %v5899_v54 = vmul.f32 1.442695, %v5874_v55  ;;  %v5879_v21 = vsub.f32 %v13568_v23, %v5861_v49 }
0x1ad6   :  { %v13630_v4 = vpop.eup %10191  ;;  %10199 = vpow2.f32 %v5903_v60  ;;  %v5925_v13 = vsel %vm709_vm2, %v13628_v58, 0.0  ;;  %v5864_v60 = vpop.xlane.xlu1 %5863 }
0x1ad7   :  { %v13634_v41 = vpop.eup %10193  ;;  %10201 = vpow2.f32 %v5899_v54  ;;  %5926 = vadd.xlane.f32.xlu0 %v5925_v13  ;;  %v5934_v8 = vsel %vm709_vm2, %v13630_v4, 0.0  ;;  %v5909_v13 = vmul.f32 1.442695, %v5879_v21 }
0x1ad8   :  { %v5928_v29 = vsel %vm709_vm2, %v13634_v41, 0.0  ;;  %v5855_v55 = vpop.xlane.xlu0 %5854 }
0x1ad9   :  { %5929 = vadd.xlane.f32.xlu1 %v5928_v29  ;;  %v5877_v29 = vsub.f32 %v13572_v40, %v5855_v55  ;;  %10203 = vpow2.f32 %v5909_v13 }
0x1ada   :  { %v5858_v24 = vpop.xlane.xlu1 %5857 }
0x1adb   :  { %v13640_v22 = vpop.eup %10195  ;;  %5935 = vadd.xlane.f32.xlu0 %v5934_v8  ;;  %v5878_v54 = vsub.f32 %v13578_v35, %v5858_v24 }
0x1adc   :  { %v5943_v16 = vsel %vm709_vm2, %v13640_v22, 0.0  ;;  %v13672_v40 = vpop.permute.xlu0 %6179 }
0x1add   :  { %5944 = vadd.xlane.f32.xlu1 %v5943_v16  ;;  %v5907_v8 = vmul.f32 1.442695, %v5878_v54  ;;  %v5880_v16 = vsub.f32 %v13574_v18, %v5864_v60 }
0x1ade   :  { %v13680_v21 = vpop.permute.xlu1 %6181 }
0x1adf   :  { %v13644_v53 = vpop.eup %10197  ;;  %10205 = vpow2.f32 %v5907_v8 }
0x1ae0   :  { %v13646_v32 = vpop.eup %10199  ;;  %v5937_v5 = vsel %vm709_vm2, %v13644_v53, 0.0 }
0x1ae1   :  { %v13650_v45 = vpop.eup %10201  ;;  %5938 = vadd.xlane.f32.xlu1 %v5937_v5  ;;  %v5946_v36 = vsel %vm709_vm2, %v13646_v32, 0.0  ;;  %v5905_v5 = vmul.f32 1.442695, %v5877_v29 }
0x1ae2   :  { %v5940_v17 = vsel %vm709_vm2, %v13650_v45, 0.0 }
0x1ae3   :  { %5941 = vadd.xlane.f32.xlu0 %v5940_v17  ;;  %v5911_v17 = vmul.f32 1.442695, %v5880_v16  ;;  %10207 = vpow2.f32 %v5905_v5 }
0x1ae5   :  { %5947 = vadd.xlane.f32.xlu1 %v5946_v36  ;;  %10209 = vpow2.f32 %v5911_v17  ;;  %v13664_v36 = vpop.eup %10203 }
0x1ae6   :  { %v5955_v23 = vsel %vm709_vm2, %v13664_v36, 0.0 }
0x1ae9   :  { %v13666_v48 = vpop.eup %10205 }
0x1aea   :  { %v5952_v18 = vsel %vm709_vm2, %v13666_v48, 0.0 }
0x1aed   :  { %v13670_v35 = vpop.eup %10207 }
0x1aee   :  { %v5949_v60 = vsel %vm709_vm2, %v13670_v35, 0.0 }
0x1aef   :  { %v13678_v49 = vpop.eup %10209 }
0x1af0   :  { %v5958_v55 = vsel %vm709_vm2, %v13678_v49, 0.0 }
0x1af6   :  { %6183 = vrot.lane.b32.xlu1 %v12820_v11, %s10427_s28 }
0x1af9   :  { %6296 = vrot.lane.b32.xlu0 %v12838_v34, %s10426_s27 }
0x1b18   :  { %5956 = vadd.xlane.f32.xlu0 %v5955_v23 }
0x1b1a   :  { %5953 = vadd.xlane.f32.xlu1 %v5952_v18 }
0x1b1b   :  { %v5921_v24 = vpop.xlane.xlu0 %5920 }
0x1b1c   :  { %5950 = vadd.xlane.f32.xlu0 %v5949_v60 }
0x1b1f   :  { %v5915_v54 = vpop.xlane.xlu0 %5914 }
0x1b20   :  { %5959 = vadd.xlane.f32.xlu0 %v5958_v55 }
0x1b23   :  { %v5924_v13 = vpop.xlane.xlu1 %5923 }
0x1b24   :  { %10211 = vrcp.f32 %v5924_v13 }
0x1b25   :  { %10213 = vrcp.f32 %v5915_v54 }
0x1b26   :  { %10215 = vrcp.f32 %v5921_v24 }
0x1b27   :  { %v5918_v29 = vpop.xlane.xlu1 %5917 }
0x1b28   :  { %10217 = vrcp.f32 %v5918_v29 }
0x1b2b   :  { %6298 = vrot.lane.b32.xlu1 %v12836_v6, %s10426_s27 }
0x1b2e   :  { %v10212_v8 = vpop.eup %10211 }
0x1b2f   :  { %6286 = vrot.lane.b32.xlu1 %v12826_v15, %s10427_s28  ;;  %v10214_v16 = vpop.eup %10213  ;;  %v5980_v23 = vmul.f32 %v10212_v8, %v13608_v14  ;;  %v6208_v14 = vsel %vm518_vm1, %v13461_v38, 0  ;;  %v6217_v38 = vsel %vm518_vm1, %v13590_v63, 0 }
0x1b30   :  { %v10216_v5 = vpop.eup %10215  ;;  %v5977_v18 = vmul.f32 %v10214_v16, %v13604_v37 }
0x1b31   :  { %v5979_v24 = vmul.f32 %v10216_v5, %v13600_v20  ;;  %v6214_v20 = vsel %vm518_vm1, %v13592_v57, 0 }
0x1b32   :  { %v10218_v17 = vpop.eup %10217 }
0x1b33   :  { %6290 = vrot.lane.b32.xlu1 %v12836_v6, %s10427_s28  ;;  %v5978_v60 = vmul.f32 %v10218_v17, %v13612_v62  ;;  %v5994_v54 = vpack.c.bf16 %v5980_v23, %v5979_v24 }
0x1b35   :  { %v5993_v55 = vpack.c.bf16 %v5978_v60, %v5977_v18 }
0x1b36   :  { %6185 = vrot.lane.b32.xlu0 %v12818_v51, %s10427_s28 }
0x1b37   :  { %6575 = vrot.lane.b32.xlu1 %v12808_v39, %s10428_s2  ;;  %9148 = vmatprep.mubr.msk.bf16.mxu1 %vm709_vm2, %v5993_v55  ;;  %v6211_v39 = vsel %vm518_vm1, %v13468_v31, 0 }
0x1b38   :  { %9149 = vmatmul.mubr.msk.bf16.vlgmr.msra.gmra.mrb[136].mxu1 %vm709_vm2, %v5994_v54 }
0x1b39   :  { %9173 = vmatpush3.bf16.xpose.msra.mxu1 %v6208_v14 }
0x1b3a   :  { %9371 = vmatprep.subr.msk.bf16.mxu1 %vm518_vm1, %v13468_v31  ;;  %6284 = vrot.lane.b32.xlu0 %v12828_v12, %s10427_s28 }
0x1b3e   :  { %6288 = vrot.lane.b32.xlu0 %v12838_v34, %s10427_s28 }
0x1b41   :  { %9175 = vmatpush3.bf16.xpose.msra.mxu1 %v6211_v39 }
0x1b42   :  { %9372 = vmatprep.subr.msk.bf16.mxu1 %vm518_vm1, %v13592_v57  ;;  %6573 = vrot.lane.b32.xlu0 %v12810_v27, %s10428_s2 }
0x1b46   :  { %6577 = vrot.lane.b32.xlu0 %v12820_v11, %s10428_s2 }
0x1b49   :  { %9177 = vmatpush3.bf16.xpose.msra.mxu1 %v6214_v20 }
0x1b4a   :  { %9373 = vmatprep.subr.msk.bf16.mxu1 %vm518_vm1, %v13590_v63 }
0x1b51   :  { %9179 = vmatpush3.bf16.xpose.msra.mxu1 %v6217_v38 }
0x1b60   :  { %v5933_v31 = vpop.xlane.xlu0 %5932 }
0x1b64   :  { %v5927_v37 = vpop.xlane.xlu0 %5926 }
0x1b65   :  { %10219 = vrcp.f32 %v5927_v37 }
0x1b66   :  { %10221 = vrcp.f32 %v5933_v31  ;;  %v5930_v62 = vpop.xlane.xlu1 %5929 }
0x1b67   :  { %10223 = vrcp.f32 %v5930_v62 }
0x1b68   :  { %v5936_v27 = vpop.xlane.xlu0 %5935 }
0x1b69   :  { %10225 = vrcp.f32 %v5936_v27 }
0x1b6a   :  { %v5945_v11 = vpop.xlane.xlu1 %5944 }
0x1b6e   :  { %v5939_v13 = vpop.xlane.xlu1 %5938 }
0x1b6f   :  { %v10220_v29 = vpop.eup %10219  ;;  %10227 = vrcp.f32 %v5939_v13 }
0x1b70   :  { %v10222_v57 = vpop.eup %10221  ;;  %10229 = vrcp.f32 %v5945_v11  ;;  %v5942_v8 = vpop.xlane.xlu0 %5941  ;;  %v5981_v63 = vmul.f32 %v10220_v29, %v13628_v58 }
0x1b71   :  { %v10224_v16 = vpop.eup %10223  ;;  %10231 = vrcp.f32 %v5942_v8  ;;  %v5983_v60 = vmul.f32 %v10222_v57, %v13622_v47 }
0x1b72   :  { %v5948_v5 = vpop.xlane.xlu1 %5947  ;;  %v5982_v17 = vmul.f32 %v10224_v16, %v13634_v41 }
0x1b73   :  { %v10226_v23 = vpop.eup %10225  ;;  %10233 = vrcp.f32 %v5948_v5 }
0x1b74   :  { %v5995_v18 = vpack.c.bf16 %v5982_v17, %v5981_v63  ;;  %v5984_v24 = vmul.f32 %v10226_v23, %v13630_v4 }
0x1b76   :  { %9152 = vmatprep.mubr.msk.bf16.mxu1 %vm709_vm2, %v5995_v18  ;;  %v5996_v55 = vpack.c.bf16 %v5984_v24, %v5983_v60  ;;  %v6184_v37 = vpop.permute.xlu1 %6183 }
0x1b78   :  { %9153 = vmatmul.mubr.msk.bf16.gmra.mrb[140].mxu1 %vm709_vm2, %v5996_v55 }
0x1b79   :  { %v10228_v54 = vpop.eup %10227  ;;  %9180 = vmatprep.mubr.msk.bf16.mxu1 %vm518_vm1, %v13672_v40 }
0x1b7a   :  { %v10230_v14 = vpop.eup %10229  ;;  %v5985_v41 = vmul.f32 %v10228_v54, %v13644_v53  ;;  %v6313_v53 = vsel %vm518_vm1, %v13470_v59, 0 }
0x1b7b   :  { %v10232_v58 = vpop.eup %10231  ;;  %v5987_v47 = vmul.f32 %v10230_v14, %v13640_v22  ;;  %v6316_v22 = vsel %vm518_vm1, %v13594_v42, 0 }
0x1b7c   :  { %v5986_v39 = vmul.f32 %v10232_v58, %v13650_v45 }
0x1b7d   :  { %v10234_v20 = vpop.eup %10233 }
0x1b7e   :  { %v5988_v4 = vmul.f32 %v10234_v20, %v13646_v32  ;;  %v5997_v38 = vpack.c.bf16 %v5986_v39, %v5985_v41  ;;  %v6297_v32 = vpop.permute.xlu0 %6296 }
0x1b7f   :  { %v6319_v45 = vsel %vm518_vm1, %v6297_v32, 0 }
0x1b80   :  { %v5998_v31 = vpack.c.bf16 %v5988_v4, %v5987_v47  ;;  %9164 = vmatprep.mubr.msk.bf16.mxu0 %vm709_vm2, %v5997_v38  ;;  %9181 = vmatmul.mubr.msk.bf16.vlgmr.msra.gmra.mrb[144].mxu1 %vm518_vm1, %v13680_v21 }
0x1b81   :  { %9184 = vmatprep.mubr.msk.bf16.mxu1 %vm518_vm1, %v6184_v37 }
0x1b82   :  { %9165 = vmatmul.mubr.msk.bf16.vlgmr.msra.gmra.mrb[156].mxu0 %vm709_vm2, %v5998_v31 }
0x1b83   :  { %9189 = vmatpush3.bf16.xpose.msra.mxu0 %v6313_v53 }
0x1b84   :  { %9375 = vmatprep.subr.msk.bf16.mxu0 %vm518_vm1, %v13594_v42 }
0x1b8b   :  { %9191 = vmatpush3.bf16.xpose.msra.mxu0 %v6316_v22  ;;  %v4059_v22 = vld [vmem:[#allocation2 + $0x1d0] sm:$0xff] }
0x1b8c   :  { %9376 = vmatprep.subr.msk.bf16.mxu0 %vm518_vm1, %v6297_v32 }
0x1b93   :  { %9193 = vmatpush3.bf16.xpose.msra.mxu0 %v6319_v45  ;;  %v4057_v45 = vld [vmem:[#allocation2 + $0x1c0] sm:$0xff] }
0x1ba5   :  { %v5957_v40 = vpop.xlane.xlu0 %5956 }
0x1ba7   :  { %v5954_v21 = vpop.xlane.xlu1 %5953 }
0x1ba8   :  { %10235 = vrcp.f32 %v5954_v21 }
0x1ba9   :  { %v5951_v62 = vpop.xlane.xlu0 %5950 }
0x1baa   :  { %10237 = vrcp.f32 %v5951_v62  ;;  %v4058_v62 = vld [vmem:[#allocation2 + $0x1c8] sm:$0xff] }
0x1bab   :  { %v6299_v59 = vpop.permute.xlu1 %6298  ;;  %10239 = vrcp.f32 %v5957_v40 }
0x1bac   :  { %9377 = vmatprep.subr.msk.bf16.mxu0 %vm518_vm1, %v6299_v59  ;;  %v6322_v27 = vsel %vm518_vm1, %v6299_v59, 0 }
0x1bad   :  { %9195 = vmatpush3.bf16.xpose.msra.mxu0 %v6322_v27  ;;  %v5960_v42 = vpop.xlane.xlu0 %5959 }
0x1bae   :  { %10241 = vrcp.f32 %v5960_v42 }
0x1baf   :  { %v6287_v29 = vpop.permute.xlu1 %6286 }
0x1bb1   :  { %v6186_v11 = vpop.permute.xlu0 %6185 }
0x1bb2   :  { %v10236_v13 = vpop.eup %10235  ;;  %9185 = vmatmul.mubr.msk.bf16.gmra.mrb[148].mxu1 %vm518_vm1, %v6186_v11 }
0x1bb3   :  { %v5990_v5 = vmul.f32 %v10236_v13, %v13666_v48  ;;  %v6291_v18 = vpop.permute.xlu1 %6290 }
0x1bb4   :  { %v10238_v57 = vpop.eup %10237 }
0x1bb5   :  { %v6285_v8 = vpop.permute.xlu0 %6284  ;;  %v5989_v16 = vmul.f32 %v10238_v57, %v13670_v35  ;;  %v10240_v63 = vpop.eup %10239  ;;  %v4060_v57 = vld [vmem:[#allocation2 + $0x1d8] sm:$0xff] }
0x1bb6   :  { %v5991_v24 = vmul.f32 %v10240_v63, %v13664_v36 }
0x1bb7   :  { %v5999_v17 = vpack.c.bf16 %v5990_v5, %v5989_v16  ;;  %v6576_v35 = vpop.permute.xlu1 %6575 }
0x1bb8   :  { %v10242_v23 = vpop.eup %10241 }
0x1bb9   :  { %9168 = vmatprep.mubr.msk.bf16.mxu0 %vm709_vm2, %v5999_v17  ;;  %v6289_v60 = vpop.permute.xlu0 %6288  ;;  %v5992_v55 = vmul.f32 %v10242_v23, %v13678_v49 }
0x1bbb   :  { %v6000_v54 = vpack.c.bf16 %v5992_v55, %v5991_v24  ;;  %v4063_v55 = vld [vmem:[#allocation2 + $0x1f0] sm:$0xff] }
0x1bbd   :  { %9169 = vmatmul.mubr.msk.bf16.gmra.mrb[160].mxu0 %vm709_vm2, %v6000_v54  ;;  %v6574_v14 = vpop.permute.xlu0 %6573 }
0x1bbe   :  { %9196 = vmatprep.mubr.msk.bf16.mxu0 %vm518_vm1, %v6285_v8  ;;  %9204 = vmatprep.subr.bf16.mxu1 %v6574_v14 }
0x1bbf   :  { %9205 = vmatpush3.bf16.msra.mxu1 %v6574_v14  ;;  %v4061_v14 = vld [vmem:[#allocation2 + $0x1e0] sm:$0xff] }
0x1bc0   :  { %9206 = vmatprep.subr.bf16.mxu1 %v6576_v35 }
0x1bc1   :  { %v6578_v48 = vpop.permute.xlu0 %6577 }
0x1bc3   :  { %9207 = vmatpush3.bf16.msra.mxu1 %v6576_v35  ;;  %v4064_v35 = vld [vmem:[#allocation2 + $0x1f8] sm:$0xff] }
0x1bc4   :  { %9208 = vmatprep.subr.bf16.mxu1 %v6578_v48 }
0x1bc5   :  { %9197 = vmatmul.mubr.msk.bf16.vlgmr.msra.gmra.mrb[164].mxu0 %vm518_vm1, %v6287_v29 }
0x1bc6   :  { %9200 = vmatprep.mubr.msk.bf16.mxu0 %vm518_vm1, %v6289_v60 }
0x1bc7   :  { %9209 = vmatpush3.bf16.msra.mxu1 %v6578_v48 }
0x1bcd   :  { %9201 = vmatmul.mubr.msk.bf16.gmra.mrb[168].mxu0 %vm518_vm1, %v6291_v18 }
0x1c0b   :  { %v13760_v36 = vpop.f32.mrb[136].mxu1 }
0x1c0c   :  { %v13762_v49 = vpop.f32.mrb[137].mxu1 }
0x1c0d   :  { %v13764_v58 = vpop.f32.mrb[138].mxu1 }
0x1c0e   :  { %v13768_v39 = vpop.f32.mrb[139].mxu1 }
0x1c4b   :  { %v13772_v47 = vpop.f32.mrb[140].mxu1 }
0x1c4c   :  { %v13774_v4 = vpop.f32.mrb[141].mxu1 }
0x1c4d   :  { %v13776_v38 = vpop.f32.mrb[142].mxu1 }
0x1c4e   :  { %v13780_v37 = vpop.f32.mrb[143].mxu1 }
0x1c53   :  { %v9182_v32 = vpop.f32.mrb[144].mxu1 }
0x1c54   :  { %v13784_v40 = vadd.f32 %v9182_v32, %v4059_v22  ;;  %v6253_v21 = vpop.f32.mrb[145].mxu1 }
0x1c55   :  { %v13786_v59 = vpop.f32.mrb[156].mxu0  ;;  %v9183_v27 = vpop.f32.mrb[146].mxu1  ;;  %v13788_v42 = vadd.f32 %v6253_v21, %v4057_v45 }
0x1c56   :  { %v13790_v11 = vpop.f32.mrb[157].mxu0  ;;  %v6256_v13 = vpop.f32.mrb[147].mxu1  ;;  %v6395_v29 = vsel %vm709_vm2, %v13784_v40, -inf  ;;  %v13806_v18 = vadd.f32 %v9183_v27, %v4060_v57 }
0x1c57   :  { %v13794_v8 = vadd.f32 %v6256_v13, %v4058_v62  ;;  %6396 = vmax.xlane.f32.xlu0 %v6395_v29  ;;  %v13796_v16 = vpop.f32.mrb[158].mxu0  ;;  %v6389_v60 = vsel %vm709_vm2, %v13788_v42, -inf  ;;  %v4062_v13 = vld [vmem:[#allocation2 + $0x1e8] sm:$0xff] }
0x1c58   :  { %v13800_v63 = vpop.f32.mrb[159].mxu0  ;;  %v6398_v24 = vsel %vm709_vm2, %v13806_v18, -inf }
0x1c59   :  { %v6392_v23 = vsel %vm709_vm2, %v13794_v8, -inf }
0x1c5a   :  { %6393 = vmax.xlane.f32.xlu1 %v6392_v23 }
0x1c5b   :  { %6390 = vmax.xlane.f32.xlu0 %v6389_v60 }
0x1c5f   :  { %6399 = vmax.xlane.f32.xlu0 %v6398_v24 }
0x1c85   :  { %v9186_v54 = vpop.f32.mrb[148].mxu1 }
0x1c86   :  { %v13812_v48 = vadd.f32 %v9186_v54, %v4063_v55  ;;  %v6269_v32 = vpop.f32.mrb[149].mxu1 }
0x1c87   :  { %v9187_v21 = vpop.f32.mrb[150].mxu1  ;;  %v13814_v27 = vadd.f32 %v6269_v32, %v4061_v14 }
0x1c88   :  { %v13816_v29 = vadd.f32 %v9187_v21, %v4064_v35  ;;  %v6272_v23 = vpop.f32.mrb[151].mxu1  ;;  %v6407_v60 = vsel %vm709_vm2, %v13812_v48, -inf }
0x1c89   :  { %6408 = vmax.xlane.f32.xlu0 %v6407_v60  ;;  %v13820_v17 = vadd.f32 %v6272_v23, %v4062_v13  ;;  %v6401_v54 = vsel %vm709_vm2, %v13814_v27, -inf }
0x1c8a   :  { %v6410_v24 = vsel %vm709_vm2, %v13816_v29, -inf }
0x1c8b   :  { %6411 = vmax.xlane.f32.xlu1 %v6410_v24  ;;  %v6404_v32 = vsel %vm709_vm2, %v13820_v17, -inf }
0x1c8d   :  { %6402 = vmax.xlane.f32.xlu0 %v6401_v54 }
0x1c8f   :  { %6405 = vmax.xlane.f32.xlu1 %v6404_v32 }
0x1c90   :  { %v13828_v21 = vpop.f32.mrb[160].mxu0 }
0x1c91   :  { %14757 = vst [vmem:[#allocation40_spill] sm:$0xff] %v13828_v21  ;;  %v13830_v5 = vpop.f32.mrb[161].mxu0 }
0x1c92   :  { %v13832_v53 = vpop.f32.mrb[162].mxu0 }
0x1c93   :  { %v13836_v60 = vpop.f32.mrb[163].mxu0 }
0x1c98   :  { %v9198_v31 = vpop.f32.mrb[164].mxu0 }
0x1c99   :  { %v13840_v54 = vadd.f32 %v9198_v31, %v4059_v22  ;;  %v6358_v20 = vpop.f32.mrb[165].mxu0 }
0x1c9a   :  { %v9199_v41 = vpop.f32.mrb[166].mxu0  ;;  %v13842_v32 = vadd.f32 %v6358_v20, %v4057_v45 }
0x1c9b   :  { %v13844_v30 = vadd.f32 %v9199_v41, %v4060_v57  ;;  %v6361_v3 = vpop.f32.mrb[167].mxu0  ;;  %v6419_v43 = vsel %vm709_vm2, %v13840_v54, -inf }
0x1c9c   :  { %6420 = vmax.xlane.f32.xlu0 %v6419_v43  ;;  %v13848_v23 = vadd.f32 %v6361_v3, %v4058_v62  ;;  %v6413_v31 = vsel %vm709_vm2, %v13842_v32, -inf }
0x1c9d   :  { %v6422_v21 = vsel %vm709_vm2, %v13844_v30, -inf }
0x1c9e   :  { %6423 = vmax.xlane.f32.xlu1 %v6422_v21  ;;  %v6416_v45 = vsel %vm709_vm2, %v13848_v23, -inf }
0x1ca0   :  { %6414 = vmax.xlane.f32.xlu0 %v6413_v31  ;;  %v9202_v22 = vpop.f32.mrb[168].mxu0 }
0x1ca1   :  { %v13854_v20 = vadd.f32 %v9202_v22, %v4063_v55  ;;  %v6374_v41 = vpop.f32.mrb[169].mxu0 }
0x1ca2   :  { %6417 = vmax.xlane.f32.xlu1 %v6416_v45  ;;  %v9203_v57 = vpop.f32.mrb[170].mxu0  ;;  %v13858_v43 = vadd.f32 %v6374_v41, %v4061_v14 }
0x1ca3   :  { %v13860_v3 = vadd.f32 %v9203_v57, %v4064_v35  ;;  %v6377_v62 = vpop.f32.mrb[171].mxu0  ;;  %v6431_v21 = vsel %vm709_vm2, %v13854_v20, -inf }
0x1ca4   :  { %v13864_v24 = vadd.f32 %v6377_v62, %v4062_v13  ;;  %6432 = vmax.xlane.f32.xlu0 %v6431_v21  ;;  %v6425_v55 = vsel %vm709_vm2, %v13858_v43, -inf }
0x1ca5   :  { %v6434_v14 = vsel %vm709_vm2, %v13860_v3, -inf }
0x1ca6   :  { %v6428_v35 = vsel %vm709_vm2, %v13864_v24, -inf }
0x1ca8   :  { %6426 = vmax.xlane.f32.xlu0 %v6425_v55 }
0x1cb3   :  { %6662 = vrot.lane.b32.xlu1 %v12828_v12, %s10428_s2 }
0x1cbe   :  { %6579 = vrot.lane.b32.xlu0 %v12818_v51, %s10428_s2 }
0x1cd7   :  { %6435 = vmax.xlane.f32.xlu1 %v6434_v14 }
0x1cdb   :  { %6429 = vmax.xlane.f32.xlu1 %v6428_v35 }
0x1ce4   :  { %v6397_v13 = vpop.xlane.xlu0 %6396 }
0x1ce5   :  { %v6439_v31 = vsub.f32 %v13784_v40, %v6397_v13 }
0x1ce7   :  { %v6457_v22 = vmul.f32 1.442695, %v6439_v31  ;;  %v6394_v55 = vpop.xlane.xlu1 %6393 }
0x1ce8   :  { %v6391_v41 = vpop.xlane.xlu0 %6390  ;;  %v6438_v14 = vsub.f32 %v13794_v8, %v6394_v55 }
0x1ce9   :  { %10243 = vpow2.f32 %v6457_v22  ;;  %v6437_v45 = vsub.f32 %v13788_v42, %v6391_v41 }
0x1cea   :  { %v6455_v35 = vmul.f32 1.442695, %v6438_v14 }
0x1ceb   :  { %v6453_v12 = vmul.f32 1.442695, %v6437_v45 }
0x1cec   :  { %6664 = vrot.lane.b32.xlu1 %v12826_v15, %s10428_s2  ;;  %v6400_v21 = vpop.xlane.xlu0 %6399 }
0x1ced   :  { %10245 = vpow2.f32 %v6453_v12  ;;  %v6440_v42 = vsub.f32 %v13806_v18, %v6400_v21 }
0x1cef   :  { %v6459_v15 = vmul.f32 1.442695, %v6440_v42 }
0x1cf1   :  { %10247 = vpow2.f32 %v6459_v15 }
0x1cf2   :  { %10249 = vpow2.f32 %v6455_v35 }
0x1cf3   :  { %v13880_v51 = vpop.eup %10243 }
0x1cf4   :  { %v6491_v57 = vsel %vm709_vm2, %v13880_v51, 0.0 }
0x1cf5   :  { %6492 = vadd.xlane.f32.xlu0 %v6491_v57 }
0x1cf7   :  { %v13884_v62 = vpop.eup %10245 }
0x1cf8   :  { %v6485_v40 = vsel %vm709_vm2, %v13884_v62, 0.0 }
0x1cf9   :  { %6486 = vadd.xlane.f32.xlu0 %v6485_v40 }
0x1cfb   :  { %v13890_v13 = vpop.eup %10247 }
0x1cfc   :  { %v6494_v31 = vsel %vm709_vm2, %v13890_v13, 0.0  ;;  %v13894_v22 = vpop.eup %10249 }
0x1cfd   :  { %v6488_v41 = vsel %vm709_vm2, %v13894_v22, 0.0 }
0x1d10   :  { %6495 = vadd.xlane.f32.xlu1 %v6494_v31 }
0x1d14   :  { %6489 = vadd.xlane.f32.xlu1 %v6488_v41 }
0x1d16   :  { %v6409_v18 = vpop.xlane.xlu0 %6408 }
0x1d17   :  { %v6443_v45 = vsub.f32 %v13812_v48, %v6409_v18 }
0x1d18   :  { %v6412_v8 = vpop.xlane.xlu1 %6411 }
0x1d19   :  { %v6465_v12 = vmul.f32 1.442695, %v6443_v45  ;;  %v6444_v57 = vsub.f32 %v13816_v29, %v6412_v8 }
0x1d1a   :  { %v6403_v21 = vpop.xlane.xlu0 %6402 }
0x1d1b   :  { %10251 = vpow2.f32 %v6465_v12  ;;  %v6467_v40 = vmul.f32 1.442695, %v6444_v57  ;;  %v6441_v42 = vsub.f32 %v13814_v27, %v6403_v21 }
0x1d1c   :  { %v6406_v55 = vpop.xlane.xlu1 %6405 }
0x1d1d   :  { %10253 = vpow2.f32 %v6467_v40  ;;  %v6461_v14 = vmul.f32 1.442695, %v6441_v42  ;;  %v6442_v15 = vsub.f32 %v13820_v17, %v6406_v55 }
0x1d1f   :  { %10255 = vpow2.f32 %v6461_v14  ;;  %v6463_v35 = vmul.f32 1.442695, %v6442_v15 }
0x1d21   :  { %10257 = vpow2.f32 %v6463_v35 }
0x1d25   :  { %v13902_v31 = vpop.eup %10251 }
0x1d26   :  { %v6503_v48 = vsel %vm709_vm2, %v13902_v31, 0.0 }
0x1d27   :  { %v13906_v41 = vpop.eup %10253  ;;  %6504 = vadd.xlane.f32.xlu0 %v6503_v48 }
0x1d28   :  { %v6506_v29 = vsel %vm709_vm2, %v13906_v41, 0.0 }
0x1d29   :  { %v13910_v27 = vpop.eup %10255  ;;  %6507 = vadd.xlane.f32.xlu1 %v6506_v29  ;;  %v6421_v18 = vpop.xlane.xlu0 %6420 }
0x1d2a   :  { %v6447_v17 = vsub.f32 %v13840_v54, %v6421_v18  ;;  %v6497_v45 = vsel %vm709_vm2, %v13910_v27, 0.0 }
0x1d2b   :  { %v13915_v8 = vpop.eup %10257  ;;  %v6424_v12 = vpop.xlane.xlu1 %6423  ;;  %6498 = vadd.xlane.f32.xlu0 %v6497_v45 }
0x1d2c   :  { %v6473_v57 = vmul.f32 1.442695, %v6447_v17  ;;  %v6448_v21 = vsub.f32 %v13844_v30, %v6424_v12  ;;  %v6500_v40 = vsel %vm709_vm2, %v13915_v8, 0.0 }
0x1d2d   :  { %6501 = vadd.xlane.f32.xlu1 %v6500_v40  ;;  %v6415_v42 = vpop.xlane.xlu0 %6414 }
0x1d2e   :  { %10259 = vpow2.f32 %v6473_v57  ;;  %v6445_v55 = vsub.f32 %v13842_v32, %v6415_v42  ;;  %v6475_v54 = vmul.f32 1.442695, %v6448_v21 }
0x1d2f   :  { %v6418_v14 = vpop.xlane.xlu1 %6417 }
0x1d30   :  { %v6469_v15 = vmul.f32 1.442695, %v6445_v55  ;;  %v6446_v35 = vsub.f32 %v13848_v23, %v6418_v14 }
0x1d31   :  { %v6433_v48 = vpop.xlane.xlu0 %6432 }
0x1d32   :  { %10261 = vpow2.f32 %v6469_v15  ;;  %v6451_v29 = vsub.f32 %v13854_v20, %v6433_v48  ;;  %v6471_v30 = vmul.f32 1.442695, %v6446_v35 }
0x1d33   :  { %v6663_v18 = vpop.permute.xlu1 %6662  ;;  %10263 = vpow2.f32 %v6475_v54 }
0x1d34   :  { %v6481_v17 = vmul.f32 1.442695, %v6451_v29  ;;  %9220 = vmatprep.subr.bf16.mxu0 %v6663_v18 }
0x1d35   :  { %9221 = vmatpush3.bf16.msra.mxu0 %v6663_v18  ;;  %v6427_v45 = vpop.xlane.xlu0 %6426 }
0x1d36   :  { %10265 = vpow2.f32 %v6481_v17  ;;  %v6449_v12 = vsub.f32 %v13858_v43, %v6427_v45 }
0x1d37   :  { %10267 = vpow2.f32 %v6471_v30 }
0x1d38   :  { %v13924_v32 = vpop.eup %10259  ;;  %v6477_v57 = vmul.f32 1.442695, %v6449_v12 }
0x1d39   :  { %v6580_v21 = vpop.permute.xlu0 %6579  ;;  %v6515_v23 = vsel %vm709_vm2, %v13924_v32, 0.0 }
0x1d3a   :  { %10269 = vpow2.f32 %v6477_v57  ;;  %6516 = vadd.xlane.f32.xlu1 %v6515_v23  ;;  %9210 = vmatprep.subr.bf16.mxu1 %v6580_v21 }
0x1d3b   :  { %9211 = vmatpush3.bf16.msra.mxu1 %v6580_v21 }
0x1d3c   :  { %v13928_v20 = vpop.eup %10261 }
0x1d3d   :  { %v6509_v40 = vsel %vm709_vm2, %v13928_v20, 0.0  ;;  %v13932_v42 = vpop.eup %10263 }
0x1d3e   :  { %6510 = vadd.xlane.f32.xlu1 %v6509_v40  ;;  %v6518_v55 = vsel %vm709_vm2, %v13932_v42, 0.0 }
0x1d40   :  { %v13934_v43 = vpop.eup %10265 }
0x1d41   :  { %v6527_v14 = vsel %vm709_vm2, %v13934_v43, 0.0  ;;  %v13940_v54 = vpop.eup %10267 }
0x1d42   :  { %6519 = vadd.xlane.f32.xlu1 %v6518_v55  ;;  %6528 = vadd.xlane.f32.xlu0 %v6527_v14  ;;  %v6512_v35 = vsel %vm709_vm2, %v13940_v54, 0.0  ;;  %v14759_v55 = vpack.i.bf16 %v13482_v52, %v13476_v50  ;;  %v14760_v14 = vpack.i.bf16 %v13764_v58, %v13760_v36  ;;  %v14763_v50 = vpack.i.bf16 %v13494_v44, %v13488_v26 }
0x1d43   :  { %v14765_v52 = vpack.i.bf16 %v13780_v37, %v13774_v4  ;;  %v14767_v26 = vpack.i.bf16 %v13522_v9, %v13516_v7 }
0x1d44   :  { %v13942_v15 = vpop.eup %10269 }
0x1d45   :  { %v6521_v48 = vsel %vm709_vm2, %v13942_v15, 0.0 }
0x1d46   :  { %6513 = vadd.xlane.f32.xlu1 %v6512_v35  ;;  %6522 = vadd.xlane.f32.xlu0 %v6521_v48 }
0x1d64   :  { %v6436_v29 = vpop.xlane.xlu1 %6435 }
0x1d65   :  { %v6452_v18 = vsub.f32 %v13860_v3, %v6436_v29 }
0x1d67   :  { %v6483_v30 = vmul.f32 1.442695, %v6452_v18 }
0x1d68   :  { %v6430_v17 = vpop.xlane.xlu1 %6429 }
0x1d69   :  { %10271 = vpow2.f32 %v6483_v30  ;;  %v6450_v45 = vsub.f32 %v13864_v24, %v6430_v17  ;;  %v14758_v24 = vpack.i.bf16 %v13478_v2, %v13474_v10  ;;  %v14764_v2 = vpack.i.bf16 %v13776_v38, %v13772_v47 }
0x1d6b   :  { %v6479_v12 = vmul.f32 1.442695, %v6450_v45 }
0x1d6c   :  { %v6665_v57 = vpop.permute.xlu1 %6664 }
0x1d6d   :  { %10273 = vpow2.f32 %v6479_v12  ;;  %9222 = vmatprep.subr.bf16.mxu0 %v6665_v57 }
0x1d6e   :  { %9223 = vmatpush3.bf16.msra.mxu0 %v6665_v57 }
0x1d73   :  { %v13950_v21 = vpop.eup %10271 }
0x1d74   :  { %v6530_v23 = vsel %vm709_vm2, %v13950_v21, 0.0 }
0x1d75   :  { %6531 = vadd.xlane.f32.xlu0 %v6530_v23 }
0x1d77   :  { %v13954_v40 = vpop.eup %10273 }
0x1d78   :  { %v6524_v3 = vsel %vm709_vm2, %v13954_v40, 0.0 }
0x1d79   :  { %6525 = vadd.xlane.f32.xlu1 %v6524_v3 }
0x1d82   :  { %v6493_v10 = vpop.xlane.xlu0 %6492 }
0x1d86   :  { %v6487_v36 = vpop.xlane.xlu0 %6486 }
0x1d8a   :  { %6668 = vrot.lane.b32.xlu1 %v12836_v6, %s10428_s2  ;;  %v14761_v6 = vpack.i.bf16 %v13768_v39, %v13762_v49 }
0x1d8b   :  { %6666 = vrot.lane.b32.xlu0 %v12838_v34, %s10428_s2  ;;  %v14762_v34 = vpack.i.bf16 %v13490_v0, %v13486_v19  ;;  %v14766_v19 = vpack.i.bf16 %v13518_v28, %v13512_v46 }
0x1d8e   :  { %9523 = vrot.lane.b32.xlu1 %v14758_v24, %s10417_s20 }
0x1d8f   :  { %9518 = vrot.lane.b32.xlu0 %v14759_v55, %s10417_s20 }
0x1d92   :  { %9533 = vrot.lane.b32.xlu1 %v14760_v14, %s10429_s29 }
0x1d93   :  { %9528 = vrot.lane.b32.xlu0 %v14761_v6, %s10429_s29 }
0x1d96   :  { %9543 = vrot.lane.b32.xlu1 %v14762_v34, %s10417_s20 }
0x1d97   :  { %9538 = vrot.lane.b32.xlu0 %v14763_v50, %s10417_s20 }
0x1d9a   :  { %9553 = vrot.lane.b32.xlu1 %v14764_v2, %s10429_s29 }
0x1d9b   :  { %9548 = vrot.lane.b32.xlu0 %v14765_v52, %s10429_s29 }
0x1d9d   :  { %v6496_v49 = vpop.xlane.xlu1 %6495 }
0x1d9e   :  { %9563 = vrot.lane.b32.xlu1 %v14766_v19, %s10417_s20  ;;  %10275 = vrcp.f32 %v6496_v49 }
0x1d9f   :  { %9558 = vrot.lane.b32.xlu0 %v14767_v26, %s10417_s20  ;;  %10277 = vrcp.f32 %v6487_v36  ;;  %v14768_v26 = vmov 0.0  }
0x1da0   :  { %10279 = vrcp.f32 %v6493_v10 }
0x1da1   :  { %v6490_v0 = vpop.xlane.xlu1 %6489 }
0x1da2   :  { %10281 = vrcp.f32 %v6490_v0 }
0x1da8   :  { %v10276_v44 = vpop.eup %10275 }
0x1da9   :  { %v10278_v58 = vpop.eup %10277  ;;  %v6552_v4 = vmul.f32 %v10276_v44, %v13890_v13 }
0x1daa   :  { %v10280_v39 = vpop.eup %10279  ;;  %v6549_v38 = vmul.f32 %v10278_v58, %v13884_v62 }
0x1dab   :  { %v6551_v28 = vmul.f32 %v10280_v39, %v13880_v51 }
0x1dac   :  { %v10282_v47 = vpop.eup %10281 }
0x1dad   :  { %v6550_v46 = vmul.f32 %v10282_v47, %v13894_v22  ;;  %v6566_v35 = vpack.c.bf16 %v6552_v4, %v6551_v28  ;;  %v9654_v28 = vld [vmem:[%s14632_s4 + $0x10] sm:$0xff]  }
0x1dae   :  { %9236 = vmatprep.subr.bf16.mxu1 %v9654_v28 }
0x1daf   :  { %v6565_v37 = vpack.c.bf16 %v6550_v46, %v6549_v38 }
0x1db1   :  { %9212 = vmatprep.mubr.msk.bf16.mxu1 %vm709_vm2, %v6565_v37 }
0x1db2   :  { %9213 = vmatmul.mubr.msk.bf16.vlgmr.msra.gmra.mrb[152].mxu1 %vm709_vm2, %v6566_v35 }
0x1db3   :  { %9237 = vmatpush3.bf16.msra.mxu1 %v9654_v28 }
0x1db4   :  { %v6505_v7 = vpop.xlane.xlu0 %6504 }
0x1db6   :  { %v6508_v9 = vpop.xlane.xlu1 %6507 }
0x1db7   :  { %10283 = vrcp.f32 %v6508_v9 }
0x1db8   :  { %v6499_v48 = vpop.xlane.xlu0 %6498 }
0x1db9   :  { %10285 = vrcp.f32 %v6499_v48  ;;  %v14769_v48 = vpack.i.bf16 %v13796_v16, %v13786_v59  ;;  %v14771_v59 = vpack.i.bf16 %v13538_v1, %v13528_v25  ;;  %v14773_v25 = vld [vmem:[#allocation40_spill] sm:$0xff] }
0x1dba   :  { %10287 = vrcp.f32 %v6505_v7  ;;  %v6502_v29 = vpop.xlane.xlu1 %6501 }
0x1dbb   :  { %10289 = vrcp.f32 %v6502_v29 }
0x1dc1   :  { %v10284_v13 = vpop.eup %10283 }
0x1dc2   :  { %v6556_v51 = vmul.f32 %v10284_v13, %v13906_v41 }
0x1dc3   :  { %v10286_v62 = vpop.eup %10285 }
0x1dc4   :  { %v10288_v18 = vpop.eup %10287  ;;  %v6553_v30 = vmul.f32 %v10286_v62, %v13910_v27 }
0x1dc5   :  { %v10290_v22 = vpop.eup %10289  ;;  %v6555_v12 = vmul.f32 %v10288_v18, %v13902_v31 }
0x1dc6   :  { %v6554_v17 = vmul.f32 %v10290_v22, %v13915_v8 }
0x1dc7   :  { %v6517_v45 = vpop.xlane.xlu1 %6516  ;;  %v6568_v23 = vpack.c.bf16 %v6556_v51, %v6555_v12 }
0x1dc8   :  { %v6567_v57 = vpack.c.bf16 %v6554_v17, %v6553_v30 }
0x1dca   :  { %9216 = vmatprep.mubr.msk.bf16.mxu1 %vm709_vm2, %v6567_v57 }
0x1dcb   :  { %v6511_v3 = vpop.xlane.xlu1 %6510  ;;  %9217 = vmatmul.mubr.msk.bf16.gmra.mrb[156].mxu1 %vm709_vm2, %v6568_v23 }
0x1dcc   :  { %10291 = vrcp.f32 %v6511_v3 }
0x1dcf   :  { %v6520_v24 = vpop.xlane.xlu1 %6519  ;;  %v6529_v31 = vpop.xlane.xlu0 %6528 }
0x1dd3   :  { %v6514_v55 = vpop.xlane.xlu1 %6513  ;;  %v6523_v34 = vpop.xlane.xlu0 %6522 }
0x1dd4   :  { %10293 = vrcp.f32 %v6514_v55 }
0x1dd5   :  { %10295 = vrcp.f32 %v6520_v24 }
0x1dd6   :  { %v10292_v14 = vpop.eup %10291  ;;  %10297 = vrcp.f32 %v6517_v45 }
0x1dd7   :  { %v6557_v27 = vmul.f32 %v10292_v14, %v13928_v20  ;;  %v14775_v14 = vpack.i.bf16 %v13836_v60, %v13830_v5 }
0x1dde   :  { %v10294_v41 = vpop.eup %10293 }
0x1ddf   :  { %v6558_v8 = vmul.f32 %v10294_v41, %v13940_v54  ;;  %v10296_v50 = vpop.eup %10295 }
0x1de0   :  { %v10298_v36 = vpop.eup %10297  ;;  %v6560_v20 = vmul.f32 %v10296_v50, %v13932_v42 }
0x1de1   :  { %v6569_v6 = vpack.c.bf16 %v6558_v8, %v6557_v27  ;;  %v6559_v49 = vmul.f32 %v10298_v36, %v13924_v32 }
0x1de3   :  { %9228 = vmatprep.mubr.msk.bf16.mxu0 %vm709_vm2, %v6569_v6  ;;  %v6570_v19 = vpack.c.bf16 %v6560_v20, %v6559_v49 }
0x1e02   :  { %v6532_v10 = vpop.xlane.xlu0 %6531 }
0x1e03   :  { %10299 = vrcp.f32 %v6532_v10 }
0x1e04   :  { %10301 = vrcp.f32 %v6523_v34 }
0x1e05   :  { %10303 = vrcp.f32 %v6529_v31 }
0x1e06   :  { %v6526_v2 = vpop.xlane.xlu1 %6525  ;;  %v6667_v52 = vpop.permute.xlu0 %6666 }
0x1e07   :  { %10305 = vrcp.f32 %v6526_v2  ;;  %9224 = vmatprep.subr.bf16.mxu0 %v6667_v52 }
0x1e08   :  { %9225 = vmatpush3.bf16.msra.mxu0 %v6667_v52 }
0x1e0a   :  { %v6669_v54 = vpop.permute.xlu1 %6668 }
0x1e0b   :  { %9226 = vmatprep.subr.bf16.mxu0 %v6669_v54 }
0x1e0c   :  { %9227 = vmatpush3.bf16.msra.mxu0 %v6669_v54 }
0x1e0d   :  { %9256 = vmatprep.subr.bf16.mxu0 %v14768_v26  ;;  %v10300_v0 = vpop.eup %10299 }
0x1e0e   :  { %v10302_v44 = vpop.eup %10301  ;;  %v6564_v47 = vmul.f32 %v10300_v0, %v13950_v21  ;;  %v9524_v16 = vpop.permute.xlu1 %9523  ;;  %v14777_v0 = vld [vmem:[#allocation25_spill] sm:$0xff] }
0x1e0f   :  { %9229 = vmatmul.mubr.msk.bf16.vlgmr.msra.gmra.mrb[172].mxu0 %vm709_vm2, %v6570_v19  ;;  %v10304_v58 = vpop.eup %10303  ;;  %v6561_v4 = vmul.f32 %v10302_v44, %v13942_v15  ;;  %v9655_v15 = vld [vmem:[%s14635_s7 + $0x8] sm:$0xff]   ;;  %v9526_v2 = vunpack.i.h.bf16 %v9524_v16  ;;  %v9525_v52 = vunpack.i.l.bf16 %v9524_v16  ;;  %v14776_v19 = vld [vmem:[#allocation27_spill] sm:$0xff] }
0x1e10   :  { %v6563_v38 = vmul.f32 %v10304_v58, %v13934_v43  ;;  %9257 = vmatpush3.bf16.msra.mxu0 %v9655_v15  ;;  %v9656_v43 = vld [vmem:[%s14632_s4 + $0x18] sm:$0xff]   ;;  %v14778_v58 = vld [vmem:[#allocation26_spill] sm:$0xff] }
0x1e11   :  { %v10306_v39 = vpop.eup %10305  ;;  %9238 = vmatprep.subr.bf16.mxu1 %v9656_v43 }
0x1e12   :  { %v6562_v42 = vmul.f32 %v10306_v39, %v13954_v40  ;;  %v6572_v46 = vpack.c.bf16 %v6564_v47, %v6563_v38  ;;  %9239 = vmatpush3.bf16.msra.mxu1 %v9656_v43  ;;  %v9534_v23 = vpop.permute.xlu1 %9533  ;;  %v6946_v39 = vsel %vm518_vm1, %v14778_v58, %v9526_v2  ;;  %v14779_v47 = vld [vmem:[#allocation24_spill] sm:$0xff] }
0x1e13   :  { %v9536_v20 = vunpack.i.h.bf16 %v9534_v23  ;;  %v9535_v54 = vunpack.i.l.bf16 %v9534_v23  ;;  %v14782_v23 = vld [vmem:[#allocation35_spill] sm:$0xff] }
0x1e14   :  { %v6571_v32 = vpack.c.bf16 %v6562_v42, %v6561_v4  ;;  %v6945_v4 = vsel %vm518_vm1, %v14779_v47, %v9525_v52 }
0x1e15   :  { %v6962_v28 = vsel %vm2996_vm3, %v6946_v39, %v9536_v20 }
0x1e16   :  { %9232 = vmatprep.mubr.msk.bf16.mxu0 %vm709_vm2, %v6571_v32  ;;  %v14066_v55 = vpop.permute.xlu1 %9543 }
0x1e17   :  { %9233 = vmatmul.mubr.msk.bf16.gmra.mrb[176].mxu0 %vm709_vm2, %v6572_v46  ;;  %v6961_v46 = vsel %vm2996_vm3, %v6945_v4, %v9535_v54 }
0x1e18   :  { %9258 = vmatprep.mubr.msk.bf16.mxu0 %vm10431_vm4, %v14768_v26 }
0x1e1f   :  { %9259 = vmatmul.mubr.msk.bf16.vlgmr.msra.gmra.mrb[180].mxu0 %vm2996_vm3, %v11998_v61  ;;  %v14770_v61 = vpack.i.bf16 %v13800_v63, %v13790_v11  ;;  %v14772_v11 = vpack.i.bf16 %v13544_v33, %v13534_v56  ;;  %v9519_v63 = vpop.permute.xlu0 %9518  ;;  %v14774_v33 = vpack.i.bf16 %v13832_v53, %v14773_v25  ;;  %v14076_v53 = vpop.permute.xlu1 %9553 }
0x1e20   :  { %v9521_v10 = vunpack.i.h.bf16 %v9519_v63  ;;  %v9520_v50 = vunpack.i.l.bf16 %v9519_v63  ;;  %v14780_v63 = vld [vmem:[#allocation34_spill] sm:$0xff] }
0x1e22   :  { %v6944_v26 = vsel %vm518_vm1, %v14776_v19, %v9521_v10  ;;  %v6943_v44 = vsel %vm518_vm1, %v14777_v0, %v9520_v50  ;;  %v9556_v10 = vunpack.i.h.bf16 %v14076_v53  ;;  %v9555_v50 = vunpack.i.l.bf16 %v14076_v53  ;;  %v14787_v19 = vld [vmem:[#allocation28_spill] sm:$0xff] }
0x1e23   :  { %v9529_v24 = vpop.permute.xlu0 %9528  ;;  %v9564_v36 = vpop.permute.xlu1 %9563 }
0x1e24   :  { %v9531_v5 = vunpack.i.h.bf16 %v9529_v24  ;;  %v9530_v60 = vunpack.i.l.bf16 %v9529_v24  ;;  %v14783_v24 = vld [vmem:[#allocation33_spill] sm:$0xff] }
0x1e26   :  { %v6959_v42 = vsel %vm2996_vm3, %v6943_v44, %v9530_v60  ;;  %v6960_v38 = vsel %vm2996_vm3, %v6944_v26, %v9531_v5  ;;  %v14784_v5 = vld [vmem:[#allocation31_spill] sm:$0xff] }
0x1e27   :  { %v14072_v27 = vpop.permute.xlu0 %9538 }
0x1e2b   :  { %v14078_v34 = vpop.permute.xlu0 %9548 }
0x1e2c   :  { %v9551_v2 = vunpack.i.h.bf16 %v14078_v34  ;;  %v9550_v52 = vunpack.i.l.bf16 %v14078_v34 }
0x1e2f   :  { %v9559_v49 = vpop.permute.xlu0 %9558 }
0x1e85   :  { %v9214_v21 = vpop.f32.mrb[152].mxu1 }
0x1e86   :  { %v6631_v40 = vpop.f32.mrb[153].mxu1 }
0x1e87   :  { %v9215_v37 = vpop.f32.mrb[154].mxu1 }
0x1e88   :  { %v9567_v35 = vpack.i.bf16 %v9215_v37, %v9214_v21  ;;  %v6634_v7 = vpop.f32.mrb[155].mxu1  ;;  %v9565_v37 = vunpack.i.l.bf16 %v9564_v36 }
0x1e89   :  { %v9572_v9 = vpack.i.bf16 %v6634_v7, %v6631_v40  ;;  %v9566_v40 = vunpack.i.h.bf16 %v9564_v36  ;;  %v14785_v36 = vld [vmem:[#allocation29_spill] sm:$0xff] }
0x1e8a   :  { %9568 = vrot.lane.b32.xlu1 %v9567_v35, %s10432_s1 }
0x1e8b   :  { %9573 = vrot.lane.b32.xlu0 %v9572_v9, %s10432_s1  ;;  %v9561_v9 = vunpack.i.h.bf16 %v9559_v49 }
0x1e8e   :  { %9583 = vrot.lane.b32.xlu1 %v14769_v48, %s10429_s29  ;;  %v9560_v48 = vunpack.i.l.bf16 %v9559_v49 }
0x1e8f   :  { %9578 = vrot.lane.b32.xlu0 %v14770_v61, %s10429_s29 }
0x1e9e   :  { %v9218_v29 = vpop.f32.mrb[156].mxu1 }
0x1e9f   :  { %v6647_v13 = vpop.f32.mrb[157].mxu1 }
0x1ea0   :  { %v9219_v62 = vpop.f32.mrb[158].mxu1 }
0x1ea1   :  { %v9587_v18 = vpack.i.bf16 %v9219_v62, %v9218_v29  ;;  %v6650_v22 = vpop.f32.mrb[159].mxu1 }
0x1ea2   :  { %v9592_v51 = vpack.i.bf16 %v6650_v22, %v6647_v13 }
0x1ea3   :  { %9588 = vrot.lane.b32.xlu1 %v9587_v18, %s10432_s1 }
0x1ea4   :  { %9593 = vrot.lane.b32.xlu0 %v9592_v51, %s10432_s1 }
0x1ea7   :  { %9603 = vrot.lane.b32.xlu1 %v14771_v59, %s10417_s20 }
0x1ea8   :  { %9598 = vrot.lane.b32.xlu0 %v14772_v11, %s10417_s20 }
0x1ee2   :  { %v9230_v30 = vpop.f32.mrb[172].mxu0 }
0x1ee3   :  { %v6720_v17 = vpop.f32.mrb[173].mxu0 }
0x1ee4   :  { %v9231_v45 = vpop.f32.mrb[174].mxu0 }
0x1ee5   :  { %v9607_v12 = vpack.i.bf16 %v9231_v45, %v9230_v30  ;;  %v6723_v57 = vpop.f32.mrb[175].mxu0  ;;  %v6954_v30 = vsel %vm518_vm1, %v14780_v63, %v9566_v40 }
0x1ee6   :  { %v9612_v3 = vpack.i.bf16 %v6723_v57, %v6720_v17  ;;  %v14781_v17 = vld [vmem:[#allocation32_spill] sm:$0xff] }
0x1ee7   :  { %9608 = vrot.lane.b32.xlu1 %v9607_v12, %s10432_s1  ;;  %v6953_v45 = vsel %vm518_vm1, %v14781_v17, %v9565_v37 }
0x1ee8   :  { %9613 = vrot.lane.b32.xlu0 %v9612_v3, %s10432_s1  ;;  %v6952_v3 = vsel %vm518_vm1, %v14782_v23, %v9561_v9 }
0x1eea   :  { %v9234_v1 = vpop.f32.mrb[176].mxu0 }
0x1eeb   :  { %9623 = vrot.lane.b32.xlu1 %v14774_v33, %s10429_s29  ;;  %v6736_v56 = vpop.f32.mrb[177].mxu0 }
0x1eec   :  { %9618 = vrot.lane.b32.xlu0 %v14775_v14, %s10429_s29  ;;  %v9235_v41 = vpop.f32.mrb[178].mxu0 }
0x1eed   :  { %v9632_v8 = vpack.i.bf16 %v9235_v41, %v9234_v1  ;;  %v6739_v6 = vpop.f32.mrb[179].mxu0  ;;  %v6951_v1 = vsel %vm518_vm1, %v14783_v24, %v9560_v48  ;;  %v9541_v41 = vunpack.i.h.bf16 %v14072_v27 }
0x1eee   :  { %v9627_v31 = vpack.i.bf16 %v6739_v6, %v6736_v56  ;;  %v9546_v6 = vunpack.i.h.bf16 %v14066_v55 }
0x1eef   :  { %9633 = vrot.lane.b32.xlu1 %v9632_v8, %s10432_s1  ;;  %v9540_v8 = vunpack.i.l.bf16 %v14072_v27  ;;  %v6948_v60 = vsel %vm518_vm1, %v14784_v5, %v9541_v41  ;;  %v14786_v27 = vld [vmem:[#allocation30_spill] sm:$0xff]  ;;  %v14789_v41 = vld [vmem:[#allocation36_spill] sm:$0xff] }
0x1ef0   :  { %9628 = vrot.lane.b32.xlu0 %v9627_v31, %s10432_s1  ;;  %v9545_v31 = vunpack.i.l.bf16 %v14066_v55  ;;  %v6950_v49 = vsel %vm518_vm1, %v14786_v27, %v9546_v6  ;;  %v6964_v4 = vsel %vm2996_vm3, %v6948_v60, %v9551_v2 }
0x1ef1   :  { %v6947_v20 = vsel %vm518_vm1, %v14785_v36, %v9540_v8  ;;  %v6966_v34 = vsel %vm2996_vm3, %v6950_v49, %v9556_v10 }
0x1ef2   :  { %v6949_v55 = vsel %vm518_vm1, %v14787_v19, %v9545_v31  ;;  %v6963_v47 = vsel %vm2996_vm3, %v6947_v20, %v9550_v52  ;;  %v14791_v31 = vld [vmem:[#allocation37_spill] sm:$0xff] }
0x1ef3   :  { %v6965_v44 = vsel %vm2996_vm3, %v6949_v55, %v9555_v50 }
0x1efc   :  { %v9569_v32 = vpop.permute.xlu1 %9568 }
0x1efd   :  { %v9571_v15 = vunpack.i.h.bf16 %v9569_v32  ;;  %v9570_v43 = vunpack.i.l.bf16 %v9569_v32  ;;  %v9574_v21 = vpop.permute.xlu0 %9573 }
0x1efe   :  { %v9576_v35 = vunpack.i.h.bf16 %v9574_v21  ;;  %v9575_v7 = vunpack.i.l.bf16 %v9574_v21  ;;  %v7204_v21 = vpop.f32.mrb[180].mxu0 }
0x1eff   :  { %v6978_v61 = vsel %vm3013_vm5, %v6962_v28, %v9571_v15  ;;  %v6977_v29 = vsel %vm3013_vm5, %v6961_v46, %v9570_v43  ;;  %v9260_v37 = vpop.f32.mrb[181].mxu0 }
0x1f00   :  { %v6992_v13 = vpack.c.bf16 %v6978_v61, %v6977_v29  ;;  %v6975_v62 = vsel %vm3013_vm5, %v6959_v42, %v9575_v7  ;;  %v6976_v18 = vsel %vm3013_vm5, %v6960_v38, %v9576_v35  ;;  %v9584_v22 = vpop.permute.xlu1 %9583  ;;  %v7207_v35 = vpop.f32.mrb[182].mxu0 }
0x1f01   :  { %v6991_v51 = vpack.c.bf16 %v6976_v18, %v6975_v62  ;;  %v9586_v59 = vunpack.i.h.bf16 %v9584_v22  ;;  %v9585_v11 = vunpack.i.l.bf16 %v9584_v22  ;;  %v9579_v16 = vpop.permute.xlu0 %9578  ;;  %v9261_v7 = vpop.f32.mrb[183].mxu0  ;;  %v14796_v35 = vld [vmem:[#allocation7_spill] sm:$0xff] }
0x1f02   :  { %v9581_v12 = vunpack.i.h.bf16 %v9579_v16  ;;  %v9580_v57 = vunpack.i.l.bf16 %v9579_v16 }
0x1f03   :  { %v6970_v25 = vsel %vm2996_vm3, %v6954_v30, %v9586_v59  ;;  %v6969_v33 = vsel %vm2996_vm3, %v6953_v45, %v9585_v11  ;;  %9240 = vmatprep.mubr.msk.bf16.mxu1 %vm99_vm0, %v6991_v51 }
0x1f04   :  { %v6967_v56 = vsel %vm2996_vm3, %v6951_v1, %v9580_v57  ;;  %v6968_v14 = vsel %vm2996_vm3, %v6952_v3, %v9581_v12  ;;  %9241 = vmatmul.mubr.msk.bf16.vlgmr.msra.gmra.mrb[160].mxu1 %vm99_vm0, %v6992_v13 }
0x1f15   :  { %v9589_v54 = vpop.permute.xlu1 %9588 }
0x1f16   :  { %v9591_v26 = vunpack.i.h.bf16 %v9589_v54  ;;  %v9590_v0 = vunpack.i.l.bf16 %v9589_v54  ;;  %v9594_v53 = vpop.permute.xlu0 %9593 }
0x1f17   :  { %v9596_v58 = vunpack.i.h.bf16 %v9594_v53  ;;  %v9595_v39 = vunpack.i.l.bf16 %v9594_v53 }
0x1f18   :  { %v6982_v42 = vsel %vm3013_vm5, %v6966_v34, %v9591_v26  ;;  %v6981_v38 = vsel %vm3013_vm5, %v6965_v44, %v9590_v0  ;;  %v8213_v44 = vld [vmem:[%s14636_s8 + $0x18] ss:$0 sm:$0xff] }
0x1f19   :  { %v6994_v32 = vpack.c.bf16 %v6982_v42, %v6981_v38  ;;  %v6979_v46 = vsel %vm3013_vm5, %v6963_v47, %v9595_v39  ;;  %v6980_v28 = vsel %vm3013_vm5, %v6964_v4, %v9596_v58  ;;  %v9604_v43 = vpop.permute.xlu1 %9603  ;;  %v7205_v34 = vadd.f32 %v8213_v44, %v7204_v21  ;;  %v14792_v58 = vld [vmem:[#allocation8_spill] sm:$0xff]  ;;  %v14168_v4 = vld [vmem:[%s14636_s8 + $0x10] sm:$0xff]  ;;  %v14793_v42 = vld [vmem:[#allocation5_spill] sm:$0xff] }
0x1f1a   :  { %v6993_v15 = vpack.c.bf16 %v6980_v28, %v6979_v46  ;;  %v9599_v40 = vpop.permute.xlu0 %9598  ;;  %v9606_v18 = vunpack.i.h.bf16 %v9604_v43  ;;  %v9605_v59 = vunpack.i.l.bf16 %v9604_v43  ;;  %v14794_v38 = vsub.s32 3, %v14793_v42  ;;  %v14795_v28 = vld [vmem:[#allocation6_spill] sm:$0xff] }
0x1f1b   :  { %v9601_v17 = vunpack.i.h.bf16 %v9599_v40  ;;  %v9600_v45 = vunpack.i.l.bf16 %v9599_v40  ;;  %v7217_v39 = vrot.slane %v7205_v34, %v14792_v58 }
0x1f1c   :  { %9244 = vmatprep.mubr.msk.bf16.mxu1 %vm99_vm0, %v6993_v15  ;;  %v6957_v8 = vsel %vm518_vm1, %v14789_v41, %v9605_v59  ;;  %v14799_v59 = vld [vmem:[#allocation13_spill] sm:$0xff] }
0x1f1d   :  { %9245 = vmatmul.mubr.msk.bf16.gmra.mrb[164].mxu1 %vm99_vm0, %v6994_v32  ;;  %v6955_v10 = vsel %vm518_vm1, %v14791_v31, %v9600_v45  ;;  %v7225_v47 = vrot.slane %v7217_v39, %v14792_v58  ;;  %v14173_v32 = vrot.slane %v14168_v4, %v14794_v38  ;;  %v14804_v38 = vld [vmem:[#allocation15_spill] sm:$0xff] }
0x1f1f   :  { %v7236_v15 = vrot.slane %v7225_v47, %v14795_v28 }
0x1f59   :  { %v9609_v9 = vpop.permute.xlu1 %9608 }
0x1f5a   :  { %v9611_v48 = vunpack.i.h.bf16 %v9609_v9  ;;  %v9610_v61 = vunpack.i.l.bf16 %v9609_v9  ;;  %v9614_v29 = vpop.permute.xlu0 %9613 }
0x1f5b   :  { %v9616_v13 = vunpack.i.h.bf16 %v9614_v29  ;;  %v9615_v62 = vunpack.i.l.bf16 %v9614_v29 }
0x1f5c   :  { %v6986_v22 = vsel %vm3013_vm5, %v6970_v25, %v9611_v48  ;;  %v6985_v51 = vsel %vm3013_vm5, %v6969_v33, %v9610_v61  ;;  %v14788_v25 = vld [vmem:[#allocation38_spill] sm:$0xff]  ;;  %v14797_v61 = vld [vmem:[#allocation9_spill] sm:$0xff] }
0x1f5d   :  { %v6996_v11 = vpack.c.bf16 %v6986_v22, %v6985_v51  ;;  %v6983_v16 = vsel %vm3013_vm5, %v6967_v56, %v9615_v62  ;;  %v6984_v63 = vsel %vm3013_vm5, %v6968_v14, %v9616_v13  ;;  %v9624_v30 = vpop.permute.xlu1 %9623  ;;  %v6958_v33 = vsel %vm518_vm1, %v14788_v25, %v9606_v18  ;;  %v14790_v14 = vld [vmem:[#allocation39_spill] sm:$0xff]  ;;  %v14800_v25 = vld [vmem:[#allocation10_spill] sm:$0xff] }
0x1f5e   :  { %v6995_v12 = vpack.c.bf16 %v6984_v63, %v6983_v16  ;;  %v9619_v57 = vpop.permute.xlu0 %9618  ;;  %v9626_v23 = vunpack.i.h.bf16 %v9624_v30  ;;  %v9625_v3 = vunpack.i.l.bf16 %v9624_v30  ;;  %v6956_v6 = vsel %vm518_vm1, %v14790_v14, %v9601_v17  ;;  %v14798_v18 = vld [vmem:[#allocation11_spill] sm:$0xff] }
0x1f5f   :  { %v9621_v24 = vunpack.i.h.bf16 %v9619_v57  ;;  %v9620_v1 = vunpack.i.l.bf16 %v9619_v57 }
0x1f60   :  { %9248 = vmatprep.mubr.msk.bf16.mxu1 %vm99_vm0, %v6995_v12  ;;  %v6974_v5 = vsel %vm2996_vm3, %v6958_v33, %v9626_v23  ;;  %v6973_v60 = vsel %vm2996_vm3, %v6957_v8, %v9625_v3 }
0x1f61   :  { %v9634_v56 = vpop.permute.xlu1 %9633  ;;  %9249 = vmatmul.mubr.msk.bf16.gmra.mrb[168].mxu1 %vm99_vm0, %v6996_v11  ;;  %v6971_v54 = vsel %vm2996_vm3, %v6955_v10, %v9620_v1  ;;  %v6972_v27 = vsel %vm2996_vm3, %v6956_v6, %v9621_v24  ;;  %v14802_v10 = vld [vmem:[#allocation14_spill] sm:$0xff] }
0x1f62   :  { %v9636_v50 = vunpack.i.h.bf16 %v9634_v56  ;;  %v9635_v2 = vunpack.i.l.bf16 %v9634_v56  ;;  %v9629_v52 = vpop.permute.xlu0 %9628  ;;  %v14801_v56 = vld [vmem:[#allocation12_spill] sm:$0xff] }
0x1f63   :  { %v9631_v36 = vunpack.i.h.bf16 %v9629_v52  ;;  %v9630_v20 = vunpack.i.l.bf16 %v9629_v52  ;;  %v14803_v52 = vld [vmem:[#allocation16_spill] sm:$0xff] }
0x1f64   :  { %v6990_v49 = vsel %vm3013_vm5, %v6974_v5, %v9636_v50  ;;  %v6989_v19 = vsel %vm3013_vm5, %v6973_v60, %v9635_v2 }
0x1f65   :  { %v6998_v55 = vpack.c.bf16 %v6990_v49, %v6989_v19  ;;  %v6987_v26 = vsel %vm3013_vm5, %v6971_v54, %v9630_v20  ;;  %v6988_v0 = vsel %vm3013_vm5, %v6972_v27, %v9631_v36  ;;  %v7218_v19 = vcombine.high %v7217_v39, %v7217_v39 }
0x1f66   :  { %v6997_v53 = vpack.c.bf16 %v6988_v0, %v6987_v26 }
0x1f68   :  { %9252 = vmatprep.mubr.msk.bf16.mxu1 %vm99_vm0, %v6997_v53 }
0x1f69   :  { %9253 = vmatmul.mubr.msk.bf16.gmra.mrb[172].mxu1 %vm99_vm0, %v6998_v55  ;;  %v7232_v55 = vrot.slane %v7218_v19, %v14792_v58  ;;  %v14806_v58 = vld [vmem:[#allocation18_spill] sm:$0xff] }
0x1f6b   :  { %v7240_v47 = vrot.slane %v7232_v55, %v14795_v28 }
0x1fd7   :  { %v9242_v46 = vpop.f32.mrb[160].mxu1 }
0x1fd8   :  { %v7087_v43 = vadd.f32 %v9242_v46, %v14173_v32  ;;  %v7078_v21 = vpop.f32.mrb[161].mxu1 }
0x1fd9   :  { %v7079_v40 = vadd.f32 %v7078_v21, %v14173_v32  ;;  %v9243_v37 = vpop.f32.mrb[162].mxu1  ;;  %v14805_v21 = vld [vmem:[#allocation17_spill] sm:$0xff] }
0x1fda   :  { %v7143_v7 = vadd.f32 %v7087_v43, %v14796_v35  ;;  %v7090_v9 = vadd.f32 %v9243_v37, %v14173_v32  ;;  %v7081_v48 = vpop.f32.mrb[163].mxu1 }
0x1fdb   :  { %v7141_v29 = vadd.f32 %v7079_v40, %v14797_v61  ;;  %v7082_v13 = vadd.f32 %v7081_v48, %v14173_v32 }
0x1fdc   :  { %v14182_v62 = vadd.f32 %v7236_v15, %v7143_v7  ;;  %v7144_v22 = vadd.f32 %v7090_v9, %v14798_v18  ;;  %v14807_v9 = vld [vmem:[#allocation20_spill] sm:$0xff] }
0x1fdd   :  { %v14185_v51 = vadd.f32 %v7236_v15, %v7141_v29  ;;  %v7142_v11 = vadd.f32 %v7082_v13, %v14799_v59 }
0x1fde   :  { %v14188_v16 = vadd.f32 %v7236_v15, %v7144_v22  ;;  %v7265_v45 = vsel %vm99_vm0, %v14182_v62, 0.0 }
0x1fdf   :  { %v14190_v63 = vadd.f32 %v7236_v15, %v7142_v11  ;;  %v7259_v30 = vsel %vm99_vm0, %v14185_v51, 0.0 }
0x1fe0   :  { %7260 = vadd.xlane.f32.xlu0 %v7259_v30  ;;  %v7268_v12 = vsel %vm99_vm0, %v14188_v16, 0.0 }
0x1fe1   :  { %v7262_v17 = vsel %vm99_vm0, %v14190_v63, 0.0 }
0x1fe2   :  { %7263 = vadd.xlane.f32.xlu1 %v7262_v17  ;;  %v14808_v17 = vld [vmem:[#allocation19_spill] sm:$0xff] }
0x1fe4   :  { %7266 = vadd.xlane.f32.xlu0 %v7265_v45 }
0x1fe8   :  { %7269 = vadd.xlane.f32.xlu0 %v7268_v12 }
0x1ff0   :  { %v9246_v57 = vpop.f32.mrb[164].mxu1 }
0x1ff1   :  { %v7103_v23 = vadd.f32 %v9246_v57, %v14173_v32  ;;  %v7094_v3 = vpop.f32.mrb[165].mxu1 }
0x1ff2   :  { %v7095_v24 = vadd.f32 %v7094_v3, %v14173_v32  ;;  %v9247_v1 = vpop.f32.mrb[166].mxu1 }
0x1ff3   :  { %v7147_v33 = vadd.f32 %v7103_v23, %v14800_v25  ;;  %v7106_v41 = vadd.f32 %v9247_v1, %v14173_v32  ;;  %v7097_v8 = vpop.f32.mrb[167].mxu1  ;;  %v14809_v23 = vld [vmem:[#allocation21_spill] sm:$0xff] }
0x1ff4   :  { %v7145_v14 = vadd.f32 %v7095_v24, %v14801_v56  ;;  %v7098_v6 = vadd.f32 %v7097_v8, %v14173_v32  ;;  %v14811_v56 = vld [vmem:[#allocation22_spill] sm:$0xff] }
0x1ff5   :  { %v14206_v31 = vadd.f32 %v7236_v15, %v7147_v33  ;;  %v7148_v50 = vadd.f32 %v7106_v41, %v14802_v10  ;;  %v14810_v33 = vld [vmem:[#allocation23_spill] sm:$0xff] }
0x1ff6   :  { %v14209_v2 = vadd.f32 %v7236_v15, %v7145_v14  ;;  %v7146_v5 = vadd.f32 %v7098_v6, %v14803_v52 }
0x1ff7   :  { %v14212_v60 = vadd.f32 %v7236_v15, %v7148_v50  ;;  %v7277_v27 = vsel %vm99_vm0, %v14206_v31, 0.0 }
0x1ff8   :  { %v14214_v36 = vadd.f32 %v7236_v15, %v7146_v5  ;;  %v7271_v20 = vsel %vm99_vm0, %v14209_v2, 0.0 }
0x1ff9   :  { %7272 = vadd.xlane.f32.xlu0 %v7271_v20  ;;  %v7280_v49 = vsel %vm99_vm0, %v14212_v60, 0.0 }
0x1ffa   :  { %v7274_v54 = vsel %vm99_vm0, %v14214_v36, 0.0 }
0x1ffb   :  { %7275 = vadd.xlane.f32.xlu1 %v7274_v54 }
0x1ffd   :  { %7278 = vadd.xlane.f32.xlu0 %v7277_v27 }
0x1fff   :  { %7281 = vadd.xlane.f32.xlu1 %v7280_v49 }
0x2034   :  { %v9250_v26 = vpop.f32.mrb[168].mxu1 }
0x2035   :  { %v7119_v0 = vadd.f32 %v9250_v26, %v14173_v32  ;;  %v7110_v53 = vpop.f32.mrb[169].mxu1 }
0x2036   :  { %v7111_v44 = vadd.f32 %v7110_v53, %v14173_v32  ;;  %v9251_v34 = vpop.f32.mrb[170].mxu1 }
0x2037   :  { %v7151_v46 = vadd.f32 %v7119_v0, %v14804_v38  ;;  %v7122_v15 = vadd.f32 %v9251_v34, %v14173_v32  ;;  %v7113_v43 = vpop.f32.mrb[171].mxu1 }
0x2038   :  { %v7149_v40 = vadd.f32 %v7111_v44, %v14805_v21  ;;  %v7114_v39 = vadd.f32 %v7113_v43, %v14173_v32 }
0x2039   :  { %v14232_v37 = vadd.f32 %v7240_v47, %v7151_v46  ;;  %v7152_v35 = vadd.f32 %v7122_v15, %v14806_v58 }
0x203a   :  { %v14235_v7 = vadd.f32 %v7240_v47, %v7149_v40  ;;  %v7150_v48 = vadd.f32 %v7114_v39, %v14807_v9 }
0x203b   :  { %v14238_v61 = vadd.f32 %v7240_v47, %v7152_v35  ;;  %v7289_v1 = vsel %vm99_vm0, %v14232_v37, 0.0 }
0x203c   :  { %v14240_v28 = vadd.f32 %v7240_v47, %v7150_v48  ;;  %v9254_v29 = vpop.f32.mrb[172].mxu1  ;;  %v7283_v13 = vsel %vm99_vm0, %v14235_v7, 0.0 }
0x203d   :  { %v7135_v18 = vadd.f32 %v9254_v29, %v14173_v32  ;;  %v7126_v22 = vpop.f32.mrb[173].mxu1  ;;  %7284 = vadd.xlane.f32.xlu0 %v7283_v13  ;;  %v7292_v6 = vsel %vm99_vm0, %v14238_v61, 0.0 }
0x203e   :  { %v7127_v59 = vadd.f32 %v7126_v22, %v14173_v32  ;;  %v9255_v11 = vpop.f32.mrb[174].mxu1  ;;  %v7286_v30 = vsel %vm99_vm0, %v14240_v28, 0.0 }
0x203f   :  { %v7155_v45 = vadd.f32 %v7135_v18, %v14808_v17  ;;  %v7138_v12 = vadd.f32 %v9255_v11, %v14173_v32  ;;  %v7129_v57 = vpop.f32.mrb[175].mxu1  ;;  %7287 = vadd.xlane.f32.xlu1 %v7286_v30 }
0x2040   :  { %v7153_v3 = vadd.f32 %v7127_v59, %v14809_v23  ;;  %v7130_v24 = vadd.f32 %v7129_v57, %v14173_v32 }
0x2041   :  { %v14254_v25 = vadd.f32 %v7240_v47, %v7155_v45  ;;  %v7156_v41 = vadd.f32 %v7138_v12, %v14810_v33  ;;  %7290 = vadd.xlane.f32.xlu0 %v7289_v1 }
0x2042   :  { %v14257_v8 = vadd.f32 %v7240_v47, %v7153_v3  ;;  %v7154_v14 = vadd.f32 %v7130_v24, %v14811_v56 }
0x2043   :  { %v14262_v10 = vadd.f32 %v7240_v47, %v7156_v41  ;;  %7293 = vadd.xlane.f32.xlu1 %v7292_v6  ;;  %v7301_v5 = vsel %vm99_vm0, %v14254_v25, 0.0  ;;  %v9658_v6 = vld [vmem:[%s14633_s5 + $0x18] sm:$0xff]  }
0x2044   :  { %v14264_v50 = vadd.f32 %v7240_v47, %v7154_v14  ;;  %v7295_v32 = vsel %vm99_vm0, %v14257_v8, 0.0  ;;  %v9657_v14 = vld [vmem:[%s14633_s5 + $0x10] sm:$0xff]  }
0x2045   :  { %7296 = vadd.xlane.f32.xlu0 %v7295_v32  ;;  %v7304_v20 = vsel %vm99_vm0, %v14262_v10, 0.0  ;;  %9262 = vmatprep.subr.bf16.mxu0 %v9657_v14 }
0x2046   :  { %v7298_v52 = vsel %vm99_vm0, %v14264_v50, 0.0  ;;  %9263 = vmatpush3.bf16.msra.mxu0 %v9657_v14 }
0x2047   :  { %7299 = vadd.xlane.f32.xlu1 %v7298_v52  ;;  %9264 = vmatprep.subr.bf16.mxu0 %v9658_v6 }
0x2049   :  { %7302 = vadd.xlane.f32.xlu0 %v7301_v5 }
0x204a   :  { %9265 = vmatpush3.bf16.msra.mxu0 %v9658_v6 }
0x204b   :  { %7305 = vadd.xlane.f32.xlu1 %v7304_v20 }
0x206d   :  { %v7261_v54 = vpop.xlane.xlu0 %7260 }
0x206e   :  { %v7307_v27 = vmul.f32 0.03125, %v7261_v54 }
0x206f   :  { %v7264_v49 = vpop.xlane.xlu1 %7263 }
0x2070   :  { %v14275_v19 = vsub.f32 %v14185_v51, %v7307_v27  ;;  %v7308_v55 = vmul.f32 0.03125, %v7264_v49 }
0x2071   :  { %v7267_v26 = vpop.xlane.xlu0 %7266 }
0x2072   :  { %v14278_v0 = vsub.f32 %v14190_v63, %v7308_v55  ;;  %v7309_v53 = vmul.f32 0.03125, %v7267_v26  ;;  %v7339_v44 = vmul.f32 %v14275_v19, %v14275_v19 }
0x2074   :  { %v14283_v34 = vsub.f32 %v14182_v62, %v7309_v53  ;;  %v7355_v47 = vsel %vm99_vm0, %v7339_v44, 0.0  ;;  %v7340_v38 = vmul.f32 %v14278_v0, %v14278_v0 }
0x2075   :  { %7356 = vadd.xlane.f32.xlu0 %v7355_v47  ;;  %v7270_v46 = vpop.xlane.xlu0 %7269 }
0x2076   :  { %v7310_v15 = vmul.f32 0.03125, %v7270_v46  ;;  %v7358_v43 = vsel %vm99_vm0, %v7340_v38, 0.0  ;;  %v7341_v21 = vmul.f32 %v14283_v34, %v14283_v34 }
0x2077   :  { %7359 = vadd.xlane.f32.xlu1 %v7358_v43 }
0x2078   :  { %v14292_v40 = vsub.f32 %v14188_v16, %v7310_v15  ;;  %v7361_v39 = vsel %vm99_vm0, %v7341_v21, 0.0 }
0x2079   :  { %7362 = vadd.xlane.f32.xlu0 %v7361_v39 }
0x207a   :  { %v7342_v58 = vmul.f32 %v14292_v40, %v14292_v40 }
0x207c   :  { %v7364_v35 = vsel %vm99_vm0, %v7342_v58, 0.0 }
0x207d   :  { %7365 = vadd.xlane.f32.xlu1 %v7364_v35 }
0x2086   :  { %v7273_v9 = vpop.xlane.xlu0 %7272 }
0x2087   :  { %v7311_v48 = vmul.f32 0.03125, %v7273_v9 }
0x2088   :  { %v7276_v29 = vpop.xlane.xlu1 %7275 }
0x2089   :  { %v14299_v13 = vsub.f32 %v14209_v2, %v7311_v48  ;;  %v7312_v18 = vmul.f32 0.03125, %v7276_v29 }
0x208a   :  { %v7279_v22 = vpop.xlane.xlu0 %7278 }
0x208b   :  { %v14302_v59 = vsub.f32 %v14214_v36, %v7312_v18  ;;  %v7313_v11 = vmul.f32 0.03125, %v7279_v22  ;;  %v7343_v30 = vmul.f32 %v14299_v13, %v14299_v13 }
0x208c   :  { %v7282_v17 = vpop.xlane.xlu1 %7281 }
0x208d   :  { %v14307_v45 = vsub.f32 %v14206_v31, %v7313_v11  ;;  %v7314_v12 = vmul.f32 0.03125, %v7282_v17  ;;  %v7367_v57 = vsel %vm99_vm0, %v7343_v30, 0.0  ;;  %v7344_v23 = vmul.f32 %v14302_v59, %v14302_v59 }
0x208e   :  { %7368 = vadd.xlane.f32.xlu0 %v7367_v57 }
0x208f   :  { %v14313_v3 = vsub.f32 %v14212_v60, %v7314_v12  ;;  %v7370_v24 = vsel %vm99_vm0, %v7344_v23, 0.0  ;;  %v7345_v1 = vmul.f32 %v14307_v45, %v14307_v45 }
0x2090   :  { %7371 = vadd.xlane.f32.xlu1 %v7370_v24 }
0x2091   :  { %v7373_v33 = vsel %vm99_vm0, %v7345_v1, 0.0  ;;  %v7346_v41 = vmul.f32 %v14313_v3, %v14313_v3 }
0x2092   :  { %7374 = vadd.xlane.f32.xlu0 %v7373_v33 }
0x2093   :  { %v7376_v56 = vsel %vm99_vm0, %v7346_v41, 0.0 }
0x2094   :  { %7377 = vadd.xlane.f32.xlu1 %v7376_v56 }
0x20ca   :  { %v7285_v32 = vpop.xlane.xlu0 %7284 }
0x20cb   :  { %v7315_v52 = vmul.f32 0.03125, %v7285_v32 }
0x20cc   :  { %v7288_v5 = vpop.xlane.xlu1 %7287 }
0x20cd   :  { %v14329_v20 = vsub.f32 %v14235_v7, %v7315_v52  ;;  %v7316_v54 = vmul.f32 0.03125, %v7288_v5 }
0x20ce   :  { %v7291_v27 = vpop.xlane.xlu0 %7290 }
0x20cf   :  { %v14332_v49 = vsub.f32 %v14240_v28, %v7316_v54  ;;  %v7317_v55 = vmul.f32 0.03125, %v7291_v27  ;;  %v7347_v26 = vmul.f32 %v14329_v20, %v14329_v20 }
0x20d0   :  { %v7294_v53 = vpop.xlane.xlu1 %7293 }
0x20d1   :  { %v14337_v44 = vsub.f32 %v14232_v37, %v7317_v55  ;;  %v7318_v47 = vmul.f32 0.03125, %v7294_v53  ;;  %v7379_v38 = vsel %vm99_vm0, %v7347_v26, 0.0  ;;  %v7348_v46 = vmul.f32 %v14332_v49, %v14332_v49 }
0x20d2   :  { %7380 = vadd.xlane.f32.xlu0 %v7379_v38  ;;  %v7297_v15 = vpop.xlane.xlu0 %7296 }
0x20d3   :  { %v14343_v43 = vsub.f32 %v14238_v61, %v7318_v47  ;;  %v7319_v21 = vmul.f32 0.03125, %v7297_v15  ;;  %v7382_v39 = vsel %vm99_vm0, %v7348_v46, 0.0  ;;  %v7349_v58 = vmul.f32 %v14337_v44, %v14337_v44 }
0x20d4   :  { %v7300_v35 = vpop.xlane.xlu1 %7299  ;;  %7383 = vadd.xlane.f32.xlu1 %v7382_v39 }
0x20d5   :  { %v14349_v9 = vsub.f32 %v14257_v8, %v7319_v21  ;;  %v7320_v48 = vmul.f32 0.03125, %v7300_v35  ;;  %v7385_v29 = vsel %vm99_vm0, %v7349_v58, 0.0  ;;  %v7350_v18 = vmul.f32 %v14343_v43, %v14343_v43 }
0x20d6   :  { %7386 = vadd.xlane.f32.xlu0 %v7385_v29  ;;  %v7303_v22 = vpop.xlane.xlu0 %7302  ;;  %v14812_v58 = vsub.s32 4, %v14793_v42 }
0x20d7   :  { %v14355_v11 = vsub.f32 %v14264_v50, %v7320_v48  ;;  %v7321_v30 = vmul.f32 0.03125, %v7303_v22  ;;  %v7388_v17 = vsel %vm99_vm0, %v7350_v18, 0.0  ;;  %v7351_v12 = vmul.f32 %v14349_v9, %v14349_v9 }
0x20d8   :  { %v7306_v57 = vpop.xlane.xlu1 %7305  ;;  %7389 = vadd.xlane.f32.xlu1 %v7388_v17  ;;  %v14379_v35 = vrot.slane %v14168_v4, %v14812_v58  ;;  %v14813_v17 = vsub.s32 5, %v14793_v42 }
0x20d9   :  { %v14361_v23 = vsub.f32 %v14254_v25, %v7321_v30  ;;  %v7322_v24 = vmul.f32 0.03125, %v7306_v57  ;;  %v7391_v1 = vsel %vm99_vm0, %v7351_v12, 0.0  ;;  %v7352_v33 = vmul.f32 %v14355_v11, %v14355_v11 }
0x20da   :  { %7392 = vadd.xlane.f32.xlu0 %v7391_v1  ;;  %v14387_v12 = vrot.slane %v14168_v4, %v14813_v17 }
0x20db   :  { %v14367_v41 = vsub.f32 %v14262_v10, %v7322_v24  ;;  %v7394_v56 = vsel %vm99_vm0, %v7352_v33, 0.0  ;;  %v7353_v14 = vmul.f32 %v14361_v23, %v14361_v23 }
0x20dc   :  { %7395 = vadd.xlane.f32.xlu1 %v7394_v56 }
0x20dd   :  { %v7397_v6 = vsel %vm99_vm0, %v7353_v14, 0.0  ;;  %v7354_v32 = vmul.f32 %v14367_v41, %v14367_v41 }
0x20de   :  { %7398 = vadd.xlane.f32.xlu0 %v7397_v6 }
0x20df   :  { %v7400_v52 = vsel %vm99_vm0, %v7354_v32, 0.0 }
0x20e0   :  { %7401 = vadd.xlane.f32.xlu1 %v7400_v52 }
0x2102   :  { %v7357_v5 = vpop.xlane.xlu0 %7356 }
0x2103   :  { %v7403_v54 = vmul.f32 0.03125, %v7357_v5 }
0x2104   :  { %v7360_v27 = vpop.xlane.xlu1 %7359 }
0x2105   :  { %v7419_v55 = vadd.f32 1e-05, %v7403_v54  ;;  %v7404_v26 = vmul.f32 0.03125, %v7360_v27 }
0x2106   :  { %v7363_v53 = vpop.xlane.xlu0 %7362 }
0x2107   :  { %10307 = vrsqrt.f32 %v7419_v55  ;;  %v7420_v47 = vadd.f32 1e-05, %v7404_v26  ;;  %v7405_v38 = vmul.f32 0.03125, %v7363_v53 }
0x2109   :  { %10309 = vrsqrt.f32 %v7420_v47  ;;  %v7421_v46 = vadd.f32 1e-05, %v7405_v38 }
0x210a   :  { %v7366_v15 = vpop.xlane.xlu1 %7365 }
0x210b   :  { %10311 = vrsqrt.f32 %v7421_v46  ;;  %v7406_v21 = vmul.f32 0.03125, %v7366_v15 }
0x210d   :  { %v7422_v39 = vadd.f32 1e-05, %v7406_v21 }
0x210f   :  { %10313 = vrsqrt.f32 %v7422_v39 }
0x2111   :  { %v10308_v48 = vpop.eup %10307 }
0x2112   :  { %v7451_v29 = vmul.f32 %v10308_v48, %v14275_v19 }
0x2113   :  { %v10310_v18 = vpop.eup %10309 }
0x2114   :  { %v7452_v22 = vmul.f32 %v10310_v18, %v14278_v0  ;;  %v7471_v30 = vmul.f32 %v14379_v35, %v7451_v29 }
0x2115   :  { %v10312_v57 = vpop.eup %10311 }
0x2116   :  { %v7453_v24 = vmul.f32 %v10312_v57, %v14283_v34  ;;  %v7472_v1 = vmul.f32 %v14379_v35, %v7452_v22  ;;  %v7491_v33 = vadd.f32 %v14387_v12, %v7471_v30 }
0x2118   :  { %v7492_v56 = vadd.f32 %v14387_v12, %v7472_v1  ;;  %v7473_v14 = vmul.f32 %v14379_v35, %v7453_v24 }
0x2119   :  { %v10314_v19 = vpop.eup %10313 }
0x211a   :  { %v7454_v0 = vmul.f32 %v10314_v19, %v14292_v40  ;;  %v7507_v6 = vpack.c.bf16 %v7492_v56, %v7491_v33  ;;  %v7493_v55 = vadd.f32 %v14387_v12, %v7473_v14 }
0x211b   :  { %v7369_v32 = vpop.xlane.xlu0 %7368 }
0x211c   :  { %v7474_v52 = vmul.f32 %v14379_v35, %v7454_v0  ;;  %v7407_v5 = vmul.f32 0.03125, %v7369_v32  ;;  %9266 = vmatprep.mubr.msk.bf16.mxu0 %vm99_vm0, %v7507_v6 }
0x211d   :  { %v7372_v54 = vpop.xlane.xlu1 %7371 }
0x211e   :  { %v7423_v34 = vadd.f32 1e-05, %v7407_v5  ;;  %v7408_v27 = vmul.f32 0.03125, %v7372_v54  ;;  %v7494_v26 = vadd.f32 %v14387_v12, %v7474_v52 }
0x211f   :  { %v7375_v53 = vpop.xlane.xlu0 %7374 }
0x2120   :  { %10315 = vrsqrt.f32 %v7423_v34  ;;  %v7424_v47 = vadd.f32 1e-05, %v7408_v27  ;;  %v7409_v38 = vmul.f32 0.03125, %v7375_v53  ;;  %v7508_v46 = vpack.c.bf16 %v7494_v26, %v7493_v55 }
0x2121   :  { %v7378_v40 = vpop.xlane.xlu1 %7377 }
0x2122   :  { %10317 = vrsqrt.f32 %v7424_v47  ;;  %v7425_v15 = vadd.f32 1e-05, %v7409_v38  ;;  %v7410_v21 = vmul.f32 0.03125, %v7378_v40  ;;  %9267 = vmatmul.mubr.msk.bf16.vlgmr.msra.gmra.mrb[184].mxu0 %vm99_vm0, %v7508_v46 }
0x2124   :  { %10319 = vrsqrt.f32 %v7425_v15  ;;  %v7426_v39 = vadd.f32 1e-05, %v7410_v21 }
0x2126   :  { %10321 = vrsqrt.f32 %v7426_v39 }
0x212a   :  { %v10316_v58 = vpop.eup %10315 }
0x212b   :  { %v7455_v48 = vmul.f32 %v10316_v58, %v14299_v13 }
0x212c   :  { %v10318_v29 = vpop.eup %10317 }
0x212d   :  { %v7456_v18 = vmul.f32 %v10318_v29, %v14302_v59  ;;  %v7475_v22 = vmul.f32 %v14379_v35, %v7455_v48 }
0x212e   :  { %v10320_v30 = vpop.eup %10319 }
0x212f   :  { %v7457_v17 = vmul.f32 %v10320_v30, %v14307_v45  ;;  %v7476_v57 = vmul.f32 %v14379_v35, %v7456_v18  ;;  %v7495_v33 = vadd.f32 %v14387_v12, %v7475_v22 }
0x2130   :  { %v10322_v24 = vpop.eup %10321 }
0x2131   :  { %v7458_v1 = vmul.f32 %v10322_v24, %v14313_v3  ;;  %v7496_v56 = vadd.f32 %v14387_v12, %v7476_v57  ;;  %v7477_v19 = vmul.f32 %v14379_v35, %v7457_v17 }
0x2133   :  { %v7509_v13 = vpack.c.bf16 %v7496_v56, %v7495_v33  ;;  %v7478_v14 = vmul.f32 %v14379_v35, %v7458_v1  ;;  %v7497_v59 = vadd.f32 %v14387_v12, %v7477_v19 }
0x2135   :  { %9270 = vmatprep.mubr.msk.bf16.mxu0 %vm99_vm0, %v7509_v13  ;;  %v7498_v45 = vadd.f32 %v14387_v12, %v7478_v14 }
0x2137   :  { %v7510_v0 = vpack.c.bf16 %v7498_v45, %v7497_v59 }
0x2139   :  { %9271 = vmatmul.mubr.msk.bf16.gmra.mrb[188].mxu0 %vm99_vm0, %v7510_v0 }
0x215f   :  { %v7381_v6 = vpop.xlane.xlu0 %7380 }
0x2160   :  { %v7411_v3 = vmul.f32 0.03125, %v7381_v6 }
0x2161   :  { %v7384_v32 = vpop.xlane.xlu1 %7383 }
0x2162   :  { %v7427_v52 = vadd.f32 1e-05, %v7411_v3  ;;  %v7412_v5 = vmul.f32 0.03125, %v7384_v32 }
0x2163   :  { %v7387_v54 = vpop.xlane.xlu0 %7386 }
0x2164   :  { %10323 = vrsqrt.f32 %v7427_v52  ;;  %v7428_v34 = vadd.f32 1e-05, %v7412_v5  ;;  %v7413_v27 = vmul.f32 0.03125, %v7387_v54 }
0x2165   :  { %v7390_v55 = vpop.xlane.xlu1 %7389 }
0x2166   :  { %10325 = vrsqrt.f32 %v7428_v34  ;;  %v7429_v26 = vadd.f32 1e-05, %v7413_v27  ;;  %v7414_v53 = vmul.f32 0.03125, %v7390_v55  ;;  %v9659_v34 = vld [vmem:[%s14634_s6 + $0x40] sm:$0xff]  }
0x2167   :  { %v7393_v47 = vpop.xlane.xlu0 %7392  ;;  %9282 = vmatprep.subr.bf16.mxu1 %v9659_v34 }
0x2168   :  { %10327 = vrsqrt.f32 %v7429_v26  ;;  %v7430_v38 = vadd.f32 1e-05, %v7414_v53  ;;  %v7415_v46 = vmul.f32 0.03125, %v7393_v47  ;;  %9283 = vmatpush3.bf16.msra.mxu1 %v9659_v34 }
0x2169   :  { %v7396_v40 = vpop.xlane.xlu1 %7395 }
0x216a   :  { %10329 = vrsqrt.f32 %v7430_v38  ;;  %v7431_v15 = vadd.f32 1e-05, %v7415_v46  ;;  %v7416_v21 = vmul.f32 0.03125, %v7396_v40 }
0x216b   :  { %v7399_v39 = vpop.xlane.xlu0 %7398 }
0x216c   :  { %10331 = vrsqrt.f32 %v7431_v15  ;;  %v7432_v58 = vadd.f32 1e-05, %v7416_v21  ;;  %v7417_v48 = vmul.f32 0.03125, %v7399_v39  ;;  %v9661_v39 = vld [vmem:[%s14634_s6 + $0x50] sm:$0xff]  }
0x216d   :  { %v7402_v29 = vpop.xlane.xlu1 %7401 }
0x216e   :  { %v10324_v18 = vpop.eup %10323  ;;  %10333 = vrsqrt.f32 %v7432_v58  ;;  %v7433_v22 = vadd.f32 1e-05, %v7417_v48  ;;  %v7418_v30 = vmul.f32 0.03125, %v7402_v29  ;;  %v9663_v48 = vld [vmem:[%s14634_s6 + $0x60] sm:$0xff]   ;;  %v9665_v29 = vld [vmem:[%s14634_s6 + $0x70] sm:$0xff]  }
0x216f   :  { %v7459_v17 = vmul.f32 %v10324_v18, %v14329_v20  ;;  %v9666_v18 = vld [vmem:[%s14634_s6 + $0x78] sm:$0xff]  }
0x2170   :  { %v10326_v57 = vpop.eup %10325  ;;  %10335 = vrsqrt.f32 %v7433_v22  ;;  %v7434_v24 = vadd.f32 1e-05, %v7418_v30  ;;  %v14814_v22 = vsub.s32 6, %v14793_v42 }
0x2171   :  { %v7460_v1 = vmul.f32 %v10326_v57, %v14332_v49  ;;  %v7479_v33 = vmul.f32 %v14379_v35, %v7459_v17 }
0x2172   :  { %v10328_v56 = vpop.eup %10327  ;;  %10337 = vrsqrt.f32 %v7434_v24  ;;  %v14469_v30 = vrot.slane %v14168_v4, %v14814_v22 }
0x2173   :  { %v7461_v19 = vmul.f32 %v10328_v56, %v14337_v44  ;;  %v7480_v13 = vmul.f32 %v14379_v35, %v7460_v1  ;;  %v7499_v45 = vadd.f32 %v14387_v12, %v7479_v33 }
0x2174   :  { %v10330_v14 = vpop.eup %10329 }
0x2175   :  { %v7462_v59 = vmul.f32 %v10330_v14, %v14343_v43  ;;  %v7500_v20 = vadd.f32 %v14387_v12, %v7480_v13  ;;  %v7481_v0 = vmul.f32 %v14379_v35, %v7461_v19 }
0x2176   :  { %v10332_v6 = vpop.eup %10331 }
0x2177   :  { %v7463_v49 = vmul.f32 %v10332_v6, %v14349_v9  ;;  %v7511_v3 = vpack.c.bf16 %v7500_v20, %v7499_v45  ;;  %v7482_v32 = vmul.f32 %v14379_v35, %v7462_v59  ;;  %v7501_v5 = vadd.f32 %v14387_v12, %v7481_v0 }
0x2178   :  { %v10334_v52 = vpop.eup %10333 }
0x2179   :  { %v7464_v44 = vmul.f32 %v10334_v52, %v14355_v11  ;;  %9274 = vmatprep.mubr.msk.bf16.mxu0 %vm99_vm0, %v7511_v3  ;;  %v7502_v43 = vadd.f32 %v14387_v12, %v7482_v32  ;;  %v7483_v54 = vmul.f32 %v14379_v35, %v7463_v49 }
0x217a   :  { %v10336_v27 = vpop.eup %10335 }
0x217b   :  { %v7465_v9 = vmul.f32 %v10336_v27, %v14361_v23  ;;  %v7512_v55 = vpack.c.bf16 %v7502_v43, %v7501_v5  ;;  %v7484_v26 = vmul.f32 %v14379_v35, %v7464_v44  ;;  %v7503_v47 = vadd.f32 %v14387_v12, %v7483_v54  ;;  %v9660_v23 = vld [vmem:[%s14634_s6 + $0x48] sm:$0xff]  }
0x217c   :  { %v10338_v11 = vpop.eup %10337  ;;  %9284 = vmatprep.subr.bf16.mxu1 %v9660_v23 }
0x217d   :  { %v7466_v53 = vmul.f32 %v10338_v11, %v14367_v41  ;;  %9275 = vmatmul.mubr.msk.bf16.gmra.mrb[192].mxu0 %vm99_vm0, %v7512_v55  ;;  %v7504_v38 = vadd.f32 %v14387_v12, %v7484_v26  ;;  %v7485_v46 = vmul.f32 %v14379_v35, %v7465_v9  ;;  %9285 = vmatpush3.bf16.msra.mxu1 %v9660_v23 }
0x217e   :  { %9286 = vmatprep.subr.bf16.mxu1 %v9661_v39 }
0x217f   :  { %v7513_v40 = vpack.c.bf16 %v7504_v38, %v7503_v47  ;;  %v7486_v15 = vmul.f32 %v14379_v35, %v7466_v53  ;;  %v7505_v41 = vadd.f32 %v14387_v12, %v7485_v46  ;;  %v9662_v35 = vld [vmem:[%s14634_s6 + $0x58] sm:$0xff]  }
0x2181   :  { %9278 = vmatprep.mubr.msk.bf16.mxu0 %vm99_vm0, %v7513_v40  ;;  %v7506_v21 = vadd.f32 %v14387_v12, %v7486_v15  ;;  %9287 = vmatpush3.bf16.msra.mxu1 %v9661_v39  ;;  %v9664_v12 = vld [vmem:[%s14634_s6 + $0x68] sm:$0xff]  }
0x2182   :  { %9288 = vmatprep.subr.bf16.mxu1 %v9662_v35 }
0x2183   :  { %v7514_v58 = vpack.c.bf16 %v7506_v21, %v7505_v41 }
0x2185   :  { %9279 = vmatmul.mubr.msk.bf16.gmra.mrb[196].mxu0 %vm99_vm0, %v7514_v58  ;;  %9289 = vmatpush3.bf16.msra.mxu1 %v9662_v35 }
0x2186   :  { %9290 = vmatprep.subr.bf16.mxu1 %v9663_v48 }
0x2189   :  { %9291 = vmatpush3.bf16.msra.mxu1 %v9663_v48 }
0x218a   :  { %9292 = vmatprep.subr.bf16.mxu1 %v9664_v12 }
0x218d   :  { %9293 = vmatpush3.bf16.msra.mxu1 %v9664_v12 }
0x218e   :  { %9294 = vmatprep.subr.bf16.mxu1 %v9665_v29 }
0x2191   :  { %9295 = vmatpush3.bf16.msra.mxu1 %v9665_v29 }
0x2192   :  { %9296 = vmatprep.subr.bf16.mxu1 %v9666_v18 }
0x2195   :  { %9297 = vmatpush3.bf16.msra.mxu1 %v9666_v18 }
0x21f5   :  { %v9268_v17 = vpop.f32.mrb[184].mxu0 }
0x21f6   :  { %v7603_v57 = vadd.f32 %v9268_v17, %v14469_v30  ;;  %v7594_v24 = vpop.f32.mrb[185].mxu0 }
0x21f7   :  { %v7595_v1 = vadd.f32 %v7594_v24, %v14469_v30  ;;  %v9269_v33 = vpop.f32.mrb[186].mxu0 }
0x21f8   :  { %v7659_v56 = vmul.f32 %v7603_v57, %v7603_v57  ;;  %v7606_v19 = vadd.f32 %v9269_v33, %v14469_v30  ;;  %v7597_v13 = vpop.f32.mrb[187].mxu0 }
0x21f9   :  { %v7657_v14 = vmul.f32 %v7595_v1, %v7595_v1  ;;  %v7598_v59 = vadd.f32 %v7597_v13, %v14469_v30 }
0x21fa   :  { %v7675_v45 = vmul.f32 %v7659_v56, %v7603_v57  ;;  %v7660_v20 = vmul.f32 %v7606_v19, %v7606_v19 }
0x21fb   :  { %v7673_v0 = vmul.f32 %v7657_v14, %v7595_v1  ;;  %v7658_v6 = vmul.f32 %v7598_v59, %v7598_v59 }
0x21fc   :  { %v7691_v4 = vmul.f32 0.044715, %v7675_v45  ;;  %v7676_v49 = vmul.f32 %v7660_v20, %v7606_v19 }
0x21fd   :  { %v7689_v3 = vmul.f32 0.044715, %v7673_v0  ;;  %v7674_v32 = vmul.f32 %v7658_v6, %v7598_v59 }
0x21fe   :  { %v7707_v52 = vadd.f32 %v7691_v4, %v7603_v57  ;;  %v7692_v44 = vmul.f32 0.044715, %v7676_v49 }
0x21ff   :  { %v7705_v5 = vadd.f32 %v7689_v3, %v7595_v1  ;;  %v7690_v43 = vmul.f32 0.044715, %v7674_v32 }
0x2200   :  { %v7723_v54 = vmul.f32 0.7978846, %v7707_v52  ;;  %v7708_v34 = vadd.f32 %v7692_v44, %v7606_v19 }
0x2201   :  { %v7721_v27 = vmul.f32 0.7978846, %v7705_v5  ;;  %v7706_v9 = vadd.f32 %v7690_v43, %v7598_v59 }
0x2202   :  { %10339 = vtanh.f32 %v7723_v54  ;;  %v7724_v55 = vmul.f32 0.7978846, %v7708_v34 }
0x2203   :  { %10341 = vtanh.f32 %v7721_v27  ;;  %v7722_v26 = vmul.f32 0.7978846, %v7706_v9 }
0x2204   :  { %10343 = vtanh.f32 %v7724_v55 }
0x2205   :  { %10345 = vtanh.f32 %v7722_v26 }
0x220c   :  { %v10340_v11 = vpop.eup %10339  ;;  %v9272_v53 = vpop.f32.mrb[188].mxu0 }
0x220d   :  { %v10342_v47 = vpop.eup %10341  ;;  %v7755_v38 = vadd.f32 1.0, %v10340_v11  ;;  %v7619_v46 = vadd.f32 %v9272_v53, %v14469_v30  ;;  %v7610_v23 = vpop.f32.mrb[189].mxu0 }
0x220e   :  { %v10344_v40 = vpop.eup %10343  ;;  %v7611_v15 = vadd.f32 %v7610_v23, %v14469_v30  ;;  %v9273_v41 = vpop.f32.mrb[190].mxu0  ;;  %v7753_v21 = vadd.f32 1.0, %v10342_v47 }
0x220f   :  { %v10346_v39 = vpop.eup %10345  ;;  %v7771_v58 = vmul.f32 0.5, %v7755_v38  ;;  %v7756_v35 = vadd.f32 1.0, %v10344_v40  ;;  %v7663_v48 = vmul.f32 %v7619_v46, %v7619_v46  ;;  %v7622_v12 = vadd.f32 %v9273_v41, %v14469_v30  ;;  %v7613_v29 = vpop.f32.mrb[191].mxu0 }
0x2210   :  { %v7661_v18 = vmul.f32 %v7611_v15, %v7611_v15  ;;  %v7614_v22 = vadd.f32 %v7613_v29, %v14469_v30  ;;  %v7754_v17 = vadd.f32 1.0, %v10346_v39  ;;  %v7769_v24 = vmul.f32 0.5, %v7753_v21 }
0x2211   :  { %v7772_v33 = vmul.f32 0.5, %v7756_v35  ;;  %v7679_v56 = vmul.f32 %v7663_v48, %v7619_v46  ;;  %v7664_v13 = vmul.f32 %v7622_v12, %v7622_v12  ;;  %v7787_v0 = vmul.f32 %v7771_v58, %v7603_v57 }
0x2212   :  { %v7677_v14 = vmul.f32 %v7661_v18, %v7611_v15  ;;  %v7662_v45 = vmul.f32 %v7614_v22, %v7614_v22  ;;  %v7770_v20 = vmul.f32 0.5, %v7754_v17  ;;  %v7785_v52 = vmul.f32 %v7769_v24, %v7595_v1 }
0x2213   :  { %v7788_v6 = vmul.f32 %v7772_v33, %v7606_v19  ;;  %v7695_v4 = vmul.f32 0.044715, %v7679_v56  ;;  %v7680_v49 = vmul.f32 %v7664_v13, %v7622_v12 }
0x2214   :  { %v7693_v3 = vmul.f32 0.044715, %v7677_v14  ;;  %v7678_v32 = vmul.f32 %v7662_v45, %v7614_v22  ;;  %v7786_v44 = vmul.f32 %v7770_v20, %v7598_v59 }
0x2215   :  { %v7802_v5 = vpack.c.bf16 %v7788_v6, %v7787_v0  ;;  %v7711_v43 = vadd.f32 %v7695_v4, %v7619_v46  ;;  %v7696_v54 = vmul.f32 0.044715, %v7680_v49 }
0x2216   :  { %v7709_v34 = vadd.f32 %v7693_v3, %v7611_v15  ;;  %v7694_v27 = vmul.f32 0.044715, %v7678_v32  ;;  %v7801_v9 = vpack.c.bf16 %v7786_v44, %v7785_v52 }
0x2217   :  { %v7727_v55 = vmul.f32 0.7978846, %v7711_v43  ;;  %v7712_v26 = vadd.f32 %v7696_v54, %v7622_v12 }
0x2218   :  { %v7725_v11 = vmul.f32 0.7978846, %v7709_v34  ;;  %v7710_v53 = vadd.f32 %v7694_v27, %v7614_v22  ;;  %9298 = vmatprep.mubr.bf16.mxu1 %v7801_v9 }
0x2219   :  { %10347 = vtanh.f32 %v7727_v55  ;;  %v7728_v57 = vmul.f32 0.7978846, %v7712_v26  ;;  %9299 = vmatmul.mubr.bf16.vlgmr.msra.gmra.mrb[176].mxu1 %v7802_v5 }
0x221a   :  { %10349 = vtanh.f32 %v7725_v11  ;;  %v7726_v19 = vmul.f32 0.7978846, %v7710_v53 }
0x221b   :  { %10351 = vtanh.f32 %v7728_v57 }
0x221c   :  { %10353 = vtanh.f32 %v7726_v19 }
0x2223   :  { %v10348_v1 = vpop.eup %10347 }
0x2224   :  { %v10350_v59 = vpop.eup %10349  ;;  %v7759_v47 = vadd.f32 1.0, %v10348_v1 }
0x2225   :  { %v10352_v38 = vpop.eup %10351  ;;  %v7757_v23 = vadd.f32 1.0, %v10350_v59 }
0x2226   :  { %v10354_v40 = vpop.eup %10353  ;;  %v7760_v41 = vadd.f32 1.0, %v10352_v38  ;;  %v7775_v21 = vmul.f32 0.5, %v7759_v47 }
0x2227   :  { %v7758_v39 = vadd.f32 1.0, %v10354_v40  ;;  %v7773_v58 = vmul.f32 0.5, %v7757_v23 }
0x2228   :  { %v7776_v35 = vmul.f32 0.5, %v7760_v41  ;;  %v7791_v29 = vmul.f32 %v7775_v21, %v7619_v46 }
0x2229   :  { %v7774_v48 = vmul.f32 0.5, %v7758_v39  ;;  %v7789_v17 = vmul.f32 %v7773_v58, %v7611_v15 }
0x222a   :  { %v7792_v18 = vmul.f32 %v7776_v35, %v7622_v12 }
0x222b   :  { %v7790_v24 = vmul.f32 %v7774_v48, %v7614_v22 }
0x222c   :  { %v7804_v33 = vpack.c.bf16 %v7792_v18, %v7791_v29 }
0x222d   :  { %v7803_v56 = vpack.c.bf16 %v7790_v24, %v7789_v17 }
0x222f   :  { %9302 = vmatprep.mubr.bf16.mxu1 %v7803_v56 }
0x2230   :  { %9303 = vmatmul.mubr.bf16.gmra.mrb[180].mxu1 %v7804_v33 }
0x2250   :  { %v9276_v13 = vpop.f32.mrb[192].mxu0 }
0x2251   :  { %v14480_v14 = vadd.f32 %v9276_v13, %v14469_v30  ;;  %v7626_v45 = vpop.f32.mrb[193].mxu0 }
0x2252   :  { %v14483_v20 = vadd.f32 %v7626_v45, %v14469_v30  ;;  %v9277_v0 = vpop.f32.mrb[194].mxu0 }
0x2253   :  { %v7667_v6 = vmul.f32 %v14480_v14, %v14480_v14  ;;  %v14488_v46 = vadd.f32 %v9277_v0, %v14469_v30  ;;  %v7629_v15 = vpop.f32.mrb[195].mxu0 }
0x2254   :  { %v7665_v12 = vmul.f32 %v14483_v20, %v14483_v20  ;;  %v14493_v22 = vadd.f32 %v7629_v15, %v14469_v30 }
0x2255   :  { %v7683_v4 = vmul.f32 %v7667_v6, %v14480_v14  ;;  %v7668_v49 = vmul.f32 %v14488_v46, %v14488_v46 }
0x2256   :  { %v7681_v3 = vmul.f32 %v7665_v12, %v14483_v20  ;;  %v7666_v32 = vmul.f32 %v14493_v22, %v14493_v22 }
0x2257   :  { %v7699_v52 = vmul.f32 0.044715, %v7683_v4  ;;  %v7684_v44 = vmul.f32 %v7668_v49, %v14488_v46 }
0x2258   :  { %v7697_v5 = vmul.f32 0.044715, %v7681_v3  ;;  %v7682_v43 = vmul.f32 %v7666_v32, %v14493_v22  ;;  %v9280_v54 = vpop.f32.mrb[196].mxu0 }
0x2259   :  { %v7715_v34 = vadd.f32 %v7699_v52, %v14480_v14  ;;  %v7700_v27 = vmul.f32 0.044715, %v7684_v44  ;;  %v14505_v9 = vadd.f32 %v9280_v54, %v14469_v30  ;;  %v7642_v55 = vpop.f32.mrb[197].mxu0 }
0x225a   :  { %v7713_v26 = vadd.f32 %v7697_v5, %v14483_v20  ;;  %v7698_v11 = vmul.f32 0.044715, %v7682_v43  ;;  %v14509_v53 = vadd.f32 %v7642_v55, %v14469_v30  ;;  %v9281_v57 = vpop.f32.mrb[198].mxu0 }
0x225b   :  { %v7731_v19 = vmul.f32 0.7978846, %v7715_v34  ;;  %v7716_v1 = vadd.f32 %v7700_v27, %v14488_v46  ;;  %v7671_v59 = vmul.f32 %v14505_v9, %v14505_v9  ;;  %v14515_v47 = vadd.f32 %v9281_v57, %v14469_v30  ;;  %v7645_v38 = vpop.f32.mrb[199].mxu0 }
0x225c   :  { %v7729_v23 = vmul.f32 0.7978846, %v7713_v26  ;;  %v7714_v40 = vadd.f32 %v7698_v11, %v14493_v22  ;;  %v7669_v41 = vmul.f32 %v14509_v53, %v14509_v53  ;;  %v14521_v21 = vadd.f32 %v7645_v38, %v14469_v30 }
0x225d   :  { %10355 = vtanh.f32 %v7731_v19  ;;  %v7732_v39 = vmul.f32 0.7978846, %v7716_v1  ;;  %v7687_v58 = vmul.f32 %v7671_v59, %v14505_v9  ;;  %v7672_v35 = vmul.f32 %v14515_v47, %v14515_v47 }
0x225e   :  { %10357 = vtanh.f32 %v7729_v23  ;;  %v7730_v48 = vmul.f32 0.7978846, %v7714_v40  ;;  %v7685_v29 = vmul.f32 %v7669_v41, %v14509_v53  ;;  %v7670_v18 = vmul.f32 %v14521_v21, %v14521_v21 }
0x225f   :  { %10359 = vtanh.f32 %v7732_v39  ;;  %v7703_v17 = vmul.f32 0.044715, %v7687_v58  ;;  %v7688_v24 = vmul.f32 %v7672_v35, %v14515_v47 }
0x2260   :  { %10361 = vtanh.f32 %v7730_v48  ;;  %v7701_v30 = vmul.f32 0.044715, %v7685_v29  ;;  %v7686_v33 = vmul.f32 %v7670_v18, %v14521_v21 }
0x2261   :  { %v7719_v56 = vadd.f32 %v7703_v17, %v14505_v9  ;;  %v7704_v13 = vmul.f32 0.044715, %v7688_v24 }
0x2262   :  { %v7717_v45 = vadd.f32 %v7701_v30, %v14509_v53  ;;  %v7702_v0 = vmul.f32 0.044715, %v7686_v33 }
0x2263   :  { %v7735_v6 = vmul.f32 0.7978846, %v7719_v56  ;;  %v7720_v15 = vadd.f32 %v7704_v13, %v14515_v47 }
0x2264   :  { %v7733_v12 = vmul.f32 0.7978846, %v7717_v45  ;;  %v7718_v4 = vadd.f32 %v7702_v0, %v14521_v21  ;;  %v10390_v0 = vld [vmem:[%s14636_s8 + $0x10] sm:$0xff] }
0x2265   :  { %10363 = vtanh.f32 %v7735_v6  ;;  %v7736_v49 = vmul.f32 0.7978846, %v7720_v15  ;;  %v14815_v6 = vsub.s32 7, %v14793_v42 }
0x2266   :  { %10365 = vtanh.f32 %v7733_v12  ;;  %v7734_v3 = vmul.f32 0.7978846, %v7718_v4 }
0x2267   :  { %v10356_v32 = vpop.eup %10355  ;;  %10367 = vtanh.f32 %v7736_v49  ;;  %v7829_v15 = vrot.slane %v10390_v0, %v14815_v6 }
0x2268   :  { %v10358_v52 = vpop.eup %10357  ;;  %10369 = vtanh.f32 %v7734_v3  ;;  %v7763_v44 = vadd.f32 1.0, %v10356_v32 }
0x2269   :  { %v10360_v5 = vpop.eup %10359  ;;  %v7761_v43 = vadd.f32 1.0, %v10358_v52 }
0x226a   :  { %v10362_v54 = vpop.eup %10361  ;;  %v7764_v34 = vadd.f32 1.0, %v10360_v5  ;;  %v7779_v27 = vmul.f32 0.5, %v7763_v44 }
0x226b   :  { %v7762_v55 = vadd.f32 1.0, %v10362_v54  ;;  %v7777_v26 = vmul.f32 0.5, %v7761_v43 }
0x226c   :  { %v7780_v11 = vmul.f32 0.5, %v7764_v34  ;;  %v7795_v19 = vmul.f32 %v7779_v27, %v14480_v14 }
0x226d   :  { %v7778_v57 = vmul.f32 0.5, %v7762_v55  ;;  %v7793_v38 = vmul.f32 %v7777_v26, %v14483_v20 }
0x226e   :  { %v7796_v1 = vmul.f32 %v7780_v11, %v14488_v46 }
0x226f   :  { %v10364_v59 = vpop.eup %10363  ;;  %v7794_v23 = vmul.f32 %v7778_v57, %v14493_v22 }
0x2270   :  { %v10366_v40 = vpop.eup %10365  ;;  %v7806_v41 = vpack.c.bf16 %v7796_v1, %v7795_v19  ;;  %v7767_v39 = vadd.f32 1.0, %v10364_v59 }
0x2271   :  { %v10368_v58 = vpop.eup %10367  ;;  %v7805_v35 = vpack.c.bf16 %v7794_v23, %v7793_v38  ;;  %v7765_v48 = vadd.f32 1.0, %v10366_v40 }
0x2272   :  { %v10370_v29 = vpop.eup %10369  ;;  %v7768_v18 = vadd.f32 1.0, %v10368_v58  ;;  %v7783_v17 = vmul.f32 0.5, %v7767_v39 }
0x2273   :  { %9306 = vmatprep.mubr.bf16.mxu1 %v7805_v35  ;;  %v7766_v24 = vadd.f32 1.0, %v10370_v29  ;;  %v7781_v30 = vmul.f32 0.5, %v7765_v48 }
0x2274   :  { %9307 = vmatmul.mubr.bf16.gmra.mrb[184].mxu1 %v7806_v41  ;;  %v7784_v14 = vmul.f32 0.5, %v7768_v18  ;;  %v7799_v33 = vmul.f32 %v7783_v17, %v14505_v9 }
0x2275   :  { %v7782_v46 = vmul.f32 0.5, %v7766_v24  ;;  %v7797_v22 = vmul.f32 %v7781_v30, %v14509_v53 }
0x2276   :  { %v7800_v20 = vmul.f32 %v7784_v14, %v14515_v47 }
0x2277   :  { %v7798_v56 = vmul.f32 %v7782_v46, %v14521_v21 }
0x2278   :  { %v7808_v13 = vpack.c.bf16 %v7800_v20, %v7799_v33 }
0x2279   :  { %v7807_v45 = vpack.c.bf16 %v7798_v56, %v7797_v22 }
0x227b   :  { %9310 = vmatprep.mubr.bf16.mxu1 %v7807_v45 }
0x227c   :  { %9311 = vmatmul.mubr.bf16.gmra.mrb[188].mxu1 %v7808_v13 }
0x22ec   :  { %v9300_v12 = vpop.f32.mrb[176].mxu1 }
0x22ed   :  { %v7921_v4 = vadd.f32 %v9300_v12, %v7829_v15  ;;  %v7912_v9 = vpop.f32.mrb[177].mxu1 }
0x22ee   :  { %v7913_v49 = vadd.f32 %v7912_v9, %v7829_v15  ;;  %v9301_v47 = vpop.f32.mrb[178].mxu1 }
0x22ef   :  { %v7977_v53 = vadd.f32 %v7921_v4, %v14182_v62  ;;  %v7924_v3 = vadd.f32 %v9301_v47, %v7829_v15  ;;  %v7915_v21 = vpop.f32.mrb[179].mxu1 }
0x22f0   :  { %v7975_v32 = vadd.f32 %v7913_v49, %v14185_v51  ;;  %v7916_v52 = vadd.f32 %v7915_v21, %v7829_v15 }
0x22f1   :  { %7993 = vst.msk [vmem:[%s14637_s9 + $0x10] sm:$0xff] %vm99_vm0, %v7977_v53  ;;  %v7978_v42 = vadd.f32 %v7924_v3, %v14188_v16 }
0x22f2   :  { %7991 = vst.msk [vmem:[%s14637_s9] sm:$0xff] %vm99_vm0, %v7975_v32  ;;  %v7976_v44 = vadd.f32 %v7916_v52, %v14190_v63 }
0x22f3   :  { %7994 = vst.msk [vmem:[%s14637_s9 + $0x18] sm:$0xff] %vm99_vm0, %v7978_v42 }
0x22f4   :  { %7992 = vst.msk [vmem:[%s14637_s9 + $0x8] sm:$0xff] %vm99_vm0, %v7976_v44 }
0x2303   :  { %v9304_v62 = vpop.f32.mrb[180].mxu1 }
0x2304   :  { %v7937_v51 = vadd.f32 %v9304_v62, %v7829_v15  ;;  %v7928_v16 = vpop.f32.mrb[181].mxu1 }
0x2305   :  { %v7929_v5 = vadd.f32 %v7928_v16, %v7829_v15  ;;  %v9305_v43 = vpop.f32.mrb[182].mxu1 }
0x2306   :  { %v7981_v54 = vadd.f32 %v7937_v51, %v14206_v31  ;;  %v7940_v34 = vadd.f32 %v9305_v43, %v7829_v15  ;;  %v7931_v27 = vpop.f32.mrb[183].mxu1 }
0x2307   :  { %v7979_v63 = vadd.f32 %v7929_v5, %v14209_v2  ;;  %v7932_v55 = vadd.f32 %v7931_v27, %v7829_v15 }
0x2308   :  { %7997 = vst.msk [vmem:[%s14637_s9 + $0x30] sm:$0xff] %vm99_vm0, %v7981_v54  ;;  %v7982_v26 = vadd.f32 %v7940_v34, %v14212_v60 }
0x2309   :  { %7995 = vst.msk [vmem:[%s14637_s9 + $0x20] sm:$0xff] %vm99_vm0, %v7979_v63  ;;  %v7980_v11 = vadd.f32 %v7932_v55, %v14214_v36 }
0x230a   :  { %7998 = vst.msk [vmem:[%s14637_s9 + $0x38] sm:$0xff] %vm99_vm0, %v7982_v26 }
0x230b   :  { %7996 = vst.msk [vmem:[%s14637_s9 + $0x28] sm:$0xff] %vm99_vm0, %v7980_v11 }
0x2347   :  { %v9308_v31 = vpop.f32.mrb[184].mxu1 }
0x2348   :  { %v7953_v2 = vadd.f32 %v9308_v31, %v7829_v15  ;;  %v7944_v60 = vpop.f32.mrb[185].mxu1 }
0x2349   :  { %v7945_v57 = vadd.f32 %v7944_v60, %v7829_v15  ;;  %v9309_v19 = vpop.f32.mrb[186].mxu1 }
0x234a   :  { %v7985_v1 = vadd.f32 %v7953_v2, %v14232_v37  ;;  %v7956_v59 = vadd.f32 %v9309_v19, %v7829_v15  ;;  %v7947_v38 = vpop.f32.mrb[187].mxu1 }
0x234b   :  { %v7983_v36 = vadd.f32 %v7945_v57, %v14235_v7  ;;  %v7948_v23 = vadd.f32 %v7947_v38, %v7829_v15 }
0x234c   :  { %8001 = vst.msk [vmem:[%s14637_s9 + $0x50] sm:$0xff] %vm99_vm0, %v7985_v1  ;;  %v7986_v40 = vadd.f32 %v7956_v59, %v14238_v61 }
0x234d   :  { %7999 = vst.msk [vmem:[%s14637_s9 + $0x40] sm:$0xff] %vm99_vm0, %v7983_v36  ;;  %v7984_v41 = vadd.f32 %v7948_v23, %v14240_v28 }
0x234e   :  { %8002 = vst.msk [vmem:[%s14637_s9 + $0x58] sm:$0xff] %vm99_vm0, %v7986_v40 }
0x234f   :  { %8000 = vst.msk [vmem:[%s14637_s9 + $0x48] sm:$0xff] %vm99_vm0, %v7984_v41  ;;  %v9312_v37 = vpop.f32.mrb[188].mxu1 }
0x2350   :  { %v7969_v7 = vadd.f32 %v9312_v37, %v7829_v15  ;;  %v7960_v61 = vpop.f32.mrb[189].mxu1 }
0x2351   :  { %v7961_v39 = vadd.f32 %v7960_v61, %v7829_v15  ;;  %v9313_v58 = vpop.f32.mrb[190].mxu1 }
0x2352   :  { %v7989_v35 = vadd.f32 %v7969_v7, %v14254_v25  ;;  %v7972_v48 = vadd.f32 %v9313_v58, %v7829_v15  ;;  %v7963_v29 = vpop.f32.mrb[191].mxu1 }
0x2353   :  { %v7987_v28 = vadd.f32 %v7961_v39, %v14257_v8  ;;  %v7964_v18 = vadd.f32 %v7963_v29, %v7829_v15 }
0x2354   :  { %8005 = vst.msk [vmem:[%s14637_s9 + $0x70] sm:$0xff] %vm99_vm0, %v7989_v35  ;;  %v7990_v17 = vadd.f32 %v7972_v48, %v14262_v10 }
0x2355   :  { %8003 = vst.msk [vmem:[%s14637_s9 + $0x60] sm:$0xff] %vm99_vm0, %v7987_v28  ;;  %v7988_v24 = vadd.f32 %v7964_v18, %v14264_v50 }
0x2356   :  { %8006 = vst.msk [vmem:[%s14637_s9 + $0x78] sm:$0xff] %vm99_vm0, %v7990_v17 }
0x2357   :  { %8004 = vst.msk [vmem:[%s14637_s9 + $0x68] sm:$0xff] %vm99_vm0, %v7988_v24 }
0x2358   :  { %8011 = vsyncpa [#allocation3], 1 }

</bundles_post_ra>
